<compile_context>
chip_gen: v6e
topology: v6e:2x2x1
jax: 0.10.0
libtpu: 0.0.40
codegen_flags: <defaults>
</compile_context>

<pallas_src>
import jax
import jax.numpy as jnp
from jax.experimental import pallas as pl
from jax.experimental.pallas import tpu as pltpu

EPS = 1e-5


# ---------------------------------------------------------------------------
# Fused kernel: conv1/bn1/relu -> conv2/bn2/relu -> conv3/bn3 -> max over
# points -> fc1/bn4/relu -> fc2/bn5/relu -> dropout(eval=id) -> fc3.
# x tile is channel-major (C, tn): points on the 128-lane axis, channels on
# sublanes, so no wrapper transpose of the (B, C, N) input is needed.
# ---------------------------------------------------------------------------
def _pointnet_kernel(x_ref, w1, b1, w2, b2, w3, b3, w4, b4, w5, b5, w6, b6,
                     o_ref):
    t = pl.program_id(1)

    # Output block index is constant over t, so o_ref is VMEM-resident across
    # the point-tile reduction: use it directly as the running-max accumulator.
    @pl.when(t == 0)
    def _():
        o_ref[...] = jnp.full(o_ref.shape, -jnp.inf, o_ref.dtype)

    # ---- pointwise conv stack (BN folded), bf16 on the MXU, f32 accumulate --
    x = x_ref[0].astype(jnp.bfloat16)                              # (C, tn)
    h = jnp.dot(w1[...], x, preferred_element_type=jnp.float32) + b1[...]
    h = jnp.maximum(h, 0.0).astype(jnp.bfloat16)                   # (64, tn)
    h = jnp.dot(w2[...], h, preferred_element_type=jnp.float32) + b2[...]
    h = jnp.maximum(h, 0.0).astype(jnp.bfloat16)                   # (128, tn)
    h = jnp.dot(w3[...], h, preferred_element_type=jnp.float32) + b3[...]
    # h: (k, tn) f32, no ReLU (matches conv3 -> bn3 -> max in PyTorch)

    # ---- global max pool over this point tile, accumulate ------------------
    o_ref[0] = jnp.maximum(o_ref[0], jnp.max(h, axis=1, keepdims=True))

    # ---- FC head, once per batch element, on the last point tile -----------
    @pl.when(t == pl.num_programs(1) - 1)
    def _():
        pooled = o_ref[0]                                          # (k, 1) f32
        g = jnp.maximum(
            jnp.dot(w4[...], pooled, preferred_element_type=jnp.float32)
            + b4[...], 0.0)                                        # (512, 1)
        g = jnp.maximum(
            jnp.dot(w5[...], g, preferred_element_type=jnp.float32)
            + b5[...], 0.0)                                        # (256, 1)
        # Dropout(p=0.3) is identity in eval mode.
        o_ref[0] = (
            jnp.dot(w6[...], g, preferred_element_type=jnp.float32) + b6[...]
        )                                                          # (k, 1)


def pointnet_forward(x, p, tn=None):
    B, C, N = x.shape
    if tn is None:
        tn = N                    # single reduction step per batch element
    assert N % tn == 0 and tn % 128 == 0, \
        "point tile must divide N and be lane aligned"
    k = p["w6"].shape[0]

    names = ("w1", "b1", "w2", "b2", "w3", "b3",
             "w4", "b4", "w5", "b5", "w6", "b6")
    consts = [p[n] for n in names]

    def const_spec(a):            # weights stay resident (constant index map)
        return pl.BlockSpec(a.shape, lambda b, t: (0, 0))

    out = pl.pallas_call(
        _pointnet_kernel,
        out_shape=jax.ShapeDtypeStruct((B, k, 1), jnp.float32),
        grid=(B, N // tn),
        in_specs=[pl.BlockSpec((1, C, tn), lambda b, t: (b, 0, t))]
        + [const_spec(a) for a in consts],
        out_specs=pl.BlockSpec((1, k, 1), lambda b, t: (b, 0, 0)),
        compiler_params=pltpu.CompilerParams(
            dimension_semantics=("parallel", "arbitrary")),
        # NOTE: at tn ~> 4096 (f32 intermediates) on v5e, add
        #   vmem_limit_bytes=... here; current sizes use only a few MiB.
    )(x, *consts)
    return out.reshape(B, k)      # drop trailing singleton


# ---------------------------------------------------------------------------
# Deterministic parameter init (PyTorch-like raw params) + BN folding
# ---------------------------------------------------------------------------
def init_params(key, k=256):
    def linear(kk, fan_in, fan_out):
        k1, k2 = jax.random.split(kk)
        bound = 1.0 / jnp.sqrt(jnp.float32(fan_in))
        w = jax.random.uniform(k1, (fan_out, fan_in), jnp.float32, -bound, bound)
        b = jax.random.uniform(k2, (fan_out,), jnp.float32, -bound, bound)
        return w, b

    def bn(kk, c):
        kg, kb, km, kv = jax.random.split(kk, 4)
        gamma = jax.random.uniform(kg, (c,), jnp.float32, 0.5, 1.5)
        beta = jax.random.uniform(kb, (c,), jnp.float32, -0.1, 0.1)
        mean = 0.1 * jax.random.normal(km, (c,), jnp.float32)
        var = jax.random.uniform(kv, (c,), jnp.float32, 0.5, 1.5)
        return gamma, beta, mean, var

    keys = jax.random.split(key, 11)
    return dict(
        conv1=linear(keys[0], 6, 64),
        conv2=linear(keys[1], 64, 128),
        conv3=linear(keys[2], 128, k),
        fc1=linear(keys[3], k, 512),
        fc2=linear(keys[4], 512, 256),
        fc3=linear(keys[5], 256, k),
        bn1=bn(keys[6], 64),
        bn2=bn(keys[7], 128),
        bn3=bn(keys[8], k),
        bn4=bn(keys[9], 512),
        bn5=bn(keys[10], 256),
    )


def fold_params(raw):
    """Fold eval-mode BatchNorm into the preceding conv/fc weights & biases."""
    def fold(wb, bnp):
        w, b = wb                             # w: (out, in), b: (out,)
        g, beta, m, v = bnp
        s = g / jnp.sqrt(v + EPS)
        return w * s[:, None], b * s + (beta - m * s)

    w1, b1 = fold(raw["conv1"], raw["bn1"])
    w2, b2 = fold(raw["conv2"], raw["bn2"])
    w3, b3 = fold(raw["conv3"], raw["bn3"])
    w4, b4 = fold(raw["fc1"], raw["bn4"])
    w5, b5 = fold(raw["fc2"], raw["bn5"])
    w6, b6 = raw["fc3"]

    p = {}
    # Conv-stack weights feed the MXU in bf16 (native MXU dtype on all gens);
    # biases stay f32 and are added after the f32-accumulated matmul.
    p["w1"], p["b1"] = w1.astype(jnp.bfloat16), b1[:, None]
    p["w2"], p["b2"] = w2.astype(jnp.bfloat16), b2[:, None]
    p["w3"], p["b3"] = w3.astype(jnp.bfloat16), b3[:, None]
    # FC head: column-major (out, in) layout, kept f32 (only ~1.25 MiB resident
    # in VMEM, M/N = 1 matmuls -> not throughput relevant; keeps numeric margin).
    p["w4"], p["b4"] = w4, b4[:, None]
    p["w5"], p["b5"] = w5, b5[:, None]
    p["w6"], p["b6"] = w6, b6[:, None]
    return p


# ---------------------------------------------------------------------------
# Pure-JAX reference (unfolded, explicit eval-mode BN) for correctness check
# ---------------------------------------------------------------------------
def ref_forward(x, raw):
    def bn_c(h, bnp):                         # h: (B, C, N)
        g, b, m, v = bnp
        s = g / jnp.sqrt(v + EPS)
        return (h - m[None, :, None]) * s[None, :, None] + b[None, :, None]

    def bn_f(h, bnp):                         # h: (B, C)
        g, b, m, v = bnp
        s = g / jnp.sqrt(v + EPS)
        return (h - m[None, :]) * s[None, :] + b[None, :]

    def conv(h, wb):                          # pointwise Conv1d
        w, b = wb
        return jnp.einsum("oc,bcn->bon", w, h) + b[None, :, None]

    def fc(h, wb):
        w, b = wb
        return h @ w.T + b[None, :]

    h = jax.nn.relu(bn_c(conv(x, raw["conv1"]), raw["bn1"]))
    h = jax.nn.relu(bn_c(conv(h, raw["conv2"]), raw["bn2"]))
    h = bn_c(conv(h, raw["conv3"]), raw["bn3"])
    h = jnp.max(h, axis=2)
    h = jax.nn.relu(bn_f(fc(h, raw["fc1"]), raw["bn4"]))
    h = jax.nn.relu(bn_f(fc(h, raw["fc2"]), raw["bn5"]))
    # dropout: identity in eval mode
    return fc(h, raw["fc3"])


if __name__ == "__main__":
    key = jax.random.PRNGKey(0)
    kx, kp = jax.random.split(key)

    B, C, N = 2, 6, 2048          # small batch, 6 input channels (fixed by module)
    K_FEAT = 256                  # PointNet(k=256)

    x = jax.random.normal(kx, (B, C, N), jnp.float32)
    raw = init_params(kp, k=K_FEAT)
    params = fold_params(raw)

    out = jax.jit(pointnet_forward)(x, params)
    out = jax.block_until_ready(out)

    ref = ref_forward(x, raw)
    assert out.shape == (B, K_FEAT), out.shape
    assert jnp.allclose(out, ref, rtol=2e-2, atol=2e-2), float(
        jnp.max(jnp.abs(out - ref)))

    print("KERNEL_OK")
</pallas_src>

<mosaic_0001>
module attributes {stable_mosaic.version = 11 : i64} {
  func.func @_pointnet_kernel(%arg0: i32, %arg1: i32, %arg2: memref<1x6x2048xf32, #tpu.memory_space<vmem>>, %arg3: memref<64x6xbf16, #tpu.memory_space<vmem>>, %arg4: memref<64x1xf32, #tpu.memory_space<vmem>>, %arg5: memref<128x64xbf16, #tpu.memory_space<vmem>>, %arg6: memref<128x1xf32, #tpu.memory_space<vmem>>, %arg7: memref<256x128xbf16, #tpu.memory_space<vmem>>, %arg8: memref<256x1xf32, #tpu.memory_space<vmem>>, %arg9: memref<512x256xf32, #tpu.memory_space<vmem>>, %arg10: memref<512x1xf32, #tpu.memory_space<vmem>>, %arg11: memref<256x512xf32, #tpu.memory_space<vmem>>, %arg12: memref<256x1xf32, #tpu.memory_space<vmem>>, %arg13: memref<256x256xf32, #tpu.memory_space<vmem>>, %arg14: memref<256x1xf32, #tpu.memory_space<vmem>>, %arg15: memref<1x256x1xf32, #tpu.memory_space<vmem>>) attributes {dimension_semantics = [#tpu.dimension_semantics<parallel>, #tpu.dimension_semantics<arbitrary>], iteration_bounds = array<i64: 2, 1>, scalar_prefetch = 0 : i64, scratch_operands = 0 : i64, tpu.core_type = #tpu.core_type<tc>, window_params = [{transform_indices = @transform_0, window_bounds = array<i64: 1, 6, 2048>}, {pipeline_mode = #tpu.pipeline_mode<synchronous>, transform_indices = @transform_1, window_bounds = array<i64: 64, 6>}, {pipeline_mode = #tpu.pipeline_mode<synchronous>, transform_indices = @transform_2, window_bounds = array<i64: 64, 1>}, {pipeline_mode = #tpu.pipeline_mode<synchronous>, transform_indices = @transform_3, window_bounds = array<i64: 128, 64>}, {pipeline_mode = #tpu.pipeline_mode<synchronous>, transform_indices = @transform_4, window_bounds = array<i64: 128, 1>}, {pipeline_mode = #tpu.pipeline_mode<synchronous>, transform_indices = @transform_5, window_bounds = array<i64: 256, 128>}, {pipeline_mode = #tpu.pipeline_mode<synchronous>, transform_indices = @transform_6, window_bounds = array<i64: 256, 1>}, {pipeline_mode = #tpu.pipeline_mode<synchronous>, transform_indices = @transform_7, window_bounds = array<i64: 512, 256>}, {pipeline_mode = #tpu.pipeline_mode<synchronous>, transform_indices = @transform_8, window_bounds = array<i64: 512, 1>}, {pipeline_mode = #tpu.pipeline_mode<synchronous>, transform_indices = @transform_9, window_bounds = array<i64: 256, 512>}, {pipeline_mode = #tpu.pipeline_mode<synchronous>, transform_indices = @transform_10, window_bounds = array<i64: 256, 1>}, {pipeline_mode = #tpu.pipeline_mode<synchronous>, transform_indices = @transform_11, window_bounds = array<i64: 256, 256>}, {pipeline_mode = #tpu.pipeline_mode<synchronous>, transform_indices = @transform_12, window_bounds = array<i64: 256, 1>}, {transform_indices = @transform_13, window_bounds = array<i64: 1, 256, 1>}]} {
    %c0_i32 = arith.constant 0 : i32
    %0 = arith.cmpi eq, %arg1, %c0_i32 : i32
    %1 = arith.extui %0 : i1 to i32
    %c0_i32_0 = arith.constant 0 : i32
    %2 = arith.cmpi ne, %1, %c0_i32_0 : i32
    scf.if %2 {
      %cst_28 = arith.constant 0xFF800000 : f32
      %38 = vector.broadcast %cst_28 : f32 to vector<1x256x1xf32>
      %c0_29 = arith.constant 0 : index
      %c0_30 = arith.constant 0 : index
      %c0_31 = arith.constant 0 : index
      %39 = vector.load %arg15[%c0_29, %c0_30, %c0_31] : memref<1x256x1xf32, #tpu.memory_space<vmem>>, vector<1x256x1xf32>
      tpu.vector_store %arg15[%c0_29, %c0_30, %c0_31], %38 {strides = array<i32>} : memref<1x256x1xf32, #tpu.memory_space<vmem>>, vector<1x256x1xf32>,
    } else {
    }
    %c0 = arith.constant 0 : index
    %c0_1 = arith.constant 0 : index
    %c0_2 = arith.constant 0 : index
    %3 = vector.load %arg2[%c0, %c0_1, %c0_2] : memref<1x6x2048xf32, #tpu.memory_space<vmem>>, vector<1x6x2048xf32>
    %4 = vector.shape_cast %3 : vector<1x6x2048xf32> to vector<6x2048xf32>
    %5 = arith.truncf %4 : vector<6x2048xf32> to vector<6x2048xbf16>
    %c0_3 = arith.constant 0 : index
    %c0_4 = arith.constant 0 : index
    %6 = vector.load %arg3[%c0_3, %c0_4] : memref<64x6xbf16, #tpu.memory_space<vmem>>, vector<64x6xbf16>
    %cst = arith.constant dense<0.000000e+00> : vector<64x2048xf32>
    %7 = tpu.matmul %6, %5, %cst {dimension_numbers = #tpu.dot_dimension_numbers<[1], [0], [0], [1], [0, 0, 1, 1], [], []>} : vector<64x6xbf16>, vector<6x2048xbf16>, vector<64x2048xf32> -> vector<64x2048xf32>
    %c0_5 = arith.constant 0 : index
    %c0_6 = arith.constant 0 : index
    %8 = vector.load %arg4[%c0_5, %c0_6] : memref<64x1xf32, #tpu.memory_space<vmem>>, vector<64x1xf32>
    %9 = vector.broadcast %8 : vector<64x1xf32> to vector<64x2048xf32>
    %10 = arith.addf %7, %9 : vector<64x2048xf32>
    %cst_7 = arith.constant 0.000000e+00 : f32
    %11 = vector.broadcast %cst_7 : f32 to vector<64x2048xf32>
    %12 = arith.maximumf %10, %11 : vector<64x2048xf32>
    %13 = arith.truncf %12 : vector<64x2048xf32> to vector<64x2048xbf16>
    %c0_8 = arith.constant 0 : index
    %c0_9 = arith.constant 0 : index
    %14 = vector.load %arg5[%c0_8, %c0_9] : memref<128x64xbf16, #tpu.memory_space<vmem>>, vector<128x64xbf16>
    %cst_10 = arith.constant dense<0.000000e+00> : vector<128x2048xf32>
    %15 = tpu.matmul %14, %13, %cst_10 {dimension_numbers = #tpu.dot_dimension_numbers<[1], [0], [0], [1], [0, 0, 1, 1], [], []>} : vector<128x64xbf16>, vector<64x2048xbf16>, vector<128x2048xf32> -> vector<128x2048xf32>
    %c0_11 = arith.constant 0 : index
    %c0_12 = arith.constant 0 : index
    %16 = vector.load %arg6[%c0_11, %c0_12] : memref<128x1xf32, #tpu.memory_space<vmem>>, vector<128x1xf32>
    %17 = vector.broadcast %16 : vector<128x1xf32> to vector<128x2048xf32>
    %18 = arith.addf %15, %17 : vector<128x2048xf32>
    %cst_13 = arith.constant 0.000000e+00 : f32
    %19 = vector.broadcast %cst_13 : f32 to vector<128x2048xf32>
    %20 = arith.maximumf %18, %19 : vector<128x2048xf32>
    %21 = arith.truncf %20 : vector<128x2048xf32> to vector<128x2048xbf16>
    %c0_14 = arith.constant 0 : index
    %c0_15 = arith.constant 0 : index
    %22 = vector.load %arg7[%c0_14, %c0_15] : memref<256x128xbf16, #tpu.memory_space<vmem>>, vector<256x128xbf16>
    %cst_16 = arith.constant dense<0.000000e+00> : vector<256x2048xf32>
    %23 = tpu.matmul %22, %21, %cst_16 {dimension_numbers = #tpu.dot_dimension_numbers<[1], [0], [0], [1], [0, 0, 1, 1], [], []>} : vector<256x128xbf16>, vector<128x2048xbf16>, vector<256x2048xf32> -> vector<256x2048xf32>
    %c0_17 = arith.constant 0 : index
    %c0_18 = arith.constant 0 : index
    %24 = vector.load %arg8[%c0_17, %c0_18] : memref<256x1xf32, #tpu.memory_space<vmem>>, vector<256x1xf32>
    %25 = vector.broadcast %24 : vector<256x1xf32> to vector<256x2048xf32>
    %26 = arith.addf %23, %25 : vector<256x2048xf32>
    %c0_19 = arith.constant 0 : index
    %c0_20 = arith.constant 0 : index
    %c0_21 = arith.constant 0 : index
    %27 = vector.load %arg15[%c0_19, %c0_20, %c0_21] : memref<1x256x1xf32, #tpu.memory_space<vmem>>, vector<1x256x1xf32>
    %28 = vector.shape_cast %27 : vector<1x256x1xf32> to vector<256x1xf32>
    %cst_22 = arith.constant dense<0xFF800000> : vector<256xf32>
    %29 = vector.multi_reduction <maximumf>, %26, %cst_22 [1] : vector<256x2048xf32> to vector<256xf32>
    %30 = vector.shape_cast %29 : vector<256xf32> to vector<256x1xf32>
    %31 = arith.maximumf %28, %30 : vector<256x1xf32>
    %c0_23 = arith.constant 0 : index
    %c0_24 = arith.constant 0 : index
    %c0_25 = arith.constant 0 : index
    %32 = vector.load %arg15[%c0_23, %c0_24, %c0_25] : memref<1x256x1xf32, #tpu.memory_space<vmem>>, vector<1x256x1xf32>
    %33 = vector.shape_cast %32 : vector<1x256x1xf32> to vector<256x1xf32>
    %34 = vector.shape_cast %31 : vector<256x1xf32> to vector<1x256x1xf32>
    tpu.vector_store %arg15[%c0_23, %c0_24, %c0_25], %34 {strides = array<i32>} : memref<1x256x1xf32, #tpu.memory_space<vmem>>, vector<1x256x1xf32>,
    %c0_i32_26 = arith.constant 0 : i32
    %35 = arith.cmpi eq, %arg1, %c0_i32_26 : i32
    %36 = arith.extui %35 : i1 to i32
    %c0_i32_27 = arith.constant 0 : i32
    %37 = arith.cmpi ne, %36, %c0_i32_27 : i32
    scf.if %37 {
      %c0_28 = arith.constant 0 : index
      %c0_29 = arith.constant 0 : index
      %c0_30 = arith.constant 0 : index
      %38 = vector.load %arg15[%c0_28, %c0_29, %c0_30] : memref<1x256x1xf32, #tpu.memory_space<vmem>>, vector<1x256x1xf32>
      %39 = vector.shape_cast %38 : vector<1x256x1xf32> to vector<256x1xf32>
      %c0_31 = arith.constant 0 : index
      %c0_32 = arith.constant 0 : index
      %40 = vector.load %arg9[%c0_31, %c0_32] : memref<512x256xf32, #tpu.memory_space<vmem>>, vector<512x256xf32>
      %cst_33 = arith.constant dense<0.000000e+00> : vector<512x1xf32>
      %41 = tpu.matmul %40, %39, %cst_33 {dimension_numbers = #tpu.dot_dimension_numbers<[1], [0], [0], [1], [0, 0, 1, 1], [], []>} : vector<512x256xf32>, vector<256x1xf32>, vector<512x1xf32> -> vector<512x1xf32>
      %c0_34 = arith.constant 0 : index
      %c0_35 = arith.constant 0 : index
      %42 = vector.load %arg10[%c0_34, %c0_35] : memref<512x1xf32, #tpu.memory_space<vmem>>, vector<512x1xf32>
      %43 = arith.addf %41, %42 : vector<512x1xf32>
      %cst_36 = arith.constant 0.000000e+00 : f32
      %44 = vector.broadcast %cst_36 : f32 to vector<512x1xf32>
      %45 = arith.maximumf %43, %44 : vector<512x1xf32>
      %c0_37 = arith.constant 0 : index
      %c0_38 = arith.constant 0 : index
      %46 = vector.load %arg11[%c0_37, %c0_38] : memref<256x512xf32, #tpu.memory_space<vmem>>, vector<256x512xf32>
      %cst_39 = arith.constant dense<0.000000e+00> : vector<256x1xf32>
      %47 = tpu.matmul %46, %45, %cst_39 {dimension_numbers = #tpu.dot_dimension_numbers<[1], [0], [0], [1], [0, 0, 1, 1], [], []>} : vector<256x512xf32>, vector<512x1xf32>, vector<256x1xf32> -> vector<256x1xf32>
      %c0_40 = arith.constant 0 : index
      %c0_41 = arith.constant 0 : index
      %48 = vector.load %arg12[%c0_40, %c0_41] : memref<256x1xf32, #tpu.memory_space<vmem>>, vector<256x1xf32>
      %49 = arith.addf %47, %48 : vector<256x1xf32>
      %cst_42 = arith.constant 0.000000e+00 : f32
      %50 = vector.broadcast %cst_42 : f32 to vector<256x1xf32>
      %51 = arith.maximumf %49, %50 : vector<256x1xf32>
      %c0_43 = arith.constant 0 : index
      %c0_44 = arith.constant 0 : index
      %52 = vector.load %arg13[%c0_43, %c0_44] : memref<256x256xf32, #tpu.memory_space<vmem>>, vector<256x256xf32>
      %cst_45 = arith.constant dense<0.000000e+00> : vector<256x1xf32>
      %53 = tpu.matmul %52, %51, %cst_45 {dimension_numbers = #tpu.dot_dimension_numbers<[1], [0], [0], [1], [0, 0, 1, 1], [], []>} : vector<256x256xf32>, vector<256x1xf32>, vector<256x1xf32> -> vector<256x1xf32>
      %c0_46 = arith.constant 0 : index
      %c0_47 = arith.constant 0 : index
      %54 = vector.load %arg14[%c0_46, %c0_47] : memref<256x1xf32, #tpu.memory_space<vmem>>, vector<256x1xf32>
      %55 = arith.addf %53, %54 : vector<256x1xf32>
      %c0_48 = arith.constant 0 : index
      %c0_49 = arith.constant 0 : index
      %c0_50 = arith.constant 0 : index
      %56 = vector.load %arg15[%c0_48, %c0_49, %c0_50] : memref<1x256x1xf32, #tpu.memory_space<vmem>>, vector<1x256x1xf32>
      %57 = vector.shape_cast %56 : vector<1x256x1xf32> to vector<256x1xf32>
      %58 = vector.shape_cast %55 : vector<256x1xf32> to vector<1x256x1xf32>
      tpu.vector_store %arg15[%c0_48, %c0_49, %c0_50], %58 {strides = array<i32>} : memref<1x256x1xf32, #tpu.memory_space<vmem>>, vector<1x256x1xf32>,
    } else {
    }
    return
  }
  func.func @transform_0(%arg0: i32, %arg1: i32) -> (i32, i32, i32) {
    %c0_i32 = arith.constant 0 : i32
    %c0_i32_0 = arith.constant 0 : i32
    return %arg0, %c0_i32, %arg1 : i32, i32, i32
  }
  func.func @transform_1(%arg0: i32, %arg1: i32) -> (i32, i32) {
    %c0_i32 = arith.constant 0 : i32
    %c0_i32_0 = arith.constant 0 : i32
    %c0_i32_1 = arith.constant 0 : i32
    return %c0_i32, %c0_i32_0 : i32, i32
  }
  func.func @transform_2(%arg0: i32, %arg1: i32) -> (i32, i32) {
    %c0_i32 = arith.constant 0 : i32
    %c0_i32_0 = arith.constant 0 : i32
    %c0_i32_1 = arith.constant 0 : i32
    return %c0_i32, %c0_i32_0 : i32, i32
  }
  func.func @transform_3(%arg0: i32, %arg1: i32) -> (i32, i32) {
    %c0_i32 = arith.constant 0 : i32
    %c0_i32_0 = arith.constant 0 : i32
    %c0_i32_1 = arith.constant 0 : i32
    return %c0_i32, %c0_i32_0 : i32, i32
  }
  func.func @transform_4(%arg0: i32, %arg1: i32) -> (i32, i32) {
    %c0_i32 = arith.constant 0 : i32
    %c0_i32_0 = arith.constant 0 : i32
    %c0_i32_1 = arith.constant 0 : i32
    return %c0_i32, %c0_i32_0 : i32, i32
  }
  func.func @transform_5(%arg0: i32, %arg1: i32) -> (i32, i32) {
    %c0_i32 = arith.constant 0 : i32
    %c0_i32_0 = arith.constant 0 : i32
    %c0_i32_1 = arith.constant 0 : i32
    return %c0_i32, %c0_i32_0 : i32, i32
  }
  func.func @transform_6(%arg0: i32, %arg1: i32) -> (i32, i32) {
    %c0_i32 = arith.constant 0 : i32
    %c0_i32_0 = arith.constant 0 : i32
    %c0_i32_1 = arith.constant 0 : i32
    return %c0_i32, %c0_i32_0 : i32, i32
  }
  func.func @transform_7(%arg0: i32, %arg1: i32) -> (i32, i32) {
    %c0_i32 = arith.constant 0 : i32
    %c0_i32_0 = arith.constant 0 : i32
    %c0_i32_1 = arith.constant 0 : i32
    return %c0_i32, %c0_i32_0 : i32, i32
  }
  func.func @transform_8(%arg0: i32, %arg1: i32) -> (i32, i32) {
    %c0_i32 = arith.constant 0 : i32
    %c0_i32_0 = arith.constant 0 : i32
    %c0_i32_1 = arith.constant 0 : i32
    return %c0_i32, %c0_i32_0 : i32, i32
  }
  func.func @transform_9(%arg0: i32, %arg1: i32) -> (i32, i32) {
    %c0_i32 = arith.constant 0 : i32
    %c0_i32_0 = arith.constant 0 : i32
    %c0_i32_1 = arith.constant 0 : i32
    return %c0_i32, %c0_i32_0 : i32, i32
  }
  func.func @transform_10(%arg0: i32, %arg1: i32) -> (i32, i32) {
    %c0_i32 = arith.constant 0 : i32
    %c0_i32_0 = arith.constant 0 : i32
    %c0_i32_1 = arith.constant 0 : i32
    return %c0_i32, %c0_i32_0 : i32, i32
  }
  func.func @transform_11(%arg0: i32, %arg1: i32) -> (i32, i32) {
    %c0_i32 = arith.constant 0 : i32
    %c0_i32_0 = arith.constant 0 : i32
    %c0_i32_1 = arith.constant 0 : i32
    return %c0_i32, %c0_i32_0 : i32, i32
  }
  func.func @transform_12(%arg0: i32, %arg1: i32) -> (i32, i32) {
    %c0_i32 = arith.constant 0 : i32
    %c0_i32_0 = arith.constant 0 : i32
    %c0_i32_1 = arith.constant 0 : i32
    return %c0_i32, %c0_i32_0 : i32, i32
  }
  func.func @transform_13(%arg0: i32, %arg1: i32) -> (i32, i32, i32) {
    %c0_i32 = arith.constant 0 : i32
    %c0_i32_0 = arith.constant 0 : i32
    %c0_i32_1 = arith.constant 0 : i32
    return %arg0, %c0_i32, %c0_i32_0 : i32, i32, i32
  }
}

</mosaic_0001>

<bundles_post_ra>
// kernel: pointnet_forward.1
= control target key start
LH: loop header
LB: loop body
LE: loop exit
PB: predicated region body
PF: predicated region fallthrough
CT: control target
= control target key end

     0   :  { %18 = vsyncpa [#allocation3], 0  ;;  %s14184_s0 = inlined_call_operand.vmem [shape: f32[2,6,2048], index: 0, kind: input, shape index: {}]   ;;  %s14185_s1 = inlined_call_operand.vmem [shape: bf16[64,6], index: 1, kind: input, shape index: {}]   ;;  %s14186_s2 = inlined_call_operand.vmem [shape: f32[64,1], index: 2, kind: input, shape index: {}]   ;;  %s14187_s3 = inlined_call_operand.vmem [shape: bf16[128,64], index: 3, kind: input, shape index: {}]   ;;  %s14188_s4 = inlined_call_operand.vmem [shape: f32[128,1], index: 4, kind: input, shape index: {}]   ;;  %s14189_s5 = inlined_call_operand.hbm [shape: bf16[256,128], index: 5, kind: input, shape index: {}]   ;;  %s14190_s6 = inlined_call_operand.vmem [shape: f32[256,1], index: 6, kind: input, shape index: {}]   ;;  %s14191_s7 = inlined_call_operand.vmem [shape: f32[512,256], index: 7, kind: input, shape index: {}]   ;;  %s14192_s8 = inlined_call_operand.vmem [shape: f32[512,1], index: 8, kind: input, shape index: {}]   ;;  %s14193_s9 = inlined_call_operand.vmem [shape: f32[256,512], index: 9, kind: input, shape index: {}]   ;;  %s14194_s10 = inlined_call_operand.vmem [shape: f32[256,1], index: 10, kind: input, shape index: {}]   ;;  %s14195_s11 = inlined_call_operand.hbm [shape: f32[256,256], index: 11, kind: input, shape index: {}]   ;;  %s14196_s12 = inlined_call_operand.vmem [shape: f32[256,1], index: 12, kind: input, shape index: {}]   ;;  %s14197_s13 = inlined_call_operand.vmem [shape: f32[2,256,1], index: 13, kind: output, shape index: {}]  }
   0x1   :  { %19 = vsyncpa [#allocation5], 0  ;;  %s7650_s25 = smov 0   ;;  %s7652_s26 = smov 0  }
   0x2   :  { %s7654_s27 = smov 0  }
   0x3 LB: > { %s7216_s28 = sadd.s32 4294967295, %s7569_s27   ;;  %s37_s29 = sadd.s32 1, %s7565_s26  ;;  %s7569_s27 = sphi %s7654_s27, %s25_s27   ;;  %s7565_s26 = sphi %s7652_s26, %s15669_s26   ;;  %s7561_s25 = sphi %s7650_s25, %s15668_s25  }
   0x4   : > { %p39_p0 = scmp.ge.s32.totalorder %s37_s29, 2  ;;  %p7218_p1 = scmp.ge.s32.totalorder %s7569_s27, 1 }
   0x5   : > { %p348_p2 = scmp.lt.s32.totalorder %s7569_s27, 3  ;;  %p7675_p4 = scmp.eq.s32.totalorder %s7216_s28, 0 }
   0x6   : > { %s15671_s29 = smov (%p39_p0, %s37_s29), 0  ;;  %s7571_s15 = smov [#allocation2]  }
   0x7   : > { %14559 = sst [smem:[#allocation8_spill]] %s15671_s29  ;;  %p7671_p3 = pnand %p7218_p1, %p348_p2 }
   0x8   : > { %s372_s16 = sshll.u32 %s7571_s15, 4  ;;  %s7572_s18 = smov [#allocation4]   ;;  %s373_s16 = int_to_ptr.vmem [resolvable:$true] %s372_s16 }
   0x9   : > { %p7373_p5 = pneg %p7671_p3  ;;  %s400_s19 = sshll.u32 %s7572_s18, 4  ;;  %s401_s19 = int_to_ptr.vmem [resolvable:$true] %s400_s19 }
   0xa   : > { %s7498_s20 = scalar_lea.vmem %s373_s16, 2048  ;;  %p7506_p11 = scmp.lt.s32.totalorder %s373_s16, %s373_s16 }
   0xb   : > { %p7683_p6 = pnand %p7675_p4, %p7373_p5  ;;  %p7499_p8 = scmp.ne.s32.totalorder %s373_s16, %s7498_s20 }
   0xc   : > { %p7507_p12 = scmp.lt.s32.totalorder %s7498_s20, %s7498_s20 }
   0xd   : > { %p7489_p7 = pneg %p7683_p6 }
   0xe   : > { %p7508_p13 = por %p7507_p12, %p7506_p11 }
   0xf   : > { %p7501_p9 = pnand %p7499_p8, %p7489_p7 }
  0x11   : > { %p7502_p10 = pneg %p7501_p9 }
  0x13   : > { %p7509_p0 = pnand %p7508_p13, %p7502_p10 }
  0x15   : > { %7512 = shalt.err (!%p7509_p0)
}
  0x16   : > { %s7573_s21 = smov 64   ;;  %s7574_s22 = smov 4  }
  0x17   : > { %7376 = dma.hbm_to_vmem [thread:$0]  (!%p7683_p6), %s14189_s5, 2048, %s373_s16, [#allocation3], %s7573_s21, %s7573_s21, %s7574_s22  }
  0x18   : > { %s7524_s28 = scalar_lea.vmem %s401_s19, 8192  ;;  %p7532_p8 = scmp.lt.s32.totalorder %s401_s19, %s401_s19 }
  0x19   : > { %p7525_p1 = scmp.ne.s32.totalorder %s401_s19, %s7524_s28  ;;  %p7533_p9 = scmp.lt.s32.totalorder %s7524_s28, %s7524_s28 }
  0x1b   : > { %p7527_p2 = pnand %p7525_p1, %p7489_p7  ;;  %p7534_p11 = por %p7533_p9, %p7532_p8 }
  0x1d   : > { %p7528_p5 = pneg %p7527_p2 }
  0x1f   : > { %p7535_p10 = pnand %p7534_p11, %p7528_p5 }
  0x21   : > { %7538 = shalt.err (!%p7535_p10)
}
  0x22   : > { %s7575_s15 = smov 256   ;;  %s7576_s18 = smov 16  }
  0x23   : > { %7379 = dma.hbm_to_vmem [thread:$0]  (!%p7683_p6), %s14195_s11, 8192, %s401_s19, [#allocation5], %s7575_s15, %s7575_s15, %s7576_s18  }
  0x24   : > { %432 = sbr.rel (%p7671_p3) target bundleno = 2696 (0xa88), region = 72 }
  0x29   : > { %7552 = dma.done.wait (%p7675_p4), [#allocation3], 2048  }
  0x2a   : > { %7554 = vsyncadd (%p7675_p4), [#allocation3], 4294965248 }
  0x2b   : > { %7556 = dma.done.wait (%p7675_p4), [#allocation5], 8192  }
  0x2c   : > { %7558 = vsyncadd (%p7675_p4), [#allocation5], 4294959104  ;;  %p485_p7 = scmp.lt.s32.totalorder %s7561_s25, 1  ;;  %v14198_v0 = vmov 0   ;;  %v583_v1 = vld [vmem:[%s14186_s2 + $0x30] sm:$0xff]  ;;  %v581_v2 = vld [vmem:[%s14186_s2 + $0x20] sm:$0xff] }
  0x2d   : > { %7418 = vset.pattern.permute.xlu1 %v14198_v0  ;;  %7417 = vset.pattern.permute.xlu0 %v14198_v0  ;;  %vm658_vm0 = vcmask 1042432   ;;  %v584_v11 = vld [vmem:[%s14186_s2 + $0x38] sm:$0xff]  ;;  %v582_v12 = vld [vmem:[%s14186_s2 + $0x28] sm:$0xff]  ;;  %v7752_v15 = vld [vmem:[%s14185_s1] sm:$0xff]   ;;  %vm645_vm1 = vcmask 48128   ;;  %vm1635_vm2 = vcmask 523264  }
  0x2e   : > { %s15673_s25 = smov (!%p485_p7, %s7561_s25), 1  ;;  %739 = vmatprep.mubr.bf16.mxu0 %v14198_v0  ;;  %812 = vmatprep.mubr.bf16.mxu1 %v14198_v0  ;;  %v580_v16 = vld [vmem:[%s14186_s2 + $0x18] sm:$0xff]  ;;  %v579_v17 = vld [vmem:[%s14186_s2 + $0x10] sm:$0xff]  ;;  %v578_v18 = vld [vmem:[%s14186_s2 + $0x8] sm:$0xff]  ;;  %vm504_vm3 = vcmask 7168  }
  0x2f   : > { %s7363_s29 = sshll.u32 %s15673_s25, 7  ;;  %617 = vperm.xlu0 %7417, %v583_v1   ;;  %607 = vperm.xlu1 %7418, %v581_v2   ;;  %v577_v19 = vld [vmem:[%s14186_s2] sm:$0xff]  ;;  %v7777_v22 = vld [vmem:[%s14185_s1 + $0x8] sm:$0xff]   ;;  %v1514_v29 = vld [vmem:[%s14188_s4 + $0x78] sm:$0xff]  ;;  %s7364_s19 = sshll.u32 %s15673_s25, 8 }
  0x30   : > { %s7727_s14 = scalar_lea.vmem %s14184_s0, %s7363_s29  ;;  %v1513_v30 = vld [vmem:[%s14188_s4 + $0x70] sm:$0xff]  ;;  %v1512_v35 = vld [vmem:[%s14188_s4 + $0x68] sm:$0xff]  ;;  %v1511_v36 = vld [vmem:[%s14188_s4 + $0x60] sm:$0xff]  ;;  %s11950_s23 = scalar_lea.vmem %s14197_s13, %s7364_s19 }
  0x31   : > { %v538_v3 = vld [vmem:[%s7727_s14 + $0x8] sm:$0x3f]  ;;  %v540_v5 = vld [vmem:[%s7727_s14 + $0x18] sm:$0x3f]  ;;  %v537_v6 = vld [vmem:[%s7727_s14] sm:$0x3f] }
  0x32   : > { %v554_v4 = vpack.c.bf16 %v538_v3, %v538_v3  ;;  %v539_v7 = vld [vmem:[%s7727_s14 + $0x10] sm:$0x3f]  ;;  %v556_v8 = vpack.c.bf16 %v540_v5, %v540_v5  ;;  %v553_v9 = vpack.c.bf16 %v537_v6, %v537_v6  ;;  %v542_v20 = vld [vmem:[%s7727_s14 + $0x28] sm:$0x3f]  ;;  %v544_v21 = vld [vmem:[%s7727_s14 + $0x38] sm:$0x3f] }
  0x33   : > { %v555_v10 = vpack.c.bf16 %v539_v7, %v539_v7  ;;  %622 = vperm.xlu0 %7417, %v584_v11   ;;  %612 = vperm.xlu1 %7418, %v582_v12   ;;  %v558_v23 = vpack.c.bf16 %v542_v20, %v542_v20  ;;  %v560_v24 = vpack.c.bf16 %v544_v21, %v544_v21  ;;  %v541_v25 = vld [vmem:[%s7727_s14 + $0x20] sm:$0x3f]  ;;  %v543_v26 = vld [vmem:[%s7727_s14 + $0x30] sm:$0x3f]  ;;  %v546_v33 = vld [vmem:[%s7727_s14 + $0x48] sm:$0x3f] }
  0x34   : > { %7233 = vmatprep.subr.msk.bf16.mxu0 %vm658_vm0, %v554_v4  ;;  %7238 = vmatprep.subr.msk.bf16.mxu1 %vm658_vm0, %v556_v8  ;;  %v660_v13 = vsel %vm658_vm0, %v553_v9, 0  ;;  %v557_v27 = vpack.c.bf16 %v541_v25, %v541_v25  ;;  %v559_v28 = vpack.c.bf16 %v543_v26, %v543_v26  ;;  %v548_v34 = vld [vmem:[%s7727_s14 + $0x58] sm:$0x3f]  ;;  %v562_v37 = vpack.c.bf16 %v546_v33, %v546_v33  ;;  %v7808_v39 = vld [vmem:[%s14185_s1 + $0x10] sm:$0xff]   ;;  %v545_v40 = vld [vmem:[%s7727_s14 + $0x40] sm:$0x3f] }
  0x35   : > { %v666_v14 = vsel %vm658_vm0, %v555_v10, 0  ;;  %722 = vmatpush1.bf16.msra.mxu0 %v660_v13  ;;  %v564_v38 = vpack.c.bf16 %v548_v34, %v548_v34  ;;  %v547_v41 = vld [vmem:[%s7727_s14 + $0x50] sm:$0x3f]  ;;  %v1510_v42 = vld [vmem:[%s14188_s4 + $0x58] sm:$0xff]  ;;  %v561_v44 = vpack.c.bf16 %v545_v40, %v545_v40  ;;  %v549_v46 = vld [vmem:[%s7727_s14 + $0x60] sm:$0x3f] }
  0x36   : > { %795 = vmatpush1.bf16.msra.mxu1 %v666_v14  ;;  %7243 = vmatprep.subr.msk.bf16.mxu0 %vm658_vm0, %v558_v23  ;;  %v672_v31 = vsel %vm658_vm0, %v557_v27, 0  ;;  %v678_v32 = vsel %vm658_vm0, %v559_v28, 0  ;;  %v1509_v43 = vld [vmem:[%s14188_s4 + $0x50] sm:$0xff]  ;;  %v563_v45 = vpack.c.bf16 %v547_v41, %v547_v41  ;;  %v565_v48 = vpack.c.bf16 %v549_v46, %v549_v46  ;;  %v1508_v50 = vld [vmem:[%s14188_s4 + $0x48] sm:$0xff]  ;;  %v1507_v51 = vld [vmem:[%s14188_s4 + $0x40] sm:$0xff] }
  0x37   : > { %602 = vperm.xlu1 %7418, %v580_v16   ;;  %597 = vperm.xlu0 %7417, %v579_v17   ;;  %v551_v47 = vld [vmem:[%s7727_s14 + $0x70] sm:$0x3f]  ;;  %v7837_v52 = vld [vmem:[%s14185_s1 + $0x18] sm:$0xff]   ;;  %v684_v53 = vsel %vm658_vm0, %v561_v44, 0  ;;  %v1504_v59 = vld [vmem:[%s14188_s4 + $0x28] sm:$0xff] }
  0x38   : > { %7234 = vmatmul.mubr.msk.bf16.vlgmr.msra.gmra.mxu0 %vm645_vm1, %v7752_v15  ;;  %7248 = vmatprep.subr.msk.bf16.mxu1 %vm658_vm0, %v560_v24  ;;  %v567_v49 = vpack.c.bf16 %v551_v47, %v551_v47  ;;  %v690_v54 = vsel %vm658_vm0, %v563_v45, 0  ;;  %v7842_v55 = vsel %vm658_vm0, %v565_v48, 0  ;;  %v1506_v57 = vld [vmem:[%s14188_s4 + $0x38] sm:$0xff]  ;;  %v1505_v58 = vld [vmem:[%s14188_s4 + $0x30] sm:$0xff]  ;;  %v1503_v60 = vld [vmem:[%s14188_s4 + $0x20] sm:$0xff] }
  0x39   : > { %7239 = vmatmul.mubr.msk.bf16.vlgmr.msra.gmra.mxu1 %vm645_vm1, %v7752_v15  ;;  %749 = vmatprep.mubr.bf16.mxu0 %v14198_v0  ;;  %v550_v61 = vld [vmem:[%s7727_s14 + $0x68] sm:$0x3f]  ;;  %v552_v62 = vld [vmem:[%s7727_s14 + $0x78] sm:$0x3f]  ;;  %v1501_v1 = vld [vmem:[%s14188_s4 + $0x10] sm:$0xff] }
  0x3a   : > { %822 = vmatprep.mubr.bf16.mxu1 %v14198_v0  ;;  %868 = vmatpush1.bf16.msra.mxu0 %v672_v31  ;;  %v7845_v56 = vsel %vm658_vm0, %v567_v49, 0  ;;  %v1502_v63 = vld [vmem:[%s14188_s4 + $0x18] sm:$0xff]  ;;  %v566_v2 = vpack.c.bf16 %v550_v61, %v550_v61  ;;  %v568_v3 = vpack.c.bf16 %v552_v62, %v552_v62  ;;  %v1500_v4 = vld [vmem:[%s14188_s4 + $0x8] sm:$0xff]  ;;  %v1499_v5 = vld [vmem:[%s14188_s4] sm:$0xff] }
  0x3b   : > { %592 = vperm.xlu1 %7418, %v578_v18   ;;  %587 = vperm.xlu0 %7417, %v577_v19   ;;  %v2994_v6 = vld [vmem:[%s14190_s6 + $0x70] sm:$0xff]  ;;  %v2995_v7 = vld [vmem:[%s14190_s6 + $0x78] sm:$0xff]  ;;  %v2992_v8 = vld [vmem:[%s14190_s6 + $0x60] sm:$0xff] }
  0x3c   : > { %941 = vmatpush1.bf16.msra.mxu1 %v678_v32  ;;  %7253 = vmatprep.subr.msk.bf16.mxu0 %vm658_vm0, %v562_v37  ;;  %v2993_v9 = vld [vmem:[%s14190_s6 + $0x68] sm:$0xff]  ;;  %v2990_v10 = vld [vmem:[%s14190_s6 + $0x50] sm:$0xff]  ;;  %v2991_v11 = vld [vmem:[%s14190_s6 + $0x58] sm:$0xff] }
  0x3d   : > { %7258 = vmatprep.subr.msk.bf16.mxu1 %vm658_vm0, %v564_v38  ;;  %v2988_v12 = vld [vmem:[%s14190_s6 + $0x40] sm:$0xff]  ;;  %v2989_v13 = vld [vmem:[%s14190_s6 + $0x48] sm:$0xff]  ;;  %v2986_v14 = vld [vmem:[%s14190_s6 + $0x30] sm:$0xff] }
  0x3e   : > { %v2987_v16 = vld [vmem:[%s14190_s6 + $0x38] sm:$0xff]  ;;  %v2984_v17 = vld [vmem:[%s14190_s6 + $0x20] sm:$0xff]  ;;  %v2985_v18 = vld [vmem:[%s14190_s6 + $0x28] sm:$0xff] }
  0x3f   : > { %1592 = vperm.xlu1 %7418, %v1514_v29   ;;  %1587 = vperm.xlu0 %7417, %v1513_v30   ;;  %v2982_v19 = vld [vmem:[%s14190_s6 + $0x10] sm:$0xff]  ;;  %v2983_v20 = vld [vmem:[%s14190_s6 + $0x18] sm:$0xff]  ;;  %v2980_v21 = vld [vmem:[%s14190_s6] sm:$0xff] }
  0x40   : > { %7235 = vmatmul.mubr.msk.bf16.gmra.mxu0 %vm645_vm1, %v7777_v22  ;;  %v2981_v23 = vld [vmem:[%s14190_s6 + $0x8] sm:$0xff]  ;;  %v3010_v24 = vld [vmem:[%s14190_s6 + $0xf0] sm:$0xff]  ;;  %v3011_v25 = vld [vmem:[%s14190_s6 + $0xf8] sm:$0xff] }
  0x41   : > { %7240 = vmatmul.mubr.msk.bf16.gmra.mxu1 %vm645_vm1, %v7777_v22  ;;  %759 = vmatprep.mubr.bf16.mxu0 %v14198_v0  ;;  %v3008_v26 = vld [vmem:[%s14190_s6 + $0xe0] sm:$0xff]  ;;  %v3009_v27 = vld [vmem:[%s14190_s6 + $0xe8] sm:$0xff]  ;;  %v3006_v28 = vld [vmem:[%s14190_s6 + $0xd0] sm:$0xff] }
  0x42   : > { %832 = vmatprep.mubr.bf16.mxu1 %v14198_v0  ;;  %v3007_v29 = vld [vmem:[%s14190_s6 + $0xd8] sm:$0xff]  ;;  %v3004_v30 = vld [vmem:[%s14190_s6 + $0xc0] sm:$0xff]  ;;  %v3005_v31 = vld [vmem:[%s14190_s6 + $0xc8] sm:$0xff] }
  0x43   : > { %1582 = vperm.xlu1 %7418, %v1512_v35   ;;  %1577 = vperm.xlu0 %7417, %v1511_v36   ;;  %v3002_v32 = vld [vmem:[%s14190_s6 + $0xb0] sm:$0xff]  ;;  %v3003_v33 = vld [vmem:[%s14190_s6 + $0xb8] sm:$0xff]  ;;  %v3000_v34 = vld [vmem:[%s14190_s6 + $0xa0] sm:$0xff] }
  0x44   : > { %v3001_v35 = vld [vmem:[%s14190_s6 + $0xa8] sm:$0xff]  ;;  %v2998_v36 = vld [vmem:[%s14190_s6 + $0x90] sm:$0xff]  ;;  %v2999_v37 = vld [vmem:[%s14190_s6 + $0x98] sm:$0xff] }
  0x45   : > { %v2996_v38 = vld [vmem:[%s14190_s6 + $0x80] sm:$0xff]  ;;  %v2997_v40 = vld [vmem:[%s14190_s6 + $0x88] sm:$0xff] }
  0x47   : > { %1572 = vperm.xlu1 %7418, %v1510_v42   ;;  %1567 = vperm.xlu0 %7417, %v1509_v43  }
  0x48   : > { %7236 = vmatmul.mubr.msk.bf16.gmra.mxu0 %vm645_vm1, %v7808_v39 }
  0x49   : > { %7241 = vmatmul.mubr.msk.bf16.gmra.mxu1 %vm645_vm1, %v7808_v39  ;;  %769 = vmatprep.mubr.bf16.mxu0 %v14198_v0 }
  0x4a   : > { %842 = vmatprep.mubr.bf16.mxu1 %v14198_v0 }
  0x4b   : > { %1562 = vperm.xlu1 %7418, %v1508_v50   ;;  %1557 = vperm.xlu0 %7417, %v1507_v51  }
  0x4f   : > { %1552 = vperm.xlu1 %7418, %v1506_v57   ;;  %1547 = vperm.xlu0 %7417, %v1505_v58  }
  0x50   : > { %7237 = vmatmul.mubr.msk.bf16.gmra.mxu0 %vm645_vm1, %v7837_v52 }
  0x51   : > { %7242 = vmatmul.mubr.msk.bf16.gmra.mxu1 %vm645_vm1, %v7837_v52  ;;  %885 = vmatprep.mubr.bf16.mxu0 %v14198_v0 }
  0x52   : > { %958 = vmatprep.mubr.bf16.mxu1 %v14198_v0 }
  0x53   : > { %1542 = vperm.xlu1 %7418, %v1504_v59   ;;  %1537 = vperm.xlu0 %7417, %v1503_v60  }
  0x57   : > { %1532 = vperm.xlu1 %7418, %v1502_v63   ;;  %1527 = vperm.xlu0 %7417, %v1501_v1  }
  0x58   : > { %7244 = vmatmul.mubr.msk.bf16.vlgmr.msra.gmra.mxu0 %vm645_vm1, %v7752_v15 }
  0x59   : > { %7249 = vmatmul.mubr.msk.bf16.vlgmr.msra.gmra.mxu1 %vm645_vm1, %v7752_v15  ;;  %895 = vmatprep.mubr.bf16.mxu0 %v14198_v0 }
  0x5a   : > { %968 = vmatprep.mubr.bf16.mxu1 %v14198_v0  ;;  %1014 = vmatpush1.bf16.msra.mxu0 %v684_v53 }
  0x5b   : > { %1087 = vmatpush1.bf16.msra.mxu1 %v690_v54  ;;  %7263 = vmatprep.subr.msk.bf16.mxu0 %vm658_vm0, %v566_v2 }
  0x5c   : > { %7268 = vmatprep.subr.msk.bf16.mxu1 %vm658_vm0, %v568_v3  ;;  %1522 = vperm.xlu1 %7418, %v1500_v4  }
  0x5d   : > { %1517 = vperm.xlu0 %7417, %v1499_v5  }
  0x60   : > { %7245 = vmatmul.mubr.msk.bf16.gmra.mxu0 %vm645_vm1, %v7777_v22  ;;  %3084 = vperm.xlu1 %7418, %v2994_v6  }
  0x61   : > { %7250 = vmatmul.mubr.msk.bf16.gmra.mxu1 %vm645_vm1, %v7777_v22  ;;  %905 = vmatprep.mubr.bf16.mxu0 %v14198_v0 }
  0x62   : > { %978 = vmatprep.mubr.bf16.mxu1 %v14198_v0  ;;  %3089 = vperm.xlu0 %7417, %v2995_v7  }
  0x64   : > { %3074 = vperm.xlu1 %7418, %v2992_v8  }
  0x66   : > { %3079 = vperm.xlu0 %7417, %v2993_v9  }
  0x68   : > { %7246 = vmatmul.mubr.msk.bf16.gmra.mxu0 %vm645_vm1, %v7808_v39  ;;  %3064 = vperm.xlu1 %7418, %v2990_v10  }
  0x69   : > { %7251 = vmatmul.mubr.msk.bf16.gmra.mxu1 %vm645_vm1, %v7808_v39  ;;  %915 = vmatprep.mubr.bf16.mxu0 %v14198_v0 }
  0x6a   : > { %988 = vmatprep.mubr.bf16.mxu1 %v14198_v0  ;;  %3069 = vperm.xlu0 %7417, %v2991_v11  }
  0x6c   : > { %3054 = vperm.xlu1 %7418, %v2988_v12  }
  0x6e   : > { %3059 = vperm.xlu0 %7417, %v2989_v13  }
  0x70   : > { %7247 = vmatmul.mubr.msk.bf16.gmra.mxu0 %vm645_vm1, %v7837_v52  ;;  %3044 = vperm.xlu1 %7418, %v2986_v14  }
  0x71   : > { %7252 = vmatmul.mubr.msk.bf16.gmra.mxu1 %vm645_vm1, %v7837_v52  ;;  %1031 = vmatprep.mubr.bf16.mxu0 %v14198_v0 }
  0x72   : > { %1104 = vmatprep.mubr.bf16.mxu1 %v14198_v0  ;;  %3049 = vperm.xlu0 %7417, %v2987_v16  }
  0x74   : > { %3034 = vperm.xlu1 %7418, %v2984_v17  }
  0x76   : > { %3039 = vperm.xlu0 %7417, %v2985_v18  }
  0x78   : > { %7254 = vmatmul.mubr.msk.bf16.vlgmr.msra.gmra.mxu0 %vm645_vm1, %v7752_v15  ;;  %3024 = vperm.xlu1 %7418, %v2982_v19  }
  0x79   : > { %7259 = vmatmul.mubr.msk.bf16.vlgmr.msra.gmra.mxu1 %vm645_vm1, %v7752_v15  ;;  %1041 = vmatprep.mubr.bf16.mxu0 %v14198_v0 }
  0x7a   : > { %1114 = vmatprep.mubr.bf16.mxu1 %v14198_v0  ;;  %3029 = vperm.xlu0 %7417, %v2983_v20  }
  0x7b   : > { %1160 = vmatpush1.bf16.msra.mxu0 %v7842_v55  ;;  %1233 = vmatpush1.bf16.msra.mxu1 %v7845_v56 }
  0x7c   : > { %3014 = vperm.xlu1 %7418, %v2980_v21  }
  0x7e   : > { %3019 = vperm.xlu0 %7417, %v2981_v23  }
  0x80   : > { %7255 = vmatmul.mubr.msk.bf16.gmra.mxu0 %vm645_vm1, %v7777_v22  ;;  %3164 = vperm.xlu1 %7418, %v3010_v24  }
  0x81   : > { %7260 = vmatmul.mubr.msk.bf16.gmra.mxu1 %vm645_vm1, %v7777_v22  ;;  %1051 = vmatprep.mubr.bf16.mxu0 %v14198_v0 }
  0x82   : > { %1124 = vmatprep.mubr.bf16.mxu1 %v14198_v0  ;;  %3169 = vperm.xlu0 %7417, %v3011_v25  }
  0x84   : > { %3154 = vperm.xlu1 %7418, %v3008_v26  }
  0x86   : > { %3159 = vperm.xlu0 %7417, %v3009_v27  }
  0x88   : > { %7256 = vmatmul.mubr.msk.bf16.gmra.mxu0 %vm645_vm1, %v7808_v39  ;;  %3144 = vperm.xlu1 %7418, %v3006_v28  }
  0x89   : > { %7261 = vmatmul.mubr.msk.bf16.gmra.mxu1 %vm645_vm1, %v7808_v39  ;;  %1061 = vmatprep.mubr.bf16.mxu0 %v14198_v0 }
  0x8a   : > { %1134 = vmatprep.mubr.bf16.mxu1 %v14198_v0  ;;  %3149 = vperm.xlu0 %7417, %v3007_v29  }
  0x8c   : > { %3134 = vperm.xlu1 %7418, %v3004_v30  }
  0x8e   : > { %3139 = vperm.xlu0 %7417, %v3005_v31  }
  0x90   : > { %7257 = vmatmul.mubr.msk.bf16.gmra.mxu0 %vm645_vm1, %v7837_v52  ;;  %3124 = vperm.xlu1 %7418, %v3002_v32  }
  0x91   : > { %7262 = vmatmul.mubr.msk.bf16.gmra.mxu1 %vm645_vm1, %v7837_v52  ;;  %1177 = vmatprep.mubr.bf16.mxu0 %v14198_v0 }
  0x92   : > { %1250 = vmatprep.mubr.bf16.mxu1 %v14198_v0  ;;  %3129 = vperm.xlu0 %7417, %v3003_v33  }
  0x94   : > { %3114 = vperm.xlu1 %7418, %v3000_v34  }
  0x96   : > { %3119 = vperm.xlu0 %7417, %v3001_v35  }
  0x98   : > { %7264 = vmatmul.mubr.msk.bf16.vlgmr.msra.gmra.mxu0 %vm645_vm1, %v7752_v15  ;;  %3104 = vperm.xlu1 %7418, %v2998_v36  }
  0x99   : > { %7269 = vmatmul.mubr.msk.bf16.vlgmr.msra.gmra.mxu1 %vm645_vm1, %v7752_v15  ;;  %1187 = vmatprep.mubr.bf16.mxu0 %v14198_v0 }
  0x9a   : > { %1260 = vmatprep.mubr.bf16.mxu1 %v14198_v0  ;;  %3109 = vperm.xlu0 %7417, %v2999_v37  }
  0x9c   : > { %3094 = vperm.xlu1 %7418, %v2996_v38  }
  0x9e   : > { %3099 = vperm.xlu0 %7417, %v2997_v40  }
  0xa0   : > { %7265 = vmatmul.mubr.msk.bf16.gmra.mxu0 %vm645_vm1, %v7777_v22 }
  0xa1   : > { %7270 = vmatmul.mubr.msk.bf16.gmra.mxu1 %vm645_vm1, %v7777_v22  ;;  %1197 = vmatprep.mubr.bf16.mxu0 %v14198_v0 }
  0xa2   : > { %1270 = vmatprep.mubr.bf16.mxu1 %v14198_v0 }
  0xa8   : > { %7266 = vmatmul.mubr.msk.bf16.gmra.mxu0 %vm645_vm1, %v7808_v39 }
  0xa9   : > { %7271 = vmatmul.mubr.msk.bf16.gmra.mxu1 %vm645_vm1, %v7808_v39  ;;  %1207 = vmatprep.mubr.bf16.mxu0 %v14198_v0 }
  0xaa   : > { %1280 = vmatprep.mubr.bf16.mxu1 %v14198_v0  ;;  %v8075_v54 = vpop.permute.xlu0 %617  ;;  %v8079_v57 = vpop.permute.xlu1 %607 }
  0xae   : > { %v8085_v62 = vpop.permute.xlu0 %622  ;;  %v8089_v2 = vpop.permute.xlu1 %612 }
  0xb0   : > { %7267 = vmatmul.mubr.msk.bf16.gmra.mxu0 %vm645_vm1, %v7837_v52 }
  0xb1   : > { %7272 = vmatmul.mubr.msk.bf16.gmra.mxu1 %vm645_vm1, %v7837_v52  ;;  %1918 = vmatprep.mubr.bf16.mxu0 %v14198_v0 }
  0xb2   : > { %1692 = vmatprep.mubr.bf16.mxu1 %v14198_v0  ;;  %v8095_v7 = vpop.permute.xlu0 %597  ;;  %v8099_v10 = vpop.permute.xlu1 %602 }
  0xb6   : > { %v8110_v25 = vpop.permute.xlu0 %587  ;;  %v8118_v34 = vpop.permute.xlu1 %592 }
  0xf8   : > { %v8051_v15 = vpop.f32.mrf.mxu0 }
  0xf9   : > { %v8053_v22 = vpop.f32.mrf.mxu1 }
  0xfa   : > { %v8055_v41 = vpop.f32.mrf.mxu0 }
  0xfb   : > { %v8057_v39 = vpop.f32.mrf.mxu1 }
  0xfc   : > { %v8059_v42 = vpop.f32.mrf.mxu0 }
  0xfd   : > { %v8061_v43 = vpop.f32.mrf.mxu1 }
  0xfe   : > { %v747_v44 = vpop.f32.mrf.mxu0 }
  0xff   : > { %v8063_v45 = vpop.f32.mrf.mxu1  ;;  %v748_v40 = vadd.f32 %v747_v44, %v8118_v34 }
 0x100   : > { %v8065_v46 = vpop.f32.mrf.mxu0 }
 0x101   : > { %v8067_v47 = vpop.f32.mrf.mxu1  ;;  %v752_v44 = vadd.f32 %v8065_v46, %v8095_v7 }
 0x102   : > { %v753_v48 = vpop.f32.mrf.mxu0 }
 0x103   : > { %v8069_v49 = vpop.f32.mrf.mxu1  ;;  %v754_v35 = vadd.f32 %v753_v48, %v8095_v7  ;;  %v744_v48 = vadd.f32 %v8055_v41, %v8110_v25  ;;  %v1308_v41 = vmax.f32 %v748_v40, 0.0 }
 0x104   : > { %v755_v50 = vpop.f32.mrf.mxu0 }
 0x105   : > { %v8071_v51 = vpop.f32.mrf.mxu1 }
 0x106   : > { %v757_v52 = vpop.f32.mrf.mxu0 }
 0x107   : > { %v8073_v53 = vpop.f32.mrf.mxu1  ;;  %v758_v26 = vadd.f32 %v757_v52, %v8099_v10  ;;  %v756_v52 = vadd.f32 %v755_v50, %v8099_v10 }
 0x108   : > { %v761_v55 = vpop.f32.mrf.mxu0 }
 0x109   : > { %v8077_v56 = vpop.f32.mrf.mxu1  ;;  %v762_v30 = vadd.f32 %v761_v55, %v8079_v57 }
 0x10a   : > { %v763_v58 = vpop.f32.mrf.mxu0 }
 0x10b   : > { %v8081_v59 = vpop.f32.mrf.mxu1  ;;  %v764_v18 = vadd.f32 %v763_v58, %v8079_v57  ;;  %v1355_v50 = vmax.f32 %v762_v30, 0.0  ;;  %v1323_v30 = vmax.f32 %v752_v44, 0.0 }
 0x10c   : > { %v765_v60 = vpop.f32.mrf.mxu0 }
 0x10d   : > { %v8083_v61 = vpop.f32.mrf.mxu1  ;;  %v766_v20 = vadd.f32 %v765_v60, %v8089_v2  ;;  %v1356_v36 = vmax.f32 %v764_v18, 0.0 }
 0x10e   : > { %v767_v63 = vpop.f32.mrf.mxu0 }
 0x10f   : > { %v8087_v1 = vpop.f32.mrf.mxu1  ;;  %v768_v11 = vadd.f32 %v767_v63, %v8089_v2  ;;  %v1371_v58 = vmax.f32 %v766_v20, 0.0  ;;  %v1339_v20 = vmax.f32 %v756_v52, 0.0 }
 0x110   : > { %v771_v3 = vpop.f32.mrf.mxu0 }
 0x111   : > { %v8091_v4 = vpop.f32.mrf.mxu1  ;;  %v772_v14 = vadd.f32 %v771_v3, %v8075_v54  ;;  %v1372_v27 = vmax.f32 %v768_v11, 0.0  ;;  %v1340_v3 = vmax.f32 %v758_v26, 0.0  ;;  %v746_v11 = vadd.f32 %v8059_v42, %v8118_v34 }
 0x112   : > { %v773_v5 = vpop.f32.mrf.mxu0 }
 0x113   : > { %v8093_v6 = vpop.f32.mrf.mxu1  ;;  %v774_v12 = vadd.f32 %v773_v5, %v8075_v54  ;;  %v1387_v31 = vmax.f32 %v772_v14, 0.0  ;;  %v1324_v14 = vmax.f32 %v754_v35, 0.0 }
 0x114   : > { %v775_v8 = vpop.f32.mrf.mxu0 }
 0x115   : > { %v8097_v9 = vpop.f32.mrf.mxu1  ;;  %v776_v13 = vadd.f32 %v775_v8, %v8085_v62  ;;  %v1388_v28 = vmax.f32 %v774_v12, 0.0  ;;  %v1452_v8 = vpack.c.bf16 %v1372_v27, %v1356_v36  ;;  %v1436_v27 = vpack.c.bf16 %v1340_v3, %v1324_v14 }
 0x116   : > { %v777_v16 = vpop.f32.mrf.mxu0  ;;  %v835_v14 = vadd.f32 %v8077_v56, %v8079_v57 }
 0x117   : > { %v850_v17 = vpop.f32.mrf.mxu1  ;;  %v778_v19 = vadd.f32 %v777_v16, %v8085_v62  ;;  %v1403_v21 = vmax.f32 %v776_v13, 0.0 }
 0x118   : > { %v8108_v23 = vpop.f32.mrf.mxu0  ;;  %v851_v46 = vadd.f32 %v850_v17, %v8085_v62  ;;  %v849_v17 = vadd.f32 %v8097_v9, %v8085_v62 }
 0x119   : > { %v960_v24 = vpop.f32.mrf.mxu1  ;;  %v1404_v29 = vmax.f32 %v778_v19, 0.0  ;;  %v1467_v60 = vpack.c.bf16 %v1403_v21, %v1387_v31  ;;  %v742_v19 = vadd.f32 %v8051_v15, %v8110_v25  ;;  %v1451_v21 = vpack.c.bf16 %v1371_v58, %v1355_v50 }
 0x11a   : > { %v8114_v32 = vpop.f32.mrf.mxu0  ;;  %v961_v37 = vadd.f32 %v960_v24, %v8110_v25  ;;  %v847_v15 = vadd.f32 %v8093_v6, %v8075_v54  ;;  %v1406_v3 = vmax.f32 %v851_v46, 0.0 }
 0x11b   : > { %v8116_v33 = vpop.f32.mrf.mxu1  ;;  %v1468_v38 = vpack.c.bf16 %v1404_v29, %v1388_v28  ;;  %v1292_v28 = vmax.f32 %v744_v48, 0.0  ;;  %v1307_v29 = vmax.f32 %v746_v11, 0.0  ;;  %v827_v11 = vadd.f32 %v8069_v49, %v8095_v7 }
 0x11c   : > { %v8124_v55 = vpop.f32.mrf.mxu0  ;;  %v1297_v16 = vmax.f32 %v961_v37, 0.0  ;;  %v1291_v37 = vmax.f32 %v742_v19, 0.0  ;;  %v1390_v44 = vmax.f32 %v847_v15, 0.0 }
 0x11d   : > { %v964_v63 = vpop.f32.mrf.mxu1  ;;  %1668 = vmatprep.subr.bf16.mxu1 %v1468_v38  ;;  %v1435_v38 = vpack.c.bf16 %v1339_v20, %v1323_v30  ;;  %v1420_v58 = vpack.c.bf16 %v1308_v41, %v1292_v28  ;;  %v829_v28 = vadd.f32 %v8071_v51, %v8099_v10  ;;  %v815_v51 = vadd.f32 %v8053_v22, %v8110_v25 }
 0x11e   : > { %v965_v5 = vadd.f32 %v964_v63, %v8118_v34  ;;  %v8133_v12 = vpop.f32.mrf.mxu0  ;;  %1669 = vmatpush1.bf16.msra.mxu1 %v1467_v60  ;;  %v837_v60 = vadd.f32 %v8081_v59, %v8079_v57  ;;  %v841_v63 = vadd.f32 %v8087_v1, %v8089_v2  ;;  %v831_v1 = vadd.f32 %v8073_v53, %v8099_v10  ;;  %v8183_v53 = vld [vmem:[%s14187_s3] sm:$0xff]  }
 0x11f   : > { %v8135_v13 = vpop.f32.mrf.mxu1  ;;  %1670 = vmatprep.subr.bf16.mxu1 %v1452_v8  ;;  %v845_v8 = vadd.f32 %v8091_v4, %v8075_v54  ;;  %v839_v4 = vadd.f32 %v8083_v61, %v8089_v2  ;;  %v817_v61 = vadd.f32 %v8057_v39, %v8110_v25 }
 0x120   : > { %v1313_v18 = vmax.f32 %v965_v5, 0.0  ;;  %v8139_v42 = vpop.f32.mrf.mxu0  ;;  %v1419_v5 = vpack.c.bf16 %v1307_v29, %v1291_v37  ;;  %v1358_v41 = vmax.f32 %v837_v60, 0.0  ;;  %v1374_v49 = vmax.f32 %v841_v63, 0.0 }
 0x121   : > { %v970_v24 = vpop.f32.mrf.mxu1  ;;  %v1357_v29 = vmax.f32 %v835_v14, 0.0  ;;  %v1373_v30 = vmax.f32 %v839_v4, 0.0  ;;  %v819_v60 = vadd.f32 %v8061_v43, %v8118_v34  ;;  %v1341_v63 = vmax.f32 %v829_v28, 0.0 }
 0x122   : > { %v8142_v26 = vpack.c.bf16 %v1313_v18, %v1297_v16  ;;  %v8144_v31 = vpop.f32.mrf.mxu0  ;;  %1671 = vmatpush1.bf16.msra.mxu1 %v1451_v21  ;;  %v971_v36 = vadd.f32 %v970_v24, %v8095_v7  ;;  %v1405_v16 = vmax.f32 %v849_v17, 0.0  ;;  %v1470_v21 = vpack.c.bf16 %v1406_v3, %v1390_v44 }
 0x123   : > { %v8146_v35 = vpop.f32.mrf.mxu1  ;;  %1672 = vmatprep.subr.bf16.mxu1 %v1436_v27  ;;  %v1389_v24 = vmax.f32 %v845_v8, 0.0  ;;  %v825_v27 = vadd.f32 %v8067_v47, %v8095_v7  ;;  %v1326_v17 = vmax.f32 %v827_v11, 0.0  ;;  %v1454_v39 = vpack.c.bf16 %v1374_v49, %v1358_v41 }
 0x124   : > { %v8153_v40 = vpop.f32.mrf.mxu0  ;;  %v1329_v59 = vmax.f32 %v971_v36, 0.0  ;;  %v1453_v3 = vpack.c.bf16 %v1373_v30, %v1357_v29  ;;  %v1294_v8 = vmax.f32 %v817_v61, 0.0  ;;  %v1309_v43 = vmax.f32 %v819_v60, 0.0 }
 0x125   : > { %v974_v52 = vpop.f32.mrf.mxu1  ;;  %v1469_v15 = vpack.c.bf16 %v1405_v16, %v1389_v24 }
 0x126   : > { %v975_v6 = vadd.f32 %v974_v52, %v8099_v10  ;;  %v8162_v48 = vpop.f32.mrf.mxu0  ;;  %1673 = vmatpush1.bf16.msra.mxu1 %v1435_v38  ;;  %v821_v38 = vadd.f32 %v8063_v45, %v8118_v34  ;;  %v1342_v52 = vmax.f32 %v831_v1, 0.0  ;;  %v1325_v45 = vmax.f32 %v825_v27, 0.0 }
 0x127   : > { %v8164_v9 = vpop.f32.mrf.mxu1  ;;  %1674 = vmatprep.subr.bf16.mxu1 %v1420_v58  ;;  %v1293_v1 = vmax.f32 %v815_v51, 0.0 }
 0x128   : > { %v1345_v50 = vmax.f32 %v975_v6, 0.0  ;;  %v8174_v18 = vpop.f32.mrf.mxu0  ;;  %v1310_v11 = vmax.f32 %v821_v38, 0.0  ;;  %v1438_v44 = vpack.c.bf16 %v1342_v52, %v1326_v17  ;;  %v1437_v14 = vpack.c.bf16 %v1341_v63, %v1325_v45 }
 0x129   : > { %v8176_v19 = vpop.f32.mrf.mxu1  ;;  %v1421_v30 = vpack.c.bf16 %v1309_v43, %v1293_v1  ;;  %v904_v52 = vadd.f32 %v8162_v48, %v8099_v10  ;;  %v908_v48 = vadd.f32 %v8174_v18, %v8079_v57  ;;  %v894_v18 = vadd.f32 %v8133_v12, %v8118_v34 }
 0x12a   : > { %v8178_v20 = vpack.c.bf16 %v1345_v50, %v1329_v59  ;;  %v909_v56 = vpop.f32.mrf.mxu0  ;;  %1675 = vmatpush1.bf16.msra.mxu1 %v1419_v5  ;;  %v8211_v59 = vld [vmem:[%s14187_s3 + $0x8] sm:$0xff]   ;;  %v1422_v61 = vpack.c.bf16 %v1310_v11, %v1294_v8  ;;  %v900_v11 = vadd.f32 %v8144_v31, %v8095_v7  ;;  %v890_v12 = vadd.f32 %v8114_v32, %v8110_v25  ;;  %v8272_v32 = vld [vmem:[%s14187_s3 + $0x18] sm:$0xff]  }
 0x12b   : > { %v8185_v46 = vpop.f32.mrf.mxu1  ;;  %1781 = vmatprep.subr.bf16.mxu1 %v1470_v21 }
 0x12c   : > { %v911_v36 = vpop.f32.mrf.mxu0 }
 0x12d   : > { %v8193_v37 = vpop.f32.mrf.mxu1  ;;  %7281 = vmatmul.mubr.msk.bf16.vlgmr.msra.gmra.mxu1 %vm1635_vm2, %v8183_v53 }
 0x12e   : > { %v913_v47 = vpop.f32.mrf.mxu0  ;;  %1782 = vmatpush1.bf16.msra.mxu1 %v1469_v15  ;;  %1702 = vmatprep.mubr.bf16.mxu1 %v14198_v0  ;;  %v910_v15 = vadd.f32 %v909_v56, %v8079_v57  ;;  %v8234_v56 = vld [vmem:[%s14187_s3 + $0x10] sm:$0xff]  }
 0x12f   : > { %v8199_v58 = vpop.f32.mrf.mxu1  ;;  %1783 = vmatprep.subr.bf16.mxu1 %v1454_v39  ;;  %v914_v4 = vadd.f32 %v913_v47, %v8089_v2  ;;  %v912_v39 = vadd.f32 %v911_v36, %v8089_v2 }
 0x130   : > { %v917_v6 = vpop.f32.mrf.mxu0 }
 0x131   : > { %v8206_v5 = vpop.f32.mrf.mxu1  ;;  %v918_v27 = vadd.f32 %v917_v6, %v8075_v54  ;;  %v1376_v47 = vmax.f32 %v914_v4, 0.0  ;;  %v902_v4 = vadd.f32 %v8153_v40, %v8099_v10  ;;  %v1359_v40 = vmax.f32 %v908_v48, 0.0 }
 0x132   : > { %v919_v50 = vpop.f32.mrf.mxu0  ;;  %1784 = vmatpush1.bf16.msra.mxu1 %v1453_v3  ;;  %v1296_v48 = vmax.f32 %v890_v12, 0.0  ;;  %v8294_v12 = vld [vmem:[%s14187_s3 + $0x20] sm:$0xff]  }
 0x133   : > { %v992_v22 = vpop.f32.mrf.mxu1  ;;  %1785 = vmatprep.subr.bf16.mxu1 %v1438_v44  ;;  %v920_v49 = vadd.f32 %v919_v50, %v8075_v54  ;;  %v1391_v36 = vmax.f32 %v918_v27, 0.0 }
 0x134   : > { %v921_v16 = vpop.f32.mrf.mxu0  ;;  %v993_v21 = vadd.f32 %v992_v22, %v8075_v54  ;;  %v1360_v22 = vmax.f32 %v910_v15, 0.0  ;;  %v1328_v15 = vmax.f32 %v900_v11, 0.0 }
 0x135   : > { %v8214_v41 = vpop.f32.mrf.mxu1  ;;  %v922_v24 = vadd.f32 %v921_v16, %v8085_v62  ;;  %7282 = vmatmul.mubr.msk.bf16.gmra.mxu1 %vm1635_vm2, %v8211_v59  ;;  %v1392_v63 = vmax.f32 %v920_v49, 0.0  ;;  %v1375_v16 = vmax.f32 %v912_v39, 0.0 }
 0x136   : > { %v923_v28 = vpop.f32.mrf.mxu0  ;;  %1786 = vmatpush1.bf16.msra.mxu1 %v1437_v14  ;;  %1712 = vmatprep.mubr.bf16.mxu1 %v14198_v0  ;;  %v1394_v3 = vmax.f32 %v993_v21, 0.0  ;;  %v1456_v27 = vpack.c.bf16 %v1376_v47, %v1360_v22 }
 0x137   : > { %v996_v29 = vpop.f32.mrf.mxu1  ;;  %v924_v38 = vadd.f32 %v923_v28, %v8085_v62  ;;  %1787 = vmatprep.subr.bf16.mxu1 %v1422_v61  ;;  %v1407_v51 = vmax.f32 %v922_v24, 0.0  ;;  %v1344_v24 = vmax.f32 %v904_v52, 0.0  ;;  %v898_v28 = vadd.f32 %v8139_v42, %v8095_v7 }
 0x138   : > { %v997_v17 = vadd.f32 %v996_v29, %v8085_v62  ;;  %v8229_v60 = vpop.f32.mrf.mxu0  ;;  %v892_v52 = vadd.f32 %v8124_v55, %v8118_v34  ;;  %v1343_v42 = vmax.f32 %v902_v4, 0.0  ;;  %v1455_v39 = vpack.c.bf16 %v1375_v16, %v1359_v40 }
 0x139   : > { %v1106_v45 = vpop.f32.mrf.mxu1  ;;  %v1408_v6 = vmax.f32 %v924_v38, 0.0  ;;  %v1471_v49 = vpack.c.bf16 %v1407_v51, %v1391_v36 }
 0x13a   : > { %v1410_v8 = vmax.f32 %v997_v17, 0.0  ;;  %v8240_v44 = vpop.f32.mrf.mxu0  ;;  %1788 = vmatpush1.bf16.msra.mxu1 %v1421_v30  ;;  %v1107_v1 = vadd.f32 %v1106_v45, %v8110_v25  ;;  %v1312_v45 = vmax.f32 %v894_v18, 0.0  ;;  %v1311_v22 = vmax.f32 %v892_v52, 0.0 }
 0x13b   : > { %v8242_v50 = vpop.f32.mrf.mxu1  ;;  %v1472_v43 = vpack.c.bf16 %v1408_v6, %v1392_v63  ;;  %v888_v6 = vadd.f32 %v8108_v23, %v8110_v25 }
 0x13c   : > { %14563 = vst [vmem:[#allocation9_spill] sm:$0xff] %v8242_v50  ;;  %v1474_v14 = vpack.c.bf16 %v1410_v8, %v1394_v3  ;;  %v8247_v31 = vpop.f32.mrf.mxu0  ;;  %v1301_v38 = vmax.f32 %v1107_v1, 0.0  ;;  %v1440_v3 = vpack.c.bf16 %v1344_v24, %v1328_v15  ;;  %v1327_v8 = vmax.f32 %v898_v28, 0.0 }
 0x13d   : > { %v1110_v21 = vpop.f32.mrf.mxu1  ;;  %7283 = vmatmul.mubr.msk.bf16.gmra.mxu1 %vm1635_vm2, %v8234_v56  ;;  %1894 = vmatprep.subr.bf16.mxu0 %v1472_v43  ;;  %v1424_v23 = vpack.c.bf16 %v1312_v45, %v1296_v48  ;;  %v1295_v16 = vmax.f32 %v888_v6, 0.0 }
 0x13e   : > { %v1111_v61 = vadd.f32 %v1110_v21, %v8118_v34  ;;  %2007 = vmatprep.subr.bf16.mxu1 %v1474_v14  ;;  %v8256_v29 = vpop.f32.mrf.mxu0  ;;  %1895 = vmatpush1.bf16.msra.mxu0 %v1471_v49  ;;  %v1439_v1 = vpack.c.bf16 %v1343_v42, %v1327_v8 }
 0x13f   : > { %v8258_v30 = vpop.f32.mrf.mxu1  ;;  %1896 = vmatprep.subr.bf16.mxu0 %v1456_v27  ;;  %1722 = vmatprep.mubr.bf16.mxu1 %v14198_v0 }
 0x140   : > { %14564 = vst [vmem:[#allocation10_spill] sm:$0xff] %v8258_v30  ;;  %v1317_v17 = vmax.f32 %v1111_v61, 0.0  ;;  %v8265_v47 = vpop.f32.mrf.mxu0  ;;  %v1423_v61 = vpack.c.bf16 %v1311_v22, %v1295_v16  ;;  %v8315_v22 = vld [vmem:[%s14187_s3 + $0x28] sm:$0xff]  }
 0x141   : > { %v1116_v51 = vpop.f32.mrf.mxu1 }
 0x142   : > { %v8267_v63 = vpack.c.bf16 %v1317_v17, %v1301_v38  ;;  %v8276_v11 = vpop.f32.mrf.mxu0  ;;  %1897 = vmatpush1.bf16.msra.mxu0 %v1455_v39  ;;  %v1117_v36 = vadd.f32 %v1116_v51, %v8095_v7 }
 0x143   : > { %v8278_v55 = vpop.f32.mrf.mxu1  ;;  %1898 = vmatprep.subr.bf16.mxu0 %v1440_v3 }
 0x144   : > { %14565 = vst [vmem:[#allocation11_spill] sm:$0xff] %v8267_v63  ;;  %14566 = vst [vmem:[#allocation12_spill] sm:$0xff] %v8278_v55  ;;  %v8281_v43 = vpop.f32.mrf.mxu0  ;;  %v1333_v18 = vmax.f32 %v1117_v36, 0.0 }
 0x145   : > { %v1120_v14 = vpop.f32.mrf.mxu1  ;;  %7284 = vmatmul.mubr.msk.bf16.gmra.mxu1 %vm1635_vm2, %v8272_v32 }
 0x146   : > { %v1121_v4 = vadd.f32 %v1120_v14, %v8099_v10  ;;  %v1049_v49 = vpop.f32.mrf.mxu0  ;;  %1899 = vmatpush1.bf16.msra.mxu0 %v1439_v1  ;;  %1732 = vmatprep.mubr.bf16.mxu1 %v14198_v0 }
 0x147   : > { %v8286_v21 = vpop.f32.mrf.mxu1  ;;  %1900 = vmatprep.subr.bf16.mxu0 %v1424_v23 }
 0x148   : > { %14567 = vst [vmem:[#allocation13_spill] sm:$0xff] %v8286_v21  ;;  %v1349_v24 = vmax.f32 %v1121_v4, 0.0  ;;  %v1053_v27 = vpop.f32.mrf.mxu0 }
 0x149   : > { %v1126_v28 = vpop.f32.mrf.mxu1 }
 0x14a   : > { %v8289_v40 = vpack.c.bf16 %v1349_v24, %v1333_v18  ;;  %v1055_v15 = vpop.f32.mrf.mxu0  ;;  %1901 = vmatpush1.bf16.msra.mxu0 %v1423_v61  ;;  %v1127_v17 = vadd.f32 %v1126_v28, %v8079_v57 }
 0x14b   : > { %v8296_v38 = vpop.f32.mrf.mxu1 }
 0x14c   : > { %14568 = vst [vmem:[#allocation14_spill] sm:$0xff] %v8289_v40  ;;  %v1057_v52 = vpop.f32.mrf.mxu0  ;;  %v1365_v3 = vmax.f32 %v1127_v17, 0.0  ;;  %v8341_v40 = vld [vmem:[%s14187_s3 + $0x30] sm:$0xff]  }
 0x14d   : > { %v1130_v42 = vpop.f32.mrf.mxu1  ;;  %7285 = vmatmul.mubr.msk.bf16.gmra.mxu1 %vm1635_vm2, %v8294_v12  ;;  %7297 = vmatmul.mubr.msk.bf16.vlgmr.msra.gmra.mxu0 %vm1635_vm2, %v8183_v53 }
 0x14e   : > { %v1131_v39 = vadd.f32 %v1130_v42, %v8089_v2  ;;  %v1059_v51 = vpop.f32.mrf.mxu0  ;;  %1742 = vmatprep.mubr.bf16.mxu1 %v14198_v0  ;;  %1928 = vmatprep.mubr.bf16.mxu0 %v14198_v0 }
 0x14f   : > { %v8304_v45 = vpop.f32.mrf.mxu1  ;;  %v1060_v24 = vadd.f32 %v1059_v51, %v8089_v2 }
 0x150   : > { %v1381_v6 = vmax.f32 %v1131_v39, 0.0  ;;  %v1063_v8 = vpop.f32.mrf.mxu0  ;;  %v1056_v39 = vadd.f32 %v1055_v15, %v8079_v57  ;;  %v1054_v15 = vadd.f32 %v1053_v27, %v8079_v57 }
 0x151   : > { %v8308_v48 = vpop.f32.mrf.mxu1  ;;  %v1064_v17 = vadd.f32 %v1063_v8, %v8075_v54  ;;  %v1380_v8 = vmax.f32 %v1060_v24, 0.0 }
 0x152   : > { %v8310_v36 = vpack.c.bf16 %v1381_v6, %v1365_v3  ;;  %v1065_v1 = vpop.f32.mrf.mxu0 }
 0x153   : > { %v8317_v14 = vpop.f32.mrf.mxu1  ;;  %v1066_v16 = vadd.f32 %v1065_v1, %v8075_v54  ;;  %v1058_v1 = vadd.f32 %v1057_v52, %v8089_v2  ;;  %v1395_v50 = vmax.f32 %v1064_v17, 0.0 }
 0x154   : > { %14569 = vst [vmem:[#allocation15_spill] sm:$0xff] %v8310_v36  ;;  %v1067_v4 = vpop.f32.mrf.mxu0 }
 0x155   : > { %v8319_v23 = vpop.f32.mrf.mxu1  ;;  %v1068_v18 = vadd.f32 %v1067_v4, %v8085_v62  ;;  %7286 = vmatmul.mubr.msk.bf16.gmra.mxu1 %vm1635_vm2, %v8315_v22  ;;  %7298 = vmatmul.mubr.msk.bf16.gmra.mxu0 %vm1635_vm2, %v8211_v59  ;;  %v1396_v4 = vmax.f32 %v1066_v16, 0.0  ;;  %v1379_v24 = vmax.f32 %v1058_v1, 0.0 }
 0x156   : > { %v1069_v61 = vpop.f32.mrf.mxu0  ;;  %1752 = vmatprep.mubr.bf16.mxu1 %v14198_v0  ;;  %1938 = vmatprep.mubr.bf16.mxu0 %v14198_v0  ;;  %v1050_v0 = vadd.f32 %v1049_v49, %v8099_v10  ;;  %v1048_v49 = vadd.f32 %v8281_v43, %v8099_v10 }
 0x157   : > { %v8328_v28 = vpop.f32.mrf.mxu1  ;;  %v1070_v42 = vadd.f32 %v1069_v61, %v8085_v62  ;;  %v1411_v51 = vmax.f32 %v1068_v18, 0.0  ;;  %v1046_v18 = vadd.f32 %v8276_v11, %v8095_v7 }
 0x158   : > { %v8335_v3 = vpop.f32.mrf.mxu0  ;;  %v1348_v11 = vmax.f32 %v1050_v0, 0.0  ;;  %v1036_v0 = vadd.f32 %v8240_v44, %v8110_v25 }
 0x159   : > { %v1252_v6 = vpop.f32.mrf.mxu1  ;;  %v1412_v63 = vmax.f32 %v1070_v42, 0.0  ;;  %v1364_v42 = vmax.f32 %v1056_v39, 0.0  ;;  %v1475_v21 = vpack.c.bf16 %v1411_v51, %v1395_v50  ;;  %v14571_v39 = vmov 0  }
 0x15a   : > { %v8344_v36 = vpop.f32.mrf.mxu0  ;;  %v1253_v52 = vadd.f32 %v1252_v6, %v8110_v25  ;;  %v1044_v50 = vadd.f32 %v8265_v47, %v8095_v7 }
 0x15b   : > { %v8346_v61 = vpop.f32.mrf.mxu1  ;;  %v1476_v16 = vpack.c.bf16 %v1412_v63, %v1396_v4  ;;  %v1040_v63 = vadd.f32 %v8256_v29, %v8118_v34  ;;  %v1460_v43 = vpack.c.bf16 %v1380_v8, %v1364_v42  ;;  %v1332_v29 = vmax.f32 %v1046_v18, 0.0 }
 0x15c   : > { %14570 = vst [vmem:[#allocation16_spill] sm:$0xff] %v8346_v61  ;;  %v8352_v30 = vpop.f32.mrf.mxu0  ;;  %v1305_v6 = vmax.f32 %v1253_v52, 0.0  ;;  %v1038_v8 = vadd.f32 %v8247_v31, %v8118_v34  ;;  %v1034_v18 = vadd.f32 %v8229_v60, %v8110_v25 }
 0x15d   : > { %v1256_v55 = vpop.f32.mrf.mxu1  ;;  %7287 = vmatmul.mubr.msk.bf16.gmra.mxu1 %vm1635_vm2, %v8341_v40  ;;  %7299 = vmatmul.mubr.msk.bf16.gmra.mxu0 %vm1635_vm2, %v8234_v56  ;;  %v1444_v52 = vpack.c.bf16 %v1348_v11, %v1332_v29 }
 0x15e   : > { %v1257_v61 = vadd.f32 %v1256_v55, %v8118_v34  ;;  %2120 = vmatprep.subr.bf16.mxu0 %v1476_v16  ;;  %v8363_v27 = vpop.f32.mrf.mxu0  ;;  %1762 = vmatprep.mubr.bf16.mxu1 %v14571_v39  ;;  %v1363_v55 = vmax.f32 %v1054_v15, 0.0  ;;  %v1347_v16 = vmax.f32 %v1048_v49, 0.0  ;;  %v995_v49 = vadd.f32 %v8214_v41, %v8085_v62 }
 0x15f   : > { %v8365_v17 = vpop.f32.mrf.mxu1  ;;  %2121 = vmatpush1.bf16.msra.mxu0 %v1475_v21  ;;  %1948 = vmatprep.mubr.bf16.mxu0 %v14571_v39  ;;  %v8382_v21 = vld [vmem:[%s14187_s3 + $0x38] sm:$0xff]   ;;  %v991_v41 = vadd.f32 %v8206_v5, %v8075_v54 }
 0x160   : > { %v1321_v1 = vmax.f32 %v1257_v61, 0.0  ;;  %2122 = vmatprep.subr.bf16.mxu0 %v1460_v43  ;;  %v8373_v4 = vpop.f32.mrf.mxu0  ;;  %v1459_v42 = vpack.c.bf16 %v1379_v24, %v1363_v55  ;;  %v1316_v61 = vmax.f32 %v1040_v63, 0.0  ;;  %v1331_v43 = vmax.f32 %v1044_v50, 0.0 }
 0x161   : > { %v1262_v51 = vpop.f32.mrf.mxu1  ;;  %v1300_v24 = vmax.f32 %v1036_v0, 0.0  ;;  %v1409_v5 = vmax.f32 %v995_v49, 0.0 }
 0x162   : > { %v8377_v47 = vpack.c.bf16 %v1321_v1, %v1305_v6  ;;  %v8384_v15 = vpop.f32.mrf.mxu0  ;;  %v1263_v31 = vadd.f32 %v1262_v51, %v8095_v7  ;;  %v987_v6 = vadd.f32 %v8199_v58, %v8089_v2  ;;  %v1315_v1 = vmax.f32 %v1038_v8, 0.0 }
 0x163   : > { %v8386_v44 = vpop.f32.mrf.mxu1  ;;  %2123 = vmatpush1.bf16.msra.mxu0 %v1459_v42  ;;  %v1443_v11 = vpack.c.bf16 %v1347_v16, %v1331_v43  ;;  %v1428_v0 = vpack.c.bf16 %v1316_v61, %v1300_v24  ;;  %v983_v58 = vadd.f32 %v8185_v46, %v8079_v57  ;;  %v1299_v51 = vmax.f32 %v1034_v18, 0.0 }
 0x164   : > { %14572 = vst [vmem:[#allocation17_spill] sm:$0xff] %v8377_v47  ;;  %2124 = vmatprep.subr.bf16.mxu0 %v1444_v52  ;;  %v8393_v55 = vpop.f32.mrf.mxu0  ;;  %v1337_v8 = vmax.f32 %v1263_v31, 0.0  ;;  %v985_v42 = vadd.f32 %v8193_v37, %v8089_v2  ;;  %v977_v61 = vadd.f32 %v8164_v9, %v8099_v10  ;;  %v1378_v24 = vmax.f32 %v987_v6, 0.0 }
 0x165   : > { %v1266_v63 = vpop.f32.mrf.mxu1  ;;  %7288 = vmatmul.mubr.msk.bf16.gmra.mxu1 %vm1635_vm2, %v8382_v21  ;;  %7300 = vmatmul.mubr.msk.bf16.gmra.mxu0 %vm1635_vm2, %v8272_v32  ;;  %v981_v46 = vadd.f32 %v8176_v19, %v8079_v57  ;;  %v1393_v18 = vmax.f32 %v991_v41, 0.0  ;;  %v973_v37 = vadd.f32 %v8146_v35, %v8095_v7  ;;  %v1362_v49 = vmax.f32 %v983_v58, 0.0 }
 0x166   : > { %v1267_v29 = vadd.f32 %v1266_v63, %v8099_v10  ;;  %v8404_v60 = vpop.f32.mrf.mxu0  ;;  %1805 = vmatprep.mubr.bf16.mxu1 %v14571_v39  ;;  %1958 = vmatprep.mubr.bf16.mxu0 %v14571_v39  ;;  %v1427_v63 = vpack.c.bf16 %v1315_v1, %v1299_v51  ;;  %v1377_v9 = vmax.f32 %v985_v42, 0.0  ;;  %v967_v51 = vadd.f32 %v8135_v13, %v8118_v34 }
 0x167   : > { %v8406_v50 = vpop.f32.mrf.mxu1  ;;  %2125 = vmatpush1.bf16.msra.mxu0 %v1443_v11  ;;  %v1473_v6 = vpack.c.bf16 %v1409_v5, %v1393_v18  ;;  %v1346_v19 = vmax.f32 %v977_v61, 0.0  ;;  %v1458_v35 = vpack.c.bf16 %v1378_v24, %v1362_v49  ;;  %v1361_v58 = vmax.f32 %v981_v46, 0.0 }
 0x168   : > { %v1353_v16 = vmax.f32 %v1267_v29, 0.0  ;;  %2126 = vmatprep.subr.bf16.mxu0 %v1428_v0  ;;  %v8414_v52 = vpop.f32.mrf.mxu0  ;;  %v1330_v42 = vmax.f32 %v973_v37, 0.0  ;;  %v1143_v24 = vadd.f32 %v8328_v28, %v8085_v62 }
 0x169   : > { %v1272_v43 = vpop.f32.mrf.mxu1 }
 0x16a   : > { %v8418_v47 = vpack.c.bf16 %v1353_v16, %v1337_v8  ;;  %v8422_v31 = vpop.f32.mrf.mxu0  ;;  %v1273_v29 = vadd.f32 %v1272_v43, %v8079_v57  ;;  %v963_v16 = vadd.f32 %v8116_v33, %v8110_v25  ;;  %v1457_v43 = vpack.c.bf16 %v1377_v9, %v1361_v58 }
 0x16b   : > { %v8424_v11 = vpop.f32.mrf.mxu1  ;;  %2127 = vmatpush1.bf16.msra.mxu0 %v1427_v63  ;;  %v1314_v63 = vmax.f32 %v967_v51, 0.0  ;;  %v1442_v18 = vpack.c.bf16 %v1346_v19, %v1330_v42  ;;  %v1139_v33 = vadd.f32 %v8317_v14, %v8075_v54  ;;  %v1202_v42 = vadd.f32 %v8422_v31, %v8079_v57 }
 0x16c   : > { %v1203_v1 = vpop.f32.mrf.mxu0  ;;  %v1369_v13 = vmax.f32 %v1273_v29, 0.0  ;;  %v1414_v29 = vmax.f32 %v1143_v24, 0.0 }
 0x16d   : > { %v1276_v0 = vpop.f32.mrf.mxu1  ;;  %7289 = vmatmul.mubr.msk.bf16.vlgmr.msra.gmra.mxu1 %vm1635_vm2, %v8183_v53  ;;  %7301 = vmatmul.mubr.msk.bf16.gmra.mxu0 %vm1635_vm2, %v8294_v12  ;;  %v1398_v51 = vmax.f32 %v1139_v33, 0.0 }
 0x16e   : > { %v1277_v41 = vadd.f32 %v1276_v0, %v8089_v2  ;;  %2008 = vmatpush1.bf16.msra.mxu1 %v1473_v6  ;;  %v1205_v8 = vpop.f32.mrf.mxu0  ;;  %1815 = vmatprep.mubr.bf16.mxu1 %v14571_v39  ;;  %v1298_v6 = vmax.f32 %v963_v16, 0.0 }
 0x16f   : > { %2009 = vmatprep.subr.bf16.mxu1 %v1458_v35  ;;  %1968 = vmatprep.mubr.bf16.mxu0 %v14571_v39  ;;  %v1478_v35 = vpack.c.bf16 %v1414_v29, %v1398_v51  ;;  %v1206_v16 = vadd.f32 %v1205_v8, %v8089_v2  ;;  %v1196_v8 = vadd.f32 %v8404_v60, %v8099_v10 }
 0x170   : > { %v1385_v5 = vmax.f32 %v1277_v41, 0.0  ;;  %v1209_v61 = vpop.f32.mrf.mxu0  ;;  %v1426_v28 = vpack.c.bf16 %v1314_v63, %v1298_v6  ;;  %v1200_v63 = vadd.f32 %v8414_v52, %v8079_v57 }
 0x171   : > { %v1352_v33 = vmax.f32 %v1196_v8, 0.0 }
 0x172   : > { %v8442_v46 = vpack.c.bf16 %v1385_v5, %v1369_v13  ;;  %2010 = vmatpush1.bf16.msra.mxu1 %v1457_v43  ;;  %v1211_v49 = vpop.f32.mrf.mxu0  ;;  %v1204_v13 = vadd.f32 %v1203_v1, %v8089_v2  ;;  %v1384_v43 = vmax.f32 %v1206_v16, 0.0  ;;  %v1186_v1 = vadd.f32 %v8363_v27, %v8118_v34 }
 0x173   : > { %2011 = vmatprep.subr.bf16.mxu1 %v1442_v18  ;;  %v1212_v0 = vadd.f32 %v1211_v49, %v8075_v54  ;;  %v1368_v18 = vmax.f32 %v1202_v42, 0.0  ;;  %v1194_v49 = vadd.f32 %v8393_v55, %v8099_v10  ;;  %v1367_v52 = vmax.f32 %v1200_v63, 0.0 }
 0x174   : > { %v1213_v37 = vpop.f32.mrf.mxu0  ;;  %v1383_v6 = vmax.f32 %v1204_v13, 0.0  ;;  %v1182_v55 = vadd.f32 %v8344_v36, %v8110_v25  ;;  %v1184_v27 = vadd.f32 %v8352_v30, %v8118_v34  ;;  %v1133_v16 = vadd.f32 %v8304_v45, %v8089_v2  ;;  %v14573_v45 = vld [vmem:[#allocation13_spill] sm:$0xff] }
 0x175   : > { %7290 = vmatmul.mubr.msk.bf16.gmra.mxu1 %vm1635_vm2, %v8211_v59  ;;  %7302 = vmatmul.mubr.msk.bf16.gmra.mxu0 %vm1635_vm2, %v8315_v22  ;;  %v1400_v19 = vmax.f32 %v1212_v0, 0.0  ;;  %v1464_v60 = vpack.c.bf16 %v1384_v43, %v1368_v18  ;;  %v1351_v29 = vmax.f32 %v1194_v49, 0.0  ;;  %v14575_v49 = vld [vmem:[#allocation10_spill] sm:$0xff] }
 0x176   : > { %2012 = vmatpush1.bf16.msra.mxu1 %v8178_v20  ;;  %v1215_v9 = vpop.f32.mrf.mxu0  ;;  %1825 = vmatprep.mubr.bf16.mxu1 %v14571_v39  ;;  %v1214_v20 = vadd.f32 %v1213_v37, %v8085_v62  ;;  %v1463_v0 = vpack.c.bf16 %v1383_v6, %v1367_v52  ;;  %v1382_v8 = vmax.f32 %v1133_v16, 0.0  ;;  %v1113_v6 = vadd.f32 %v14575_v49, %v8118_v34 }
 0x177   : > { %v1216_v14 = vadd.f32 %v1215_v9, %v8085_v62  ;;  %2013 = vmatprep.subr.bf16.mxu1 %v1426_v28  ;;  %1978 = vmatprep.mubr.bf16.mxu0 %v14571_v39  ;;  %v1320_v28 = vmax.f32 %v1186_v1, 0.0 }
 0x178   : > { %v1415_v5 = vmax.f32 %v1214_v20, 0.0  ;;  %v1141_v20 = vadd.f32 %v8319_v23, %v8085_v62  ;;  %v1129_v23 = vadd.f32 %v8296_v38, %v8079_v57  ;;  %v1318_v52 = vmax.f32 %v1113_v6, 0.0 }
 0x179   : > { %v1416_v41 = vmax.f32 %v1216_v14, 0.0  ;;  %v1304_v14 = vmax.f32 %v1182_v55, 0.0  ;;  %v1259_v6 = vadd.f32 %v8365_v17, %v8118_v34 }
 0x17a   : > { %2014 = vmatpush1.bf16.msra.mxu1 %v8142_v26  ;;  %v1210_v26 = vadd.f32 %v1209_v61, %v8075_v54  ;;  %v1192_v61 = vadd.f32 %v8384_v15, %v8095_v7  ;;  %v1190_v15 = vadd.f32 %v8373_v4, %v8095_v7  ;;  %v1180_v4 = vadd.f32 %v8335_v3, %v8110_v25 }
 0x17b   : > { %2233 = vmatprep.subr.bf16.mxu1 %v1478_v35  ;;  %v1480_v58 = vpack.c.bf16 %v1416_v41, %v1400_v19  ;;  %v1319_v19 = vmax.f32 %v1184_v27, 0.0  ;;  %v1432_v30 = vpack.c.bf16 %v1320_v28, %v1304_v14  ;;  %v8508_v35 = vpop.f32.mrf.mxu1  ;;  %v1413_v13 = vmax.f32 %v1141_v20, 0.0  ;;  %v14577_v27 = vld [vmem:[#allocation15_spill] sm:$0xff] }
 0x17c   : > { %v1399_v24 = vmax.f32 %v1210_v26, 0.0  ;;  %v1336_v37 = vmax.f32 %v1192_v61, 0.0  ;;  %v1335_v51 = vmax.f32 %v1190_v15, 0.0  ;;  %v1303_v41 = vmax.f32 %v1180_v4, 0.0  ;;  %v14578_v4 = vld [vmem:[#allocation14_spill] sm:$0xff] }
 0x17d   : > { %7291 = vmatmul.mubr.msk.bf16.gmra.mxu1 %vm1635_vm2, %v8234_v56  ;;  %7303 = vmatmul.mubr.msk.bf16.gmra.mxu0 %vm1635_vm2, %v8341_v40  ;;  %v1137_v26 = vadd.f32 %v8308_v48, %v8075_v54  ;;  %v1366_v48 = vmax.f32 %v1129_v23, 0.0 }
 0x17e   : > { %2346 = vmatprep.subr.bf16.mxu0 %v1480_v58  ;;  %1835 = vmatprep.mubr.bf16.mxu1 %v14571_v39  ;;  %v1479_v31 = vpack.c.bf16 %v1415_v5, %v1399_v24  ;;  %v1448_v9 = vpack.c.bf16 %v1352_v33, %v1336_v37  ;;  %v1447_v36 = vpack.c.bf16 %v1351_v29, %v1335_v51  ;;  %v8512_v58 = vpop.f32.mrf.mxu1  ;;  %v14574_v24 = vld [vmem:[#allocation12_spill] sm:$0xff]  ;;  %v14576_v33 = vld [vmem:[#allocation9_spill] sm:$0xff] }
 0x17f   : > { %1988 = vmatprep.mubr.bf16.mxu0 %v14571_v39  ;;  %v1431_v3 = vpack.c.bf16 %v1319_v19, %v1303_v41  ;;  %v1123_v5 = vadd.f32 %v14573_v45, %v8099_v10  ;;  %v1397_v43 = vmax.f32 %v1137_v26, 0.0  ;;  %v1119_v61 = vadd.f32 %v14574_v24, %v8095_v7  ;;  %v14579_v19 = vld [vmem:[#allocation11_spill] sm:$0xff] }
 0x180   : > { %v1284_v42 = vpop.f32.mrf.mxu1  ;;  %v1462_v38 = vpack.c.bf16 %v1382_v8, %v1366_v48  ;;  %v1283_v24 = vadd.f32 %v8512_v58, %v8075_v54 }
 0x181   : > { %v1477_v18 = vpack.c.bf16 %v1413_v13, %v1397_v43  ;;  %v1334_v15 = vmax.f32 %v1119_v61, 0.0  ;;  %v1279_v43 = vadd.f32 %v8508_v35, %v8089_v2  ;;  %v1269_v2 = vadd.f32 %v8406_v50, %v8099_v10 }
 0x182   : > { %v8530_v63 = vpop.f32.mrf.mxu1  ;;  %v1401_v48 = vmax.f32 %v1283_v24, 0.0 }
 0x183   : > { %v1386_v35 = vmax.f32 %v1279_v43, 0.0  ;;  %v14588_v43 = vld [vmem:[#allocation17_spill] sm:$0xff] }
 0x184   : > { %v1288_v1 = vpop.f32.mrf.mxu1 }
 0x185   : > { %7292 = vmatmul.mubr.msk.bf16.gmra.mxu1 %vm1635_vm2, %v8272_v32  ;;  %7304 = vmatmul.mubr.msk.bf16.gmra.mxu0 %vm1635_vm2, %v8382_v21  ;;  %v1289_v55 = vadd.f32 %v1288_v1, %v8085_v62 }
 0x186   : > { %1845 = vmatprep.mubr.bf16.mxu1 %v14571_v39  ;;  %2144 = vmatprep.mubr.bf16.mxu0 %v14571_v39 }
 0x187   : > { %v1418_v28 = vmax.f32 %v1289_v55, 0.0 }
 0x18d   : > { %7293 = vmatmul.mubr.msk.bf16.gmra.mxu1 %vm1635_vm2, %v8294_v12  ;;  %7313 = vmatmul.mubr.msk.bf16.vlgmr.msra.gmra.mxu0 %vm1635_vm2, %v8183_v53 }
 0x18e   : > { %2347 = vmatpush1.bf16.msra.mxu0 %v1479_v31  ;;  %1855 = vmatprep.mubr.bf16.mxu1 %v14571_v39  ;;  %v1350_v31 = vmax.f32 %v1123_v5, 0.0  ;;  %v1287_v5 = vadd.f32 %v8530_v63, %v8085_v62  ;;  %v1275_v62 = vadd.f32 %v8424_v11, %v8079_v57 }
 0x18f   : > { %2348 = vmatprep.subr.bf16.mxu0 %v1464_v60  ;;  %2154 = vmatprep.mubr.bf16.mxu0 %v14571_v39  ;;  %v1109_v60 = vadd.f32 %v14576_v33, %v8110_v25 }
 0x190   : > { %v1446_v37 = vpack.c.bf16 %v1350_v31, %v1334_v15  ;;  %v1417_v63 = vmax.f32 %v1287_v5, 0.0  ;;  %v1370_v58 = vmax.f32 %v1275_v62, 0.0  ;;  %v1354_v31 = vmax.f32 %v1269_v2, 0.0 }
 0x191   : > { %v1302_v29 = vmax.f32 %v1109_v60, 0.0 }
 0x192   : > { %2349 = vmatpush1.bf16.msra.mxu0 %v1463_v0  ;;  %v1285_v0 = vadd.f32 %v1284_v42, %v8075_v54  ;;  %v1265_v54 = vadd.f32 %v8386_v44, %v8095_v7  ;;  %v1481_v49 = vpack.c.bf16 %v1417_v63, %v1401_v48  ;;  %v1466_v10 = vpack.c.bf16 %v1386_v35, %v1370_v58  ;;  %v14586_v7 = vld [vmem:[#allocation16_spill] sm:$0xff] }
 0x193   : > { %2350 = vmatprep.subr.bf16.mxu0 %v1448_v9  ;;  %v1430_v9 = vpack.c.bf16 %v1318_v52, %v1302_v29  ;;  %v1255_v44 = vadd.f32 %v14586_v7, %v8110_v25 }
 0x194   : > { %v1402_v51 = vmax.f32 %v1285_v0, 0.0  ;;  %v1338_v11 = vmax.f32 %v1265_v54, 0.0 }
 0x195   : > { %7294 = vmatmul.mubr.msk.bf16.gmra.mxu1 %vm1635_vm2, %v8315_v22  ;;  %7314 = vmatmul.mubr.msk.bf16.gmra.mxu0 %vm1635_vm2, %v8211_v59  ;;  %v1306_v52 = vmax.f32 %v1255_v44, 0.0 }
 0x196   : > { %2351 = vmatpush1.bf16.msra.mxu0 %v1447_v36  ;;  %1865 = vmatprep.mubr.bf16.mxu1 %v14571_v39  ;;  %v1482_v14 = vpack.c.bf16 %v1418_v28, %v1402_v51  ;;  %v8561_v36 = vpop.permute.xlu0 %1587  ;;  %v1450_v33 = vpack.c.bf16 %v1354_v31, %v1338_v11 }
 0x197   : > { %2352 = vmatprep.subr.bf16.mxu0 %v1432_v30  ;;  %2164 = vmatprep.mubr.bf16.mxu0 %v14571_v39  ;;  %v8569_v30 = vpop.permute.xlu1 %1592 }
 0x19a   : > { %2353 = vmatpush1.bf16.msra.mxu0 %v1431_v3  ;;  %v8571_v41 = vpop.permute.xlu0 %1577 }
 0x19b   : > { %v8573_v3 = vpop.permute.xlu1 %1582 }
 0x19d   : > { %7295 = vmatmul.mubr.msk.bf16.gmra.mxu1 %vm1635_vm2, %v8341_v40  ;;  %7315 = vmatmul.mubr.msk.bf16.gmra.mxu0 %vm1635_vm2, %v8234_v56 }
 0x19e   : > { %1875 = vmatprep.mubr.bf16.mxu1 %v14571_v39  ;;  %2174 = vmatprep.mubr.bf16.mxu0 %v14571_v39  ;;  %v8581_v20 = vpop.permute.xlu0 %1567 }
 0x19f   : > { %v8583_v16 = vpop.permute.xlu1 %1572 }
 0x1a2   : > { %v8591_v26 = vpop.permute.xlu0 %1557 }
 0x1a3   : > { %v8593_v42 = vpop.permute.xlu1 %1562 }
 0x1a5   : > { %7296 = vmatmul.mubr.msk.bf16.gmra.mxu1 %vm1635_vm2, %v8382_v21  ;;  %7316 = vmatmul.mubr.msk.bf16.gmra.mxu0 %vm1635_vm2, %v8272_v32 }
 0x1a6   : > { %2031 = vmatprep.mubr.bf16.mxu1 %v14571_v39  ;;  %2184 = vmatprep.mubr.bf16.mxu0 %v14571_v39  ;;  %v8595_v23 = vpop.permute.xlu0 %1547 }
 0x1a7   : > { %14580 = vst [vmem:[#allocation13_spill] sm:$0xff] %v8595_v23  ;;  %v8603_v13 = vpop.permute.xlu1 %1552 }
 0x1aa   : > { %v8605_v45 = vpop.permute.xlu0 %1537 }
 0x1ab   : > { %14581 = vst [vmem:[#allocation12_spill] sm:$0xff] %v8605_v45  ;;  %v8609_v8 = vpop.permute.xlu1 %1542 }
 0x1ac   : > { %14582 = vst [vmem:[#allocation10_spill] sm:$0xff] %v8609_v8 }
 0x1ad   : > { %7305 = vmatmul.mubr.msk.bf16.vlgmr.msra.gmra.mxu1 %vm1635_vm2, %v8183_v53  ;;  %7317 = vmatmul.mubr.msk.bf16.gmra.mxu0 %vm1635_vm2, %v8294_v12 }
 0x1ae   : > { %2234 = vmatpush1.bf16.msra.mxu1 %v1477_v18  ;;  %2041 = vmatprep.mubr.bf16.mxu1 %v14571_v39  ;;  %v8623_v61 = vpop.permute.xlu0 %1527 }
 0x1af   : > { %2235 = vmatprep.subr.bf16.mxu1 %v1462_v38  ;;  %2194 = vmatprep.mubr.bf16.mxu0 %v14571_v39  ;;  %14583 = vst [vmem:[#allocation9_spill] sm:$0xff] %v8623_v61  ;;  %v8627_v18 = vpop.permute.xlu1 %1532  ;;  %v1322_v38 = vmax.f32 %v1259_v6, 0.0 }
 0x1b0   : > { %14584 = vst [vmem:[#allocation15_spill] sm:$0xff] %v8627_v18 }
 0x1b1   : > { %v1434_v0 = vpack.c.bf16 %v1322_v38, %v1306_v52 }
 0x1b2   : > { %2236 = vmatpush1.bf16.msra.mxu1 %v14577_v27  ;;  %v8638_v50 = vpop.permute.xlu0 %1517 }
 0x1b3   : > { %2237 = vmatprep.subr.bf16.mxu1 %v1446_v37  ;;  %14585 = vst [vmem:[#allocation14_spill] sm:$0xff] %v8638_v50 }
 0x1b5   : > { %7306 = vmatmul.mubr.msk.bf16.gmra.mxu1 %vm1635_vm2, %v8211_v59  ;;  %7318 = vmatmul.mubr.msk.bf16.gmra.mxu0 %vm1635_vm2, %v8315_v22 }
 0x1b6   : > { %2238 = vmatpush1.bf16.msra.mxu1 %v14578_v4  ;;  %2051 = vmatprep.mubr.bf16.mxu1 %v14571_v39 }
 0x1b7   : > { %2239 = vmatprep.subr.bf16.mxu1 %v1430_v9  ;;  %2204 = vmatprep.mubr.bf16.mxu0 %v14571_v39 }
 0x1ba   : > { %2240 = vmatpush1.bf16.msra.mxu1 %v14579_v19 }
 0x1bb   : > { %2459 = vmatprep.subr.bf16.mxu1 %v1482_v14 }
 0x1bd   : > { %7307 = vmatmul.mubr.msk.bf16.gmra.mxu1 %vm1635_vm2, %v8234_v56  ;;  %7319 = vmatmul.mubr.msk.bf16.gmra.mxu0 %vm1635_vm2, %v8341_v40 }
 0x1be   : > { %2061 = vmatprep.mubr.bf16.mxu1 %v14571_v39  ;;  %2214 = vmatprep.mubr.bf16.mxu0 %v14571_v39 }
 0x1c5   : > { %7308 = vmatmul.mubr.msk.bf16.gmra.mxu1 %vm1635_vm2, %v8272_v32  ;;  %7320 = vmatmul.mubr.msk.bf16.gmra.mxu0 %vm1635_vm2, %v8382_v21 }
 0x1c6   : > { %2071 = vmatprep.mubr.bf16.mxu1 %v14571_v39  ;;  %2370 = vmatprep.mubr.bf16.mxu0 %v14571_v39 }
 0x1cd   : > { %7309 = vmatmul.mubr.msk.bf16.gmra.mxu1 %vm1635_vm2, %v8294_v12  ;;  %7329 = vmatmul.mubr.msk.bf16.vlgmr.msra.gmra.mxu0 %vm1635_vm2, %v8183_v53 }
 0x1ce   : > { %2081 = vmatprep.mubr.bf16.mxu1 %v14571_v39  ;;  %2380 = vmatprep.mubr.bf16.mxu0 %v14571_v39 }
 0x1d5   : > { %7310 = vmatmul.mubr.msk.bf16.gmra.mxu1 %vm1635_vm2, %v8315_v22  ;;  %7330 = vmatmul.mubr.msk.bf16.gmra.mxu0 %vm1635_vm2, %v8211_v59 }
 0x1d6   : > { %2091 = vmatprep.mubr.bf16.mxu1 %v14571_v39  ;;  %2390 = vmatprep.mubr.bf16.mxu0 %v14571_v39 }
 0x1dd   : > { %7311 = vmatmul.mubr.msk.bf16.gmra.mxu1 %vm1635_vm2, %v8341_v40  ;;  %7331 = vmatmul.mubr.msk.bf16.gmra.mxu0 %vm1635_vm2, %v8234_v56 }
 0x1de   : > { %2101 = vmatprep.mubr.bf16.mxu1 %v14571_v39  ;;  %2400 = vmatprep.mubr.bf16.mxu0 %v14571_v39 }
 0x1e5   : > { %7312 = vmatmul.mubr.msk.bf16.gmra.mxu1 %vm1635_vm2, %v8382_v21  ;;  %7332 = vmatmul.mubr.msk.bf16.gmra.mxu0 %vm1635_vm2, %v8272_v32 }
 0x1e6   : > { %2257 = vmatprep.mubr.bf16.mxu1 %v14571_v39  ;;  %2410 = vmatprep.mubr.bf16.mxu0 %v14571_v39 }
 0x1ed   : > { %v1694_v57 = vpop.f32.mrf.mxu1  ;;  %7321 = vmatmul.mubr.msk.bf16.vlgmr.msra.gmra.mxu1 %vm1635_vm2, %v8183_v53  ;;  %7333 = vmatmul.mubr.msk.bf16.gmra.mxu0 %vm1635_vm2, %v8294_v12  ;;  %v8644_v53 = vpop.permute.xlu1 %1522 }
 0x1ee   : > { %2460 = vmatpush1.bf16.msra.mxu1 %v1481_v49  ;;  %2267 = vmatprep.mubr.bf16.mxu1 %v14571_v39  ;;  %v1695_v17 = vadd.f32 %v1694_v57, %v8638_v50  ;;  %14587 = vst [vmem:[#allocation11_spill] sm:$0xff] %v8644_v53 }
 0x1ef   : > { %2461 = vmatprep.subr.bf16.mxu1 %v1466_v10  ;;  %v1696_v34 = vpop.f32.mrf.mxu1  ;;  %2420 = vmatprep.mubr.bf16.mxu0 %v14571_v39 }
 0x1f0   : > { %v1697_v60 = vadd.f32 %v1696_v34, %v8638_v50  ;;  %v2564_v55 = vmax.f32 %v1695_v17, 0.0 }
 0x1f1   : > { %v1698_v1 = vpop.f32.mrf.mxu1 }
 0x1f2   : > { %v1699_v15 = vadd.f32 %v1698_v1, %v8644_v53  ;;  %2462 = vmatpush1.bf16.msra.mxu1 %v8442_v46  ;;  %v2565_v28 = vmax.f32 %v1697_v60, 0.0 }
 0x1f3   : > { %2463 = vmatprep.subr.bf16.mxu1 %v1450_v33  ;;  %v1700_v25 = vpop.f32.mrf.mxu1 }
 0x1f4   : > { %v2580_v37 = vmax.f32 %v1699_v15, 0.0  ;;  %v1701_v27 = vadd.f32 %v1700_v25, %v8644_v53 }
 0x1f5   : > { %v1704_v29 = vpop.f32.mrf.mxu1  ;;  %7322 = vmatmul.mubr.msk.bf16.gmra.mxu1 %vm1635_vm2, %v8211_v59  ;;  %7334 = vmatmul.mubr.msk.bf16.gmra.mxu0 %vm1635_vm2, %v8315_v22 }
 0x1f6   : > { %v8654_v9 = vpack.c.bf16 %v2580_v37, %v2564_v55  ;;  %v2581_v4 = vmax.f32 %v1701_v27, 0.0  ;;  %2464 = vmatpush1.bf16.msra.mxu1 %v8418_v47  ;;  %2277 = vmatprep.mubr.bf16.mxu1 %v14571_v39  ;;  %v1705_v51 = vadd.f32 %v1704_v29, %v8623_v61 }
 0x1f7   : > { %2465 = vmatprep.subr.bf16.mxu1 %v1434_v0  ;;  %v1706_v46 = vpop.f32.mrf.mxu1  ;;  %2430 = vmatprep.mubr.bf16.mxu0 %v14571_v39 }
 0x1f8   : > { %v8660_v14 = vpack.c.bf16 %v2581_v4, %v2565_v28  ;;  %v1707_v19 = vadd.f32 %v1706_v46, %v8623_v61  ;;  %v2596_v62 = vmax.f32 %v1705_v51, 0.0 }
 0x1f9   : > { %v1708_v59 = vpop.f32.mrf.mxu1 }
 0x1fa   : > { %v1709_v5 = vadd.f32 %v1708_v59, %v8627_v18  ;;  %2466 = vmatpush1.bf16.msra.mxu1 %v14588_v43  ;;  %v2597_v35 = vmax.f32 %v1707_v19, 0.0 }
 0x1fb   : > { %v1710_v24 = vpop.f32.mrf.mxu1 }
 0x1fc   : > { %v2612_v47 = vmax.f32 %v1709_v5, 0.0  ;;  %v1711_v63 = vadd.f32 %v1710_v24, %v8627_v18 }
 0x1fd   : > { %v8666_v2 = vpop.f32.mrf.mxu1  ;;  %7323 = vmatmul.mubr.msk.bf16.gmra.mxu1 %vm1635_vm2, %v8234_v56  ;;  %7335 = vmatmul.mubr.msk.bf16.gmra.mxu0 %vm1635_vm2, %v8341_v40 }
 0x1fe   : > { %v8672_v48 = vpack.c.bf16 %v2612_v47, %v2596_v62  ;;  %v2613_v54 = vmax.f32 %v1711_v63, 0.0  ;;  %2287 = vmatprep.mubr.bf16.mxu1 %v14571_v39  ;;  %2440 = vmatprep.mubr.bf16.mxu0 %v14571_v39 }
 0x1ff   : > { %v8676_v58 = vpop.f32.mrf.mxu1 }
 0x200   : > { %v8678_v49 = vpack.c.bf16 %v2613_v54, %v2597_v35 }
 0x201   : > { %v8680_v6 = vpop.f32.mrf.mxu1 }
 0x203   : > { %v8682_v31 = vpop.f32.mrf.mxu1 }
 0x205   : > { %v8684_v56 = vpop.f32.mrf.mxu1  ;;  %7324 = vmatmul.mubr.msk.bf16.gmra.mxu1 %vm1635_vm2, %v8272_v32  ;;  %7336 = vmatmul.mubr.msk.bf16.gmra.mxu0 %vm1635_vm2, %v8382_v21 }
 0x206   : > { %2297 = vmatprep.mubr.bf16.mxu1 %v14571_v39  ;;  %3300 = vmatprep.mubr.bf16.mxu0 %v14571_v39 }
 0x207   : > { %v8692_v57 = vpop.f32.mrf.mxu1 }
 0x209   : > { %v8694_v10 = vpop.f32.mrf.mxu1 }
 0x20b   : > { %v8696_v7 = vpop.f32.mrf.mxu1 }
 0x20d   : > { %v8698_v44 = vpop.f32.mrf.mxu1  ;;  %v1920_v11 = vpop.f32.mrf.mxu0  ;;  %7325 = vmatmul.mubr.msk.bf16.gmra.mxu1 %vm1635_vm2, %v8294_v12 }
 0x20e   : > { %2307 = vmatprep.mubr.bf16.mxu1 %v14571_v39  ;;  %v1921_v17 = vadd.f32 %v1920_v11, %v8638_v50 }
 0x20f   : > { %v8703_v32 = vpop.f32.mrf.mxu1  ;;  %v8705_v34 = vpop.f32.mrf.mxu0 }
 0x210   : > { %14589 = vst [vmem:[#allocation16_spill] sm:$0xff] %v8705_v34  ;;  %v2568_v52 = vmax.f32 %v1921_v17, 0.0 }
 0x211   : > { %v8708_v38 = vpop.f32.mrf.mxu1  ;;  %v1924_v1 = vpop.f32.mrf.mxu0 }
 0x212   : > { %v1925_v33 = vadd.f32 %v1924_v1, %v8644_v53 }
 0x213   : > { %v8711_v60 = vpop.f32.mrf.mxu1  ;;  %v8713_v15 = vpop.f32.mrf.mxu0 }
 0x214   : > { %14590 = vst [vmem:[#allocation17_spill] sm:$0xff] %v8713_v15  ;;  %v2584_v25 = vmax.f32 %v1925_v33, 0.0 }
 0x215   : > { %v8715_v12 = vpop.f32.mrf.mxu1  ;;  %v1930_v55 = vpop.f32.mrf.mxu0  ;;  %7326 = vmatmul.mubr.msk.bf16.gmra.mxu1 %vm1635_vm2, %v8315_v22 }
 0x216   : > { %v8719_v37 = vpack.c.bf16 %v2584_v25, %v2568_v52  ;;  %2317 = vmatprep.mubr.bf16.mxu1 %v14571_v39  ;;  %v1931_v0 = vadd.f32 %v1930_v55, %v8623_v61 }
 0x217   : > { %v1746_v27 = vpop.f32.mrf.mxu1  ;;  %v8722_v29 = vpop.f32.mrf.mxu0 }
 0x218   : > { %14591 = vst [vmem:[#allocation18_spill] sm:$0xff] %v8719_v37  ;;  %14592 = vst [vmem:[#allocation19_spill] sm:$0xff] %v8722_v29  ;;  %v2600_v19 = vmax.f32 %v1931_v0, 0.0 }
 0x219   : > { %v1748_v28 = vpop.f32.mrf.mxu1  ;;  %v1934_v4 = vpop.f32.mrf.mxu0 }
 0x21a   : > { %v1935_v46 = vadd.f32 %v1934_v4, %v8627_v18 }
 0x21b   : > { %v1750_v51 = vpop.f32.mrf.mxu1  ;;  %v8726_v59 = vpop.f32.mrf.mxu0 }
 0x21c   : > { %14593 = vst [vmem:[#allocation20_spill] sm:$0xff] %v8726_v59  ;;  %v2616_v5 = vmax.f32 %v1935_v46, 0.0  ;;  %v1747_v59 = vadd.f32 %v1746_v27, %v8581_v20 }
 0x21d   : > { %v1754_v43 = vpop.f32.mrf.mxu1  ;;  %v8728_v22 = vpop.f32.mrf.mxu0  ;;  %7327 = vmatmul.mubr.msk.bf16.gmra.mxu1 %vm1635_vm2, %v8341_v40 }
 0x21e   : > { %14594 = vst [vmem:[#allocation21_spill] sm:$0xff] %v8728_v22  ;;  %v8732_v24 = vpack.c.bf16 %v2616_v5, %v2600_v19  ;;  %2327 = vmatprep.mubr.bf16.mxu1 %v14571_v39 }
 0x21f   : > { %v1756_v62 = vpop.f32.mrf.mxu1  ;;  %v8735_v47 = vpop.f32.mrf.mxu0 }
 0x220   : > { %14595 = vst [vmem:[#allocation22_spill] sm:$0xff] %v8732_v24  ;;  %14596 = vst [vmem:[#allocation23_spill] sm:$0xff] %v8735_v47 }
 0x221   : > { %v1758_v63 = vpop.f32.mrf.mxu1  ;;  %v8737_v35 = vpop.f32.mrf.mxu0 }
 0x222   : > { %14597 = vst [vmem:[#allocation24_spill] sm:$0xff] %v8737_v35  ;;  %v1759_v24 = vadd.f32 %v1758_v63, %v8573_v3 }
 0x223   : > { %v1760_v54 = vpop.f32.mrf.mxu1  ;;  %v8739_v11 = vpop.f32.mrf.mxu0 }
 0x224   : > { %14598 = vst [vmem:[#allocation25_spill] sm:$0xff] %v8739_v11  ;;  %v1761_v55 = vadd.f32 %v1760_v54, %v8573_v3  ;;  %v7447_v54 = vld [vmem:[%s14187_s3] sm:$0xff]  }
 0x225   : > { %v1764_v17 = vpop.f32.mrf.mxu1  ;;  %v8741_v1 = vpop.f32.mrf.mxu0  ;;  %7328 = vmatmul.mubr.msk.bf16.gmra.mxu1 %vm1635_vm2, %v8382_v21  ;;  %v1757_v21 = vadd.f32 %v1756_v62, %v8571_v41  ;;  %v1755_v62 = vadd.f32 %v1754_v43, %v8571_v41 }
 0x226   : > { %14599 = vst [vmem:[#allocation26_spill] sm:$0xff] %v8741_v1  ;;  %2483 = vmatprep.mubr.bf16.mxu1 %v14571_v39  ;;  %v1765_v46 = vadd.f32 %v1764_v17, %v8561_v36  ;;  %v1751_v17 = vadd.f32 %v1750_v51, %v8583_v16  ;;  %v1741_v51 = vadd.f32 %v8711_v60, %v8593_v42 }
 0x227   : > { %v1766_v40 = vpop.f32.mrf.mxu1  ;;  %v8746_v33 = vpop.f32.mrf.mxu0  ;;  %v2757_v35 = vmax.f32 %v1757_v21, 0.0  ;;  %v1737_v60 = vadd.f32 %v8703_v32, %v8591_v26  ;;  %v2725_v21 = vmax.f32 %v1747_v59, 0.0 }
 0x228   : > { %v1767_v0 = vadd.f32 %v1766_v40, %v8561_v36  ;;  %v2773_v40 = vmax.f32 %v1761_v55, 0.0  ;;  %v2788_v63 = vmax.f32 %v1765_v46, 0.0  ;;  %v1749_v55 = vadd.f32 %v1748_v28, %v8583_v16 }
 0x229   : > { %v1768_v52 = vpop.f32.mrf.mxu1  ;;  %v8748_v25 = vpop.f32.mrf.mxu0  ;;  %v2741_v43 = vmax.f32 %v1751_v17, 0.0  ;;  %v2756_v28 = vmax.f32 %v1755_v62, 0.0 }
 0x22a   : > { %14600 = vst [vmem:[#allocation27_spill] sm:$0xff] %v8748_v25  ;;  %v1769_v4 = vadd.f32 %v1768_v52, %v8569_v30  ;;  %v2789_v52 = vmax.f32 %v1767_v0, 0.0  ;;  %v2917_v27 = vpack.c.bf16 %v2773_v40, %v2757_v35  ;;  %v2740_v40 = vmax.f32 %v1749_v55, 0.0 }
 0x22b   : > { %v1770_v19 = vpop.f32.mrf.mxu1  ;;  %v8754_v5 = vpop.f32.mrf.mxu0  ;;  %v2901_v62 = vpack.c.bf16 %v2741_v43, %v2725_v21  ;;  %v1721_v43 = vadd.f32 %v8682_v31, %v8609_v8  ;;  %v1725_v31 = vadd.f32 %v8684_v56, %v8595_v23 }
 0x22c   : > { %v1771_v37 = vadd.f32 %v1770_v19, %v8569_v30  ;;  %v2804_v34 = vmax.f32 %v1769_v4, 0.0 }
 0x22d   : > { %v1807_v15 = vpop.f32.mrf.mxu1  ;;  %v8759_v29 = vpop.f32.mrf.mxu0  ;;  %7337 = vmatmul.mubr.msk.bf16.vlgmr.msra.gmra.mxu1 %vm1635_vm2, %v7447_v54 }
 0x22e   : > { %v2805_v22 = vmax.f32 %v1771_v37, 0.0  ;;  %2493 = vmatprep.mubr.bf16.mxu1 %v14571_v39  ;;  %v1808_v47 = vadd.f32 %v1807_v15, %v8638_v50  ;;  %v2772_v37 = vmax.f32 %v1759_v24, 0.0  ;;  %v2932_v0 = vpack.c.bf16 %v2804_v34, %v2788_v63 }
 0x22f   : > { %v1809_v4 = vpop.f32.mrf.mxu1  ;;  %v8768_v19 = vpop.f32.mrf.mxu0  ;;  %v8781_v15 = vadd.f32 %v8696_v7, %v8603_v13  ;;  %v1745_v34 = vadd.f32 %v8715_v12, %v8581_v20  ;;  %v1739_v7 = vadd.f32 %v8708_v38, %v8593_v42  ;;  %v7448_v12 = vld [vmem:[%s14187_s3 + $0x8] sm:$0xff]   ;;  %v1735_v38 = vadd.f32 %v8698_v44, %v8591_v26 }
 0x230   : > { %v2933_v1 = vpack.c.bf16 %v2805_v22, %v2789_v52  ;;  %v1810_v46 = vadd.f32 %v1809_v4, %v8638_v50  ;;  %v2566_v17 = vmax.f32 %v1808_v47, 0.0  ;;  %v2916_v32 = vpack.c.bf16 %v2772_v37, %v2756_v28 }
 0x231   : > { %v1811_v54 = vpop.f32.mrf.mxu1  ;;  %v8775_v11 = vpop.f32.mrf.mxu0  ;;  %v1729_v44 = vadd.f32 %v8694_v10, %v8603_v13 }
 0x232   : > { %v1812_v25 = vadd.f32 %v1811_v54, %v8644_v53  ;;  %3268 = vmatprep.subr.bf16.mxu0 %v2933_v1  ;;  %v2709_v1 = vmax.f32 %v1741_v51, 0.0  ;;  %v2567_v59 = vmax.f32 %v1810_v46, 0.0  ;;  %v2724_v51 = vmax.f32 %v1745_v34, 0.0 }
 0x233   : > { %v1813_v22 = vpop.f32.mrf.mxu1  ;;  %v8787_v24 = vpop.f32.mrf.mxu0  ;;  %3269 = vmatpush1.bf16.msra.mxu0 %v2932_v0  ;;  %v1727_v0 = vadd.f32 %v8692_v57, %v8595_v23  ;;  %v2693_v54 = vmax.f32 %v1737_v60, 0.0  ;;  %v2708_v34 = vmax.f32 %v1739_v7, 0.0 }
 0x234   : > { %v2582_v52 = vmax.f32 %v1812_v25, 0.0  ;;  %v1814_v35 = vadd.f32 %v1813_v22, %v8644_v53  ;;  %3270 = vmatprep.subr.bf16.mxu0 %v2917_v27  ;;  %v2900_v28 = vpack.c.bf16 %v2740_v40, %v2724_v51 }
 0x235   : > { %v1817_v63 = vpop.f32.mrf.mxu1  ;;  %v8792_v4 = vpop.f32.mrf.mxu0  ;;  %7338 = vmatmul.mubr.msk.bf16.gmra.mxu1 %vm1635_vm2, %v7448_v12  ;;  %v2661_v40 = vmax.f32 %v1727_v0, 0.0 }
 0x236   : > { %v8798_v47 = vpack.c.bf16 %v2582_v52, %v2566_v17  ;;  %v2583_v25 = vmax.f32 %v1814_v35, 0.0  ;;  %2503 = vmatprep.mubr.bf16.mxu1 %v14571_v39  ;;  %v1818_v46 = vadd.f32 %v1817_v63, %v8623_v61  ;;  %v2677_v17 = vmax.f32 %v8781_v15, 0.0 }
 0x237   : > { %v1819_v55 = vpop.f32.mrf.mxu1  ;;  %v8803_v37 = vpop.f32.mrf.mxu0  ;;  %3271 = vmatpush1.bf16.msra.mxu0 %v2916_v32  ;;  %v2885_v52 = vpack.c.bf16 %v2709_v1, %v2693_v54  ;;  %v1717_v35 = vadd.f32 %v8676_v58, %v8605_v45  ;;  %v2692_v32 = vmax.f32 %v1735_v38, 0.0  ;;  %v1719_v1 = vadd.f32 %v8680_v6, %v8609_v8  ;;  %v7449_v38 = vld [vmem:[%s14187_s3 + $0x10] sm:$0xff]  }
 0x238   : > { %3272 = vmatprep.subr.bf16.mxu0 %v2901_v62  ;;  %v8808_v27 = vpack.c.bf16 %v2583_v25, %v2567_v59  ;;  %v1820_v57 = vadd.f32 %v1819_v55, %v8623_v61  ;;  %v2598_v63 = vmax.f32 %v1818_v46, 0.0  ;;  %v2645_v59 = vmax.f32 %v1721_v43, 0.0 }
 0x239   : > { %v1821_v22 = vpop.f32.mrf.mxu1  ;;  %v8814_v21 = vpop.f32.mrf.mxu0  ;;  %v2676_v25 = vmax.f32 %v1729_v44, 0.0  ;;  %v2884_v58 = vpack.c.bf16 %v2708_v34, %v2692_v32  ;;  %v2869_v54 = vpack.c.bf16 %v2677_v17, %v2661_v40  ;;  %v1715_v6 = vadd.f32 %v8666_v2, %v8605_v45 }
 0x23a   : > { %v1822_v60 = vadd.f32 %v1821_v22, %v8627_v18  ;;  %v2599_v51 = vmax.f32 %v1820_v57, 0.0  ;;  %v2660_v46 = vmax.f32 %v1725_v31, 0.0  ;;  %v2629_v34 = vmax.f32 %v1717_v35, 0.0  ;;  %v7450_v35 = vld [vmem:[%s14187_s3 + $0x18] sm:$0xff]  }
 0x23b   : > { %v1823_v10 = vpop.f32.mrf.mxu1  ;;  %v8823_v7 = vpop.f32.mrf.mxu0  ;;  %3273 = vmatpush1.bf16.msra.mxu0 %v2900_v28  ;;  %v2644_v22 = vmax.f32 %v1719_v1, 0.0  ;;  %v2628_v32 = vmax.f32 %v1715_v6, 0.0 }
 0x23c   : > { %v2614_v12 = vmax.f32 %v1822_v60, 0.0  ;;  %v1824_v15 = vadd.f32 %v1823_v10, %v8627_v18  ;;  %3274 = vmatprep.subr.bf16.mxu0 %v2885_v52  ;;  %v2868_v57 = vpack.c.bf16 %v2676_v25, %v2660_v46  ;;  %v2853_v17 = vpack.c.bf16 %v2645_v59, %v2629_v34 }
 0x23d   : > { %v8828_v62 = vpop.f32.mrf.mxu1  ;;  %v1980_v56 = vpop.f32.mrf.mxu0  ;;  %7339 = vmatmul.mubr.msk.bf16.gmra.mxu1 %vm1635_vm2, %v7449_v38  ;;  %v2852_v2 = vpack.c.bf16 %v2644_v22, %v2628_v32 }
 0x23e   : > { %v8834_v55 = vpack.c.bf16 %v2614_v12, %v2598_v63  ;;  %v2615_v0 = vmax.f32 %v1824_v15, 0.0  ;;  %2513 = vmatprep.mubr.bf16.mxu1 %v14571_v39 }
 0x23f   : > { %v8839_v43 = vpop.f32.mrf.mxu1  ;;  %v1982_v44 = vpop.f32.mrf.mxu0  ;;  %3275 = vmatpush1.bf16.msra.mxu0 %v2884_v58 }
 0x240   : > { %3276 = vmatprep.subr.bf16.mxu0 %v2869_v54  ;;  %v8841_v28 = vpack.c.bf16 %v2615_v0, %v2599_v51  ;;  %v1983_v6 = vadd.f32 %v1982_v44, %v8571_v41 }
 0x241   : > { %v8843_v60 = vpop.f32.mrf.mxu1  ;;  %v1984_v52 = vpop.f32.mrf.mxu0 }
 0x242   : > { %v1985_v46 = vadd.f32 %v1984_v52, %v8573_v3 }
 0x243   : > { %v8845_v10 = vpop.f32.mrf.mxu1  ;;  %v1986_v40 = vpop.f32.mrf.mxu0  ;;  %3277 = vmatpush1.bf16.msra.mxu0 %v2868_v57 }
 0x244   : > { %3278 = vmatprep.subr.bf16.mxu0 %v2853_v17  ;;  %v1987_v25 = vadd.f32 %v1986_v40, %v8573_v3  ;;  %v7451_v17 = vld [vmem:[%s14187_s3 + $0x20] sm:$0xff]  }
 0x245   : > { %v8847_v31 = vpop.f32.mrf.mxu1  ;;  %v1990_v63 = vpop.f32.mrf.mxu0  ;;  %7340 = vmatmul.mubr.msk.bf16.gmra.mxu1 %vm1635_vm2, %v7450_v35 }
 0x246   : > { %2523 = vmatprep.mubr.bf16.mxu1 %v14571_v39  ;;  %v1991_v51 = vadd.f32 %v1990_v63, %v8561_v36  ;;  %v2777_v44 = vmax.f32 %v1987_v25, 0.0 }
 0x247   : > { %v8854_v12 = vpop.f32.mrf.mxu1  ;;  %v1992_v15 = vpop.f32.mrf.mxu0  ;;  %3279 = vmatpush1.bf16.msra.mxu0 %v2852_v2  ;;  %v8878_v2 = vld [vmem:[#allocation2] sm:$0xff]  }
 0x248   : > { %3280 = vmatprep.subr.bf16.mxu0 %v8678_v49  ;;  %v1993_v58 = vadd.f32 %v1992_v15, %v8561_v36  ;;  %14601 = vst [vmem:[#allocation28_spill] sm:$0xff] %v8878_v2  ;;  %v2792_v52 = vmax.f32 %v1991_v51, 0.0  ;;  %v1973_v15 = vadd.f32 %v8803_v37, %v8581_v20 }
 0x249   : > { %v8857_v1 = vpop.f32.mrf.mxu1  ;;  %v1994_v59 = vpop.f32.mrf.mxu0 }
 0x24a   : > { %v1995_v38 = vadd.f32 %v1994_v59, %v8569_v30  ;;  %v2793_v32 = vmax.f32 %v1993_v58, 0.0  ;;  %v1975_v58 = vadd.f32 %v8814_v21, %v8583_v16 }
 0x24b   : > { %v8863_v0 = vpop.f32.mrf.mxu1  ;;  %v1996_v54 = vpop.f32.mrf.mxu0  ;;  %3281 = vmatpush1.bf16.msra.mxu0 %v8672_v48  ;;  %v1977_v48 = vadd.f32 %v8823_v7, %v8583_v16  ;;  %v2761_v7 = vmax.f32 %v1983_v6, 0.0  ;;  %v1971_v6 = vadd.f32 %v8792_v4, %v8581_v20 }
 0x24c   : > { %v1997_v49 = vadd.f32 %v1996_v54, %v8569_v30  ;;  %3282 = vmatprep.subr.bf16.mxu0 %v8660_v14  ;;  %v2808_v34 = vmax.f32 %v1995_v38, 0.0  ;;  %v1981_v14 = vadd.f32 %v1980_v56, %v8571_v41  ;;  %v2776_v38 = vmax.f32 %v1985_v46, 0.0 }
 0x24d   : > { %v8870_v22 = vpop.f32.mrf.mxu1  ;;  %v2146_v57 = vpop.f32.mrf.mxu0  ;;  %7341 = vmatmul.mubr.msk.bf16.gmra.mxu1 %vm1635_vm2, %v7451_v17  ;;  %v2745_v17 = vmax.f32 %v1977_v48, 0.0  ;;  %v2921_v37 = vpack.c.bf16 %v2777_v44, %v2761_v7  ;;  %v1965_v44 = vadd.f32 %v8775_v11, %v8593_v42  ;;  %v7452_v7 = vld [vmem:[%s14187_s3 + $0x28] sm:$0xff]   ;;  %v1961_v11 = vadd.f32 %v8759_v29, %v8591_v26 }
 0x24e   : > { %v2809_v40 = vmax.f32 %v1997_v49, 0.0  ;;  %2533 = vmatprep.mubr.bf16.mxu1 %v14571_v39  ;;  %v2147_v59 = vadd.f32 %v2146_v57, %v8638_v50  ;;  %v2936_v54 = vpack.c.bf16 %v2808_v34, %v2792_v52  ;;  %v1967_v49 = vadd.f32 %v8787_v24, %v8593_v42 }
 0x24f   : > { %v8882_v63 = vpop.f32.mrf.mxu1  ;;  %v8884_v35 = vpop.f32.mrf.mxu0  ;;  %3283 = vmatpush1.bf16.msra.mxu0 %v8654_v9  ;;  %v2760_v57 = vmax.f32 %v1981_v14, 0.0  ;;  %v1963_v24 = vadd.f32 %v8768_v19, %v8591_v26  ;;  %v2729_v34 = vmax.f32 %v1973_v15, 0.0  ;;  %v1957_v19 = vadd.f32 %v8754_v5, %v8603_v13 }
 0x250   : > { %14602 = vst [vmem:[#allocation29_spill] sm:$0xff] %v8884_v35  ;;  %v2937_v25 = vpack.c.bf16 %v2809_v40, %v2793_v32  ;;  %v2572_v48 = vmax.f32 %v2147_v59, 0.0  ;;  %v2744_v40 = vmax.f32 %v1975_v58, 0.0  ;;  %v2713_v15 = vmax.f32 %v1967_v49, 0.0 }
 0x251   : > { %v8892_v56 = vpop.f32.mrf.mxu1  ;;  %v2150_v51 = vpop.f32.mrf.mxu0  ;;  %v2920_v4 = vpack.c.bf16 %v2776_v38, %v2760_v57  ;;  %v2728_v58 = vmax.f32 %v1971_v6, 0.0  ;;  %v1953_v5 = vadd.f32 %v8746_v33, %v8595_v23  ;;  %v2697_v49 = vmax.f32 %v1963_v24, 0.0  ;;  %v14608_v6 = vld [vmem:[#allocation25_spill] sm:$0xff]  ;;  %v14609_v24 = vld [vmem:[#allocation26_spill] sm:$0xff] }
 0x252   : > { %v2151_v9 = vadd.f32 %v2150_v51, %v8644_v53  ;;  %3301 = vmatmul.mubr.bf16.vlgmr.msra.gmra.mxu0 %v8878_v2  ;;  %3654 = vmatprep.subr.bf16.mxu0 %v2937_v25  ;;  %v2905_v25 = vpack.c.bf16 %v2745_v17, %v2729_v34  ;;  %v14607_v17 = vld [vmem:[#allocation27_spill] sm:$0xff]  ;;  %v2712_v57 = vmax.f32 %v1965_v44, 0.0 }
 0x253   : > { %v8900_v21 = vpop.f32.mrf.mxu1  ;;  %v8902_v46 = vpop.f32.mrf.mxu0  ;;  %3655 = vmatpush1.bf16.msra.mxu0 %v2936_v54  ;;  %3310 = vmatprep.mubr.bf16.mxu0 %v14571_v39  ;;  %v8919_v54 = vld [vmem:[#allocation2 + $0x8] sm:$0xff]   ;;  %v2904_v34 = vpack.c.bf16 %v2744_v40, %v2728_v58  ;;  %v2889_v33 = vpack.c.bf16 %v2713_v15, %v2697_v49  ;;  %v14611_v40 = vld [vmem:[#allocation23_spill] sm:$0xff]  ;;  %v14612_v15 = vld [vmem:[#allocation24_spill] sm:$0xff] }
 0x254   : > { %14603 = vst [vmem:[#allocation30_spill] sm:$0xff] %v8902_v46  ;;  %v2588_v32 = vmax.f32 %v2151_v9, 0.0  ;;  %3656 = vmatprep.subr.bf16.mxu0 %v2921_v37  ;;  %14605 = vst [vmem:[#allocation32_spill] sm:$0xff] %v8919_v54  ;;  %v1955_v37 = vadd.f32 %v14607_v17, %v8603_v13  ;;  %v1943_v58 = vadd.f32 %v14611_v40, %v8605_v45  ;;  %v14613_v40 = vld [vmem:[#allocation20_spill] sm:$0xff]  ;;  %v8960_v46 = vld [vmem:[#allocation2 + $0x10] sm:$0xff]  }
 0x255   : > { %v8909_v14 = vpop.f32.mrf.mxu1  ;;  %v2156_v52 = vpop.f32.mrf.mxu0  ;;  %7342 = vmatmul.mubr.msk.bf16.gmra.mxu1 %vm1635_vm2, %v7452_v7  ;;  %v2681_v7 = vmax.f32 %v1957_v19, 0.0  ;;  %v2665_v19 = vmax.f32 %v1953_v5, 0.0  ;;  %v1945_v49 = vadd.f32 %v14612_v15, %v8609_v8  ;;  %v1937_v5 = vadd.f32 %v14613_v40, %v8627_v18 }
 0x256   : > { %v8917_v59 = vpack.c.bf16 %v2588_v32, %v2572_v48  ;;  %2543 = vmatprep.mubr.bf16.mxu1 %v14571_v39  ;;  %v2157_v9 = vadd.f32 %v2156_v52, %v8623_v61  ;;  %v1947_v32 = vadd.f32 %v14608_v6, %v8609_v8  ;;  %v1951_v52 = vadd.f32 %v14609_v24, %v8595_v23 }
 0x257   : > { %v8924_v38 = vpop.f32.mrf.mxu1  ;;  %v8926_v51 = vpop.f32.mrf.mxu0  ;;  %3657 = vmatpush1.bf16.msra.mxu0 %v2920_v4  ;;  %v2680_v6 = vmax.f32 %v1955_v37, 0.0  ;;  %v14615_v37 = vld [vmem:[#allocation21_spill] sm:$0xff]  ;;  %v2633_v40 = vmax.f32 %v1943_v58, 0.0 }
 0x258   : > { %14604 = vst [vmem:[#allocation31_spill] sm:$0xff] %v8917_v59  ;;  %14606 = vst [vmem:[#allocation33_spill] sm:$0xff] %v8926_v51  ;;  %3658 = vmatprep.subr.bf16.mxu0 %v2905_v25  ;;  %v2696_v25 = vmax.f32 %v1961_v11, 0.0  ;;  %v2604_v17 = vmax.f32 %v2157_v9, 0.0  ;;  %v2649_v9 = vmax.f32 %v1947_v32, 0.0 }
 0x259   : > { %v8933_v48 = vpop.f32.mrf.mxu1  ;;  %v2160_v29 = vpop.f32.mrf.mxu0 }
 0x25a   : > { %v2161_v4 = vadd.f32 %v2160_v29, %v8627_v18  ;;  %3311 = vmatmul.mubr.bf16.gmra.mxu0 %v8919_v54  ;;  %v2888_v24 = vpack.c.bf16 %v2712_v57, %v2696_v25  ;;  %v1941_v57 = vadd.f32 %v14615_v37, %v8605_v45  ;;  %v2664_v25 = vmax.f32 %v1951_v52, 0.0 }
 0x25b   : > { %v8941_v59 = vpop.f32.mrf.mxu1  ;;  %v8943_v44 = vpop.f32.mrf.mxu0  ;;  %3659 = vmatpush1.bf16.msra.mxu0 %v2904_v34  ;;  %3320 = vmatprep.mubr.bf16.mxu0 %v14571_v39  ;;  %v7453_v34 = vld [vmem:[%s14187_s3 + $0x30] sm:$0xff]   ;;  %v2617_v37 = vmax.f32 %v1937_v5, 0.0 }
 0x25c   : > { %14610 = vst [vmem:[#allocation27_spill] sm:$0xff] %v8943_v44  ;;  %v2620_v29 = vmax.f32 %v2161_v4, 0.0  ;;  %3660 = vmatprep.subr.bf16.mxu0 %v2889_v33  ;;  %v2873_v33 = vpack.c.bf16 %v2681_v7, %v2665_v19  ;;  %v14618_v7 = vld [vmem:[#allocation17_spill] sm:$0xff]  ;;  %v2632_v58 = vmax.f32 %v1941_v57, 0.0 }
 0x25d   : > { %v8950_v11 = vpop.f32.mrf.mxu1  ;;  %v2166_v35 = vpop.f32.mrf.mxu0  ;;  %7343 = vmatmul.mubr.msk.bf16.gmra.mxu1 %vm1635_vm2, %v7453_v34  ;;  %v14617_v34 = vld [vmem:[#allocation19_spill] sm:$0xff]  ;;  %v1927_v19 = vadd.f32 %v14618_v7, %v8644_v53 }
 0x25e   : > { %v8958_v4 = vpack.c.bf16 %v2620_v29, %v2604_v17  ;;  %2553 = vmatprep.mubr.bf16.mxu1 %v14571_v39  ;;  %v1933_v44 = vadd.f32 %v14617_v34, %v8623_v61  ;;  %v2167_v32 = vadd.f32 %v2166_v35, %v8605_v45  ;;  %v2648_v17 = vmax.f32 %v1945_v49, 0.0 }
 0x25f   : > { %v1869_v15 = vpop.f32.mrf.mxu1  ;;  %v8965_v51 = vpop.f32.mrf.mxu0  ;;  %3661 = vmatpush1.bf16.msra.mxu0 %v2888_v24  ;;  %v2872_v29 = vpack.c.bf16 %v2680_v6, %v2664_v25  ;;  %v2857_v24 = vpack.c.bf16 %v2649_v9, %v2633_v40  ;;  %v2585_v5 = vmax.f32 %v1927_v19, 0.0  ;;  %v7454_v9 = vld [vmem:[%s14187_s3 + $0x38] sm:$0xff]  }
 0x260   : > { %14614 = vst [vmem:[#allocation25_spill] sm:$0xff] %v8958_v4  ;;  %14616 = vst [vmem:[#allocation26_spill] sm:$0xff] %v8965_v51  ;;  %3662 = vmatprep.subr.bf16.mxu0 %v2873_v33  ;;  %v14619_v51 = vld [vmem:[#allocation16_spill] sm:$0xff]  ;;  %v2601_v49 = vmax.f32 %v1933_v44, 0.0  ;;  %v2636_v6 = vmax.f32 %v2167_v32, 0.0  ;;  %v2856_v25 = vpack.c.bf16 %v2648_v17, %v2632_v58  ;;  %v8993_v17 = vadd.f32 %v8839_v43, %v8605_v45 }
 0x261   : > { %v1871_v4 = vpop.f32.mrf.mxu1  ;;  %v2170_v54 = vpop.f32.mrf.mxu0  ;;  %v1923_v34 = vadd.f32 %v14619_v51, %v8638_v50  ;;  %v8985_v40 = vld [vmem:[#allocation2 + $0x18] sm:$0xff]  }
 0x262   : > { %v2171_v52 = vadd.f32 %v2170_v54, %v8609_v8  ;;  %3321 = vmatmul.mubr.bf16.gmra.mxu0 %v8960_v46  ;;  %v2841_v57 = vpack.c.bf16 %v2617_v37, %v2601_v49  ;;  %v9002_v49 = vadd.f32 %v8863_v0, %v8603_v13  ;;  %v14624_v0 = vld [vmem:[#allocation22_spill] sm:$0xff] }
 0x263   : > { %v1873_v2 = vpop.f32.mrf.mxu1  ;;  %v8976_v35 = vpop.f32.mrf.mxu0  ;;  %3663 = vmatpush1.bf16.msra.mxu0 %v2872_v29  ;;  %3330 = vmatprep.mubr.bf16.mxu0 %v14571_v39  ;;  %v2569_v44 = vmax.f32 %v1923_v34, 0.0 }
 0x264   : > { %14620 = vst [vmem:[#allocation23_spill] sm:$0xff] %v8976_v35  ;;  %v2652_v33 = vmax.f32 %v2171_v52, 0.0  ;;  %3664 = vmatprep.subr.bf16.mxu0 %v2857_v24  ;;  %v8997_v52 = vadd.f32 %v8843_v60, %v8609_v8  ;;  %v1874_v37 = vadd.f32 %v1873_v2, %v8573_v3  ;;  %v9010_v60 = vadd.f32 %v8882_v63, %v8591_v26 }
 0x265   : > { %v1877_v54 = vpop.f32.mrf.mxu1  ;;  %v2176_v7 = vpop.f32.mrf.mxu0  ;;  %7344 = vmatmul.mubr.msk.bf16.gmra.mxu1 %vm1635_vm2, %v7454_v9  ;;  %v2825_v34 = vpack.c.bf16 %v2585_v5, %v2569_v44  ;;  %v1870_v2 = vadd.f32 %v1869_v15, %v8571_v41  ;;  %v9020_v9 = vadd.f32 %v8892_v56, %v8593_v42  ;;  %v1864_v15 = vadd.f32 %v8941_v59, %v8583_v16 }
 0x266   : > { %v8983_v51 = vpack.c.bf16 %v2652_v33, %v2636_v6  ;;  %3493 = vmatprep.mubr.bf16.mxu1 %v14571_v39  ;;  %v2177_v19 = vadd.f32 %v2176_v7, %v8595_v23  ;;  %v1878_v5 = vadd.f32 %v1877_v54, %v8561_v36  ;;  %v1872_v54 = vadd.f32 %v1871_v4, %v8573_v3 }
 0x267   : > { %v1879_v32 = vpop.f32.mrf.mxu1  ;;  %v8988_v29 = vpop.f32.mrf.mxu0  ;;  %3665 = vmatpush1.bf16.msra.mxu0 %v2856_v25 }
 0x268   : > { %14621 = vst [vmem:[#allocation24_spill] sm:$0xff] %v8983_v51  ;;  %14622 = vst [vmem:[#allocation20_spill] sm:$0xff] %v8988_v29  ;;  %3666 = vmatprep.subr.bf16.mxu0 %v2841_v57  ;;  %v1880_v6 = vadd.f32 %v1879_v32, %v8561_v36  ;;  %v2668_v57 = vmax.f32 %v2177_v19, 0.0  ;;  %v2775_v32 = vmax.f32 %v1874_v37, 0.0  ;;  %v1860_v51 = vadd.f32 %v8924_v38, %v8581_v20  ;;  %v14627_v29 = vld [vmem:[#allocation18_spill] sm:$0xff] }
 0x269   : > { %v1881_v24 = vpop.f32.mrf.mxu1  ;;  %v2180_v58 = vpop.f32.mrf.mxu0  ;;  %v2790_v59 = vmax.f32 %v1878_v5, 0.0  ;;  %v1854_v38 = vadd.f32 %v8900_v21, %v8593_v42  ;;  %v1858_v21 = vadd.f32 %v8909_v14, %v8581_v20 }
 0x26a   : > { %v1882_v33 = vadd.f32 %v1881_v24, %v8569_v30  ;;  %v2181_v43 = vadd.f32 %v2180_v58, %v8603_v13  ;;  %3331 = vmatmul.mubr.bf16.gmra.mxu0 %v8985_v40  ;;  %v2791_v35 = vmax.f32 %v1880_v6, 0.0  ;;  %v1862_v6 = vadd.f32 %v8933_v48, %v8583_v16 }
 0x26b   : > { %v1883_v25 = vpop.f32.mrf.mxu1  ;;  %v9014_v7 = vpop.f32.mrf.mxu0  ;;  %3667 = vmatpush1.bf16.msra.mxu0 %v14624_v0  ;;  %3340 = vmatprep.mubr.bf16.mxu0 %v14571_v39  ;;  %v2727_v48 = vmax.f32 %v1860_v51, 0.0 }
 0x26c   : > { %14623 = vst [vmem:[#allocation21_spill] sm:$0xff] %v9014_v7  ;;  %v2684_v44 = vmax.f32 %v2181_v43, 0.0  ;;  %v1884_v63 = vadd.f32 %v1883_v25, %v8569_v30  ;;  %3668 = vmatprep.subr.bf16.mxu0 %v2825_v34  ;;  %v2806_v24 = vmax.f32 %v1882_v33, 0.0  ;;  %v9030_v43 = vld [vmem:[#allocation2 + $0x20] sm:$0xff]   ;;  %v1868_v34 = vadd.f32 %v8950_v11, %v8571_v41 }
 0x26d   : > { %v2033_v58 = vpop.f32.mrf.mxu1  ;;  %v2186_v0 = vpop.f32.mrf.mxu0  ;;  %v2759_v25 = vmax.f32 %v1870_v2, 0.0  ;;  %v2774_v11 = vmax.f32 %v1872_v54, 0.0 }
 0x26e   : > { %v9028_v56 = vpack.c.bf16 %v2684_v44, %v2668_v57  ;;  %v2807_v19 = vmax.f32 %v1884_v63, 0.0  ;;  %v2034_v4 = vadd.f32 %v2033_v58, %v8638_v50  ;;  %v2187_v57 = vadd.f32 %v2186_v0, %v8591_v26 }
 0x26f   : > { %v2035_v37 = vpop.f32.mrf.mxu1  ;;  %v9035_v33 = vpop.f32.mrf.mxu0  ;;  %3669 = vmatpush1.bf16.msra.mxu0 %v14627_v29  ;;  %v2743_v63 = vmax.f32 %v1864_v15, 0.0  ;;  %v2934_v2 = vpack.c.bf16 %v2806_v24, %v2790_v59  ;;  %v2919_v58 = vpack.c.bf16 %v2775_v32, %v2759_v25  ;;  %v2711_v25 = vmax.f32 %v1854_v38, 0.0 }
 0x270   : > { %14625 = vst [vmem:[#allocation19_spill] sm:$0xff] %v9028_v56  ;;  %14626 = vst [vmem:[#allocation17_spill] sm:$0xff] %v9035_v33  ;;  %v2935_v44 = vpack.c.bf16 %v2807_v19, %v2791_v35  ;;  %v2036_v7 = vadd.f32 %v2035_v37, %v8638_v50  ;;  %v2758_v35 = vmax.f32 %v1868_v34, 0.0  ;;  %v2570_v15 = vmax.f32 %v2034_v4, 0.0 }
 0x271   : > { %v2037_v5 = vpop.f32.mrf.mxu1  ;;  %v2190_v56 = vpop.f32.mrf.mxu0  ;;  %v2700_v32 = vmax.f32 %v2187_v57, 0.0  ;;  %v2742_v59 = vmax.f32 %v1862_v6, 0.0  ;;  %v2903_v51 = vpack.c.bf16 %v2743_v63, %v2727_v48  ;;  %v1848_v57 = vadd.f32 %v8870_v22, %v8591_v26 }
 0x272   : > { %v2038_v33 = vadd.f32 %v2037_v5, %v8644_v53  ;;  %v2191_v29 = vadd.f32 %v2190_v56, %v8593_v42  ;;  %3341 = vmatmul.mubr.bf16.gmra.mxu0 %v9030_v43  ;;  %3461 = vmatprep.subr.bf16.mxu1 %v2935_v44  ;;  %v2918_v37 = vpack.c.bf16 %v2774_v11, %v2758_v35  ;;  %v2571_v34 = vmax.f32 %v2036_v7, 0.0 }
 0x273   : > { %v2039_v54 = vpop.f32.mrf.mxu1  ;;  %v9049_v24 = vpop.f32.mrf.mxu0  ;;  %3462 = vmatpush1.bf16.msra.mxu1 %v2934_v2  ;;  %3350 = vmatprep.mubr.bf16.mxu0 %v14571_v39  ;;  %v2726_v38 = vmax.f32 %v1858_v21, 0.0  ;;  %v1834_v7 = vadd.f32 %v8845_v10, %v8609_v8  ;;  %v2695_v63 = vmax.f32 %v9010_v60, 0.0  ;;  %v2679_v22 = vmax.f32 %v9002_v49, 0.0 }
 0x274   : > { %14628 = vst [vmem:[#allocation16_spill] sm:$0xff] %v9049_v24  ;;  %v2586_v0 = vmax.f32 %v2038_v33, 0.0  ;;  %v2716_v19 = vmax.f32 %v2191_v29, 0.0  ;;  %v2040_v56 = vadd.f32 %v2039_v54, %v8644_v53  ;;  %3463 = vmatprep.subr.bf16.mxu1 %v2919_v58  ;;  %v9057_v24 = vld [vmem:[#allocation2 + $0x28] sm:$0xff]   ;;  %v1840_v33 = vadd.f32 %v8854_v12, %v8595_v23 }
 0x275   : > { %v2043_v44 = vpop.f32.mrf.mxu1  ;;  %v2196_v14 = vpop.f32.mrf.mxu0  ;;  %v1842_v12 = vadd.f32 %v8857_v1, %v8603_v13  ;;  %v2710_v21 = vmax.f32 %v9020_v9, 0.0  ;;  %v2902_v35 = vpack.c.bf16 %v2742_v59, %v2726_v38 }
 0x276   : > { %v9053_v4 = vpack.c.bf16 %v2586_v0, %v2570_v15  ;;  %v9055_v5 = vpack.c.bf16 %v2716_v19, %v2700_v32  ;;  %v2587_v2 = vmax.f32 %v2040_v56, 0.0  ;;  %v2044_v6 = vadd.f32 %v2043_v44, %v8623_v61 }
 0x277   : > { %v2045_v11 = vpop.f32.mrf.mxu1  ;;  %v9064_v58 = vpop.f32.mrf.mxu0  ;;  %3464 = vmatpush1.bf16.msra.mxu1 %v2918_v37  ;;  %v2197_v29 = vadd.f32 %v2196_v14, %v8581_v20  ;;  %v2887_v0 = vpack.c.bf16 %v2711_v25, %v2695_v63  ;;  %v1838_v19 = vadd.f32 %v8847_v31, %v8595_v23  ;;  %v2663_v1 = vmax.f32 %v1840_v33, 0.0 }
 0x278   : > { %14629 = vst [vmem:[#allocation22_spill] sm:$0xff] %v9053_v4  ;;  %14630 = vst [vmem:[#allocation18_spill] sm:$0xff] %v9055_v5  ;;  %3465 = vmatprep.subr.bf16.mxu1 %v2903_v51  ;;  %v9070_v48 = vpack.c.bf16 %v2587_v2, %v2571_v34  ;;  %v2046_v32 = vadd.f32 %v2045_v11, %v8623_v61  ;;  %v2694_v56 = vmax.f32 %v1848_v57, 0.0  ;;  %v2602_v49 = vmax.f32 %v2044_v6, 0.0 }
 0x279   : > { %14631 = vst [vmem:[#allocation34_spill] sm:$0xff] %v9064_v58  ;;  %v2047_v15 = vpop.f32.mrf.mxu1  ;;  %v2200_v54 = vpop.f32.mrf.mxu0  ;;  %v2732_v59 = vmax.f32 %v2197_v29, 0.0  ;;  %v2647_v34 = vmax.f32 %v1834_v7, 0.0  ;;  %v2678_v25 = vmax.f32 %v1842_v12, 0.0  ;;  %v2871_v33 = vpack.c.bf16 %v2679_v22, %v2663_v1 }
 0x27a   : > { %14632 = vst [vmem:[#allocation35_spill] sm:$0xff] %v9070_v48  ;;  %v2048_v10 = vadd.f32 %v2047_v15, %v8627_v18  ;;  %v2201_v60 = vadd.f32 %v2200_v54, %v8583_v16  ;;  %3351 = vmatmul.mubr.bf16.gmra.mxu0 %v9057_v24  ;;  %v2886_v2 = vpack.c.bf16 %v2710_v21, %v2694_v56  ;;  %v2603_v57 = vmax.f32 %v2046_v32, 0.0 }
 0x27b   : > { %v2049_v37 = vpop.f32.mrf.mxu1  ;;  %v9082_v9 = vpop.f32.mrf.mxu0  ;;  %3466 = vmatpush1.bf16.msra.mxu1 %v2902_v35  ;;  %3360 = vmatprep.mubr.bf16.mxu0 %v14571_v39  ;;  %v9092_v35 = vld [vmem:[#allocation2 + $0x30] sm:$0xff]   ;;  %v1828_v29 = vadd.f32 %v8828_v62, %v8605_v45  ;;  %v2662_v15 = vmax.f32 %v1838_v19, 0.0  ;;  %v2631_v12 = vmax.f32 %v8993_v17, 0.0  ;;  %v2646_v32 = vmax.f32 %v8997_v52, 0.0 }
 0x27c   : > { %14633 = vst [vmem:[#allocation36_spill] sm:$0xff] %v9082_v9  ;;  %v2618_v44 = vmax.f32 %v2048_v10, 0.0  ;;  %v2748_v14 = vmax.f32 %v2201_v60, 0.0  ;;  %v2050_v51 = vadd.f32 %v2049_v37, %v8627_v18  ;;  %3467 = vmatprep.subr.bf16.mxu1 %v2887_v0 }
 0x27d   : > { %v9086_v38 = vpop.f32.mrf.mxu1  ;;  %v2206_v31 = vpop.f32.mrf.mxu0  ;;  %v2870_v10 = vpack.c.bf16 %v2678_v25, %v2662_v15  ;;  %v2855_v19 = vpack.c.bf16 %v2647_v34, %v2631_v12  ;;  %v2630_v1 = vmax.f32 %v1828_v29, 0.0 }
 0x27e   : > { %v9088_v6 = vpack.c.bf16 %v2618_v44, %v2602_v49  ;;  %v9090_v11 = vpack.c.bf16 %v2748_v14, %v2732_v59  ;;  %v2619_v63 = vmax.f32 %v2050_v51, 0.0  ;;  %v2207_v22 = vadd.f32 %v2206_v31, %v8571_v41  ;;  %v9118_v51 = vld [vmem:[#allocation2 + $0x38] sm:$0xff]  }
 0x27f   : > { %v9096_v54 = vpop.f32.mrf.mxu1  ;;  %v9098_v7 = vpop.f32.mrf.mxu0  ;;  %3468 = vmatpush1.bf16.msra.mxu1 %v2886_v2  ;;  %v2854_v52 = vpack.c.bf16 %v2646_v32, %v2630_v1  ;;  %v9139_v1 = vld [vmem:[#allocation2 + $0x40] sm:$0xff]  }
 0x280   : > { %14634 = vst [vmem:[#allocation37_spill] sm:$0xff] %v9088_v6  ;;  %14635 = vst [vmem:[#allocation38_spill] sm:$0xff] %v9090_v11  ;;  %3469 = vmatprep.subr.bf16.mxu1 %v2871_v33  ;;  %v9102_v21 = vpack.c.bf16 %v2619_v63, %v2603_v57  ;;  %v2764_v49 = vmax.f32 %v2207_v22, 0.0 }
 0x281   : > { %14636 = vst [vmem:[#allocation39_spill] sm:$0xff] %v9098_v7  ;;  %v9105_v60 = vpop.f32.mrf.mxu1  ;;  %v2210_v0 = vpop.f32.mrf.mxu0  ;;  %14639 = vst [vmem:[#allocation42_spill] sm:$0xff] %v9139_v1 }
 0x282   : > { %v2211_v62 = vadd.f32 %v2210_v0, %v8573_v3  ;;  %3361 = vmatmul.mubr.bf16.gmra.mxu0 %v9092_v35 }
 0x283   : > { %v9109_v56 = vpop.f32.mrf.mxu1  ;;  %v9111_v17 = vpop.f32.mrf.mxu0  ;;  %3470 = vmatpush1.bf16.msra.mxu1 %v2870_v10  ;;  %3370 = vmatprep.mubr.bf16.mxu0 %v14571_v39 }
 0x284   : > { %v2780_v37 = vmax.f32 %v2211_v62, 0.0  ;;  %3471 = vmatprep.subr.bf16.mxu1 %v2855_v19 }
 0x285   : > { %v9114_v59 = vpop.f32.mrf.mxu1  ;;  %v2216_v44 = vpop.f32.mrf.mxu0 }
 0x286   : > { %v9116_v14 = vpack.c.bf16 %v2780_v37, %v2764_v49  ;;  %v2217_v2 = vadd.f32 %v2216_v44, %v8561_v36 }
 0x287   : > { %v9120_v34 = vpop.f32.mrf.mxu1  ;;  %v2218_v25 = vpop.f32.mrf.mxu0  ;;  %3472 = vmatpush1.bf16.msra.mxu1 %v2854_v52 }
 0x288   : > { %14637 = vst [vmem:[#allocation40_spill] sm:$0xff] %v9116_v14  ;;  %3473 = vmatprep.subr.bf16.mxu1 %v8841_v28  ;;  %v2219_v57 = vadd.f32 %v2218_v25, %v8561_v36  ;;  %v2796_v12 = vmax.f32 %v2217_v2, 0.0  ;;  %v14641_v2 = vld [vmem:[#allocation28_spill] sm:$0xff] }
 0x289   : > { %v9124_v31 = vpop.f32.mrf.mxu1  ;;  %v2220_v33 = vpop.f32.mrf.mxu0  ;;  %v9194_v14 = vld [vmem:[#allocation2 + $0x58] sm:$0xff]  }
 0x28a   : > { %v2221_v63 = vadd.f32 %v2220_v33, %v8569_v30  ;;  %3371 = vmatmul.mubr.bf16.gmra.mxu0 %v9118_v51  ;;  %v2797_v0 = vmax.f32 %v2219_v57, 0.0  ;;  %14653 = vst [vmem:[#allocation52_spill] sm:$0xff] %v9194_v14 }
 0x28b   : > { %v9129_v29 = vpop.f32.mrf.mxu1  ;;  %v2222_v15 = vpop.f32.mrf.mxu0  ;;  %3474 = vmatpush1.bf16.msra.mxu1 %v8834_v55  ;;  %3380 = vmatprep.mubr.bf16.mxu0 %v14571_v39 }
 0x28c   : > { %v2812_v22 = vmax.f32 %v2221_v63, 0.0  ;;  %v2223_v28 = vadd.f32 %v2222_v15, %v8569_v30  ;;  %3475 = vmatprep.subr.bf16.mxu1 %v8808_v27 }
 0x28d   : > { %v9135_v32 = vpop.f32.mrf.mxu1  ;;  %v2372_v10 = vpop.f32.mrf.mxu0 }
 0x28e   : > { %v9137_v62 = vpack.c.bf16 %v2812_v22, %v2796_v12  ;;  %v2813_v19 = vmax.f32 %v2223_v28, 0.0  ;;  %v2373_v37 = vadd.f32 %v2372_v10, %v8638_v50  ;;  %v9162_v28 = vld [vmem:[#allocation2 + $0x48] sm:$0xff]  }
 0x28f   : > { %v9141_v49 = vpop.f32.mrf.mxu1  ;;  %v9143_v55 = vpop.f32.mrf.mxu0  ;;  %3476 = vmatpush1.bf16.msra.mxu1 %v8798_v47  ;;  %14644 = vst [vmem:[#allocation45_spill] sm:$0xff] %v9162_v28 }
 0x290   : > { %14638 = vst [vmem:[#allocation41_spill] sm:$0xff] %v9137_v62  ;;  %14640 = vst [vmem:[#allocation43_spill] sm:$0xff] %v9143_v55  ;;  %v2941_v52 = vpack.c.bf16 %v2813_v19, %v2797_v0  ;;  %v2576_v47 = vmax.f32 %v2373_v37, 0.0 }
 0x291   : > { %v9147_v44 = vpop.f32.mrf.mxu1  ;;  %v2376_v27 = vpop.f32.mrf.mxu0 }
 0x292   : > { %v2377_v25 = vadd.f32 %v2376_v27, %v8644_v53  ;;  %3381 = vmatmul.mubr.bf16.gmra.mxu0 %v9139_v1  ;;  %3494 = vmatmul.mubr.bf16.vlgmr.msra.gmra.mxu1 %v14641_v2 }
 0x293   : > { %4040 = vmatprep.subr.bf16.mxu0 %v2941_v52  ;;  %v9152_v33 = vpop.f32.mrf.mxu1  ;;  %v9154_v57 = vpop.f32.mrf.mxu0  ;;  %3390 = vmatprep.mubr.bf16.mxu0 %v14571_v39 }
 0x294   : > { %14642 = vst [vmem:[#allocation28_spill] sm:$0xff] %v9154_v57  ;;  %v2592_v63 = vmax.f32 %v2377_v25, 0.0  ;;  %3503 = vmatprep.mubr.bf16.mxu1 %v14571_v39  ;;  %v14646_v25 = vld [vmem:[#allocation32_spill] sm:$0xff] }
 0x295   : > { %v9158_v15 = vpop.f32.mrf.mxu1  ;;  %v2382_v12 = vpop.f32.mrf.mxu0 }
 0x296   : > { %v9160_v22 = vpack.c.bf16 %v2592_v63, %v2576_v47  ;;  %v2383_v19 = vadd.f32 %v2382_v12, %v8623_v61 }
 0x297   : > { %v9164_v10 = vpop.f32.mrf.mxu1  ;;  %v9166_v0 = vpop.f32.mrf.mxu0 }
 0x298   : > { %14643 = vst [vmem:[#allocation44_spill] sm:$0xff] %v9160_v22  ;;  %14645 = vst [vmem:[#allocation46_spill] sm:$0xff] %v9166_v0  ;;  %v2608_v63 = vmax.f32 %v2383_v19, 0.0  ;;  %v9180_v0 = vld [vmem:[#allocation2 + $0x50] sm:$0xff]  }
 0x299   : > { %v9169_v52 = vpop.f32.mrf.mxu1  ;;  %v2386_v27 = vpop.f32.mrf.mxu0  ;;  %14649 = vst [vmem:[#allocation48_spill] sm:$0xff] %v9180_v0 }
 0x29a   : > { %v2387_v37 = vadd.f32 %v2386_v27, %v8627_v18  ;;  %3391 = vmatmul.mubr.bf16.gmra.mxu0 %v9162_v28  ;;  %3504 = vmatmul.mubr.bf16.gmra.mxu1 %v14646_v25 }
 0x29b   : > { %v2089_v2 = vpop.f32.mrf.mxu1  ;;  %v9174_v47 = vpop.f32.mrf.mxu0  ;;  %3400 = vmatprep.mubr.bf16.mxu0 %v14571_v39  ;;  %3513 = vmatprep.mubr.bf16.mxu1 %v14571_v39 }
 0x29c   : > { %14647 = vst [vmem:[#allocation32_spill] sm:$0xff] %v9174_v47  ;;  %v2624_v22 = vmax.f32 %v2387_v37, 0.0  ;;  %v2090_v58 = vadd.f32 %v2089_v2, %v8583_v16  ;;  %v2086_v2 = vadd.f32 %v9164_v10, %v8581_v20 }
 0x29d   : > { %v2093_v55 = vpop.f32.mrf.mxu1  ;;  %v2392_v12 = vpop.f32.mrf.mxu0 }
 0x29e   : > { %v9178_v57 = vpack.c.bf16 %v2624_v22, %v2608_v63  ;;  %v2393_v25 = vadd.f32 %v2392_v12, %v8605_v45 }
 0x29f   : > { %v2095_v27 = vpop.f32.mrf.mxu1  ;;  %v9182_v5 = vpop.f32.mrf.mxu0 }
 0x2a0   : > { %14648 = vst [vmem:[#allocation47_spill] sm:$0xff] %v9178_v57  ;;  %14650 = vst [vmem:[#allocation49_spill] sm:$0xff] %v9182_v5  ;;  %v2640_v22 = vmax.f32 %v2393_v25, 0.0  ;;  %v9213_v25 = vadd.f32 %v9129_v29, %v8603_v13 }
 0x2a1   : > { %v2097_v11 = vpop.f32.mrf.mxu1  ;;  %v2396_v28 = vpop.f32.mrf.mxu0 }
 0x2a2   : > { %v2397_v47 = vadd.f32 %v2396_v28, %v8609_v8  ;;  %3401 = vmatmul.mubr.bf16.gmra.mxu0 %v9180_v0  ;;  %3514 = vmatmul.mubr.bf16.gmra.mxu1 %v8960_v46  ;;  %v9205_v0 = vadd.f32 %v9096_v54, %v8605_v45  ;;  %v9222_v54 = vadd.f32 %v9135_v32, %v8591_v26 }
 0x2a3   : > { %v2099_v19 = vpop.f32.mrf.mxu1  ;;  %v9188_v37 = vpop.f32.mrf.mxu0  ;;  %3410 = vmatprep.mubr.bf16.mxu0 %v14571_v39  ;;  %3523 = vmatprep.mubr.bf16.mxu1 %v14571_v39 }
 0x2a4   : > { %14651 = vst [vmem:[#allocation50_spill] sm:$0xff] %v9188_v37  ;;  %v2656_v63 = vmax.f32 %v2397_v47, 0.0  ;;  %v9201_v37 = vadd.f32 %v9086_v38, %v8605_v45  ;;  %v9209_v47 = vadd.f32 %v9109_v56, %v8609_v8  ;;  %v2100_v56 = vadd.f32 %v2099_v19, %v8573_v3 }
 0x2a5   : > { %v2103_v57 = vpop.f32.mrf.mxu1  ;;  %v2402_v5 = vpop.f32.mrf.mxu0  ;;  %v9237_v19 = vadd.f32 %v9152_v33, %v8593_v42 }
 0x2a6   : > { %v9192_v12 = vpack.c.bf16 %v2656_v63, %v2640_v22  ;;  %v2403_v46 = vadd.f32 %v2402_v5, %v8595_v23  ;;  %v2104_v29 = vadd.f32 %v2103_v57, %v8561_v36  ;;  %v2096_v57 = vadd.f32 %v2095_v27, %v8571_v41 }
 0x2a7   : > { %v2105_v28 = vpop.f32.mrf.mxu1  ;;  %v9196_v62 = vpop.f32.mrf.mxu0  ;;  %v2779_v9 = vmax.f32 %v2100_v56, 0.0 }
 0x2a8   : > { %14652 = vst [vmem:[#allocation51_spill] sm:$0xff] %v9192_v12  ;;  %14654 = vst [vmem:[#allocation53_spill] sm:$0xff] %v9196_v62  ;;  %v2106_v5 = vadd.f32 %v2105_v28, %v8561_v36  ;;  %v9232_v28 = vadd.f32 %v9141_v49, %v8591_v26  ;;  %v2794_v33 = vmax.f32 %v2104_v29, 0.0 }
 0x2a9   : > { %v2107_v22 = vpop.f32.mrf.mxu1  ;;  %v2406_v63 = vpop.f32.mrf.mxu0 }
 0x2aa   : > { %v2108_v12 = vadd.f32 %v2107_v22, %v8569_v30  ;;  %v2407_v38 = vadd.f32 %v2406_v63, %v8603_v13  ;;  %3411 = vmatmul.mubr.bf16.gmra.mxu0 %v9194_v14  ;;  %3524 = vmatmul.mubr.bf16.gmra.mxu1 %v8985_v40  ;;  %v2672_v40 = vmax.f32 %v2403_v46, 0.0  ;;  %v2098_v63 = vadd.f32 %v2097_v11, %v8573_v3 }
 0x2ab   : > { %v2109_v62 = vpop.f32.mrf.mxu1  ;;  %v9226_v1 = vpop.f32.mrf.mxu0  ;;  %3420 = vmatprep.mubr.bf16.mxu0 %v14571_v39  ;;  %3533 = vmatprep.mubr.bf16.mxu1 %v14571_v39  ;;  %v2795_v48 = vmax.f32 %v2106_v5, 0.0  ;;  %v2084_v11 = vadd.f32 %v9158_v15, %v8581_v20 }
 0x2ac   : > { %14655 = vst [vmem:[#allocation54_spill] sm:$0xff] %v9226_v1  ;;  %v2688_v22 = vmax.f32 %v2407_v38, 0.0  ;;  %v2110_v32 = vadd.f32 %v2109_v62, %v8569_v30  ;;  %v2810_v1 = vmax.f32 %v2108_v12, 0.0  ;;  %v9244_v38 = vld [vmem:[#allocation2 + $0x60] sm:$0xff]   ;;  %v2094_v62 = vadd.f32 %v2093_v55, %v8571_v41 }
 0x2ad   : > { %v2259_v14 = vpop.f32.mrf.mxu1  ;;  %v2412_v4 = vpop.f32.mrf.mxu0  ;;  %v2763_v55 = vmax.f32 %v2096_v57, 0.0  ;;  %v2778_v56 = vmax.f32 %v2098_v63, 0.0 }
 0x2ae   : > { %v9242_v49 = vpack.c.bf16 %v2688_v22, %v2672_v40  ;;  %v2811_v46 = vmax.f32 %v2110_v32, 0.0  ;;  %v2260_v6 = vadd.f32 %v2259_v14, %v8638_v50  ;;  %v2413_v12 = vadd.f32 %v2412_v4, %v8591_v26 }
 0x2af   : > { %v2261_v27 = vpop.f32.mrf.mxu1  ;;  %v9248_v7 = vpop.f32.mrf.mxu0  ;;  %v2088_v40 = vadd.f32 %v9169_v52, %v8583_v16  ;;  %v2938_v29 = vpack.c.bf16 %v2810_v1, %v2794_v33  ;;  %v2747_v4 = vmax.f32 %v2090_v58, 0.0  ;;  %v2923_v1 = vpack.c.bf16 %v2779_v9, %v2763_v55 }
 0x2b0   : > { %14656 = vst [vmem:[#allocation55_spill] sm:$0xff] %v9242_v49  ;;  %14657 = vst [vmem:[#allocation56_spill] sm:$0xff] %v9248_v7  ;;  %v2939_v5 = vpack.c.bf16 %v2811_v46, %v2795_v48  ;;  %v2262_v32 = vadd.f32 %v2261_v27, %v8638_v50  ;;  %v2762_v48 = vmax.f32 %v2094_v62, 0.0  ;;  %v2574_v10 = vmax.f32 %v2260_v6, 0.0  ;;  %v14689_v7 = vld [vmem:[#allocation33_spill] sm:$0xff] }
 0x2b1   : > { %v2263_v22 = vpop.f32.mrf.mxu1  ;;  %v2416_v14 = vpop.f32.mrf.mxu0  ;;  %v2704_v63 = vmax.f32 %v2413_v12, 0.0  ;;  %v2731_v58 = vmax.f32 %v2086_v2, 0.0  ;;  %v2746_v6 = vmax.f32 %v2088_v40, 0.0 }
 0x2b2   : > { %v2264_v49 = vadd.f32 %v2263_v22, %v8644_v53  ;;  %v2417_v15 = vadd.f32 %v2416_v14, %v8593_v42  ;;  %3421 = vmatmul.mubr.bf16.gmra.mxu0 %v9244_v38  ;;  %3534 = vmatmul.mubr.bf16.gmra.mxu1 %v9030_v43  ;;  %v2078_v43 = vadd.f32 %v9147_v44, %v8593_v42  ;;  %v2575_v9 = vmax.f32 %v2262_v32, 0.0  ;;  %v9273_v14 = vld [vmem:[#allocation2 + $0x68] sm:$0xff]  }
 0x2b3   : > { %3847 = vmatprep.subr.bf16.mxu1 %v2939_v5  ;;  %v2265_v52 = vpop.f32.mrf.mxu1  ;;  %v9262_v57 = vpop.f32.mrf.mxu0  ;;  %3430 = vmatprep.mubr.bf16.mxu0 %v14571_v39  ;;  %v2922_v62 = vpack.c.bf16 %v2778_v56, %v2762_v48  ;;  %v2907_v40 = vpack.c.bf16 %v2747_v4, %v2731_v58  ;;  %v2064_v56 = vadd.f32 %v9114_v59, %v8595_v23 }
 0x2b4   : > { %14658 = vst [vmem:[#allocation57_spill] sm:$0xff] %v9262_v57  ;;  %v2590_v46 = vmax.f32 %v2264_v49, 0.0  ;;  %v2720_v33 = vmax.f32 %v2417_v15, 0.0  ;;  %v2266_v27 = vadd.f32 %v2265_v52, %v8644_v53  ;;  %3848 = vmatpush1.bf16.msra.mxu1 %v2938_v29  ;;  %3543 = vmatprep.mubr.bf16.mxu1 %v14571_v39  ;;  %v2715_v29 = vmax.f32 %v9237_v19, 0.0 }
 0x2b5   : > { %3849 = vmatprep.subr.bf16.mxu1 %v2923_v1  ;;  %v2269_v5 = vpop.f32.mrf.mxu1  ;;  %v2422_v22 = vpop.f32.mrf.mxu0  ;;  %v2730_v15 = vmax.f32 %v2084_v11, 0.0  ;;  %v2066_v32 = vadd.f32 %v9120_v34, %v8595_v23  ;;  %v2068_v19 = vadd.f32 %v9124_v31, %v8603_v13  ;;  %v2699_v11 = vmax.f32 %v9232_v28, 0.0 }
 0x2b6   : > { %v9269_v55 = vpack.c.bf16 %v2590_v46, %v2574_v10  ;;  %v9271_v12 = vpack.c.bf16 %v2720_v33, %v2704_v63  ;;  %v2591_v49 = vmax.f32 %v2266_v27, 0.0  ;;  %v2270_v52 = vadd.f32 %v2269_v5, %v8623_v61 }
 0x2b7   : > { %v2271_v44 = vpop.f32.mrf.mxu1  ;;  %v9277_v2 = vpop.f32.mrf.mxu0  ;;  %v2423_v48 = vadd.f32 %v2422_v22, %v8581_v20  ;;  %v2714_v1 = vmax.f32 %v2078_v43, 0.0  ;;  %v2906_v63 = vpack.c.bf16 %v2746_v6, %v2730_v15  ;;  %v2683_v27 = vmax.f32 %v9213_v25, 0.0 }
 0x2b8   : > { %14659 = vst [vmem:[#allocation58_spill] sm:$0xff] %v9269_v55  ;;  %14660 = vst [vmem:[#allocation59_spill] sm:$0xff] %v9271_v12  ;;  %3850 = vmatpush1.bf16.msra.mxu1 %v2922_v62  ;;  %v9284_v10 = vpack.c.bf16 %v2591_v49, %v2575_v9  ;;  %v2272_v59 = vadd.f32 %v2271_v44, %v8623_v61  ;;  %v2698_v31 = vmax.f32 %v9222_v54, 0.0  ;;  %v2606_v28 = vmax.f32 %v2270_v52, 0.0 }
 0x2b9   : > { %14661 = vst [vmem:[#allocation60_spill] sm:$0xff] %v9277_v2  ;;  %3851 = vmatprep.subr.bf16.mxu1 %v2907_v40  ;;  %v2273_v4 = vpop.f32.mrf.mxu1  ;;  %v2426_v46 = vpop.f32.mrf.mxu0  ;;  %v2891_v6 = vpack.c.bf16 %v2715_v29, %v2699_v11  ;;  %v2736_v62 = vmax.f32 %v2423_v48, 0.0  ;;  %v2058_v25 = vadd.f32 %v9105_v60, %v8609_v8  ;;  %v2667_v49 = vmax.f32 %v2066_v32, 0.0 }
 0x2ba   : > { %14662 = vst [vmem:[#allocation61_spill] sm:$0xff] %v9284_v10  ;;  %v2274_v33 = vadd.f32 %v2273_v4, %v8627_v18  ;;  %v2427_v34 = vadd.f32 %v2426_v46, %v8583_v16  ;;  %3431 = vmatmul.mubr.bf16.gmra.mxu0 %v9273_v14  ;;  %3544 = vmatmul.mubr.bf16.gmra.mxu1 %v9057_v24  ;;  %v2682_v54 = vmax.f32 %v2068_v19, 0.0  ;;  %v2607_v29 = vmax.f32 %v2272_v59, 0.0  ;;  %v9307_v4 = vld [vmem:[#allocation2 + $0x70] sm:$0xff]  }
 0x2bb   : > { %v2275_v43 = vpop.f32.mrf.mxu1  ;;  %v9296_v58 = vpop.f32.mrf.mxu0  ;;  %3440 = vmatprep.mubr.bf16.mxu0 %v14571_v39  ;;  %3553 = vmatprep.mubr.bf16.mxu1 %v14571_v39  ;;  %v2890_v15 = vpack.c.bf16 %v2714_v1, %v2698_v31  ;;  %v2651_v46 = vmax.f32 %v9209_v47, 0.0  ;;  %v2875_v19 = vpack.c.bf16 %v2683_v27, %v2667_v49  ;;  %v2650_v31 = vmax.f32 %v2058_v25, 0.0 }
 0x2bc   : > { %14663 = vst [vmem:[#allocation62_spill] sm:$0xff] %v9296_v58  ;;  %v2622_v5 = vmax.f32 %v2274_v33, 0.0  ;;  %v2752_v22 = vmax.f32 %v2427_v34, 0.0  ;;  %v2276_v9 = vadd.f32 %v2275_v43, %v8627_v18  ;;  %3852 = vmatpush1.bf16.msra.mxu1 %v2906_v63  ;;  %v2666_v63 = vmax.f32 %v2064_v56, 0.0  ;;  %v14691_v58 = vld [vmem:[#allocation48_spill] sm:$0xff] }
 0x2bd   : > { %3853 = vmatprep.subr.bf16.mxu1 %v2891_v6  ;;  %v2279_v52 = vpop.f32.mrf.mxu1  ;;  %v2432_v44 = vpop.f32.mrf.mxu0  ;;  %v2635_v34 = vmax.f32 %v9205_v0, 0.0  ;;  %v2634_v27 = vmax.f32 %v9201_v37, 0.0 }
 0x2be   : > { %v9303_v40 = vpack.c.bf16 %v2622_v5, %v2606_v28  ;;  %v9305_v11 = vpack.c.bf16 %v2752_v22, %v2736_v62  ;;  %v2623_v48 = vmax.f32 %v2276_v9, 0.0  ;;  %v2280_v33 = vadd.f32 %v2279_v52, %v8605_v45 }
 0x2bf   : > { %v2281_v60 = vpop.f32.mrf.mxu1  ;;  %v9311_v32 = vpop.f32.mrf.mxu0  ;;  %v2433_v1 = vadd.f32 %v2432_v44, %v8571_v41  ;;  %v2874_v28 = vpack.c.bf16 %v2682_v54, %v2666_v63  ;;  %v2859_v9 = vpack.c.bf16 %v2651_v46, %v2635_v34  ;;  %v2858_v52 = vpack.c.bf16 %v2650_v31, %v2634_v27  ;;  %v14669_v27 = vld [vmem:[#allocation39_spill] sm:$0xff] }
 0x2c0   : > { %14664 = vst [vmem:[#allocation63_spill] sm:$0xff] %v9303_v40  ;;  %14665 = vst [vmem:[#allocation64_spill] sm:$0xff] %v9305_v11  ;;  %3854 = vmatpush1.bf16.msra.mxu1 %v2890_v15  ;;  %v9314_v59 = vpack.c.bf16 %v2623_v48, %v2607_v29  ;;  %v2282_v47 = vadd.f32 %v2281_v60, %v8605_v45  ;;  %v2638_v5 = vmax.f32 %v2280_v33, 0.0  ;;  %v9332_v33 = vld [vmem:[#allocation2 + $0x78] sm:$0xff]  }
 0x2c1   : > { %14666 = vst [vmem:[#allocation65_spill] sm:$0xff] %v9311_v32  ;;  %3855 = vmatprep.subr.bf16.mxu1 %v2875_v19  ;;  %v2283_v43 = vpop.f32.mrf.mxu1  ;;  %v2436_v6 = vpop.f32.mrf.mxu0  ;;  %v2768_v25 = vmax.f32 %v2433_v1, 0.0  ;;  %v14696_v40 = vld [vmem:[#allocation52_spill] sm:$0xff] }
 0x2c2   : > { %v2284_v56 = vadd.f32 %v2283_v43, %v8609_v8  ;;  %v2437_v62 = vadd.f32 %v2436_v6, %v8573_v3  ;;  %3441 = vmatmul.mubr.bf16.gmra.mxu0 %v9307_v4  ;;  %3554 = vmatmul.mubr.bf16.gmra.mxu1 %v9092_v35  ;;  %v2639_v37 = vmax.f32 %v2282_v47, 0.0 }
 0x2c3   : > { %v2285_v22 = vpop.f32.mrf.mxu1  ;;  %v9323_v0 = vpop.f32.mrf.mxu0  ;;  %3450 = vmatprep.mubr.bf16.mxu0 %v14571_v39  ;;  %3563 = vmatprep.mubr.bf16.mxu1 %v14571_v39 }
 0x2c4   : > { %14667 = vst [vmem:[#allocation66_spill] sm:$0xff] %v9323_v0  ;;  %v2654_v49 = vmax.f32 %v2284_v56, 0.0  ;;  %v2784_v54 = vmax.f32 %v2437_v62, 0.0  ;;  %v2286_v15 = vadd.f32 %v2285_v22, %v8609_v8  ;;  %3856 = vmatpush1.bf16.msra.mxu1 %v2874_v28  ;;  %v2213_v28 = vadd.f32 %v9111_v17, %v8573_v3 }
 0x2c5   : > { %3857 = vmatprep.subr.bf16.mxu1 %v2859_v9  ;;  %v2289_v44 = vpop.f32.mrf.mxu1  ;;  %v2442_v29 = vpop.f32.mrf.mxu0 }
 0x2c6   : > { %v9328_v48 = vpack.c.bf16 %v2654_v49, %v2638_v5  ;;  %v9330_v63 = vpack.c.bf16 %v2784_v54, %v2768_v25  ;;  %v2655_v46 = vmax.f32 %v2286_v15, 0.0  ;;  %v2290_v60 = vadd.f32 %v2289_v44, %v8595_v23  ;;  %v14670_v54 = vld [vmem:[#allocation37_spill] sm:$0xff]  ;;  %v14671_v15 = vld [vmem:[#allocation36_spill] sm:$0xff] }
 0x2c7   : > { %v2291_v19 = vpop.f32.mrf.mxu1  ;;  %v9335_v1 = vpop.f32.mrf.mxu0  ;;  %v2443_v34 = vadd.f32 %v2442_v29, %v8561_v36  ;;  %v2209_v5 = vadd.f32 %v14669_v27, %v8571_v41  ;;  %v2781_v44 = vmax.f32 %v2213_v28, 0.0  ;;  %v14672_v29 = vld [vmem:[#allocation35_spill] sm:$0xff]  ;;  %v14676_v28 = vld [vmem:[#allocation16_spill] sm:$0xff] }
 0x2c8   : > { %14668 = vst [vmem:[#allocation67_spill] sm:$0xff] %v9330_v63  ;;  %3858 = vmatpush1.bf16.msra.mxu1 %v2858_v52  ;;  %v9338_v31 = vpack.c.bf16 %v2655_v46, %v2639_v37  ;;  %v2292_v47 = vadd.f32 %v2291_v19, %v8595_v23  ;;  %v2670_v22 = vmax.f32 %v2290_v60, 0.0  ;;  %v2203_v52 = vadd.f32 %v14671_v15, %v8583_v16  ;;  %v14681_v63 = vld [vmem:[#allocation40_spill] sm:$0xff] }
 0x2c9   : > { %3859 = vmatprep.subr.bf16.mxu1 %v9102_v21  ;;  %v2293_v43 = vpop.f32.mrf.mxu1  ;;  %v2446_v6 = vpop.f32.mrf.mxu0  ;;  %v2800_v21 = vmax.f32 %v2443_v34, 0.0  ;;  %v2193_v15 = vadd.f32 %v14676_v28, %v8593_v42  ;;  %v14680_v28 = vld [vmem:[#allocation21_spill] sm:$0xff]  ;;  %v2445_v55 = vadd.f32 %v9335_v1, %v8561_v36 }
 0x2ca   : > { %v2294_v56 = vadd.f32 %v2293_v43, %v8603_v13  ;;  %v2447_v62 = vadd.f32 %v2446_v6, %v8569_v30  ;;  %3451 = vmatmul.mubr.bf16.gmra.mxu0 %v9332_v33  ;;  %3564 = vmatmul.mubr.bf16.gmra.mxu1 %v9118_v51  ;;  %v2671_v46 = vmax.f32 %v2292_v47, 0.0  ;;  %v14674_v6 = vld [vmem:[#allocation34_spill] sm:$0xff] }
 0x2cb   : > { %v2295_v9 = vpop.f32.mrf.mxu1  ;;  %3573 = vmatprep.mubr.bf16.mxu1 %v14571_v39  ;;  %3686 = vmatprep.mubr.bf16.mxu0 %v14571_v39  ;;  %v2801_v1 = vmax.f32 %v2445_v55, 0.0 }
 0x2cc   : > { %v2686_v17 = vmax.f32 %v2294_v56, 0.0  ;;  %v2816_v25 = vmax.f32 %v2447_v62, 0.0  ;;  %v2296_v49 = vadd.f32 %v2295_v9, %v8603_v13  ;;  %3860 = vmatpush1.bf16.msra.mxu1 %v14670_v54  ;;  %v2199_v56 = vadd.f32 %v14674_v6, %v8581_v20  ;;  %v14675_v9 = vld [vmem:[#allocation22_spill] sm:$0xff] }
 0x2cd   : > { %3861 = vmatprep.subr.bf16.mxu1 %v14672_v29  ;;  %v2299_v37 = vpop.f32.mrf.mxu1  ;;  %v2765_v62 = vmax.f32 %v2209_v5, 0.0  ;;  %v14678_v29 = vld [vmem:[#allocation17_spill] sm:$0xff] }
 0x2ce   : > { %v9357_v60 = vpack.c.bf16 %v2686_v17, %v2670_v22  ;;  %v9359_v19 = vpack.c.bf16 %v2816_v25, %v2800_v21  ;;  %v2687_v43 = vmax.f32 %v2296_v49, 0.0  ;;  %v2300_v27 = vadd.f32 %v2299_v37, %v8591_v26  ;;  %v14677_v25 = vld [vmem:[#allocation42_spill] sm:$0xff]  ;;  %v9372_v49 = vld [vmem:[#allocation2] sm:$0xff]  }
 0x2cf   : > { %v2301_v34 = vpop.f32.mrf.mxu1  ;;  %v2749_v22 = vmax.f32 %v2203_v52, 0.0  ;;  %v2925_v5 = vpack.c.bf16 %v2781_v44, %v2765_v62  ;;  %v2189_v37 = vadd.f32 %v14678_v29, %v8591_v26  ;;  %v2733_v52 = vmax.f32 %v2199_v56, 0.0 }
 0x2d0   : > { %14673 = vst [vmem:[#allocation39_spill] sm:$0xff] %v9359_v19  ;;  %3862 = vmatpush1.bf16.msra.mxu1 %v14675_v9  ;;  %v9365_v54 = vpack.c.bf16 %v2687_v43, %v2671_v46  ;;  %v2302_v21 = vadd.f32 %v2301_v34, %v8591_v26  ;;  %v14679_v46 = vld [vmem:[#allocation41_spill] sm:$0xff]  ;;  %v2702_v6 = vmax.f32 %v2300_v27, 0.0  ;;  %v2717_v44 = vmax.f32 %v2193_v15, 0.0  ;;  %v14682_v27 = vld [vmem:[#allocation20_spill] sm:$0xff]  ;;  %v14683_v15 = vld [vmem:[#allocation23_spill] sm:$0xff] }
 0x2d1   : > { %v2303_v47 = vpop.f32.mrf.mxu1  ;;  %v2909_v11 = vpack.c.bf16 %v2749_v22, %v2733_v52  ;;  %v9399_v22 = vld [vmem:[#allocation2 + $0x8] sm:$0xff]   ;;  %v2159_v19 = vadd.f32 %v14689_v7, %v8623_v61  ;;  %v14693_v7 = vld [vmem:[#allocation29_spill] sm:$0xff] }
 0x2d2   : > { %v2304_v17 = vadd.f32 %v2303_v47, %v8593_v42  ;;  %3574 = vmatmul.mubr.bf16.gmra.mxu1 %v14677_v25  ;;  %3687 = vmatmul.mubr.bf16.vlgmr.msra.gmra.mxu0 %v9372_v49  ;;  %v2183_v47 = vadd.f32 %v14680_v28, %v8603_v13  ;;  %v2703_v29 = vmax.f32 %v2302_v21, 0.0  ;;  %v2173_v21 = vadd.f32 %v14683_v15, %v8609_v8  ;;  %v14685_v52 = vld [vmem:[#allocation38_spill] sm:$0xff] }
 0x2d3   : > { %4041 = vmatpush1.bf16.msra.mxu0 %v14679_v46  ;;  %v2305_v43 = vpop.f32.mrf.mxu1  ;;  %3583 = vmatprep.mubr.bf16.mxu1 %v14571_v39 }
 0x2d4   : > { %v2718_v34 = vmax.f32 %v2304_v17, 0.0  ;;  %v2306_v9 = vadd.f32 %v2305_v43, %v8593_v42  ;;  %4042 = vmatprep.subr.bf16.mxu0 %v2925_v5  ;;  %3696 = vmatprep.mubr.bf16.mxu0 %v14571_v39  ;;  %v2179_v17 = vadd.f32 %v14682_v27, %v8595_v23  ;;  %v2701_v5 = vmax.f32 %v2189_v37, 0.0 }
 0x2d5   : > { %v9383_v62 = vpop.f32.mrf.mxu1  ;;  %v2653_v15 = vmax.f32 %v2173_v21, 0.0 }
 0x2d6   : > { %v9385_v12 = vpack.c.bf16 %v2718_v34, %v2702_v6  ;;  %v2719_v46 = vmax.f32 %v2306_v9, 0.0  ;;  %v2685_v6 = vmax.f32 %v2183_v47, 0.0  ;;  %v14684_v34 = vld [vmem:[#allocation45_spill] sm:$0xff] }
 0x2d7   : > { %4043 = vmatpush1.bf16.msra.mxu0 %v14681_v63  ;;  %v9388_v56 = vpop.f32.mrf.mxu1  ;;  %v2893_v63 = vpack.c.bf16 %v2717_v44, %v2701_v5  ;;  %v14688_v5 = vld [vmem:[#allocation18_spill] sm:$0xff] }
 0x2d8   : > { %4044 = vmatprep.subr.bf16.mxu0 %v2909_v11  ;;  %v9392_v43 = vpack.c.bf16 %v2719_v46, %v2703_v29  ;;  %v14686_v11 = vld [vmem:[#allocation26_spill] sm:$0xff]  ;;  %v2669_v29 = vmax.f32 %v2179_v17, 0.0  ;;  %v14687_v46 = vld [vmem:[#allocation27_spill] sm:$0xff] }
 0x2d9   : > { %v9394_v28 = vpop.f32.mrf.mxu1  ;;  %v2169_v37 = vadd.f32 %v14686_v11, %v8605_v45  ;;  %v2163_v27 = vadd.f32 %v14687_v46, %v8627_v18  ;;  %v9423_v46 = vld [vmem:[#allocation2 + $0x10] sm:$0xff]  }
 0x2da   : > { %3584 = vmatmul.mubr.bf16.gmra.mxu1 %v14684_v34  ;;  %3697 = vmatmul.mubr.bf16.gmra.mxu0 %v9399_v22  ;;  %v2877_v44 = vpack.c.bf16 %v2685_v6, %v2669_v29  ;;  %v2448_v6 = vpop.f32.mrf.mxu0  ;;  %v14692_v29 = vld [vmem:[#allocation19_spill] sm:$0xff] }
 0x2db   : > { %4045 = vmatpush1.bf16.msra.mxu0 %v14685_v52  ;;  %v9403_v9 = vpop.f32.mrf.mxu1  ;;  %3593 = vmatprep.mubr.bf16.mxu1 %v14571_v39  ;;  %v2637_v57 = vmax.f32 %v2169_v37, 0.0  ;;  %v2621_v2 = vmax.f32 %v2163_v27, 0.0  ;;  %v2149_v37 = vadd.f32 %v14693_v7, %v8638_v50  ;;  %v2449_v32 = vadd.f32 %v2448_v6, %v8569_v30  ;;  %v14698_v6 = vld [vmem:[#allocation25_spill] sm:$0xff] }
 0x2dc   : > { %4046 = vmatprep.subr.bf16.mxu0 %v2893_v63  ;;  %3706 = vmatprep.mubr.bf16.mxu0 %v14571_v39  ;;  %v14690_v63 = vld [vmem:[#allocation30_spill] sm:$0xff] }
 0x2dd   : > { %v9409_v47 = vpop.f32.mrf.mxu1  ;;  %v2153_v11 = vadd.f32 %v14690_v63, %v8644_v53  ;;  %v2861_v21 = vpack.c.bf16 %v2653_v15, %v2637_v57  ;;  %v14694_v15 = vld [vmem:[#allocation24_spill] sm:$0xff]  ;;  %v2573_v0 = vmax.f32 %v2149_v37, 0.0 }
 0x2df   : > { %4047 = vmatpush1.bf16.msra.mxu0 %v14688_v5  ;;  %v9414_v52 = vpop.f32.mrf.mxu1  ;;  %v2589_v63 = vmax.f32 %v2153_v11, 0.0  ;;  %v9445_v11 = vld [vmem:[#allocation2 + $0x18] sm:$0xff]  }
 0x2e0   : > { %4048 = vmatprep.subr.bf16.mxu0 %v2877_v44  ;;  %v2605_v44 = vmax.f32 %v2159_v19, 0.0  ;;  %v9441_v19 = vpop.permute.xlu1 %3084  ;;  %14697 = vst [vmem:[#allocation36_spill] sm:$0xff] %v9445_v11 }
 0x2e1   : > { %v9418_v17 = vpop.f32.mrf.mxu1  ;;  %14695 = vst [vmem:[#allocation37_spill] sm:$0xff] %v9441_v19  ;;  %v14700_v19 = vld [vmem:[#allocation31_spill] sm:$0xff] }
 0x2e2   : > { %3594 = vmatmul.mubr.bf16.gmra.mxu1 %v14691_v58  ;;  %3707 = vmatmul.mubr.bf16.gmra.mxu0 %v9423_v46  ;;  %v2845_v57 = vpack.c.bf16 %v2621_v2, %v2605_v44  ;;  %v2829_v2 = vpack.c.bf16 %v2589_v63, %v2573_v0 }
 0x2e3   : > { %4049 = vmatpush1.bf16.msra.mxu0 %v14692_v29  ;;  %v9427_v5 = vpop.f32.mrf.mxu1  ;;  %3603 = vmatprep.mubr.bf16.mxu1 %v14571_v39 }
 0x2e4   : > { %4050 = vmatprep.subr.bf16.mxu0 %v2861_v21  ;;  %3716 = vmatprep.mubr.bf16.mxu0 %v14571_v39  ;;  %v2817_v21 = vmax.f32 %v2449_v32, 0.0  ;;  %v9455_v63 = vpop.permute.xlu1 %3074 }
 0x2e5   : > { %v9433_v27 = vpop.f32.mrf.mxu1  ;;  %14701 = vst [vmem:[#allocation34_spill] sm:$0xff] %v9455_v63 }
 0x2e7   : > { %4051 = vmatpush1.bf16.msra.mxu0 %v14694_v15  ;;  %v2331_v29 = vpop.f32.mrf.mxu1 }
 0x2e8   : > { %4052 = vmatprep.subr.bf16.mxu0 %v2845_v57  ;;  %v2332_v7 = vadd.f32 %v2331_v29, %v8561_v36  ;;  %v9452_v57 = vpop.permute.xlu0 %3089  ;;  %v2945_v29 = vpack.c.bf16 %v2817_v21, %v2801_v1 }
 0x2e9   : > { %v9439_v10 = vpop.f32.mrf.mxu1  ;;  %14699 = vst [vmem:[#allocation35_spill] sm:$0xff] %v9452_v57  ;;  %v9461_v57 = vld [vmem:[#allocation2 + $0x20] sm:$0xff]  }
 0x2ea   : > { %3604 = vmatmul.mubr.bf16.gmra.mxu1 %v14696_v40  ;;  %3717 = vmatmul.mubr.bf16.gmra.mxu0 %v9445_v11  ;;  %v2799_v40 = vmax.f32 %v2332_v7, 0.0 }
 0x2eb   : > { %4053 = vmatpush1.bf16.msra.mxu0 %v14698_v6  ;;  %v2335_v37 = vpop.f32.mrf.mxu1  ;;  %3613 = vmatprep.mubr.bf16.mxu1 %v14571_v39 }
 0x2ec   : > { %v2336_v44 = vadd.f32 %v2335_v37, %v8569_v30  ;;  %4054 = vmatprep.subr.bf16.mxu0 %v2829_v2  ;;  %3726 = vmatprep.mubr.bf16.mxu0 %v14571_v39  ;;  %v9465_v21 = vpop.permute.xlu0 %3079 }
 0x2ed   : > { %v2485_v32 = vpop.f32.mrf.mxu1  ;;  %14702 = vst [vmem:[#allocation22_spill] sm:$0xff] %v9465_v21 }
 0x2ee   : > { %v2815_v15 = vmax.f32 %v2336_v44, 0.0  ;;  %v2486_v6 = vadd.f32 %v2485_v32, %v8638_v50 }
 0x2ef   : > { %4055 = vmatpush1.bf16.msra.mxu0 %v14700_v19  ;;  %v2487_v0 = vpop.f32.mrf.mxu1 }
 0x2f0   : > { %4426 = vmatprep.subr.bf16.mxu0 %v2945_v29  ;;  %v2943_v55 = vpack.c.bf16 %v2815_v15, %v2799_v40  ;;  %v2488_v2 = vadd.f32 %v2487_v0, %v8638_v50  ;;  %v2578_v7 = vmax.f32 %v2486_v6, 0.0  ;;  %v9476_v21 = vpop.permute.xlu0 %3069 }
 0x2f1   : > { %v2489_v11 = vpop.f32.mrf.mxu1  ;;  %14706 = vst [vmem:[#allocation41_spill] sm:$0xff] %v9476_v21 }
 0x2f2   : > { %v2490_v37 = vadd.f32 %v2489_v11, %v8644_v53  ;;  %3614 = vmatmul.mubr.bf16.gmra.mxu1 %v9244_v38  ;;  %3727 = vmatmul.mubr.bf16.gmra.mxu0 %v9461_v57  ;;  %v9469_v11 = vpop.permute.xlu1 %3064  ;;  %v2579_v38 = vmax.f32 %v2488_v2, 0.0 }
 0x2f3   : > { %4233 = vmatprep.subr.bf16.mxu1 %v2943_v55  ;;  %v2491_v19 = vpop.f32.mrf.mxu1  ;;  %3623 = vmatprep.mubr.bf16.mxu1 %v14571_v39  ;;  %14703 = vst [vmem:[#allocation16_spill] sm:$0xff] %v9469_v11 }
 0x2f4   : > { %v2594_v1 = vmax.f32 %v2490_v37, 0.0  ;;  %v2492_v44 = vadd.f32 %v2491_v19, %v8644_v53  ;;  %3736 = vmatprep.mubr.bf16.mxu0 %v14571_v39 }
 0x2f5   : > { %v2495_v32 = vpop.f32.mrf.mxu1 }
 0x2f6   : > { %v9471_v40 = vpack.c.bf16 %v2594_v1, %v2578_v7  ;;  %v2595_v15 = vmax.f32 %v2492_v44, 0.0  ;;  %v2496_v0 = vadd.f32 %v2495_v32, %v8623_v61  ;;  %v9484_v19 = vpop.permute.xlu1 %3054 }
 0x2f7   : > { %v2497_v29 = vpop.f32.mrf.mxu1  ;;  %14707 = vst [vmem:[#allocation21_spill] sm:$0xff] %v9484_v19 }
 0x2f8   : > { %14704 = vst [vmem:[#allocation42_spill] sm:$0xff] %v9471_v40  ;;  %v9474_v55 = vpack.c.bf16 %v2595_v15, %v2579_v38  ;;  %v2498_v6 = vadd.f32 %v2497_v29, %v8623_v61  ;;  %v2610_v7 = vmax.f32 %v2496_v0, 0.0  ;;  %v9489_v40 = vpop.permute.xlu0 %3059 }
 0x2f9   : > { %v2499_v50 = vpop.f32.mrf.mxu1  ;;  %14709 = vst [vmem:[#allocation20_spill] sm:$0xff] %v9489_v40 }
 0x2fa   : > { %14705 = vst [vmem:[#allocation17_spill] sm:$0xff] %v9474_v55  ;;  %v2500_v37 = vadd.f32 %v2499_v50, %v8627_v18  ;;  %3624 = vmatmul.mubr.bf16.gmra.mxu1 %v9273_v14  ;;  %3737 = vmatmul.mubr.bf16.gmra.mxu0 %v9057_v24  ;;  %v2611_v38 = vmax.f32 %v2498_v6, 0.0  ;;  %v9494_v61 = vpop.permute.xlu1 %3044 }
 0x2fb   : > { %v2501_v2 = vpop.f32.mrf.mxu1  ;;  %3633 = vmatprep.mubr.bf16.mxu1 %v14571_v39  ;;  %3746 = vmatprep.mubr.bf16.mxu0 %v14571_v39  ;;  %14711 = vst [vmem:[#allocation45_spill] sm:$0xff] %v9494_v61 }
 0x2fc   : > { %v2626_v1 = vmax.f32 %v2500_v37, 0.0  ;;  %v2502_v44 = vadd.f32 %v2501_v2, %v8627_v18 }
 0x2fd   : > { %v2505_v32 = vpop.f32.mrf.mxu1 }
 0x2fe   : > { %v9487_v15 = vpack.c.bf16 %v2626_v1, %v2610_v7  ;;  %v2627_v50 = vmax.f32 %v2502_v44, 0.0  ;;  %v2506_v24 = vadd.f32 %v2505_v32, %v8605_v45  ;;  %v9503_v32 = vpop.permute.xlu0 %3049 }
 0x2ff   : > { %v2507_v29 = vpop.f32.mrf.mxu1  ;;  %14712 = vst [vmem:[#allocation38_spill] sm:$0xff] %v9503_v32 }
 0x300   : > { %14708 = vst [vmem:[#allocation40_spill] sm:$0xff] %v9487_v15  ;;  %v9492_v55 = vpack.c.bf16 %v2627_v50, %v2611_v38  ;;  %v2508_v0 = vadd.f32 %v2507_v29, %v8605_v45  ;;  %v2642_v2 = vmax.f32 %v2506_v24, 0.0  ;;  %v9507_v15 = vpop.permute.xlu1 %3034  ;;  %v2334_v24 = vadd.f32 %v9439_v10, %v8569_v30 }
 0x301   : > { %v2509_v53 = vpop.f32.mrf.mxu1  ;;  %14714 = vst [vmem:[#allocation27_spill] sm:$0xff] %v9507_v15 }
 0x302   : > { %14710 = vst [vmem:[#allocation23_spill] sm:$0xff] %v9492_v55  ;;  %v2510_v37 = vadd.f32 %v2509_v53, %v8609_v8  ;;  %3634 = vmatmul.mubr.bf16.gmra.mxu1 %v9307_v4  ;;  %3747 = vmatmul.mubr.bf16.gmra.mxu0 %v9092_v35  ;;  %v2643_v38 = vmax.f32 %v2508_v0, 0.0  ;;  %v9524_v10 = vpop.permute.xlu0 %3039 }
 0x303   : > { %v2511_v6 = vpop.f32.mrf.mxu1  ;;  %3643 = vmatprep.mubr.bf16.mxu1 %v14571_v39  ;;  %3756 = vmatprep.mubr.bf16.mxu0 %v14571_v39  ;;  %14716 = vst [vmem:[#allocation33_spill] sm:$0xff] %v9524_v10 }
 0x304   : > { %v2658_v7 = vmax.f32 %v2510_v37, 0.0  ;;  %v2512_v1 = vadd.f32 %v2511_v6, %v8609_v8  ;;  %v2326_v6 = vadd.f32 %v9427_v5, %v8573_v3  ;;  %v2322_v5 = vadd.f32 %v9414_v52, %v8571_v41 }
 0x305   : > { %v2515_v44 = vpop.f32.mrf.mxu1  ;;  %v2320_v52 = vadd.f32 %v9409_v47, %v8571_v41 }
 0x306   : > { %v9505_v50 = vpack.c.bf16 %v2658_v7, %v2642_v2  ;;  %v2659_v53 = vmax.f32 %v2512_v1, 0.0  ;;  %v2516_v35 = vadd.f32 %v2515_v44, %v8595_v23  ;;  %v2330_v2 = vadd.f32 %v9433_v27, %v8561_v36 }
 0x307   : > { %v2517_v29 = vpop.f32.mrf.mxu1  ;;  %v2324_v27 = vadd.f32 %v9418_v17, %v8573_v3 }
 0x308   : > { %14713 = vst [vmem:[#allocation26_spill] sm:$0xff] %v9505_v50  ;;  %v9510_v55 = vpack.c.bf16 %v2659_v53, %v2643_v38  ;;  %v2518_v18 = vadd.f32 %v2517_v29, %v8595_v23  ;;  %v2674_v1 = vmax.f32 %v2516_v35, 0.0  ;;  %v2814_v53 = vmax.f32 %v2334_v24, 0.0 }
 0x309   : > { %v2519_v37 = vpop.f32.mrf.mxu1  ;;  %v2783_v50 = vmax.f32 %v2326_v6, 0.0  ;;  %v2798_v35 = vmax.f32 %v2330_v2, 0.0  ;;  %v2314_v6 = vadd.f32 %v9394_v28, %v8583_v16  ;;  %v2766_v28 = vmax.f32 %v2320_v52, 0.0 }
 0x30a   : > { %14715 = vst [vmem:[#allocation18_spill] sm:$0xff] %v9510_v55  ;;  %v2520_v0 = vadd.f32 %v2519_v37, %v8603_v13  ;;  %3644 = vmatmul.mubr.bf16.gmra.mxu1 %v9332_v33  ;;  %3757 = vmatmul.mubr.bf16.gmra.mxu0 %v9118_v51  ;;  %v2316_v51 = vadd.f32 %v9403_v9, %v8583_v16  ;;  %v9533_v37 = vpop.permute.xlu1 %3024  ;;  %v2675_v55 = vmax.f32 %v2518_v18, 0.0  ;;  %v2782_v18 = vmax.f32 %v2324_v27, 0.0 }
 0x30b   : > { %v2521_v7 = vpop.f32.mrf.mxu1  ;;  %3766 = vmatprep.mubr.bf16.mxu0 %v14571_v39  ;;  %3879 = vmatprep.mubr.bf16.mxu1 %v14571_v39  ;;  %14717 = vst [vmem:[#allocation30_spill] sm:$0xff] %v9533_v37  ;;  %v2312_v9 = vadd.f32 %v9388_v56, %v8581_v20  ;;  %v2310_v56 = vadd.f32 %v9383_v62, %v8581_v20 }
 0x30c   : > { %v2690_v44 = vmax.f32 %v2520_v0, 0.0  ;;  %v2522_v38 = vadd.f32 %v2521_v7, %v8603_v13  ;;  %v2767_v7 = vmax.f32 %v2322_v5, 0.0 }
 0x30d   : > { %v2525_v29 = vpop.f32.mrf.mxu1 }
 0x30e   : > { %v9535_v45 = vpack.c.bf16 %v2690_v44, %v2674_v1  ;;  %v2691_v8 = vmax.f32 %v2522_v38, 0.0  ;;  %v2526_v17 = vadd.f32 %v2525_v29, %v8591_v26  ;;  %v2942_v1 = vpack.c.bf16 %v2814_v53, %v2798_v35  ;;  %v9546_v38 = vpop.permute.xlu0 %3029  ;;  %v9555_v5 = vpop.permute.xlu1 %3014 }
 0x30f   : > { %v2527_v0 = vpop.f32.mrf.mxu1  ;;  %14720 = vst [vmem:[#allocation29_spill] sm:$0xff] %v9546_v38  ;;  %14721 = vst [vmem:[#allocation24_spill] sm:$0xff] %v9555_v5  ;;  %v2926_v35 = vpack.c.bf16 %v2782_v18, %v2766_v28 }
 0x310   : > { %14718 = vst [vmem:[#allocation48_spill] sm:$0xff] %v9535_v45  ;;  %v9542_v24 = vpack.c.bf16 %v2691_v8, %v2675_v55  ;;  %v2751_v45 = vmax.f32 %v2316_v51, 0.0  ;;  %v2528_v47 = vadd.f32 %v2527_v0, %v8591_v26  ;;  %v2927_v8 = vpack.c.bf16 %v2783_v50, %v2767_v7 }
 0x311   : > { %v2529_v44 = vpop.f32.mrf.mxu1  ;;  %v2735_v51 = vmax.f32 %v2312_v9, 0.0  ;;  %v2706_v27 = vmax.f32 %v2526_v17, 0.0  ;;  %v2750_v50 = vmax.f32 %v2314_v6, 0.0 }
 0x312   : > { %14719 = vst [vmem:[#allocation19_spill] sm:$0xff] %v9542_v24  ;;  %v2530_v2 = vadd.f32 %v2529_v44, %v8593_v42  ;;  %v3302_v23 = vpop.f32.mrf.mxu0  ;;  %3767 = vmatmul.mubr.bf16.gmra.mxu0 %v14677_v25  ;;  %3880 = vmatmul.mubr.bf16.vlgmr.msra.gmra.mxu1 %v9372_v49  ;;  %v2707_v7 = vmax.f32 %v2528_v47, 0.0  ;;  %v9569_v18 = vpop.permute.xlu0 %3019 }
 0x313   : > { %4234 = vmatpush1.bf16.msra.mxu1 %v2942_v1  ;;  %v2531_v55 = vpop.f32.mrf.mxu1  ;;  %3776 = vmatprep.mubr.bf16.mxu0 %v14571_v39  ;;  %v9560_v62 = vadd.f32 %v3302_v23, %v9555_v5  ;;  %v2911_v44 = vpack.c.bf16 %v2751_v45, %v2735_v51  ;;  %14723 = vst [vmem:[#allocation25_spill] sm:$0xff] %v9569_v18 }
 0x314   : > { %v2722_v53 = vmax.f32 %v2530_v2, 0.0  ;;  %v2532_v29 = vadd.f32 %v2531_v55, %v8593_v42  ;;  %4235 = vmatprep.subr.bf16.mxu1 %v2927_v8  ;;  %v3304_v25 = vpop.f32.mrf.mxu0  ;;  %3889 = vmatprep.mubr.bf16.mxu1 %v14571_v39  ;;  %v2734_v2 = vmax.f32 %v2310_v56, 0.0 }
 0x315   : > { %v9563_v52 = vadd.f32 %v3304_v25, %v9555_v5  ;;  %v2535_v0 = vpop.f32.mrf.mxu1 }
 0x316   : > { %v9565_v1 = vpack.c.bf16 %v2722_v53, %v2706_v27  ;;  %v2723_v9 = vmax.f32 %v2532_v29, 0.0  ;;  %v3306_v17 = vpop.f32.mrf.mxu0  ;;  %v2536_v23 = vadd.f32 %v2535_v0, %v8581_v20  ;;  %v2910_v47 = vpack.c.bf16 %v2750_v50, %v2734_v2  ;;  %v9658_v8 = vpop.permute.xlu0 %3169 }
 0x317   : > { %4236 = vmatpush1.bf16.msra.mxu1 %v2926_v35  ;;  %v2537_v6 = vpop.f32.mrf.mxu1  ;;  %v9575_v27 = vadd.f32 %v3306_v17, %v9569_v18 }
 0x318   : > { %14722 = vst [vmem:[#allocation52_spill] sm:$0xff] %v9565_v1  ;;  %4237 = vmatprep.subr.bf16.mxu1 %v2911_v44  ;;  %v3308_v28 = vpop.f32.mrf.mxu0  ;;  %v9572_v55 = vpack.c.bf16 %v2723_v9, %v2707_v7  ;;  %v2538_v51 = vadd.f32 %v2537_v6, %v8581_v20  ;;  %v2738_v35 = vmax.f32 %v2536_v23, 0.0 }
 0x319   : > { %v9578_v45 = vadd.f32 %v3308_v28, %v9569_v18  ;;  %v2539_v56 = vpop.f32.mrf.mxu1 }
 0x31a   : > { %14724 = vst [vmem:[#allocation31_spill] sm:$0xff] %v9572_v55  ;;  %v2540_v53 = vadd.f32 %v2539_v56, %v8583_v16  ;;  %v3312_v29 = vpop.f32.mrf.mxu0  ;;  %3777 = vmatmul.mubr.bf16.gmra.mxu0 %v14684_v34  ;;  %3890 = vmatmul.mubr.bf16.gmra.mxu1 %v9399_v22  ;;  %v2739_v2 = vmax.f32 %v2538_v51, 0.0 }
 0x31b   : > { %4238 = vmatpush1.bf16.msra.mxu1 %v2910_v47  ;;  %v2541_v50 = vpop.f32.mrf.mxu1  ;;  %3786 = vmatprep.mubr.bf16.mxu0 %v14571_v39  ;;  %v9591_v34 = vadd.f32 %v3312_v29, %v9533_v37 }
 0x31c   : > { %v2754_v0 = vmax.f32 %v2540_v53, 0.0  ;;  %v2542_v7 = vadd.f32 %v2541_v50, %v8583_v16  ;;  %4239 = vmatprep.subr.bf16.mxu1 %v9392_v43  ;;  %v3314_v9 = vpop.f32.mrf.mxu0  ;;  %3899 = vmatprep.mubr.bf16.mxu1 %v14571_v39 }
 0x31d   : > { %v9594_v17 = vadd.f32 %v3314_v9, %v9533_v37  ;;  %v2545_v44 = vpop.f32.mrf.mxu1 }
 0x31e   : > { %v9596_v6 = vpack.c.bf16 %v2754_v0, %v2738_v35  ;;  %v2755_v28 = vmax.f32 %v2542_v7, 0.0  ;;  %v3316_v23 = vpop.f32.mrf.mxu0  ;;  %v2546_v56 = vadd.f32 %v2545_v44, %v8571_v41 }
 0x31f   : > { %4240 = vmatpush1.bf16.msra.mxu1 %v9385_v12  ;;  %v2547_v43 = vpop.f32.mrf.mxu1  ;;  %v9606_v50 = vadd.f32 %v3316_v23, %v9546_v38 }
 0x320   : > { %14725 = vst [vmem:[#allocation68_spill] sm:$0xff] %v9596_v6  ;;  %4241 = vmatprep.subr.bf16.mxu1 %v9365_v54  ;;  %v3318_v53 = vpop.f32.mrf.mxu0  ;;  %v9603_v29 = vpack.c.bf16 %v2755_v28, %v2739_v2  ;;  %v2548_v0 = vadd.f32 %v2547_v43, %v8571_v41  ;;  %v2770_v44 = vmax.f32 %v2546_v56, 0.0 }
 0x321   : > { %v9609_v51 = vadd.f32 %v3318_v53, %v9546_v38  ;;  %v2549_v35 = vpop.f32.mrf.mxu1 }
 0x322   : > { %14726 = vst [vmem:[#allocation69_spill] sm:$0xff] %v9603_v29  ;;  %v2550_v7 = vadd.f32 %v2549_v35, %v8573_v3  ;;  %v3322_v12 = vpop.f32.mrf.mxu0  ;;  %3787 = vmatmul.mubr.bf16.gmra.mxu0 %v14691_v58  ;;  %3900 = vmatmul.mubr.bf16.gmra.mxu1 %v9423_v46 }
 0x323   : > { %4242 = vmatpush1.bf16.msra.mxu1 %v9357_v60  ;;  %v2551_v9 = vpop.f32.mrf.mxu1  ;;  %3796 = vmatprep.mubr.bf16.mxu0 %v14571_v39  ;;  %v9623_v58 = vadd.f32 %v3322_v12, %v9507_v15  ;;  %v2771_v60 = vmax.f32 %v2548_v0, 0.0 }
 0x324   : > { %v2786_v2 = vmax.f32 %v2550_v7, 0.0  ;;  %v2552_v28 = vadd.f32 %v2551_v9, %v8573_v3  ;;  %4243 = vmatprep.subr.bf16.mxu1 %v9338_v31  ;;  %v3324_v23 = vpop.f32.mrf.mxu0  ;;  %3909 = vmatprep.mubr.bf16.mxu1 %v14571_v39 }
 0x325   : > { %v9626_v43 = vadd.f32 %v3324_v23, %v9507_v15  ;;  %v2555_v53 = vpop.f32.mrf.mxu1  ;;  %v9637_v23 = vpop.permute.xlu1 %3164 }
 0x326   : > { %v9628_v35 = vpack.c.bf16 %v2786_v2, %v2770_v44  ;;  %v2787_v54 = vmax.f32 %v2552_v28, 0.0  ;;  %v3326_v56 = vpop.f32.mrf.mxu0  ;;  %v2556_v9 = vadd.f32 %v2555_v53, %v8561_v36  ;;  %14729 = vst [vmem:[#allocation72_spill] sm:$0xff] %v9637_v23  ;;  %v9647_v53 = vld [vmem:[#allocation2 + $0x58] sm:$0xff]  }
 0x327   : > { %4244 = vmatpush1.bf16.msra.mxu1 %v9328_v48  ;;  %v2557_v31 = vpop.f32.mrf.mxu1  ;;  %v9640_v0 = vadd.f32 %v3326_v56, %v9524_v10 }
 0x328   : > { %14727 = vst [vmem:[#allocation70_spill] sm:$0xff] %v9628_v35  ;;  %4245 = vmatprep.subr.bf16.mxu1 %v9314_v59  ;;  %v3328_v12 = vpop.f32.mrf.mxu0  ;;  %v9635_v47 = vpack.c.bf16 %v2787_v54, %v2771_v60  ;;  %v2558_v28 = vadd.f32 %v2557_v31, %v8561_v36  ;;  %v14730_v59 = vld [vmem:[#allocation36_spill] sm:$0xff]  ;;  %v14731_v60 = vld [vmem:[#allocation63_spill] sm:$0xff]  ;;  %v14732_v31 = vld [vmem:[#allocation61_spill] sm:$0xff] }
 0x329   : > { %v9643_v44 = vadd.f32 %v3328_v12, %v9524_v10  ;;  %v2559_v2 = vpop.f32.mrf.mxu1  ;;  %v2802_v12 = vmax.f32 %v2556_v9, 0.0  ;;  %14733 = vst [vmem:[#allocation36_spill] sm:$0xff] %v9658_v8  ;;  %v9668_v55 = vpop.permute.xlu1 %3154 }
 0x32a   : > { %14728 = vst [vmem:[#allocation71_spill] sm:$0xff] %v9635_v47  ;;  %v2560_v48 = vadd.f32 %v2559_v2, %v8569_v30  ;;  %v3332_v7 = vpop.f32.mrf.mxu0  ;;  %3797 = vmatmul.mubr.bf16.gmra.mxu0 %v9647_v53  ;;  %3910 = vmatmul.mubr.bf16.gmra.mxu1 %v14730_v59  ;;  %14735 = vst [vmem:[#allocation61_spill] sm:$0xff] %v9668_v55 }
 0x32b   : > { %4246 = vmatpush1.bf16.msra.mxu1 %v14731_v60  ;;  %v2561_v56 = vpop.f32.mrf.mxu1  ;;  %3806 = vmatprep.mubr.bf16.mxu0 %v14571_v39  ;;  %v9661_v24 = vadd.f32 %v3332_v7, %v9494_v61  ;;  %v2803_v60 = vmax.f32 %v2558_v28, 0.0 }
 0x32c   : > { %v2818_v25 = vmax.f32 %v2560_v48, 0.0  ;;  %v2562_v36 = vadd.f32 %v2561_v56, %v8569_v30  ;;  %4247 = vmatprep.subr.bf16.mxu1 %v14732_v31  ;;  %v3334_v2 = vpop.f32.mrf.mxu0  ;;  %3919 = vmatprep.mubr.bf16.mxu1 %v14571_v39  ;;  %v14736_v56 = vld [vmem:[#allocation58_spill] sm:$0xff] }
 0x32d   : > { %v9664_v54 = vadd.f32 %v3334_v2, %v9494_v61 }
 0x32e   : > { %v9666_v1 = vpack.c.bf16 %v2818_v25, %v2802_v12  ;;  %v2819_v9 = vmax.f32 %v2562_v36, 0.0  ;;  %v3336_v48 = vpop.f32.mrf.mxu0  ;;  %v9679_v25 = vld [vmem:[#allocation2 + $0x60] sm:$0xff]   ;;  %v9683_v12 = vpop.permute.xlu0 %3159 }
 0x32f   : > { %4248 = vmatpush1.bf16.msra.mxu1 %v14736_v56  ;;  %v9674_v7 = vadd.f32 %v3336_v48, %v9503_v32  ;;  %14737 = vst [vmem:[#allocation58_spill] sm:$0xff] %v9679_v25  ;;  %14738 = vst [vmem:[#allocation73_spill] sm:$0xff] %v9683_v12 }
 0x330   : > { %14734 = vst [vmem:[#allocation63_spill] sm:$0xff] %v9666_v1  ;;  %v3338_v31 = vpop.f32.mrf.mxu0  ;;  %v2947_v6 = vpack.c.bf16 %v2819_v9, %v2803_v60  ;;  %v9689_v9 = vpop.permute.xlu1 %3144 }
 0x331   : > { %v9677_v2 = vadd.f32 %v3338_v31, %v9503_v32  ;;  %14739 = vst [vmem:[#allocation74_spill] sm:$0xff] %v9689_v9 }
 0x332   : > { %v3342_v28 = vpop.f32.mrf.mxu0  ;;  %3807 = vmatmul.mubr.bf16.gmra.mxu0 %v9679_v25  ;;  %3920 = vmatmul.mubr.bf16.gmra.mxu1 %v9461_v57  ;;  %v9699_v36 = vpop.permute.xlu0 %3149 }
 0x333   : > { %4619 = vmatprep.subr.bf16.mxu1 %v2947_v6  ;;  %3816 = vmatprep.mubr.bf16.mxu0 %v14571_v39  ;;  %v9692_v48 = vadd.f32 %v3342_v28, %v9484_v19  ;;  %14741 = vst [vmem:[#allocation76_spill] sm:$0xff] %v9699_v36  ;;  %v9708_v28 = vld [vmem:[#allocation2 + $0x28] sm:$0xff]  }
 0x334   : > { %v3344_v60 = vpop.f32.mrf.mxu0  ;;  %3929 = vmatprep.mubr.bf16.mxu1 %v14571_v39  ;;  %14744 = vst [vmem:[#allocation79_spill] sm:$0xff] %v9708_v28 }
 0x335   : > { %v9695_v56 = vadd.f32 %v3344_v60, %v9484_v19  ;;  %v9711_v60 = vpop.permute.xlu1 %3134 }
 0x336   : > { %v3346_v31 = vpop.f32.mrf.mxu0  ;;  %14745 = vst [vmem:[#allocation80_spill] sm:$0xff] %v9711_v60  ;;  %v9723_v8 = vpop.permute.xlu0 %3139 }
 0x337   : > { %14740 = vst [vmem:[#allocation75_spill] sm:$0xff] %v9695_v56  ;;  %v9702_v6 = vadd.f32 %v3346_v31, %v9489_v40  ;;  %14748 = vst [vmem:[#allocation83_spill] sm:$0xff] %v9723_v8 }
 0x338   : > { %v3348_v29 = vpop.f32.mrf.mxu0 }
 0x339   : > { %14742 = vst [vmem:[#allocation77_spill] sm:$0xff] %v9702_v6  ;;  %v9705_v35 = vadd.f32 %v3348_v29, %v9489_v40  ;;  %v9727_v55 = vpop.permute.xlu1 %3124 }
 0x33a   : > { %v3352_v47 = vpop.f32.mrf.mxu0  ;;  %3817 = vmatmul.mubr.bf16.gmra.mxu0 %v9273_v14  ;;  %3930 = vmatmul.mubr.bf16.gmra.mxu1 %v9708_v28  ;;  %14749 = vst [vmem:[#allocation84_spill] sm:$0xff] %v9727_v55 }
 0x33b   : > { %14743 = vst [vmem:[#allocation78_spill] sm:$0xff] %v9705_v35  ;;  %3826 = vmatprep.mubr.bf16.mxu0 %v14571_v39  ;;  %3939 = vmatprep.mubr.bf16.mxu1 %v14571_v39  ;;  %v9718_v29 = vadd.f32 %v3352_v47, %v9469_v11  ;;  %v14767_v35 = vld [vmem:[#allocation60_spill] sm:$0xff] }
 0x33c   : > { %v3354_v31 = vpop.f32.mrf.mxu0 }
 0x33d   : > { %14746 = vst [vmem:[#allocation81_spill] sm:$0xff] %v9718_v29  ;;  %v9721_v1 = vadd.f32 %v3354_v31, %v9469_v11  ;;  %v9736_v31 = vld [vmem:[#allocation2 + $0x30] sm:$0xff]   ;;  %v14760_v11 = vld [vmem:[#allocation66_spill] sm:$0xff] }
 0x33e   : > { %v3356_v14 = vpop.f32.mrf.mxu0  ;;  %14752 = vst [vmem:[#allocation87_spill] sm:$0xff] %v9736_v31 }
 0x33f   : > { %14747 = vst [vmem:[#allocation82_spill] sm:$0xff] %v9721_v1  ;;  %v9730_v30 = vadd.f32 %v3356_v14, %v9476_v21  ;;  %v9743_v14 = vpop.permute.xlu0 %3129  ;;  %v9751_v1 = vpop.permute.xlu1 %3114 }
 0x340   : > { %v3358_v12 = vpop.f32.mrf.mxu0  ;;  %14753 = vst [vmem:[#allocation88_spill] sm:$0xff] %v9743_v14  ;;  %14756 = vst [vmem:[#allocation91_spill] sm:$0xff] %v9751_v1 }
 0x341   : > { %14750 = vst [vmem:[#allocation85_spill] sm:$0xff] %v9730_v30  ;;  %v9733_v36 = vadd.f32 %v3358_v12, %v9476_v21 }
 0x342   : > { %v3362_v47 = vpop.f32.mrf.mxu0  ;;  %3827 = vmatmul.mubr.bf16.gmra.mxu0 %v9307_v4  ;;  %3940 = vmatmul.mubr.bf16.gmra.mxu1 %v9736_v31 }
 0x343   : > { %14751 = vst [vmem:[#allocation86_spill] sm:$0xff] %v9733_v36  ;;  %3836 = vmatprep.mubr.bf16.mxu0 %v14571_v39  ;;  %3949 = vmatprep.mubr.bf16.mxu1 %v14571_v39  ;;  %v9746_v12 = vadd.f32 %v3362_v47, %v9455_v63  ;;  %v14757_v36 = vld [vmem:[#allocation22_spill] sm:$0xff]  ;;  %v2439_v47 = vadd.f32 %v14760_v11, %v8573_v3  ;;  %v9775_v11 = vpop.permute.xlu1 %3104 }
 0x344   : > { %v3364_v23 = vpop.f32.mrf.mxu0 }
 0x345   : > { %14754 = vst [vmem:[#allocation89_spill] sm:$0xff] %v9746_v12  ;;  %v9749_v21 = vadd.f32 %v3364_v23, %v9455_v63  ;;  %v9764_v23 = vld [vmem:[#allocation2 + $0x38] sm:$0xff]   ;;  %v9767_v63 = vpop.permute.xlu0 %3119  ;;  %v2785_v31 = vmax.f32 %v2439_v47, 0.0 }
 0x346   : > { %v3366_v4 = vpop.f32.mrf.mxu0  ;;  %14761 = vst [vmem:[#allocation66_spill] sm:$0xff] %v9764_v23  ;;  %14762 = vst [vmem:[#allocation94_spill] sm:$0xff] %v9767_v63 }
 0x347   : > { %14755 = vst [vmem:[#allocation90_spill] sm:$0xff] %v9749_v21  ;;  %v9756_v30 = vadd.f32 %v3366_v4, %v14757_v36  ;;  %v14766_v21 = vld [vmem:[#allocation62_spill] sm:$0xff] }
 0x348   : > { %v3368_v9 = vpop.f32.mrf.mxu0  ;;  %v2429_v12 = vadd.f32 %v14766_v21, %v8583_v16  ;;  %v14771_v16 = vld [vmem:[#allocation57_spill] sm:$0xff] }
 0x349   : > { %14758 = vst [vmem:[#allocation92_spill] sm:$0xff] %v9756_v30  ;;  %v9759_v29 = vadd.f32 %v3368_v9, %v14757_v36  ;;  %v14763_v9 = vld [vmem:[#allocation65_spill] sm:$0xff]  ;;  %v9789_v8 = vpop.permute.xlu0 %3109  ;;  %v2419_v21 = vadd.f32 %v14771_v16, %v8593_v42  ;;  %v14775_v42 = vld [vmem:[#allocation56_spill] sm:$0xff] }
 0x34a   : > { %v3372_v28 = vpop.f32.mrf.mxu0  ;;  %3837 = vmatmul.mubr.bf16.gmra.mxu0 %v9332_v33  ;;  %3950 = vmatmul.mubr.bf16.gmra.mxu1 %v9764_v23  ;;  %v2435_v4 = vadd.f32 %v14763_v9, %v8571_v41  ;;  %14764 = vst [vmem:[#allocation65_spill] sm:$0xff] %v9775_v11  ;;  %v14765_v33 = vld [vmem:[#allocation37_spill] sm:$0xff]  ;;  %v2425_v41 = vadd.f32 %v14767_v35, %v8581_v20  ;;  %14768 = vst [vmem:[#allocation62_spill] sm:$0xff] %v9789_v8  ;;  %v2753_v47 = vmax.f32 %v2429_v12, 0.0  ;;  %v9803_v35 = vpop.permute.xlu1 %3094 }
 0x34b   : > { %14759 = vst [vmem:[#allocation93_spill] sm:$0xff] %v9759_v29  ;;  %3959 = vmatprep.mubr.bf16.mxu1 %v14571_v39  ;;  %4072 = vmatprep.mubr.bf16.mxu0 %v14571_v39  ;;  %v9778_v36 = vadd.f32 %v3372_v28, %v14765_v33  ;;  %v14769_v28 = vld [vmem:[#allocation35_spill] sm:$0xff]  ;;  %v9799_v30 = vld [vmem:[#allocation2 + $0x40] sm:$0xff]   ;;  %14773 = vst [vmem:[#allocation95_spill] sm:$0xff] %v9803_v35  ;;  %v2415_v12 = vadd.f32 %v14775_v42, %v8591_v26 }
 0x34c   : > { %v3374_v3 = vpop.f32.mrf.mxu0  ;;  %v2769_v9 = vmax.f32 %v2435_v4, 0.0  ;;  %14772 = vst [vmem:[#allocation57_spill] sm:$0xff] %v9799_v30  ;;  %v14774_v4 = vld [vmem:[#allocation39_spill] sm:$0xff]  ;;  %v2737_v16 = vmax.f32 %v2425_v41, 0.0  ;;  %v14779_v26 = vld [vmem:[#allocation54_spill] sm:$0xff] }
 0x34d   : > { %v9781_v23 = vadd.f32 %v3374_v3, %v14765_v33  ;;  %v2409_v41 = vadd.f32 %v14779_v26, %v8603_v13  ;;  %v2705_v13 = vmax.f32 %v2415_v12, 0.0 }
 0x34e   : > { %v3376_v29 = vpop.f32.mrf.mxu0  ;;  %v2929_v20 = vpack.c.bf16 %v2785_v31, %v2769_v9  ;;  %v14776_v31 = vmax.f32 %v9560_v62, %v9563_v52 }
 0x34f   : > { %v9792_v40 = vadd.f32 %v3376_v29, %v14769_v28 }
 0x350   : > { %v3378_v6 = vpop.f32.mrf.mxu0 }
 0x351   : > { %v9795_v3 = vadd.f32 %v3378_v6, %v14769_v28 }
 0x352   : > { %v3382_v33 = vpop.f32.mrf.mxu0  ;;  %v3495_v56 = vpop.f32.mrf.mxu1  ;;  %3960 = vmatmul.mubr.bf16.gmra.mxu1 %v9799_v30  ;;  %4073 = vmatmul.mubr.bf16.vlgmr.msra.gmra.mxu0 %v9372_v49 }
 0x353   : > { %14770 = vst [vmem:[#allocation60_spill] sm:$0xff] %v9795_v3  ;;  %v3496_v6 = vadd.f32 %v3495_v56, %v9555_v5  ;;  %4427 = vmatpush1.bf16.msra.mxu0 %v14774_v4  ;;  %3969 = vmatprep.mubr.bf16.mxu1 %v14571_v39  ;;  %v9814_v49 = vadd.f32 %v3382_v33, %v9803_v35  ;;  %v9829_v33 = vpop.permute.xlu0 %3099 }
 0x354   : > { %4428 = vmatprep.subr.bf16.mxu0 %v2929_v20  ;;  %v3384_v30 = vpop.f32.mrf.mxu0  ;;  %v3497_v28 = vpop.f32.mrf.mxu1  ;;  %4082 = vmatprep.mubr.bf16.mxu0 %v14571_v39  ;;  %v2721_v20 = vmax.f32 %v2419_v21, 0.0  ;;  %v2913_v3 = vpack.c.bf16 %v2753_v47, %v2737_v16  ;;  %14780 = vst [vmem:[#allocation54_spill] sm:$0xff] %v9829_v33  ;;  %v14784_v16 = vmax.f32 %v9575_v27, %v9578_v45 }
 0x355   : > { %v9819_v56 = vmax.f32 %v14776_v31, %v3496_v6  ;;  %v9822_v9 = vadd.f32 %v3384_v30, %v9803_v35  ;;  %v9825_v4 = vadd.f32 %v3497_v28, %v9555_v5  ;;  %v14781_v6 = vld [vmem:[#allocation67_spill] sm:$0xff]  ;;  %v14782_v28 = vld [vmem:[#allocation13_spill] sm:$0xff] }
 0x356   : > { %v3386_v42 = vpop.f32.mrf.mxu0  ;;  %v3499_v29 = vpop.f32.mrf.mxu1  ;;  %v14783_v31 = vld [vmem:[#allocation53_spill] sm:$0xff]  ;;  %v2897_v27 = vpack.c.bf16 %v2721_v20, %v2705_v13  ;;  %v14791_v20 = vmax.f32 %v9591_v34, %v9594_v17 }
 0x357   : > { %14777 = vst [vmem:[#allocation39_spill] sm:$0xff] %v9819_v56  ;;  %14778 = vst [vmem:[#allocation56_spill] sm:$0xff] %v9825_v4  ;;  %v3500_v30 = vadd.f32 %v3499_v29, %v9569_v18  ;;  %4429 = vmatpush1.bf16.msra.mxu0 %v14781_v6  ;;  %v2405_v5 = vadd.f32 %v14783_v31, %v14782_v28  ;;  %v9840_v47 = vadd.f32 %v3386_v42, %v9829_v33  ;;  %v14785_v6 = vld [vmem:[#allocation10_spill] sm:$0xff] }
 0x358   : > { %4430 = vmatprep.subr.bf16.mxu0 %v2913_v3  ;;  %v3388_v21 = vpop.f32.mrf.mxu0  ;;  %v3501_v26 = vpop.f32.mrf.mxu1  ;;  %v14786_v28 = vld [vmem:[#allocation50_spill] sm:$0xff]  ;;  %v2689_v3 = vmax.f32 %v2409_v41, 0.0  ;;  %v14789_v41 = vld [vmem:[#allocation12_spill] sm:$0xff] }
 0x359   : > { %v9845_v62 = vmax.f32 %v14784_v16, %v3500_v30  ;;  %v9848_v52 = vadd.f32 %v3388_v21, %v9829_v33  ;;  %v9851_v29 = vadd.f32 %v3501_v26, %v9569_v18  ;;  %v2399_v12 = vadd.f32 %v14786_v28, %v14785_v6  ;;  %v9855_v56 = vld [vmem:[#allocation2 + $0x48] sm:$0xff]   ;;  %v14788_v21 = vld [vmem:[#allocation64_spill] sm:$0xff]  ;;  %v14790_v26 = vld [vmem:[#allocation49_spill] sm:$0xff] }
 0x35a   : > { %v3392_v31 = vpop.f32.mrf.mxu0  ;;  %v3505_v4 = vpop.f32.mrf.mxu1  ;;  %14787 = vst [vmem:[#allocation67_spill] sm:$0xff] %v9855_v56  ;;  %3970 = vmatmul.mubr.bf16.gmra.mxu1 %v9855_v56  ;;  %4083 = vmatmul.mubr.bf16.gmra.mxu0 %v9399_v22  ;;  %v2395_v16 = vadd.f32 %v14790_v26, %v14789_v41  ;;  %v2673_v6 = vmax.f32 %v2405_v5, 0.0  ;;  %v14793_v5 = vld [vmem:[#allocation15_spill] sm:$0xff] }
 0x35b   : > { %v3506_v30 = vadd.f32 %v3505_v4, %v9533_v37  ;;  %4431 = vmatpush1.bf16.msra.mxu0 %v14788_v21  ;;  %3979 = vmatprep.mubr.bf16.mxu1 %v14571_v39  ;;  %v9869_v22 = vadd.f32 %v3392_v31, %v9775_v11  ;;  %v2657_v26 = vmax.f32 %v2399_v12, 0.0 }
 0x35c   : > { %4432 = vmatprep.subr.bf16.mxu0 %v2897_v27  ;;  %v3394_v28 = vpop.f32.mrf.mxu0  ;;  %v3507_v56 = vpop.f32.mrf.mxu1  ;;  %4092 = vmatprep.mubr.bf16.mxu0 %v14571_v39  ;;  %v14794_v27 = vld [vmem:[#allocation32_spill] sm:$0xff]  ;;  %v2881_v45 = vpack.c.bf16 %v2689_v3, %v2673_v6  ;;  %v14798_v3 = vmax.f32 %v9606_v50, %v9609_v51 }
 0x35d   : > { %v9874_v13 = vmax.f32 %v14791_v20, %v3506_v30  ;;  %v9877_v4 = vadd.f32 %v3394_v28, %v9775_v11  ;;  %v9880_v21 = vadd.f32 %v3507_v56, %v9533_v37  ;;  %v2389_v41 = vadd.f32 %v14794_v27, %v14793_v5  ;;  %v14795_v28 = vld [vmem:[#allocation59_spill] sm:$0xff]  ;;  %v14796_v56 = vld [vmem:[#allocation9_spill] sm:$0xff]  ;;  %v14797_v20 = vld [vmem:[#allocation46_spill] sm:$0xff] }
 0x35e   : > { %v3396_v42 = vpop.f32.mrf.mxu0  ;;  %v3509_v31 = vpop.f32.mrf.mxu1  ;;  %v2385_v37 = vadd.f32 %v14797_v20, %v14796_v56  ;;  %v2641_v11 = vmax.f32 %v2395_v16, 0.0  ;;  %v14800_v56 = vld [vmem:[#allocation28_spill] sm:$0xff] }
 0x35f   : > { %14792 = vst [vmem:[#allocation13_spill] sm:$0xff] %v9880_v21  ;;  %v3510_v30 = vadd.f32 %v3509_v31, %v9546_v38  ;;  %4433 = vmatpush1.bf16.msra.mxu0 %v14795_v28  ;;  %v9894_v27 = vadd.f32 %v3396_v42, %v9789_v8  ;;  %v14799_v28 = vld [vmem:[#allocation11_spill] sm:$0xff] }
 0x360   : > { %4434 = vmatprep.subr.bf16.mxu0 %v2881_v45  ;;  %v3398_v5 = vpop.f32.mrf.mxu0  ;;  %v3511_v12 = vpop.f32.mrf.mxu1  ;;  %v2379_v16 = vadd.f32 %v14800_v56, %v14799_v28  ;;  %v2625_v45 = vmax.f32 %v2389_v41, 0.0  ;;  %v9909_v21 = vld [vmem:[#allocation2 + $0x50] sm:$0xff]   ;;  %v2865_v50 = vpack.c.bf16 %v2657_v26, %v2641_v11  ;;  %v14803_v41 = vld [vmem:[#allocation14_spill] sm:$0xff]  ;;  %v2609_v28 = vmax.f32 %v2385_v37, 0.0 }
 0x361   : > { %v9899_v6 = vmax.f32 %v14798_v3, %v3510_v30  ;;  %v9902_v17 = vadd.f32 %v3398_v5, %v9789_v8  ;;  %v9905_v31 = vadd.f32 %v3511_v12, %v9546_v38  ;;  %14801 = vst [vmem:[#allocation53_spill] sm:$0xff] %v9909_v21  ;;  %v14802_v5 = vld [vmem:[#allocation55_spill] sm:$0xff]  ;;  %v14805_v11 = vmax.f32 %v9623_v58, %v9626_v43 }
 0x362   : > { %v3402_v20 = vpop.f32.mrf.mxu0  ;;  %v3515_v34 = vpop.f32.mrf.mxu1  ;;  %3980 = vmatmul.mubr.bf16.gmra.mxu1 %v9909_v21  ;;  %4093 = vmatmul.mubr.bf16.gmra.mxu0 %v9423_v46  ;;  %v14804_v12 = vld [vmem:[#allocation43_spill] sm:$0xff]  ;;  %v2593_v37 = vmax.f32 %v2379_v16, 0.0  ;;  %v14807_v16 = vmax.f32 %v9640_v0, %v9643_v44 }
 0x363   : > { %v3516_v30 = vadd.f32 %v3515_v34, %v9507_v15  ;;  %4435 = vmatpush1.bf16.msra.mxu0 %v14802_v5  ;;  %v2375_v3 = vadd.f32 %v14804_v12, %v14803_v41  ;;  %3989 = vmatprep.mubr.bf16.mxu1 %v14571_v39  ;;  %v9923_v46 = vadd.f32 %v3402_v20, %v9751_v1 }
 0x364   : > { %4436 = vmatprep.subr.bf16.mxu0 %v2865_v50  ;;  %v3404_v56 = vpop.f32.mrf.mxu0  ;;  %v3517_v21 = vpop.f32.mrf.mxu1  ;;  %4102 = vmatprep.mubr.bf16.mxu0 %v14571_v39  ;;  %v2849_v12 = vpack.c.bf16 %v2625_v45, %v2609_v28 }
 0x365   : > { %v9928_v26 = vmax.f32 %v14805_v11, %v3516_v30  ;;  %v9931_v34 = vadd.f32 %v3404_v56, %v9751_v1  ;;  %v9934_v5 = vadd.f32 %v3517_v21, %v9507_v15  ;;  %v14806_v30 = vld [vmem:[#allocation51_spill] sm:$0xff]  ;;  %v2577_v56 = vmax.f32 %v2375_v3, 0.0 }
 0x366   : > { %v3406_v50 = vpop.f32.mrf.mxu0  ;;  %v3519_v41 = vpop.f32.mrf.mxu1 }
 0x367   : > { %v3520_v43 = vadd.f32 %v3519_v41, %v9524_v10  ;;  %4437 = vmatpush1.bf16.msra.mxu0 %v14806_v30  ;;  %v9944_v42 = vadd.f32 %v3406_v50, %v9767_v63  ;;  %v2833_v3 = vpack.c.bf16 %v2593_v37, %v2577_v56 }
 0x368   : > { %4438 = vmatprep.subr.bf16.mxu0 %v2849_v12  ;;  %v3408_v21 = vpop.f32.mrf.mxu0  ;;  %v3521_v11 = vpop.f32.mrf.mxu1  ;;  %v14808_v12 = vld [vmem:[#allocation47_spill] sm:$0xff] }
 0x369   : > { %v9949_v45 = vmax.f32 %v14807_v16, %v3520_v43  ;;  %v9952_v28 = vadd.f32 %v3408_v21, %v9767_v63  ;;  %v9955_v58 = vadd.f32 %v3521_v11, %v9524_v10 }
 0x36a   : > { %v3412_v41 = vpop.f32.mrf.mxu0  ;;  %v3525_v30 = vpop.f32.mrf.mxu1  ;;  %3990 = vmatmul.mubr.bf16.gmra.mxu1 %v9647_v53  ;;  %4103 = vmatmul.mubr.bf16.gmra.mxu0 %v14730_v59  ;;  %v14809_v59 = vmax.f32 %v9661_v24, %v9664_v54  ;;  %v14810_v54 = vld [vmem:[#allocation44_spill] sm:$0xff] }
 0x36b   : > { %v3526_v44 = vadd.f32 %v3525_v30, %v9494_v61  ;;  %4439 = vmatpush1.bf16.msra.mxu0 %v14808_v12  ;;  %3999 = vmatprep.mubr.bf16.mxu1 %v14571_v39  ;;  %v9967_v11 = vadd.f32 %v3412_v41, %v9727_v55 }
 0x36c   : > { %4440 = vmatprep.subr.bf16.mxu0 %v2833_v3  ;;  %v3414_v43 = vpop.f32.mrf.mxu0  ;;  %v3527_v21 = vpop.f32.mrf.mxu1  ;;  %4112 = vmatprep.mubr.bf16.mxu0 %v14571_v39 }
 0x36d   : > { %v9972_v37 = vmax.f32 %v14809_v59, %v3526_v44  ;;  %v9975_v56 = vadd.f32 %v3414_v43, %v9727_v55  ;;  %v9978_v16 = vadd.f32 %v3527_v21, %v9494_v61  ;;  %v14811_v21 = vmax.f32 %v9674_v7, %v9677_v2 }
 0x36e   : > { %v3416_v30 = vpop.f32.mrf.mxu0  ;;  %v3529_v3 = vpop.f32.mrf.mxu1 }
 0x36f   : > { %v3530_v24 = vadd.f32 %v3529_v3, %v9503_v32  ;;  %4441 = vmatpush1.bf16.msra.mxu0 %v14810_v54  ;;  %v9988_v59 = vadd.f32 %v3416_v30, %v9743_v14 }
 0x370   : > { %v3418_v44 = vpop.f32.mrf.mxu0  ;;  %v3531_v43 = vpop.f32.mrf.mxu1 }
 0x371   : > { %v9993_v0 = vmax.f32 %v14811_v21, %v3530_v24  ;;  %v9996_v50 = vadd.f32 %v3418_v44, %v9743_v14  ;;  %v9999_v12 = vadd.f32 %v3531_v43, %v9503_v32  ;;  %v14815_v43 = vld [vmem:[#allocation75_spill] sm:$0xff] }
 0x372   : > { %v3422_v41 = vpop.f32.mrf.mxu0  ;;  %v3535_v3 = vpop.f32.mrf.mxu1  ;;  %4000 = vmatmul.mubr.bf16.gmra.mxu1 %v9679_v25  ;;  %4113 = vmatmul.mubr.bf16.gmra.mxu0 %v9461_v57  ;;  %v14816_v57 = vmax.f32 %v9692_v48, %v14815_v43  ;;  %v14820_v25 = vld [vmem:[#allocation20_spill] sm:$0xff] }
 0x373   : > { %14812 = vst [vmem:[#allocation10_spill] sm:$0xff] %v9993_v0  ;;  %14813 = vst [vmem:[#allocation50_spill] sm:$0xff] %v9999_v12  ;;  %v3536_v2 = vadd.f32 %v3535_v3, %v9484_v19  ;;  %4009 = vmatprep.mubr.bf16.mxu1 %v14571_v39  ;;  %4122 = vmatprep.mubr.bf16.mxu0 %v14571_v39  ;;  %v10011_v44 = vadd.f32 %v3422_v41, %v9711_v60 }
 0x374   : > { %v3424_v24 = vpop.f32.mrf.mxu0  ;;  %v3537_v54 = vpop.f32.mrf.mxu1 }
 0x375   : > { %14814 = vst [vmem:[#allocation64_spill] sm:$0xff] %v10011_v44  ;;  %v10016_v21 = vmax.f32 %v14816_v57, %v3536_v2  ;;  %v10019_v30 = vadd.f32 %v3424_v24, %v9711_v60  ;;  %v10022_v7 = vadd.f32 %v3537_v54, %v9484_v19  ;;  %v14821_v2 = vld [vmem:[#allocation83_spill] sm:$0xff]  ;;  %v14823_v24 = vld [vmem:[#allocation77_spill] sm:$0xff]  ;;  %v14824_v57 = vld [vmem:[#allocation78_spill] sm:$0xff] }
 0x376   : > { %v3426_v3 = vpop.f32.mrf.mxu0  ;;  %v3539_v20 = vpop.f32.mrf.mxu1  ;;  %v14825_v60 = vmax.f32 %v14823_v24, %v14824_v57  ;;  %v14832_v57 = vld [vmem:[#allocation74_spill] sm:$0xff] }
 0x377   : > { %14817 = vst [vmem:[#allocation12_spill] sm:$0xff] %v10016_v21  ;;  %14818 = vst [vmem:[#allocation49_spill] sm:$0xff] %v10019_v30  ;;  %v3540_v12 = vadd.f32 %v3539_v20, %v14820_v25  ;;  %v10030_v43 = vadd.f32 %v3426_v3, %v14821_v2  ;;  %v14830_v20 = vld [vmem:[#allocation79_spill] sm:$0xff] }
 0x378   : > { %14819 = vst [vmem:[#allocation15_spill] sm:$0xff] %v10022_v7  ;;  %v3428_v0 = vpop.f32.mrf.mxu0  ;;  %v3541_v48 = vpop.f32.mrf.mxu1  ;;  %v10043_v7 = vld [vmem:[#allocation2 + $0x68] sm:$0xff]  }
 0x379   : > { %14822 = vst [vmem:[#allocation32_spill] sm:$0xff] %v10030_v43  ;;  %v10035_v54 = vmax.f32 %v14825_v60, %v3540_v12  ;;  %v10038_v19 = vadd.f32 %v3428_v0, %v14821_v2  ;;  %v10041_v51 = vadd.f32 %v3541_v48, %v14820_v25  ;;  %14829 = vst [vmem:[#allocation11_spill] sm:$0xff] %v10043_v7  ;;  %v14831_v12 = vld [vmem:[#allocation16_spill] sm:$0xff]  ;;  %v14835_v2 = vld [vmem:[#allocation82_spill] sm:$0xff] }
 0x37a   : > { %v3432_v30 = vpop.f32.mrf.mxu0  ;;  %v3545_v41 = vpop.f32.mrf.mxu1  ;;  %4010 = vmatmul.mubr.bf16.gmra.mxu1 %v10043_v7  ;;  %4123 = vmatmul.mubr.bf16.gmra.mxu0 %v14830_v20  ;;  %v14834_v7 = vld [vmem:[#allocation81_spill] sm:$0xff] }
 0x37b   : > { %14826 = vst [vmem:[#allocation59_spill] sm:$0xff] %v10035_v54  ;;  %14827 = vst [vmem:[#allocation9_spill] sm:$0xff] %v10038_v19  ;;  %v3546_v0 = vadd.f32 %v3545_v41, %v14831_v12  ;;  %4019 = vmatprep.mubr.bf16.mxu1 %v14571_v39  ;;  %4132 = vmatprep.mubr.bf16.mxu0 %v14571_v39  ;;  %v10055_v25 = vadd.f32 %v3432_v30, %v14832_v57  ;;  %v14840_v19 = vld [vmem:[#allocation41_spill] sm:$0xff] }
 0x37c   : > { %14828 = vst [vmem:[#allocation46_spill] sm:$0xff] %v10041_v51  ;;  %v3434_v48 = vpop.f32.mrf.mxu0  ;;  %v3547_v24 = vpop.f32.mrf.mxu1  ;;  %v14836_v20 = vmax.f32 %v14834_v7, %v14835_v2  ;;  %v14841_v2 = vld [vmem:[#allocation76_spill] sm:$0xff] }
 0x37d   : > { %14833 = vst [vmem:[#allocation28_spill] sm:$0xff] %v10055_v25  ;;  %v10063_v3 = vadd.f32 %v3434_v48, %v14832_v57  ;;  %v10066_v60 = vadd.f32 %v3547_v24, %v14831_v12  ;;  %v14844_v48 = vld [vmem:[#allocation86_spill] sm:$0xff] }
 0x37e   : > { %v10060_v21 = vmax.f32 %v14836_v20, %v3546_v0  ;;  %v3436_v41 = vpop.f32.mrf.mxu0  ;;  %v3549_v51 = vpop.f32.mrf.mxu1  ;;  %v14843_v0 = vld [vmem:[#allocation85_spill] sm:$0xff] }
 0x37f   : > { %14838 = vst [vmem:[#allocation14_spill] sm:$0xff] %v10063_v3  ;;  %14839 = vst [vmem:[#allocation43_spill] sm:$0xff] %v10066_v60  ;;  %v3550_v43 = vadd.f32 %v3549_v51, %v14840_v19  ;;  %v10074_v20 = vadd.f32 %v3436_v41, %v14841_v2  ;;  %v14845_v57 = vmax.f32 %v14843_v0, %v14844_v48  ;;  %v10087_v60 = vld [vmem:[#allocation2 + $0x70] sm:$0xff]   ;;  %v14852_v48 = vld [vmem:[#allocation61_spill] sm:$0xff] }
 0x380   : > { %14837 = vst [vmem:[#allocation55_spill] sm:$0xff] %v10060_v21  ;;  %v3438_v44 = vpop.f32.mrf.mxu0  ;;  %v3551_v7 = vpop.f32.mrf.mxu1  ;;  %14849 = vst [vmem:[#allocation77_spill] sm:$0xff] %v10087_v60  ;;  %v14850_v51 = vld [vmem:[#allocation87_spill] sm:$0xff] }
 0x381   : > { %14842 = vst [vmem:[#allocation51_spill] sm:$0xff] %v10074_v20  ;;  %v10079_v24 = vmax.f32 %v14845_v57, %v3550_v43  ;;  %v10082_v12 = vadd.f32 %v3438_v44, %v14841_v2  ;;  %v10085_v54 = vadd.f32 %v3551_v7, %v14840_v19  ;;  %v14851_v57 = vld [vmem:[#allocation34_spill] sm:$0xff] }
 0x382   : > { %v3442_v3 = vpop.f32.mrf.mxu0  ;;  %v3555_v30 = vpop.f32.mrf.mxu1  ;;  %4020 = vmatmul.mubr.bf16.gmra.mxu1 %v10087_v60  ;;  %4133 = vmatmul.mubr.bf16.gmra.mxu0 %v14850_v51  ;;  %v14853_v60 = vld [vmem:[#allocation89_spill] sm:$0xff]  ;;  %v14854_v2 = vld [vmem:[#allocation90_spill] sm:$0xff] }
 0x383   : > { %14846 = vst [vmem:[#allocation47_spill] sm:$0xff] %v10079_v24  ;;  %14847 = vst [vmem:[#allocation44_spill] sm:$0xff] %v10082_v12  ;;  %v3556_v44 = vadd.f32 %v3555_v30, %v14851_v57  ;;  %4029 = vmatprep.mubr.bf16.mxu1 %v14571_v39  ;;  %4142 = vmatprep.mubr.bf16.mxu0 %v14571_v39  ;;  %v10099_v19 = vadd.f32 %v3442_v3, %v14852_v48  ;;  %v14858_v12 = vld [vmem:[#allocation22_spill] sm:$0xff] }
 0x384   : > { %14848 = vst [vmem:[#allocation75_spill] sm:$0xff] %v10085_v54  ;;  %v3444_v7 = vpop.f32.mrf.mxu0  ;;  %v3557_v0 = vpop.f32.mrf.mxu1  ;;  %v14855_v51 = vmax.f32 %v14853_v60, %v14854_v2  ;;  %v14859_v2 = vld [vmem:[#allocation73_spill] sm:$0xff] }
 0x385   : > { %v10107_v41 = vadd.f32 %v3444_v7, %v14852_v48  ;;  %v10110_v43 = vadd.f32 %v3557_v0, %v14851_v57  ;;  %v14862_v7 = vld [vmem:[#allocation93_spill] sm:$0xff] }
 0x386   : > { %v10104_v21 = vmax.f32 %v14855_v51, %v3556_v44  ;;  %v3446_v30 = vpop.f32.mrf.mxu0  ;;  %v3559_v54 = vpop.f32.mrf.mxu1  ;;  %v14861_v44 = vld [vmem:[#allocation92_spill] sm:$0xff] }
 0x387   : > { %14856 = vst [vmem:[#allocation78_spill] sm:$0xff] %v10107_v41  ;;  %14857 = vst [vmem:[#allocation81_spill] sm:$0xff] %v10110_v43  ;;  %v3560_v20 = vadd.f32 %v3559_v54, %v14858_v12  ;;  %v10118_v51 = vadd.f32 %v3446_v30, %v14859_v2  ;;  %v14863_v48 = vmax.f32 %v14861_v44, %v14862_v7  ;;  %v10131_v43 = vld [vmem:[#allocation2 + $0x78] sm:$0xff]   ;;  %v14868_v54 = vld [vmem:[#allocation66_spill] sm:$0xff] }
 0x388   : > { %v3448_v25 = vpop.f32.mrf.mxu0  ;;  %v3561_v60 = vpop.f32.mrf.mxu1  ;;  %14867 = vst [vmem:[#allocation90_spill] sm:$0xff] %v10131_v43  ;;  %v14870_v7 = vld [vmem:[#allocation72_spill] sm:$0xff] }
 0x389   : > { %14860 = vst [vmem:[#allocation82_spill] sm:$0xff] %v10118_v51  ;;  %v10123_v0 = vmax.f32 %v14863_v48, %v3560_v20  ;;  %v10126_v57 = vadd.f32 %v3448_v25, %v14859_v2  ;;  %v10129_v24 = vadd.f32 %v3561_v60, %v14858_v12  ;;  %v14869_v48 = vld [vmem:[#allocation37_spill] sm:$0xff] }
 0x38a   : > { %v3452_v41 = vpop.f32.mrf.mxu0  ;;  %v3565_v3 = vpop.f32.mrf.mxu1  ;;  %4030 = vmatmul.mubr.bf16.gmra.mxu1 %v10131_v43  ;;  %4143 = vmatmul.mubr.bf16.gmra.mxu0 %v14868_v54  ;;  %v14871_v54 = vmax.f32 %v9778_v36, %v9781_v23  ;;  %v14875_v23 = vld [vmem:[#allocation36_spill] sm:$0xff] }
 0x38b   : > { %14864 = vst [vmem:[#allocation85_spill] sm:$0xff] %v10123_v0  ;;  %14865 = vst [vmem:[#allocation86_spill] sm:$0xff] %v10126_v57  ;;  %v3566_v25 = vadd.f32 %v3565_v3, %v14869_v48  ;;  %4152 = vmatprep.mubr.bf16.mxu0 %v14571_v39  ;;  %4265 = vmatprep.mubr.bf16.mxu1 %v14571_v39  ;;  %v10143_v12 = vadd.f32 %v3452_v41, %v14870_v7  ;;  %v14874_v57 = vld [vmem:[#allocation35_spill] sm:$0xff] }
 0x38c   : > { %14866 = vst [vmem:[#allocation89_spill] sm:$0xff] %v10129_v24  ;;  %v3454_v60 = vpop.f32.mrf.mxu0  ;;  %v3567_v44 = vpop.f32.mrf.mxu1 }
 0x38d   : > { %v10148_v43 = vmax.f32 %v14871_v54, %v3566_v25  ;;  %v10151_v30 = vadd.f32 %v3454_v60, %v14870_v7  ;;  %v10154_v20 = vadd.f32 %v3567_v44, %v14869_v48  ;;  %v14876_v25 = vld [vmem:[#allocation60_spill] sm:$0xff] }
 0x38e   : > { %v3456_v3 = vpop.f32.mrf.mxu0  ;;  %v3569_v24 = vpop.f32.mrf.mxu1  ;;  %v14877_v60 = vmax.f32 %v9792_v40, %v14876_v25 }
 0x38f   : > { %14872 = vst [vmem:[#allocation92_spill] sm:$0xff] %v10151_v30  ;;  %14873 = vst [vmem:[#allocation93_spill] sm:$0xff] %v10154_v20  ;;  %v3570_v51 = vadd.f32 %v3569_v24, %v14874_v57  ;;  %v10162_v54 = vadd.f32 %v3456_v3, %v14875_v23  ;;  %v14880_v20 = vld [vmem:[#allocation57_spill] sm:$0xff]  ;;  %v14886_v3 = vld [vmem:[#allocation39_spill] sm:$0xff] }
 0x390   : > { %v3458_v2 = vpop.f32.mrf.mxu0  ;;  %v3571_v36 = vpop.f32.mrf.mxu1  ;;  %v10176_v24 = vld [vmem:[#allocation2] sm:$0xff]  }
 0x391   : > { %v10167_v44 = vmax.f32 %v14877_v60, %v3570_v51  ;;  %v10170_v48 = vadd.f32 %v3458_v2, %v14875_v23  ;;  %v10173_v0 = vadd.f32 %v3571_v36, %v14874_v57  ;;  %14881 = vst [vmem:[#allocation97_spill] sm:$0xff] %v10176_v24  ;;  %v14882_v51 = vld [vmem:[#allocation24_spill] sm:$0xff]  ;;  %v14883_v36 = vld [vmem:[#allocation63_spill] sm:$0xff] }
 0x392   : > { %v3575_v30 = vpop.f32.mrf.mxu1  ;;  %v3688_v41 = vpop.f32.mrf.mxu0  ;;  %4153 = vmatmul.mubr.bf16.gmra.mxu0 %v14880_v20  ;;  %4266 = vmatmul.mubr.bf16.vlgmr.msra.gmra.mxu1 %v10176_v24  ;;  %v14884_v60 = vld [vmem:[#allocation71_spill] sm:$0xff]  ;;  %v14885_v24 = vmax.f32 %v9814_v49, %v9822_v9  ;;  %v14894_v49 = vmax.f32 %v9845_v62, %v9851_v29 }
 0x393   : > { %14878 = vst [vmem:[#allocation60_spill] sm:$0xff] %v10170_v48  ;;  %14879 = vst [vmem:[#allocation96_spill] sm:$0xff] %v10173_v0  ;;  %v3576_v2 = vadd.f32 %v3575_v30, %v9803_v35  ;;  %v3689_v25 = vadd.f32 %v3688_v41, %v14882_v51  ;;  %4620 = vmatpush1.bf16.msra.mxu1 %v14883_v36  ;;  %4162 = vmatprep.mubr.bf16.mxu0 %v14571_v39  ;;  %v14887_v48 = vld [vmem:[#allocation56_spill] sm:$0xff]  ;;  %v14896_v9 = vld [vmem:[#allocation67_spill] sm:$0xff] }
 0x394   : > { %4621 = vmatprep.subr.bf16.mxu1 %v14884_v60  ;;  %v3577_v57 = vpop.f32.mrf.mxu1  ;;  %v3690_v20 = vpop.f32.mrf.mxu0  ;;  %v14888_v40 = vmax.f32 %v14886_v3, %v14887_v48  ;;  %4275 = vmatprep.mubr.bf16.mxu1 %v14571_v39  ;;  %v14891_v3 = vld [vmem:[#allocation70_spill] sm:$0xff] }
 0x395   : > { %v10191_v23 = vmax.f32 %v14885_v24, %v3576_v2  ;;  %v10199_v30 = vadd.f32 %v3577_v57, %v9803_v35  ;;  %v10202_v41 = vadd.f32 %v3690_v20, %v14882_v51  ;;  %v14892_v57 = vld [vmem:[#allocation69_spill] sm:$0xff]  ;;  %v14893_v2 = vmax.f32 %v9840_v47, %v9848_v52 }
 0x396   : > { %v10196_v0 = vmax.f32 %v14888_v40, %v3689_v25  ;;  %v3579_v36 = vpop.f32.mrf.mxu1  ;;  %v3692_v60 = vpop.f32.mrf.mxu0  ;;  %v14898_v47 = vld [vmem:[#allocation65_spill] sm:$0xff] }
 0x397   : > { %14889 = vst [vmem:[#allocation63_spill] sm:$0xff] %v10199_v30  ;;  %14890 = vst [vmem:[#allocation71_spill] sm:$0xff] %v10202_v41  ;;  %v3580_v48 = vadd.f32 %v3579_v36, %v9829_v33  ;;  %v3693_v24 = vadd.f32 %v3692_v60, %v9569_v18  ;;  %4622 = vmatpush1.bf16.msra.mxu1 %v14891_v3  ;;  %v10230_v41 = vld [vmem:[#allocation2 + $0x8] sm:$0xff]   ;;  %v14903_v52 = vld [vmem:[#allocation13_spill] sm:$0xff] }
 0x398   : > { %4623 = vmatprep.subr.bf16.mxu1 %v14892_v57  ;;  %v3581_v20 = vpop.f32.mrf.mxu1  ;;  %v3694_v40 = vpop.f32.mrf.mxu0  ;;  %14897 = vst [vmem:[#allocation56_spill] sm:$0xff] %v10230_v41  ;;  %v14904_v62 = vmax.f32 %v9874_v13, %v14903_v52  ;;  %v14907_v52 = vld [vmem:[#allocation52_spill] sm:$0xff] }
 0x399   : > { %v10216_v25 = vmax.f32 %v14893_v2, %v3580_v48  ;;  %v10221_v30 = vmax.f32 %v14894_v49, %v3693_v24  ;;  %v10224_v36 = vadd.f32 %v3581_v20, %v9829_v33  ;;  %v10227_v60 = vadd.f32 %v3694_v40, %v9569_v18  ;;  %v14899_v49 = vld [vmem:[#allocation30_spill] sm:$0xff]  ;;  %v14900_v24 = vld [vmem:[#allocation68_spill] sm:$0xff]  ;;  %v14901_v20 = vld [vmem:[#allocation31_spill] sm:$0xff] }
 0x39a   : > { %v3585_v3 = vpop.f32.mrf.mxu1  ;;  %v3698_v57 = vpop.f32.mrf.mxu0  ;;  %4163 = vmatmul.mubr.bf16.gmra.mxu0 %v14896_v9  ;;  %4276 = vmatmul.mubr.bf16.gmra.mxu1 %v10230_v41  ;;  %v14902_v41 = vmax.f32 %v9869_v22, %v9877_v4  ;;  %v14910_v22 = vmax.f32 %v9899_v6, %v9905_v31  ;;  %v14911_v4 = vld [vmem:[#allocation53_spill] sm:$0xff] }
 0x39b   : > { %14895 = vst [vmem:[#allocation39_spill] sm:$0xff] %v10227_v60  ;;  %v3586_v29 = vadd.f32 %v3585_v3, %v14898_v47  ;;  %v3699_v48 = vadd.f32 %v3698_v57, %v14899_v49  ;;  %4624 = vmatpush1.bf16.msra.mxu1 %v14900_v24  ;;  %4172 = vmatprep.mubr.bf16.mxu0 %v14571_v39 }
 0x39c   : > { %4625 = vmatprep.subr.bf16.mxu1 %v14901_v20  ;;  %v3587_v40 = vpop.f32.mrf.mxu1  ;;  %v3700_v2 = vpop.f32.mrf.mxu0  ;;  %4285 = vmatprep.mubr.bf16.mxu1 %v14571_v39 }
 0x39d   : > { %v10245_v9 = vmax.f32 %v14902_v41, %v3586_v29  ;;  %v10250_v60 = vmax.f32 %v14904_v62, %v3699_v48  ;;  %v10253_v3 = vadd.f32 %v3587_v40, %v14898_v47  ;;  %v10256_v57 = vadd.f32 %v3700_v2, %v14899_v49  ;;  %v14908_v62 = vld [vmem:[#allocation19_spill] sm:$0xff] }
 0x39e   : > { %v3589_v24 = vpop.f32.mrf.mxu1  ;;  %v3702_v20 = vpop.f32.mrf.mxu0  ;;  %v14909_v40 = vmax.f32 %v9894_v27, %v9902_v17  ;;  %v14915_v27 = vmax.f32 %v9928_v26, %v9934_v5 }
 0x39f   : > { %14905 = vst [vmem:[#allocation70_spill] sm:$0xff] %v10253_v3  ;;  %14906 = vst [vmem:[#allocation69_spill] sm:$0xff] %v10256_v57  ;;  %v3590_v13 = vadd.f32 %v3589_v24, %v9789_v8  ;;  %v3703_v41 = vadd.f32 %v3702_v20, %v9546_v38  ;;  %4626 = vmatpush1.bf16.msra.mxu1 %v14907_v52  ;;  %v10284_v57 = vld [vmem:[#allocation2 + $0x10] sm:$0xff]  }
 0x3a0   : > { %4627 = vmatprep.subr.bf16.mxu1 %v14908_v62  ;;  %v3591_v29 = vpop.f32.mrf.mxu1  ;;  %v3704_v48 = vpop.f32.mrf.mxu0 }
 0x3a1   : > { %v10270_v2 = vmax.f32 %v14909_v40, %v3590_v13  ;;  %v10275_v3 = vmax.f32 %v14910_v22, %v3703_v41  ;;  %v10278_v24 = vadd.f32 %v3591_v29, %v9789_v8  ;;  %v10281_v20 = vadd.f32 %v3704_v48, %v9546_v38  ;;  %v14912_v22 = vld [vmem:[#allocation48_spill] sm:$0xff]  ;;  %v14913_v13 = vld [vmem:[#allocation18_spill] sm:$0xff] }
 0x3a2   : > { %v3595_v52 = vpop.f32.mrf.mxu1  ;;  %v3708_v62 = vpop.f32.mrf.mxu0  ;;  %4173 = vmatmul.mubr.bf16.gmra.mxu0 %v14911_v4  ;;  %4286 = vmatmul.mubr.bf16.gmra.mxu1 %v10284_v57  ;;  %v14914_v48 = vmax.f32 %v9923_v46, %v9931_v34  ;;  %v14920_v46 = vmax.f32 %v9949_v45, %v9955_v58  ;;  %v10338_v34 = vld [vmem:[#allocation2 + $0x18] sm:$0xff]  }
 0x3a3   : > { %v3596_v6 = vadd.f32 %v3595_v52, %v9751_v1  ;;  %v3709_v31 = vadd.f32 %v3708_v62, %v9507_v15  ;;  %4628 = vmatpush1.bf16.msra.mxu1 %v14912_v22  ;;  %4182 = vmatprep.mubr.bf16.mxu0 %v14571_v39  ;;  %14921 = vst [vmem:[#allocation31_spill] sm:$0xff] %v10338_v34 }
 0x3a4   : > { %4629 = vmatprep.subr.bf16.mxu1 %v14913_v13  ;;  %v3597_v41 = vpop.f32.mrf.mxu1  ;;  %v3710_v29 = vpop.f32.mrf.mxu0  ;;  %4295 = vmatprep.mubr.bf16.mxu1 %v14571_v39 }
 0x3a5   : > { %v10299_v40 = vmax.f32 %v14914_v48, %v3596_v6  ;;  %v10304_v17 = vmax.f32 %v14915_v27, %v3709_v31  ;;  %v10307_v52 = vadd.f32 %v3597_v41, %v9751_v1  ;;  %v10310_v62 = vadd.f32 %v3710_v29, %v9507_v15  ;;  %v14917_v27 = vld [vmem:[#allocation26_spill] sm:$0xff]  ;;  %v14918_v6 = vld [vmem:[#allocation23_spill] sm:$0xff] }
 0x3a6   : > { %v3599_v22 = vpop.f32.mrf.mxu1  ;;  %v3712_v13 = vpop.f32.mrf.mxu0  ;;  %v14919_v29 = vmax.f32 %v9944_v42, %v9952_v28  ;;  %v14934_v42 = vld [vmem:[#allocation50_spill] sm:$0xff] }
 0x3a7   : > { %14916 = vst [vmem:[#allocation68_spill] sm:$0xff] %v10307_v52  ;;  %v3600_v26 = vadd.f32 %v3599_v22, %v9767_v63  ;;  %v3713_v5 = vadd.f32 %v3712_v13, %v9524_v10  ;;  %4630 = vmatpush1.bf16.msra.mxu1 %v14917_v27 }
 0x3a8   : > { %4631 = vmatprep.subr.bf16.mxu1 %v14918_v6  ;;  %v3601_v31 = vpop.f32.mrf.mxu1  ;;  %v3714_v41 = vpop.f32.mrf.mxu0 }
 0x3a9   : > { %v10324_v48 = vmax.f32 %v14919_v29, %v3600_v26  ;;  %v10329_v52 = vmax.f32 %v14920_v46, %v3713_v5  ;;  %v10332_v22 = vadd.f32 %v3601_v31, %v9767_v63  ;;  %v10335_v13 = vadd.f32 %v3714_v41, %v9524_v10  ;;  %v14922_v46 = vld [vmem:[#allocation40_spill] sm:$0xff]  ;;  %v14923_v26 = vld [vmem:[#allocation17_spill] sm:$0xff] }
 0x3aa   : > { %v3605_v27 = vpop.f32.mrf.mxu1  ;;  %v3718_v6 = vpop.f32.mrf.mxu0  ;;  %4183 = vmatmul.mubr.bf16.gmra.mxu0 %v9647_v53  ;;  %4296 = vmatmul.mubr.bf16.gmra.mxu1 %v10338_v34  ;;  %v14924_v31 = vmax.f32 %v9967_v11, %v9975_v56  ;;  %v14926_v29 = vmax.f32 %v9972_v37, %v9978_v16 }
 0x3ab   : > { %v3606_v45 = vadd.f32 %v3605_v27, %v9727_v55  ;;  %v3719_v28 = vadd.f32 %v3718_v6, %v9494_v61  ;;  %4632 = vmatpush1.bf16.msra.mxu1 %v14922_v46  ;;  %4192 = vmatprep.mubr.bf16.mxu0 %v14571_v39 }
 0x3ac   : > { %4633 = vmatprep.subr.bf16.mxu1 %v14923_v26  ;;  %v3607_v5 = vpop.f32.mrf.mxu1  ;;  %v3720_v53 = vpop.f32.mrf.mxu0  ;;  %4305 = vmatprep.mubr.bf16.mxu1 %v14571_v39 }
 0x3ad   : > { %v10353_v41 = vmax.f32 %v14924_v31, %v3606_v45  ;;  %v10358_v58 = vmax.f32 %v14926_v29, %v3719_v28  ;;  %v10361_v27 = vadd.f32 %v3607_v5, %v9727_v55  ;;  %v10364_v6 = vadd.f32 %v3720_v53, %v9494_v61  ;;  %v14930_v45 = vld [vmem:[#allocation42_spill] sm:$0xff] }
 0x3ae   : > { %v3609_v46 = vpop.f32.mrf.mxu1  ;;  %v3722_v26 = vpop.f32.mrf.mxu0  ;;  %v14931_v53 = vmax.f32 %v9988_v59, %v9996_v50  ;;  %v14933_v29 = vld [vmem:[#allocation10_spill] sm:$0xff]  ;;  %v14941_v59 = vld [vmem:[#allocation80_spill] sm:$0xff]  ;;  %v14948_v50 = vld [vmem:[#allocation15_spill] sm:$0xff] }
 0x3af   : > { %14925 = vst [vmem:[#allocation13_spill] sm:$0xff] %v10353_v41  ;;  %14927 = vst [vmem:[#allocation52_spill] sm:$0xff] %v10358_v58  ;;  %v3610_v37 = vadd.f32 %v3609_v46, %v9743_v14  ;;  %v3723_v16 = vadd.f32 %v3722_v26, %v9503_v32  ;;  %4634 = vmatpush1.bf16.msra.mxu1 %v14930_v45  ;;  %v14935_v61 = vmax.f32 %v14933_v29, %v14934_v42  ;;  %v10391_v58 = vld [vmem:[#allocation2 + $0x20] sm:$0xff]  }
 0x3b0   : > { %14928 = vst [vmem:[#allocation19_spill] sm:$0xff] %v10361_v27  ;;  %14929 = vst [vmem:[#allocation53_spill] sm:$0xff] %v10364_v6  ;;  %v3611_v28 = vpop.f32.mrf.mxu1  ;;  %v3724_v5 = vpop.f32.mrf.mxu0  ;;  %v14939_v6 = vld [vmem:[#allocation58_spill] sm:$0xff] }
 0x3b1   : > { %v10377_v31 = vmax.f32 %v14931_v53, %v3610_v37  ;;  %v10382_v11 = vmax.f32 %v14935_v61, %v3723_v16  ;;  %v10385_v56 = vadd.f32 %v3611_v28, %v9743_v14  ;;  %v10388_v46 = vadd.f32 %v3724_v5, %v9503_v32  ;;  %14940 = vst [vmem:[#allocation40_spill] sm:$0xff] %v10391_v58  ;;  %v14942_v37 = vld [vmem:[#allocation21_spill] sm:$0xff]  ;;  %v14947_v32 = vld [vmem:[#allocation12_spill] sm:$0xff] }
 0x3b2   : > { %v3615_v26 = vpop.f32.mrf.mxu1  ;;  %v3728_v45 = vpop.f32.mrf.mxu0  ;;  %4193 = vmatmul.mubr.bf16.gmra.mxu0 %v14939_v6  ;;  %4306 = vmatmul.mubr.bf16.gmra.mxu1 %v10391_v58  ;;  %v14943_v6 = vld [vmem:[#allocation64_spill] sm:$0xff]  ;;  %v14944_v53 = vld [vmem:[#allocation49_spill] sm:$0xff] }
 0x3b3   : > { %14932 = vst [vmem:[#allocation48_spill] sm:$0xff] %v10377_v31  ;;  %14936 = vst [vmem:[#allocation18_spill] sm:$0xff] %v10382_v11  ;;  %v3616_v42 = vadd.f32 %v3615_v26, %v14941_v59  ;;  %v3729_v16 = vadd.f32 %v3728_v45, %v14942_v37  ;;  %4202 = vmatprep.mubr.bf16.mxu0 %v14571_v39  ;;  %4315 = vmatprep.mubr.bf16.mxu1 %v14571_v39 }
 0x3b4   : > { %14937 = vst [vmem:[#allocation26_spill] sm:$0xff] %v10385_v56  ;;  %14938 = vst [vmem:[#allocation23_spill] sm:$0xff] %v10388_v46  ;;  %v3617_v28 = vpop.f32.mrf.mxu1  ;;  %v3730_v5 = vpop.f32.mrf.mxu0  ;;  %v14945_v29 = vmax.f32 %v14943_v6, %v14944_v53  ;;  %v14949_v56 = vmax.f32 %v14947_v32, %v14948_v50  ;;  %v14953_v6 = vld [vmem:[#allocation83_spill] sm:$0xff] }
 0x3b5   : > { %v10413_v26 = vadd.f32 %v3617_v28, %v14941_v59  ;;  %v10416_v45 = vadd.f32 %v3730_v5, %v14942_v37  ;;  %v14956_v28 = vld [vmem:[#allocation9_spill] sm:$0xff]  ;;  %v14959_v5 = vld [vmem:[#allocation59_spill] sm:$0xff]  ;;  %v14960_v37 = vld [vmem:[#allocation46_spill] sm:$0xff] }
 0x3b6   : > { %v10405_v58 = vmax.f32 %v14945_v29, %v3616_v42  ;;  %v10410_v31 = vmax.f32 %v14949_v56, %v3729_v16  ;;  %v3619_v61 = vpop.f32.mrf.mxu1  ;;  %v3732_v46 = vpop.f32.mrf.mxu0  ;;  %v14954_v29 = vld [vmem:[#allocation20_spill] sm:$0xff]  ;;  %v14961_v27 = vmax.f32 %v14959_v5, %v14960_v37  ;;  %v14970_v5 = vld [vmem:[#allocation14_spill] sm:$0xff] }
 0x3b7   : > { %14951 = vst [vmem:[#allocation10_spill] sm:$0xff] %v10413_v26  ;;  %14952 = vst [vmem:[#allocation50_spill] sm:$0xff] %v10416_v45  ;;  %v3620_v53 = vadd.f32 %v3619_v61, %v14953_v6  ;;  %v3733_v32 = vadd.f32 %v3732_v46, %v14954_v29  ;;  %v14955_v16 = vld [vmem:[#allocation32_spill] sm:$0xff]  ;;  %v14965_v45 = vld [vmem:[#allocation11_spill] sm:$0xff] }
 0x3b8   : > { %14946 = vst [vmem:[#allocation17_spill] sm:$0xff] %v10405_v58  ;;  %14950 = vst [vmem:[#allocation42_spill] sm:$0xff] %v10410_v31  ;;  %v3621_v56 = vpop.f32.mrf.mxu1  ;;  %v3734_v50 = vpop.f32.mrf.mxu0  ;;  %v14957_v59 = vmax.f32 %v14955_v16, %v14956_v28  ;;  %v14966_v31 = vld [vmem:[#allocation79_spill] sm:$0xff]  ;;  %v14969_v28 = vld [vmem:[#allocation28_spill] sm:$0xff] }
 0x3b9   : > { %v10432_v41 = vmax.f32 %v14961_v27, %v3733_v32  ;;  %v10435_v11 = vadd.f32 %v3621_v56, %v14953_v6  ;;  %v10438_v42 = vadd.f32 %v3734_v50, %v14954_v29  ;;  %v14967_v27 = vld [vmem:[#allocation74_spill] sm:$0xff]  ;;  %v14968_v32 = vld [vmem:[#allocation16_spill] sm:$0xff]  ;;  %v14972_v29 = vld [vmem:[#allocation55_spill] sm:$0xff] }
 0x3ba   : > { %v10427_v14 = vmax.f32 %v14957_v59, %v3620_v53  ;;  %v3625_v61 = vpop.f32.mrf.mxu1  ;;  %v3738_v46 = vpop.f32.mrf.mxu0  ;;  %4203 = vmatmul.mubr.bf16.gmra.mxu0 %v14965_v45  ;;  %4316 = vmatmul.mubr.bf16.gmra.mxu1 %v14966_v31  ;;  %v14971_v45 = vmax.f32 %v14969_v28, %v14970_v5  ;;  %v14973_v59 = vld [vmem:[#allocation43_spill] sm:$0xff]  ;;  %v14978_v5 = vld [vmem:[#allocation41_spill] sm:$0xff] }
 0x3bb   : > { %14962 = vst [vmem:[#allocation64_spill] sm:$0xff] %v10432_v41  ;;  %14963 = vst [vmem:[#allocation49_spill] sm:$0xff] %v10435_v11  ;;  %v3626_v53 = vadd.f32 %v3625_v61, %v14967_v27  ;;  %v3739_v56 = vadd.f32 %v3738_v46, %v14968_v32  ;;  %4212 = vmatprep.mubr.bf16.mxu0 %v14571_v39  ;;  %4325 = vmatprep.mubr.bf16.mxu1 %v14571_v39 }
 0x3bc   : > { %14958 = vst [vmem:[#allocation58_spill] sm:$0xff] %v10427_v14  ;;  %14964 = vst [vmem:[#allocation12_spill] sm:$0xff] %v10438_v42  ;;  %v3627_v50 = vpop.f32.mrf.mxu1  ;;  %v3740_v16 = vpop.f32.mrf.mxu0  ;;  %v14974_v11 = vmax.f32 %v14972_v29, %v14973_v59 }
 0x3bd   : > { %v10453_v31 = vmax.f32 %v14971_v45, %v3626_v53  ;;  %v10461_v61 = vadd.f32 %v3627_v50, %v14967_v27  ;;  %v10464_v46 = vadd.f32 %v3740_v16, %v14968_v32  ;;  %v14977_v53 = vld [vmem:[#allocation76_spill] sm:$0xff]  ;;  %v14983_v16 = vld [vmem:[#allocation47_spill] sm:$0xff] }
 0x3be   : > { %v10458_v14 = vmax.f32 %v14974_v11, %v3739_v56  ;;  %v3629_v37 = vpop.f32.mrf.mxu1  ;;  %v3742_v42 = vpop.f32.mrf.mxu0  ;;  %v14979_v56 = vld [vmem:[#allocation51_spill] sm:$0xff]  ;;  %v14980_v50 = vld [vmem:[#allocation44_spill] sm:$0xff] }
 0x3bf   : > { %14976 = vst [vmem:[#allocation32_spill] sm:$0xff] %v10464_v46  ;;  %v3630_v28 = vadd.f32 %v3629_v37, %v14977_v53  ;;  %v3743_v29 = vadd.f32 %v3742_v42, %v14978_v5  ;;  %v14981_v27 = vmax.f32 %v14979_v56, %v14980_v50  ;;  %v14984_v32 = vld [vmem:[#allocation75_spill] sm:$0xff]  ;;  %v14989_v46 = vld [vmem:[#allocation77_spill] sm:$0xff]  ;;  %v14993_v50 = vld [vmem:[#allocation78_spill] sm:$0xff] }
 0x3c0   : > { %14975 = vst [vmem:[#allocation15_spill] sm:$0xff] %v10458_v14  ;;  %v3631_v11 = vpop.f32.mrf.mxu1  ;;  %v3744_v59 = vpop.f32.mrf.mxu0  ;;  %v14985_v26 = vmax.f32 %v14983_v16, %v14984_v32  ;;  %v14990_v14 = vld [vmem:[#allocation87_spill] sm:$0xff]  ;;  %v14994_v16 = vmax.f32 %v10099_v19, %v14993_v50 }
 0x3c1   : > { %v10475_v6 = vmax.f32 %v14981_v27, %v3630_v28  ;;  %v10483_v41 = vadd.f32 %v3631_v11, %v14977_v53  ;;  %v10486_v45 = vadd.f32 %v3744_v59, %v14978_v5  ;;  %v14995_v27 = vld [vmem:[#allocation81_spill] sm:$0xff] }
 0x3c2   : > { %v10480_v58 = vmax.f32 %v14985_v26, %v3743_v29  ;;  %v3635_v37 = vpop.f32.mrf.mxu1  ;;  %v3748_v42 = vpop.f32.mrf.mxu0  ;;  %4213 = vmatmul.mubr.bf16.gmra.mxu0 %v14989_v46  ;;  %4326 = vmatmul.mubr.bf16.gmra.mxu1 %v14990_v14  ;;  %v14991_v26 = vld [vmem:[#allocation61_spill] sm:$0xff]  ;;  %v14992_v29 = vld [vmem:[#allocation34_spill] sm:$0xff]  ;;  %v14996_v46 = vmax.f32 %v10104_v21, %v14995_v27 }
 0x3c3   : > { %14982 = vst [vmem:[#allocation9_spill] sm:$0xff] %v10475_v6  ;;  %14987 = vst [vmem:[#allocation46_spill] sm:$0xff] %v10483_v41  ;;  %v3636_v28 = vadd.f32 %v3635_v37, %v14991_v26  ;;  %v3749_v11 = vadd.f32 %v3748_v42, %v14992_v29  ;;  %4222 = vmatprep.mubr.bf16.mxu0 %v14571_v39  ;;  %4335 = vmatprep.mubr.bf16.mxu1 %v14571_v39 }
 0x3c4   : > { %14986 = vst [vmem:[#allocation59_spill] sm:$0xff] %v10480_v58  ;;  %14988 = vst [vmem:[#allocation79_spill] sm:$0xff] %v10486_v45  ;;  %v3637_v59 = vpop.f32.mrf.mxu1  ;;  %v3750_v56 = vpop.f32.mrf.mxu0 }
 0x3c5   : > { %v10501_v14 = vmax.f32 %v14994_v16, %v3636_v28  ;;  %v10506_v41 = vmax.f32 %v14996_v46, %v3749_v11  ;;  %v10509_v37 = vadd.f32 %v3637_v59, %v14991_v26  ;;  %v10512_v42 = vadd.f32 %v3750_v56, %v14992_v29  ;;  %v14999_v28 = vld [vmem:[#allocation73_spill] sm:$0xff]  ;;  %v15000_v16 = vld [vmem:[#allocation22_spill] sm:$0xff] }
 0x3c6   : > { %v3639_v32 = vpop.f32.mrf.mxu1  ;;  %v3752_v45 = vpop.f32.mrf.mxu0  ;;  %v15001_v11 = vld [vmem:[#allocation82_spill] sm:$0xff]  ;;  %v15004_v56 = vld [vmem:[#allocation85_spill] sm:$0xff] }
 0x3c7   : > { %14997 = vst [vmem:[#allocation28_spill] sm:$0xff] %v10506_v41  ;;  %14998 = vst [vmem:[#allocation14_spill] sm:$0xff] %v10512_v42  ;;  %v3640_v50 = vadd.f32 %v3639_v32, %v14999_v28  ;;  %v3753_v21 = vadd.f32 %v3752_v45, %v15000_v16  ;;  %v15002_v59 = vld [vmem:[#allocation86_spill] sm:$0xff]  ;;  %v15005_v29 = vld [vmem:[#allocation89_spill] sm:$0xff] }
 0x3c8   : > { %v3641_v46 = vpop.f32.mrf.mxu1  ;;  %v3754_v27 = vpop.f32.mrf.mxu0  ;;  %v15003_v26 = vmax.f32 %v15001_v11, %v15002_v59  ;;  %v15006_v5 = vmax.f32 %v15004_v56, %v15005_v29  ;;  %v15010_v42 = vld [vmem:[#allocation90_spill] sm:$0xff]  ;;  %v15013_v11 = vld [vmem:[#allocation92_spill] sm:$0xff]  ;;  %v15015_v56 = vld [vmem:[#allocation93_spill] sm:$0xff] }
 0x3c9   : > { %v10531_v58 = vadd.f32 %v3641_v46, %v14999_v28  ;;  %v10534_v19 = vadd.f32 %v3754_v27, %v15000_v16  ;;  %v15011_v41 = vld [vmem:[#allocation66_spill] sm:$0xff]  ;;  %v15014_v59 = vmax.f32 %v10143_v12, %v15013_v11 }
 0x3ca   : > { %v10523_v6 = vmax.f32 %v15003_v26, %v3640_v50  ;;  %v10528_v53 = vmax.f32 %v15006_v5, %v3753_v21  ;;  %v3645_v32 = vpop.f32.mrf.mxu1  ;;  %v3758_v45 = vpop.f32.mrf.mxu0  ;;  %4223 = vmatmul.mubr.bf16.gmra.mxu0 %v15010_v42  ;;  %4336 = vmatmul.mubr.bf16.gmra.mxu1 %v15011_v41  ;;  %v15012_v50 = vld [vmem:[#allocation37_spill] sm:$0xff]  ;;  %v15016_v26 = vmax.f32 %v10148_v43, %v15015_v56 }
 0x3cb   : > { %15008 = vst [vmem:[#allocation43_spill] sm:$0xff] %v10531_v58  ;;  %15009 = vst [vmem:[#allocation51_spill] sm:$0xff] %v10534_v19  ;;  %v3646_v5 = vadd.f32 %v3645_v32, %v14870_v7  ;;  %v3759_v21 = vadd.f32 %v3758_v45, %v15012_v50  ;;  %4345 = vmatprep.mubr.bf16.mxu1 %v14571_v39  ;;  %4458 = vmatprep.mubr.bf16.mxu0 %v14571_v39 }
 0x3cc   : > { %15007 = vst [vmem:[#allocation55_spill] sm:$0xff] %v10528_v53  ;;  %v3647_v46 = vpop.f32.mrf.mxu1  ;;  %v3760_v27 = vpop.f32.mrf.mxu0 }
 0x3cd   : > { %v10549_v41 = vmax.f32 %v15014_v59, %v3646_v5  ;;  %v10554_v42 = vmax.f32 %v15016_v26, %v3759_v21  ;;  %v10557_v32 = vadd.f32 %v3647_v46, %v14870_v7  ;;  %v10560_v45 = vadd.f32 %v3760_v27, %v15012_v50  ;;  %v15019_v5 = vld [vmem:[#allocation36_spill] sm:$0xff]  ;;  %v15020_v59 = vld [vmem:[#allocation35_spill] sm:$0xff] }
 0x3ce   : > { %v3649_v29 = vpop.f32.mrf.mxu1  ;;  %v3762_v19 = vpop.f32.mrf.mxu0  ;;  %v15021_v46 = vld [vmem:[#allocation60_spill] sm:$0xff] }
 0x3cf   : > { %15017 = vst [vmem:[#allocation44_spill] sm:$0xff] %v10554_v42  ;;  %15018 = vst [vmem:[#allocation47_spill] sm:$0xff] %v10560_v45  ;;  %v3650_v11 = vadd.f32 %v3649_v29, %v15019_v5  ;;  %v3763_v43 = vadd.f32 %v3762_v19, %v15020_v59  ;;  %v15022_v56 = vmax.f32 %v10162_v54, %v15021_v46  ;;  %v15023_v27 = vld [vmem:[#allocation96_spill] sm:$0xff]  ;;  %v15026_v45 = vld [vmem:[#allocation57_spill] sm:$0xff] }
 0x3d0   : > { %v3651_v26 = vpop.f32.mrf.mxu1  ;;  %v3764_v21 = vpop.f32.mrf.mxu0  ;;  %v15024_v50 = vmax.f32 %v10167_v44, %v15023_v27  ;;  %v15027_v42 = vld [vmem:[#allocation97_spill] sm:$0xff] }
 0x3d1   : > { %v10571_v7 = vmax.f32 %v15022_v56, %v3650_v11  ;;  %v10579_v53 = vadd.f32 %v3651_v26, %v15019_v5  ;;  %v10582_v12 = vadd.f32 %v3764_v21, %v15020_v59  ;;  %v15030_v56 = vld [vmem:[#allocation71_spill] sm:$0xff] }
 0x3d2   : > { %v10576_v58 = vmax.f32 %v15024_v50, %v3763_v43  ;;  %v3768_v29 = vpop.f32.mrf.mxu0  ;;  %v3881_v19 = vpop.f32.mrf.mxu1  ;;  %4346 = vmatmul.mubr.bf16.gmra.mxu1 %v15026_v45  ;;  %4459 = vmatmul.mubr.bf16.vlgmr.msra.gmra.mxu0 %v15027_v42  ;;  %v15028_v45 = vld [vmem:[#allocation63_spill] sm:$0xff]  ;;  %v15031_v27 = vmax.f32 %v10196_v0, %v15030_v56 }
 0x3d3   : > { %15025 = vst [vmem:[#allocation75_spill] sm:$0xff] %v10582_v12  ;;  %v3769_v50 = vadd.f32 %v3768_v29, %v9803_v35  ;;  %v3882_v11 = vadd.f32 %v3881_v19, %v14882_v51  ;;  %4355 = vmatprep.mubr.bf16.mxu1 %v14571_v39  ;;  %4468 = vmatprep.mubr.bf16.mxu0 %v14571_v39 }
 0x3d4   : > { %v3770_v43 = vpop.f32.mrf.mxu0  ;;  %v3883_v26 = vpop.f32.mrf.mxu1  ;;  %v15029_v21 = vmax.f32 %v10191_v23, %v15028_v45 }
 0x3d5   : > { %v10602_v54 = vmax.f32 %v15031_v27, %v3882_v11  ;;  %v10605_v29 = vadd.f32 %v3770_v43, %v9803_v35  ;;  %v10608_v19 = vadd.f32 %v3883_v26, %v14882_v51  ;;  %v15034_v43 = vmax.f32 %v10216_v25, %v10224_v36  ;;  %v15035_v26 = vld [vmem:[#allocation39_spill] sm:$0xff] }
 0x3d6   : > { %v10597_v46 = vmax.f32 %v15029_v21, %v3769_v50  ;;  %v3772_v44 = vpop.f32.mrf.mxu0  ;;  %v3885_v42 = vpop.f32.mrf.mxu1  ;;  %v15036_v56 = vmax.f32 %v10221_v30, %v15035_v26  ;;  %v15042_v26 = vld [vmem:[#allocation69_spill] sm:$0xff] }
 0x3d7   : > { %15032 = vst [vmem:[#allocation87_spill] sm:$0xff] %v10602_v54  ;;  %15033 = vst [vmem:[#allocation78_spill] sm:$0xff] %v10608_v19  ;;  %v3773_v50 = vadd.f32 %v3772_v44, %v9829_v33  ;;  %v3886_v0 = vadd.f32 %v3885_v42, %v9569_v18  ;;  %v15038_v19 = vld [vmem:[#allocation67_spill] sm:$0xff]  ;;  %v15039_v54 = vld [vmem:[#allocation56_spill] sm:$0xff] }
 0x3d8   : > { %v3774_v11 = vpop.f32.mrf.mxu0  ;;  %v3887_v45 = vpop.f32.mrf.mxu1 }
 0x3d9   : > { %v10619_v21 = vmax.f32 %v15034_v43, %v3773_v50  ;;  %v10624_v27 = vmax.f32 %v15036_v56, %v3886_v0  ;;  %v10627_v12 = vadd.f32 %v3774_v11, %v9829_v33  ;;  %v10630_v23 = vadd.f32 %v3887_v45, %v9569_v18 }
 0x3da   : > { %v3778_v44 = vpop.f32.mrf.mxu0  ;;  %v3891_v42 = vpop.f32.mrf.mxu1  ;;  %4356 = vmatmul.mubr.bf16.gmra.mxu1 %v15038_v19  ;;  %4469 = vmatmul.mubr.bf16.gmra.mxu0 %v15039_v54  ;;  %v15040_v19 = vld [vmem:[#allocation70_spill] sm:$0xff]  ;;  %v15043_v56 = vmax.f32 %v10250_v60, %v15042_v26 }
 0x3db   : > { %15037 = vst [vmem:[#allocation81_spill] sm:$0xff] %v10630_v23  ;;  %v3779_v36 = vadd.f32 %v3778_v44, %v14898_v47  ;;  %v3892_v50 = vadd.f32 %v3891_v42, %v14899_v49  ;;  %4365 = vmatprep.mubr.bf16.mxu1 %v14571_v39  ;;  %4478 = vmatprep.mubr.bf16.mxu0 %v14571_v39  ;;  %v10728_v23 = vld [vmem:[#allocation2 + $0x58] sm:$0xff]  }
 0x3dc   : > { %v3780_v0 = vpop.f32.mrf.mxu0  ;;  %v3893_v11 = vpop.f32.mrf.mxu1  ;;  %v15041_v45 = vmax.f32 %v10245_v9, %v15040_v19  ;;  %15056 = vst [vmem:[#allocation92_spill] sm:$0xff] %v10728_v23 }
 0x3dd   : > { %v10650_v25 = vmax.f32 %v15043_v56, %v3892_v50  ;;  %v10653_v44 = vadd.f32 %v3780_v0, %v14898_v47  ;;  %v10656_v42 = vadd.f32 %v3893_v11, %v14899_v49  ;;  %v15044_v0 = vmax.f32 %v10270_v2, %v10278_v24 }
 0x3de   : > { %v10645_v43 = vmax.f32 %v15041_v45, %v3779_v36  ;;  %v3782_v30 = vpop.f32.mrf.mxu0  ;;  %v3895_v54 = vpop.f32.mrf.mxu1  ;;  %v15045_v11 = vmax.f32 %v10275_v3, %v10281_v20 }
 0x3df   : > { %v3783_v36 = vadd.f32 %v3782_v30, %v9789_v8  ;;  %v3896_v60 = vadd.f32 %v3895_v54, %v9546_v38 }
 0x3e0   : > { %v3784_v50 = vpop.f32.mrf.mxu0  ;;  %v3897_v19 = vpop.f32.mrf.mxu1 }
 0x3e1   : > { %v10667_v45 = vmax.f32 %v15044_v0, %v3783_v36  ;;  %v10672_v26 = vmax.f32 %v15045_v11, %v3896_v60  ;;  %v10675_v56 = vadd.f32 %v3784_v50, %v9789_v8  ;;  %v10678_v9 = vadd.f32 %v3897_v19, %v9546_v38 }
 0x3e2   : > { %v3788_v30 = vpop.f32.mrf.mxu0  ;;  %v3901_v54 = vpop.f32.mrf.mxu1  ;;  %4366 = vmatmul.mubr.bf16.gmra.mxu1 %v14911_v4  ;;  %4479 = vmatmul.mubr.bf16.gmra.mxu0 %v10284_v57  ;;  %v15046_v4 = vld [vmem:[#allocation68_spill] sm:$0xff]  ;;  %v15048_v0 = vmax.f32 %v10304_v17, %v10310_v62 }
 0x3e3   : > { %v3789_v24 = vadd.f32 %v3788_v30, %v9751_v1  ;;  %v3902_v20 = vadd.f32 %v3901_v54, %v9507_v15  ;;  %4375 = vmatprep.mubr.bf16.mxu1 %v14571_v39  ;;  %4488 = vmatprep.mubr.bf16.mxu0 %v14571_v39  ;;  %v15047_v50 = vmax.f32 %v10299_v40, %v15046_v4 }
 0x3e4   : > { %v3790_v36 = vpop.f32.mrf.mxu0  ;;  %v3903_v60 = vpop.f32.mrf.mxu1 }
 0x3e5   : > { %v10693_v19 = vmax.f32 %v15047_v50, %v3789_v24  ;;  %v10698_v11 = vmax.f32 %v15048_v0, %v3902_v20  ;;  %v10701_v30 = vadd.f32 %v3790_v36, %v9751_v1  ;;  %v10704_v54 = vadd.f32 %v3903_v60, %v9507_v15 }
 0x3e6   : > { %v3792_v3 = vpop.f32.mrf.mxu0  ;;  %v3905_v2 = vpop.f32.mrf.mxu1  ;;  %v15050_v36 = vmax.f32 %v10324_v48, %v10332_v22  ;;  %v15052_v60 = vmax.f32 %v10329_v52, %v10335_v13  ;;  %v15057_v13 = vld [vmem:[#allocation45_spill] sm:$0xff] }
 0x3e7   : > { %15049 = vst [vmem:[#allocation82_spill] sm:$0xff] %v10704_v54  ;;  %v3793_v24 = vadd.f32 %v3792_v3, %v9767_v63  ;;  %v3906_v17 = vadd.f32 %v3905_v2, %v9524_v10  ;;  %v15063_v48 = vld [vmem:[#allocation53_spill] sm:$0xff] }
 0x3e8   : > { %v3794_v62 = vpop.f32.mrf.mxu0  ;;  %v3907_v20 = vpop.f32.mrf.mxu1 }
 0x3e9   : > { %v10715_v4 = vmax.f32 %v15050_v36, %v3793_v24  ;;  %v10720_v50 = vmax.f32 %v15052_v60, %v3906_v17  ;;  %v10723_v0 = vadd.f32 %v3794_v62, %v9767_v63  ;;  %v10726_v40 = vadd.f32 %v3907_v20, %v9524_v10  ;;  %v15058_v20 = vld [vmem:[#allocation13_spill] sm:$0xff]  ;;  %v15059_v36 = vld [vmem:[#allocation19_spill] sm:$0xff] }
 0x3ea   : > { %v3798_v3 = vpop.f32.mrf.mxu0  ;;  %v3911_v2 = vpop.f32.mrf.mxu1  ;;  %4376 = vmatmul.mubr.bf16.gmra.mxu1 %v10728_v23  ;;  %4489 = vmatmul.mubr.bf16.gmra.mxu0 %v10338_v34  ;;  %v15060_v60 = vmax.f32 %v15058_v20, %v15059_v36  ;;  %v15062_v23 = vld [vmem:[#allocation52_spill] sm:$0xff] }
 0x3eb   : > { %15051 = vst [vmem:[#allocation86_spill] sm:$0xff] %v10715_v4  ;;  %15053 = vst [vmem:[#allocation85_spill] sm:$0xff] %v10720_v50  ;;  %v3799_v22 = vadd.f32 %v3798_v3, %v9727_v55  ;;  %v3912_v24 = vadd.f32 %v3911_v2, %v15057_v13  ;;  %4385 = vmatprep.mubr.bf16.mxu1 %v14571_v39  ;;  %4498 = vmatprep.mubr.bf16.mxu0 %v14571_v39  ;;  %v15068_v20 = vld [vmem:[#allocation88_spill] sm:$0xff] }
 0x3ec   : > { %15054 = vst [vmem:[#allocation89_spill] sm:$0xff] %v10723_v0  ;;  %15055 = vst [vmem:[#allocation66_spill] sm:$0xff] %v10726_v40  ;;  %v3800_v17 = vpop.f32.mrf.mxu0  ;;  %v3913_v62 = vpop.f32.mrf.mxu1  ;;  %v15064_v0 = vmax.f32 %v15062_v23, %v15063_v48 }
 0x3ed   : > { %v10743_v34 = vmax.f32 %v15060_v60, %v3799_v22  ;;  %v10751_v3 = vadd.f32 %v3800_v17, %v9727_v55  ;;  %v10754_v2 = vadd.f32 %v3913_v62, %v15057_v13  ;;  %v15069_v60 = vld [vmem:[#allocation38_spill] sm:$0xff]  ;;  %v15075_v13 = vld [vmem:[#allocation23_spill] sm:$0xff] }
 0x3ee   : > { %v10748_v4 = vmax.f32 %v15064_v0, %v3912_v24  ;;  %v3802_v52 = vpop.f32.mrf.mxu0  ;;  %v3915_v40 = vpop.f32.mrf.mxu1  ;;  %v15070_v24 = vld [vmem:[#allocation48_spill] sm:$0xff]  ;;  %v15071_v17 = vld [vmem:[#allocation26_spill] sm:$0xff] }
 0x3ef   : > { %15061 = vst [vmem:[#allocation93_spill] sm:$0xff] %v10743_v34  ;;  %15066 = vst [vmem:[#allocation96_spill] sm:$0xff] %v10751_v3  ;;  %v3803_v36 = vadd.f32 %v3802_v52, %v15068_v20  ;;  %v3916_v23 = vadd.f32 %v3915_v40, %v15069_v60  ;;  %v15072_v55 = vmax.f32 %v15070_v24, %v15071_v17  ;;  %v15074_v62 = vld [vmem:[#allocation18_spill] sm:$0xff]  ;;  %v15081_v24 = vld [vmem:[#allocation40_spill] sm:$0xff] }
 0x3f0   : > { %15065 = vst [vmem:[#allocation60_spill] sm:$0xff] %v10748_v4  ;;  %15067 = vst [vmem:[#allocation57_spill] sm:$0xff] %v10754_v2  ;;  %v3804_v0 = vpop.f32.mrf.mxu0  ;;  %v3917_v48 = vpop.f32.mrf.mxu1  ;;  %v15076_v63 = vmax.f32 %v15074_v62, %v15075_v13  ;;  %v10778_v2 = vld [vmem:[#allocation2 + $0x60] sm:$0xff]   ;;  %v15082_v13 = vld [vmem:[#allocation80_spill] sm:$0xff] }
 0x3f1   : > { %v10765_v10 = vmax.f32 %v15072_v55, %v3803_v36  ;;  %v10773_v50 = vadd.f32 %v3804_v0, %v15068_v20  ;;  %v10776_v22 = vadd.f32 %v3917_v48, %v15069_v60  ;;  %15080 = vst [vmem:[#allocation70_spill] sm:$0xff] %v10778_v2  ;;  %v15084_v62 = vld [vmem:[#allocation17_spill] sm:$0xff]  ;;  %v15087_v20 = vld [vmem:[#allocation42_spill] sm:$0xff] }
 0x3f2   : > { %v10770_v54 = vmax.f32 %v15076_v63, %v3916_v23  ;;  %v3808_v52 = vpop.f32.mrf.mxu0  ;;  %v3921_v40 = vpop.f32.mrf.mxu1  ;;  %4386 = vmatmul.mubr.bf16.gmra.mxu1 %v10778_v2  ;;  %4499 = vmatmul.mubr.bf16.gmra.mxu0 %v15081_v24  ;;  %v15083_v23 = vld [vmem:[#allocation21_spill] sm:$0xff]  ;;  %v15085_v2 = vld [vmem:[#allocation10_spill] sm:$0xff] }
 0x3f3   : > { %15073 = vst [vmem:[#allocation63_spill] sm:$0xff] %v10765_v10  ;;  %15078 = vst [vmem:[#allocation39_spill] sm:$0xff] %v10773_v50  ;;  %v3809_v36 = vadd.f32 %v3808_v52, %v15082_v13  ;;  %v3922_v0 = vadd.f32 %v3921_v40, %v15083_v23  ;;  %4395 = vmatprep.mubr.bf16.mxu1 %v14571_v39  ;;  %4508 = vmatprep.mubr.bf16.mxu0 %v14571_v39  ;;  %v15088_v55 = vld [vmem:[#allocation50_spill] sm:$0xff] }
 0x3f4   : > { %15077 = vst [vmem:[#allocation71_spill] sm:$0xff] %v10770_v54  ;;  %15079 = vst [vmem:[#allocation67_spill] sm:$0xff] %v10776_v22  ;;  %v3810_v48 = vpop.f32.mrf.mxu0  ;;  %v3923_v17 = vpop.f32.mrf.mxu1  ;;  %v15086_v60 = vmax.f32 %v15084_v62, %v15085_v2  ;;  %v15089_v50 = vmax.f32 %v15087_v20, %v15088_v55  ;;  %v15093_v62 = vld [vmem:[#allocation20_spill] sm:$0xff] }
 0x3f5   : > { %v10801_v52 = vadd.f32 %v3810_v48, %v15082_v13  ;;  %v10804_v40 = vadd.f32 %v3923_v17, %v15083_v23  ;;  %v15095_v48 = vld [vmem:[#allocation49_spill] sm:$0xff]  ;;  %v15098_v17 = vld [vmem:[#allocation64_spill] sm:$0xff] }
 0x3f6   : > { %v10793_v24 = vmax.f32 %v15086_v60, %v3809_v36  ;;  %v10798_v10 = vmax.f32 %v15089_v50, %v3922_v0  ;;  %v3812_v63 = vpop.f32.mrf.mxu0  ;;  %v3925_v22 = vpop.f32.mrf.mxu1  ;;  %v15092_v60 = vld [vmem:[#allocation83_spill] sm:$0xff]  ;;  %v15094_v0 = vld [vmem:[#allocation58_spill] sm:$0xff]  ;;  %v15099_v23 = vld [vmem:[#allocation12_spill] sm:$0xff] }
 0x3f7   : > { %15091 = vst [vmem:[#allocation68_spill] sm:$0xff] %v10804_v40  ;;  %v3813_v36 = vadd.f32 %v3812_v63, %v15092_v60  ;;  %v3926_v20 = vadd.f32 %v3925_v22, %v15093_v62  ;;  %v15096_v13 = vmax.f32 %v15094_v0, %v15095_v48  ;;  %v15100_v3 = vmax.f32 %v15098_v17, %v15099_v23  ;;  %v15104_v40 = vld [vmem:[#allocation11_spill] sm:$0xff]  ;;  %v15106_v23 = vld [vmem:[#allocation74_spill] sm:$0xff] }
 0x3f8   : > { %15090 = vst [vmem:[#allocation69_spill] sm:$0xff] %v10798_v10  ;;  %v3814_v50 = vpop.f32.mrf.mxu0  ;;  %v3927_v55 = vpop.f32.mrf.mxu1  ;;  %v10829_v10 = vld [vmem:[#allocation2 + $0x28] sm:$0xff]   ;;  %v15109_v17 = vld [vmem:[#allocation15_spill] sm:$0xff] }
 0x3f9   : > { %v10815_v4 = vmax.f32 %v15096_v13, %v3813_v36  ;;  %v10820_v34 = vmax.f32 %v15100_v3, %v3926_v20  ;;  %v10823_v54 = vadd.f32 %v3814_v50, %v15092_v60  ;;  %v10826_v2 = vadd.f32 %v3927_v55, %v15093_v62  ;;  %15105 = vst [vmem:[#allocation48_spill] sm:$0xff] %v10829_v10  ;;  %v15107_v20 = vld [vmem:[#allocation16_spill] sm:$0xff] }
 0x3fa   : > { %v3818_v63 = vpop.f32.mrf.mxu0  ;;  %v3931_v22 = vpop.f32.mrf.mxu1  ;;  %4396 = vmatmul.mubr.bf16.gmra.mxu1 %v15104_v40  ;;  %4509 = vmatmul.mubr.bf16.gmra.mxu0 %v10829_v10  ;;  %v15108_v40 = vmax.f32 %v10453_v31, %v10461_v61  ;;  %v15110_v13 = vld [vmem:[#allocation32_spill] sm:$0xff] }
 0x3fb   : > { %15097 = vst [vmem:[#allocation13_spill] sm:$0xff] %v10815_v4  ;;  %15101 = vst [vmem:[#allocation19_spill] sm:$0xff] %v10820_v34  ;;  %v3819_v36 = vadd.f32 %v3818_v63, %v15106_v23  ;;  %v3932_v50 = vadd.f32 %v3931_v22, %v15107_v20  ;;  %4405 = vmatprep.mubr.bf16.mxu1 %v14571_v39  ;;  %4518 = vmatprep.mubr.bf16.mxu0 %v14571_v39  ;;  %v15114_v61 = vld [vmem:[#allocation76_spill] sm:$0xff] }
 0x3fc   : > { %15102 = vst [vmem:[#allocation52_spill] sm:$0xff] %v10823_v54  ;;  %15103 = vst [vmem:[#allocation53_spill] sm:$0xff] %v10826_v2  ;;  %v3820_v55 = vpop.f32.mrf.mxu0  ;;  %v3933_v0 = vpop.f32.mrf.mxu1  ;;  %v15111_v10 = vmax.f32 %v15109_v17, %v15110_v13  ;;  %v15116_v17 = vld [vmem:[#allocation9_spill] sm:$0xff] }
 0x3fd   : > { %v10843_v48 = vmax.f32 %v15108_v40, %v3819_v36  ;;  %v10851_v63 = vadd.f32 %v3820_v55, %v15106_v23  ;;  %v10854_v22 = vadd.f32 %v3933_v0, %v15107_v20  ;;  %v15115_v40 = vld [vmem:[#allocation41_spill] sm:$0xff]  ;;  %v15117_v55 = vld [vmem:[#allocation46_spill] sm:$0xff]  ;;  %v15119_v0 = vld [vmem:[#allocation59_spill] sm:$0xff] }
 0x3fe   : > { %v10848_v54 = vmax.f32 %v15111_v10, %v3932_v50  ;;  %v3822_v3 = vpop.f32.mrf.mxu0  ;;  %v3935_v2 = vpop.f32.mrf.mxu1  ;;  %v15118_v23 = vmax.f32 %v15116_v17, %v15117_v55  ;;  %v15120_v20 = vld [vmem:[#allocation79_spill] sm:$0xff] }
 0x3ff   : > { %15113 = vst [vmem:[#allocation18_spill] sm:$0xff] %v10854_v22  ;;  %v3823_v36 = vadd.f32 %v3822_v3, %v15114_v61  ;;  %v3936_v13 = vadd.f32 %v3935_v2, %v15115_v40  ;;  %v15121_v62 = vmax.f32 %v15119_v0, %v15120_v20  ;;  %v15125_v22 = vld [vmem:[#allocation77_spill] sm:$0xff]  ;;  %v15130_v0 = vld [vmem:[#allocation28_spill] sm:$0xff] }
 0x400   : > { %15112 = vst [vmem:[#allocation26_spill] sm:$0xff] %v10848_v54  ;;  %v3824_v10 = vpop.f32.mrf.mxu0  ;;  %v3937_v50 = vpop.f32.mrf.mxu1  ;;  %v10879_v54 = vld [vmem:[#allocation2 + $0x30] sm:$0xff]   ;;  %v15127_v20 = vld [vmem:[#allocation61_spill] sm:$0xff] }
 0x401   : > { %v10865_v4 = vmax.f32 %v15118_v23, %v3823_v36  ;;  %v10870_v60 = vmax.f32 %v15121_v62, %v3936_v13  ;;  %v10873_v34 = vadd.f32 %v3824_v10, %v15114_v61  ;;  %v10876_v31 = vadd.f32 %v3937_v50, %v15115_v40  ;;  %15126 = vst [vmem:[#allocation42_spill] sm:$0xff] %v10879_v54  ;;  %v15128_v13 = vld [vmem:[#allocation34_spill] sm:$0xff] }
 0x402   : > { %v3828_v3 = vpop.f32.mrf.mxu0  ;;  %v3941_v2 = vpop.f32.mrf.mxu1  ;;  %4406 = vmatmul.mubr.bf16.gmra.mxu1 %v15125_v22  ;;  %4519 = vmatmul.mubr.bf16.gmra.mxu0 %v10879_v54  ;;  %v15129_v22 = vmax.f32 %v10501_v14, %v10509_v37  ;;  %v15131_v23 = vld [vmem:[#allocation14_spill] sm:$0xff] }
 0x403   : > { %15122 = vst [vmem:[#allocation23_spill] sm:$0xff] %v10870_v60  ;;  %15123 = vst [vmem:[#allocation17_spill] sm:$0xff] %v10873_v34  ;;  %v3829_v36 = vadd.f32 %v3828_v3, %v15127_v20  ;;  %v3942_v10 = vadd.f32 %v3941_v2, %v15128_v13  ;;  %4415 = vmatprep.mubr.bf16.mxu1 %v14571_v39  ;;  %4528 = vmatprep.mubr.bf16.mxu0 %v14571_v39 }
 0x404   : > { %15124 = vst [vmem:[#allocation10_spill] sm:$0xff] %v10876_v31  ;;  %v3830_v50 = vpop.f32.mrf.mxu0  ;;  %v3943_v17 = vpop.f32.mrf.mxu1  ;;  %v15132_v54 = vmax.f32 %v15130_v0, %v15131_v23  ;;  %v15138_v0 = vld [vmem:[#allocation51_spill] sm:$0xff] }
 0x405   : > { %v10893_v55 = vmax.f32 %v15129_v22, %v3829_v36  ;;  %v10901_v3 = vadd.f32 %v3830_v50, %v15127_v20  ;;  %v10904_v2 = vadd.f32 %v3943_v17, %v15128_v13  ;;  %v15137_v17 = vld [vmem:[#allocation55_spill] sm:$0xff] }
 0x406   : > { %v10898_v34 = vmax.f32 %v15132_v54, %v3942_v10  ;;  %v3832_v62 = vpop.f32.mrf.mxu0  ;;  %v3945_v31 = vpop.f32.mrf.mxu1  ;;  %v15135_v10 = vld [vmem:[#allocation43_spill] sm:$0xff]  ;;  %v15139_v13 = vmax.f32 %v15137_v17, %v15138_v0  ;;  %v15148_v0 = vld [vmem:[#allocation44_spill] sm:$0xff] }
 0x407   : > { %15134 = vst [vmem:[#allocation58_spill] sm:$0xff] %v10904_v2  ;;  %v3833_v37 = vadd.f32 %v3832_v62, %v14999_v28  ;;  %v3946_v23 = vadd.f32 %v3945_v31, %v15000_v16  ;;  %v15136_v50 = vmax.f32 %v10523_v6, %v15135_v10  ;;  %v15143_v2 = vld [vmem:[#allocation90_spill] sm:$0xff]  ;;  %v15149_v6 = vld [vmem:[#allocation47_spill] sm:$0xff] }
 0x408   : > { %15133 = vst [vmem:[#allocation50_spill] sm:$0xff] %v10898_v34  ;;  %v3834_v54 = vpop.f32.mrf.mxu0  ;;  %v3947_v36 = vpop.f32.mrf.mxu1  ;;  %v10929_v34 = vld [vmem:[#allocation2 + $0x38] sm:$0xff]  }
 0x409   : > { %v10915_v22 = vmax.f32 %v15136_v50, %v3833_v37  ;;  %v10920_v20 = vmax.f32 %v15139_v13, %v3946_v23  ;;  %v10923_v60 = vadd.f32 %v3834_v54, %v14999_v28  ;;  %v10926_v14 = vadd.f32 %v3947_v36, %v15000_v16  ;;  %15144 = vst [vmem:[#allocation11_spill] sm:$0xff] %v10929_v34  ;;  %v15145_v37 = vld [vmem:[#allocation72_spill] sm:$0xff]  ;;  %v15146_v54 = vld [vmem:[#allocation37_spill] sm:$0xff] }
 0x40a   : > { %v3838_v62 = vpop.f32.mrf.mxu0  ;;  %v3951_v31 = vpop.f32.mrf.mxu1  ;;  %4416 = vmatmul.mubr.bf16.gmra.mxu1 %v15143_v2  ;;  %4529 = vmatmul.mubr.bf16.gmra.mxu0 %v10929_v34  ;;  %v15147_v2 = vmax.f32 %v10549_v41, %v10557_v32  ;;  %v15150_v34 = vmax.f32 %v15148_v0, %v15149_v6 }
 0x40b   : > { %15140 = vst [vmem:[#allocation49_spill] sm:$0xff] %v10920_v20  ;;  %15141 = vst [vmem:[#allocation64_spill] sm:$0xff] %v10923_v60  ;;  %v3839_v23 = vadd.f32 %v3838_v62, %v15145_v37  ;;  %v3952_v10 = vadd.f32 %v3951_v31, %v15146_v54  ;;  %4538 = vmatprep.mubr.bf16.mxu0 %v14571_v39  ;;  %4651 = vmatprep.mubr.bf16.mxu1 %v14571_v39 }
 0x40c   : > { %15142 = vst [vmem:[#allocation12_spill] sm:$0xff] %v10926_v14  ;;  %v3840_v36 = vpop.f32.mrf.mxu0  ;;  %v3953_v50 = vpop.f32.mrf.mxu1 }
 0x40d   : > { %v10943_v17 = vmax.f32 %v15147_v2, %v3839_v23  ;;  %v10948_v60 = vmax.f32 %v15150_v34, %v3952_v10  ;;  %v10951_v62 = vadd.f32 %v3840_v36, %v15145_v37  ;;  %v10954_v31 = vadd.f32 %v3953_v50, %v15146_v54  ;;  %v15153_v50 = vld [vmem:[#allocation75_spill] sm:$0xff] }
 0x40e   : > { %v3842_v13 = vpop.f32.mrf.mxu0  ;;  %v3955_v14 = vpop.f32.mrf.mxu1  ;;  %v15152_v10 = vmax.f32 %v10571_v7, %v10579_v53  ;;  %v15154_v2 = vmax.f32 %v10576_v58, %v15153_v50  ;;  %v15158_v7 = vld [vmem:[#allocation97_spill] sm:$0xff] }
 0x40f   : > { %15151 = vst [vmem:[#allocation15_spill] sm:$0xff] %v10954_v31  ;;  %v3843_v32 = vadd.f32 %v3842_v13, %v15019_v5  ;;  %v3956_v6 = vadd.f32 %v3955_v14, %v15020_v59  ;;  %v10978_v31 = vld [vmem:[#allocation2 + $0x40] sm:$0xff]  }
 0x410   : > { %v3844_v34 = vpop.f32.mrf.mxu0  ;;  %v3957_v23 = vpop.f32.mrf.mxu1  ;;  %15157 = vst [vmem:[#allocation46_spill] sm:$0xff] %v10978_v31 }
 0x411   : > { %v10965_v36 = vmax.f32 %v15152_v10, %v3843_v32  ;;  %v10970_v0 = vmax.f32 %v15154_v2, %v3956_v6  ;;  %v10973_v20 = vadd.f32 %v3844_v34, %v15019_v5  ;;  %v10976_v41 = vadd.f32 %v3957_v23, %v15020_v59  ;;  %v15160_v2 = vld [vmem:[#allocation87_spill] sm:$0xff] }
 0x412   : > { %v3961_v13 = vpop.f32.mrf.mxu1  ;;  %v4074_v14 = vpop.f32.mrf.mxu0  ;;  %4539 = vmatmul.mubr.bf16.gmra.mxu0 %v10978_v31  ;;  %4652 = vmatmul.mubr.bf16.vlgmr.msra.gmra.mxu1 %v15158_v7  ;;  %v15159_v10 = vmax.f32 %v10597_v46, %v10605_v29  ;;  %v15161_v7 = vld [vmem:[#allocation78_spill] sm:$0xff] }
 0x413   : > { %15155 = vst [vmem:[#allocation32_spill] sm:$0xff] %v10970_v0  ;;  %15156 = vst [vmem:[#allocation9_spill] sm:$0xff] %v10976_v41  ;;  %v3962_v32 = vadd.f32 %v3961_v13, %v9803_v35  ;;  %v4075_v6 = vadd.f32 %v4074_v14, %v14882_v51  ;;  %4548 = vmatprep.mubr.bf16.mxu0 %v14571_v39  ;;  %4661 = vmatprep.mubr.bf16.mxu1 %v14571_v39 }
 0x414   : > { %v3963_v34 = vpop.f32.mrf.mxu1  ;;  %v4076_v23 = vpop.f32.mrf.mxu0  ;;  %v15162_v53 = vmax.f32 %v15160_v2, %v15161_v7 }
 0x415   : > { %v10993_v50 = vmax.f32 %v15159_v10, %v3962_v32  ;;  %v11001_v13 = vadd.f32 %v3963_v34, %v9803_v35  ;;  %v11004_v14 = vadd.f32 %v4076_v23, %v14882_v51  ;;  %v15164_v34 = vmax.f32 %v10619_v21, %v10627_v12  ;;  %v15165_v23 = vld [vmem:[#allocation81_spill] sm:$0xff]  ;;  %v15168_v12 = vld [vmem:[#allocation56_spill] sm:$0xff] }
 0x416   : > { %v10998_v31 = vmax.f32 %v15162_v53, %v4075_v6  ;;  %v3965_v58 = vpop.f32.mrf.mxu1  ;;  %v4078_v41 = vpop.f32.mrf.mxu0  ;;  %v15166_v2 = vmax.f32 %v10624_v27, %v15165_v23 }
 0x417   : > { %15163 = vst [vmem:[#allocation59_spill] sm:$0xff] %v11004_v14  ;;  %v3966_v29 = vadd.f32 %v3965_v58, %v9829_v33  ;;  %v4079_v32 = vadd.f32 %v4078_v41, %v9569_v18  ;;  %v11028_v14 = vld [vmem:[#allocation2 + $0x48] sm:$0xff]  }
 0x418   : > { %v3967_v53 = vpop.f32.mrf.mxu1  ;;  %v4080_v6 = vpop.f32.mrf.mxu0  ;;  %15167 = vst [vmem:[#allocation79_spill] sm:$0xff] %v11028_v14 }
 0x419   : > { %v11015_v10 = vmax.f32 %v15164_v34, %v3966_v29  ;;  %v11020_v7 = vmax.f32 %v15166_v2, %v4079_v32  ;;  %v11023_v0 = vadd.f32 %v3967_v53, %v9829_v33  ;;  %v11026_v46 = vadd.f32 %v4080_v6, %v9569_v18 }
 0x41a   : > { %v3971_v58 = vpop.f32.mrf.mxu1  ;;  %v4084_v41 = vpop.f32.mrf.mxu0  ;;  %4549 = vmatmul.mubr.bf16.gmra.mxu0 %v11028_v14  ;;  %4662 = vmatmul.mubr.bf16.gmra.mxu1 %v15168_v12  ;;  %v15169_v34 = vmax.f32 %v10645_v43, %v10653_v44  ;;  %v15170_v2 = vmax.f32 %v10650_v25, %v10656_v42  ;;  %v11078_v14 = vld [vmem:[#allocation2 + $0x50] sm:$0xff]  }
 0x41b   : > { %v3972_v29 = vadd.f32 %v3971_v58, %v14898_v47  ;;  %v4085_v32 = vadd.f32 %v4084_v41, %v14899_v49  ;;  %4558 = vmatprep.mubr.bf16.mxu0 %v14571_v39  ;;  %4671 = vmatprep.mubr.bf16.mxu1 %v14571_v39  ;;  %15176 = vst [vmem:[#allocation43_spill] sm:$0xff] %v11078_v14 }
 0x41c   : > { %v3973_v53 = vpop.f32.mrf.mxu1  ;;  %v4086_v6 = vpop.f32.mrf.mxu0 }
 0x41d   : > { %v11043_v23 = vmax.f32 %v15169_v34, %v3972_v29  ;;  %v11048_v12 = vmax.f32 %v15170_v2, %v4085_v32  ;;  %v11051_v58 = vadd.f32 %v3973_v53, %v14898_v47  ;;  %v11054_v41 = vadd.f32 %v4086_v6, %v14899_v49 }
 0x41e   : > { %v3975_v27 = vpop.f32.mrf.mxu1  ;;  %v4088_v21 = vpop.f32.mrf.mxu0  ;;  %v15171_v32 = vmax.f32 %v10667_v45, %v10675_v56  ;;  %v15172_v6 = vmax.f32 %v10672_v26, %v10678_v9 }
 0x41f   : > { %v3976_v44 = vadd.f32 %v3975_v27, %v9789_v8  ;;  %v4089_v25 = vadd.f32 %v4088_v21, %v9546_v38 }
 0x420   : > { %v3977_v42 = vpop.f32.mrf.mxu1  ;;  %v4090_v29 = vpop.f32.mrf.mxu0 }
 0x421   : > { %v11065_v53 = vmax.f32 %v15171_v32, %v3976_v44  ;;  %v11070_v34 = vmax.f32 %v15172_v6, %v4089_v25  ;;  %v11073_v2 = vadd.f32 %v3977_v42, %v9789_v8  ;;  %v11076_v43 = vadd.f32 %v4090_v29, %v9546_v38  ;;  %v15179_v29 = vld [vmem:[#allocation82_spill] sm:$0xff] }
 0x422   : > { %v3981_v27 = vpop.f32.mrf.mxu1  ;;  %v4094_v21 = vpop.f32.mrf.mxu0  ;;  %4559 = vmatmul.mubr.bf16.gmra.mxu0 %v11078_v14  ;;  %4672 = vmatmul.mubr.bf16.gmra.mxu1 %v10284_v57  ;;  %v15177_v42 = vmax.f32 %v10693_v19, %v10701_v30  ;;  %v15180_v32 = vmax.f32 %v10698_v11, %v15179_v29  ;;  %v15184_v30 = vld [vmem:[#allocation94_spill] sm:$0xff] }
 0x423   : > { %15173 = vst [vmem:[#allocation77_spill] sm:$0xff] %v11070_v34  ;;  %15174 = vst [vmem:[#allocation28_spill] sm:$0xff] %v11073_v2  ;;  %v3982_v26 = vadd.f32 %v3981_v27, %v9751_v1  ;;  %v4095_v56 = vadd.f32 %v4094_v21, %v9507_v15  ;;  %4568 = vmatprep.mubr.bf16.mxu0 %v14571_v39  ;;  %4681 = vmatprep.mubr.bf16.mxu1 %v14571_v39 }
 0x424   : > { %15175 = vst [vmem:[#allocation14_spill] sm:$0xff] %v11076_v43  ;;  %v3983_v44 = vpop.f32.mrf.mxu1  ;;  %v4096_v25 = vpop.f32.mrf.mxu0 }
 0x425   : > { %v11093_v57 = vmax.f32 %v15177_v42, %v3982_v26  ;;  %v11098_v6 = vmax.f32 %v15180_v32, %v4095_v56  ;;  %v11101_v27 = vadd.f32 %v3983_v44, %v9751_v1  ;;  %v11104_v21 = vadd.f32 %v4096_v25, %v9507_v15  ;;  %v15185_v42 = vld [vmem:[#allocation33_spill] sm:$0xff]  ;;  %v15186_v32 = vld [vmem:[#allocation86_spill] sm:$0xff] }
 0x426   : > { %v3985_v9 = vpop.f32.mrf.mxu1  ;;  %v4098_v45 = vpop.f32.mrf.mxu0  ;;  %v15187_v44 = vld [vmem:[#allocation89_spill] sm:$0xff]  ;;  %v15191_v15 = vld [vmem:[#allocation66_spill] sm:$0xff] }
 0x427   : > { %15178 = vst [vmem:[#allocation55_spill] sm:$0xff] %v11093_v57  ;;  %15181 = vst [vmem:[#allocation51_spill] sm:$0xff] %v11098_v6  ;;  %v3986_v26 = vadd.f32 %v3985_v9, %v15184_v30  ;;  %v4099_v11 = vadd.f32 %v4098_v45, %v15185_v42  ;;  %v15188_v1 = vmax.f32 %v15186_v32, %v15187_v44  ;;  %v15190_v25 = vld [vmem:[#allocation85_spill] sm:$0xff]  ;;  %v15197_v6 = vld [vmem:[#allocation31_spill] sm:$0xff] }
 0x428   : > { %15182 = vst [vmem:[#allocation90_spill] sm:$0xff] %v11101_v27  ;;  %15183 = vst [vmem:[#allocation44_spill] sm:$0xff] %v11104_v21  ;;  %v3987_v56 = vpop.f32.mrf.mxu1  ;;  %v4100_v29 = vpop.f32.mrf.mxu0  ;;  %v15192_v34 = vmax.f32 %v15190_v25, %v15191_v15  ;;  %v15196_v21 = vld [vmem:[#allocation92_spill] sm:$0xff]  ;;  %v15200_v44 = vld [vmem:[#allocation93_spill] sm:$0xff] }
 0x429   : > { %v11115_v43 = vmax.f32 %v15188_v1, %v3986_v26  ;;  %v11123_v14 = vadd.f32 %v3987_v56, %v15184_v30  ;;  %v11126_v19 = vadd.f32 %v4100_v29, %v15185_v42  ;;  %v15201_v25 = vld [vmem:[#allocation96_spill] sm:$0xff]  ;;  %v15204_v1 = vld [vmem:[#allocation57_spill] sm:$0xff] }
 0x42a   : > { %v11120_v2 = vmax.f32 %v15192_v34, %v4099_v11  ;;  %v3991_v9 = vpop.f32.mrf.mxu1  ;;  %v4104_v45 = vpop.f32.mrf.mxu0  ;;  %4569 = vmatmul.mubr.bf16.gmra.mxu0 %v15196_v21  ;;  %4682 = vmatmul.mubr.bf16.gmra.mxu1 %v15197_v6  ;;  %v15198_v34 = vld [vmem:[#allocation84_spill] sm:$0xff]  ;;  %v15199_v11 = vld [vmem:[#allocation45_spill] sm:$0xff]  ;;  %v15202_v21 = vmax.f32 %v15200_v44, %v15201_v25  ;;  %v15209_v25 = vld [vmem:[#allocation38_spill] sm:$0xff] }
 0x42b   : > { %15189 = vst [vmem:[#allocation47_spill] sm:$0xff] %v11115_v43  ;;  %15194 = vst [vmem:[#allocation97_spill] sm:$0xff] %v11123_v14  ;;  %v3992_v26 = vadd.f32 %v3991_v9, %v15198_v34  ;;  %v4105_v56 = vadd.f32 %v4104_v45, %v15199_v11  ;;  %4578 = vmatprep.mubr.bf16.mxu0 %v14571_v39  ;;  %4691 = vmatprep.mubr.bf16.mxu1 %v14571_v39  ;;  %v15203_v42 = vld [vmem:[#allocation60_spill] sm:$0xff] }
 0x42c   : > { %15193 = vst [vmem:[#allocation75_spill] sm:$0xff] %v11120_v2  ;;  %15195 = vst [vmem:[#allocation87_spill] sm:$0xff] %v11126_v19  ;;  %v3993_v29 = vpop.f32.mrf.mxu1  ;;  %v4106_v32 = vpop.f32.mrf.mxu0  ;;  %v15205_v14 = vmax.f32 %v15203_v42, %v15204_v1 }
 0x42d   : > { %v11141_v6 = vmax.f32 %v15202_v21, %v3992_v26  ;;  %v11149_v9 = vadd.f32 %v3993_v29, %v15198_v34  ;;  %v11152_v45 = vadd.f32 %v4106_v32, %v15199_v11  ;;  %v15208_v26 = vld [vmem:[#allocation88_spill] sm:$0xff]  ;;  %v15211_v29 = vld [vmem:[#allocation39_spill] sm:$0xff] }
 0x42e   : > { %v11146_v43 = vmax.f32 %v15205_v14, %v4105_v56  ;;  %v3995_v15 = vpop.f32.mrf.mxu1  ;;  %v4108_v19 = vpop.f32.mrf.mxu0  ;;  %v15210_v56 = vld [vmem:[#allocation63_spill] sm:$0xff] }
 0x42f   : > { %15207 = vst [vmem:[#allocation81_spill] sm:$0xff] %v11152_v45  ;;  %v3996_v44 = vadd.f32 %v3995_v15, %v15208_v26  ;;  %v4109_v42 = vadd.f32 %v4108_v19, %v15209_v25  ;;  %v15212_v34 = vmax.f32 %v15210_v56, %v15211_v29  ;;  %v15214_v32 = vld [vmem:[#allocation71_spill] sm:$0xff]  ;;  %v15220_v45 = vld [vmem:[#allocation70_spill] sm:$0xff] }
 0x430   : > { %15206 = vst [vmem:[#allocation78_spill] sm:$0xff] %v11146_v43  ;;  %v3997_v14 = vpop.f32.mrf.mxu1  ;;  %v4110_v1 = vpop.f32.mrf.mxu0  ;;  %v15215_v11 = vld [vmem:[#allocation67_spill] sm:$0xff]  ;;  %v15221_v43 = vld [vmem:[#allocation40_spill] sm:$0xff] }
 0x431   : > { %v11163_v30 = vmax.f32 %v15212_v34, %v3996_v44  ;;  %v15216_v27 = vmax.f32 %v15214_v32, %v15215_v11  ;;  %v11171_v2 = vadd.f32 %v3997_v14, %v15208_v26  ;;  %v11174_v21 = vadd.f32 %v4110_v1, %v15209_v25  ;;  %v15225_v32 = vld [vmem:[#allocation69_spill] sm:$0xff]  ;;  %v15226_v34 = vld [vmem:[#allocation68_spill] sm:$0xff] }
 0x432   : > { %v4001_v15 = vpop.f32.mrf.mxu1  ;;  %v4114_v19 = vpop.f32.mrf.mxu0  ;;  %4579 = vmatmul.mubr.bf16.gmra.mxu0 %v15220_v45  ;;  %4692 = vmatmul.mubr.bf16.gmra.mxu1 %v15221_v43  ;;  %v15224_v43 = vmax.f32 %v10793_v24, %v10801_v52  ;;  %v15227_v45 = vmax.f32 %v15225_v32, %v15226_v34  ;;  %v15231_v25 = vld [vmem:[#allocation20_spill] sm:$0xff] }
 0x433   : > { %15213 = vst [vmem:[#allocation56_spill] sm:$0xff] %v11163_v30  ;;  %v11168_v57 = vmax.f32 %v15216_v27, %v4109_v42  ;;  %15218 = vst [vmem:[#allocation86_spill] sm:$0xff] %v11171_v2  ;;  %v15222_v27 = vld [vmem:[#allocation80_spill] sm:$0xff]  ;;  %v15223_v42 = vld [vmem:[#allocation21_spill] sm:$0xff]  ;;  %4588 = vmatprep.mubr.bf16.mxu0 %v14571_v39  ;;  %4701 = vmatprep.mubr.bf16.mxu1 %v14571_v39 }
 0x434   : > { %15219 = vst [vmem:[#allocation89_spill] sm:$0xff] %v11174_v21  ;;  %v4002_v44 = vadd.f32 %v4001_v15, %v15222_v27  ;;  %v4115_v14 = vadd.f32 %v4114_v19, %v15223_v42  ;;  %v4003_v1 = vpop.f32.mrf.mxu1  ;;  %v11185_v56 = vpop.f32.mrf.mxu0  ;;  %v15230_v2 = vld [vmem:[#allocation83_spill] sm:$0xff] }
 0x435   : > { %15217 = vst [vmem:[#allocation82_spill] sm:$0xff] %v11168_v57  ;;  %v11199_v15 = vadd.f32 %v4003_v1, %v15222_v27  ;;  %v15237_v1 = vld [vmem:[#allocation53_spill] sm:$0xff] }
 0x436   : > { %v11191_v29 = vmax.f32 %v15224_v43, %v4002_v44  ;;  %v11196_v11 = vmax.f32 %v15227_v45, %v4115_v14  ;;  %v4005_v19 = vpop.f32.mrf.mxu1  ;;  %v4118_v21 = vpop.f32.mrf.mxu0  ;;  %v15232_v44 = vld [vmem:[#allocation13_spill] sm:$0xff]  ;;  %v15233_v43 = vld [vmem:[#allocation52_spill] sm:$0xff]  ;;  %v15236_v14 = vld [vmem:[#allocation19_spill] sm:$0xff] }
 0x437   : > { %15229 = vst [vmem:[#allocation66_spill] sm:$0xff] %v11199_v15  ;;  %v4006_v30 = vadd.f32 %v4005_v19, %v15230_v2  ;;  %v4119_v26 = vadd.f32 %v4118_v21, %v15231_v25  ;;  %v15234_v34 = vmax.f32 %v15232_v44, %v15233_v43  ;;  %v15238_v32 = vmax.f32 %v15236_v14, %v15237_v1  ;;  %v11220_v15 = vld [vmem:[#allocation2 + $0x68] sm:$0xff]   ;;  %v15241_v21 = vld [vmem:[#allocation48_spill] sm:$0xff] }
 0x438   : > { %15228 = vst [vmem:[#allocation85_spill] sm:$0xff] %v11196_v11  ;;  %v4007_v24 = vpop.f32.mrf.mxu1  ;;  %v11205_v52 = vpop.f32.mrf.mxu0  ;;  %15240 = vst [vmem:[#allocation96_spill] sm:$0xff] %v11220_v15  ;;  %v15242_v44 = vld [vmem:[#allocation74_spill] sm:$0xff]  ;;  %v15245_v1 = vmax.f32 %v10843_v48, %v10851_v63 }
 0x439   : > { %v11210_v45 = vmax.f32 %v15234_v34, %v4006_v30  ;;  %v11215_v27 = vmax.f32 %v15238_v32, %v4119_v26  ;;  %v11218_v11 = vadd.f32 %v4007_v24, %v15230_v2  ;;  %v15243_v34 = vld [vmem:[#allocation16_spill] sm:$0xff] }
 0x43a   : > { %v4011_v57 = vpop.f32.mrf.mxu1  ;;  %v4124_v19 = vpop.f32.mrf.mxu0  ;;  %4589 = vmatmul.mubr.bf16.gmra.mxu0 %v11220_v15  ;;  %4702 = vmatmul.mubr.bf16.gmra.mxu1 %v15241_v21  ;;  %v15246_v21 = vld [vmem:[#allocation26_spill] sm:$0xff] }
 0x43b   : > { %15235 = vst [vmem:[#allocation31_spill] sm:$0xff] %v11210_v45  ;;  %15239 = vst [vmem:[#allocation93_spill] sm:$0xff] %v11218_v11  ;;  %v4012_v43 = vadd.f32 %v4011_v57, %v15242_v44  ;;  %v4125_v14 = vadd.f32 %v4124_v19, %v15243_v34  ;;  %4598 = vmatprep.mubr.bf16.mxu0 %v14571_v39  ;;  %4711 = vmatprep.mubr.bf16.mxu1 %v14571_v39  ;;  %v15247_v15 = vld [vmem:[#allocation18_spill] sm:$0xff] }
 0x43c   : > { %v4013_v26 = vpop.f32.mrf.mxu1  ;;  %v11229_v24 = vpop.f32.mrf.mxu0  ;;  %v15248_v2 = vmax.f32 %v15246_v21, %v15247_v15 }
 0x43d   : > { %15244 = vst [vmem:[#allocation60_spill] sm:$0xff] %v11229_v24  ;;  %v11235_v32 = vmax.f32 %v15245_v1, %v4012_v43  ;;  %v11243_v57 = vadd.f32 %v4013_v26, %v15242_v44  ;;  %v15250_v43 = vld [vmem:[#allocation17_spill] sm:$0xff]  ;;  %v15254_v26 = vld [vmem:[#allocation10_spill] sm:$0xff] }
 0x43e   : > { %v11240_v30 = vmax.f32 %v15248_v2, %v4125_v14  ;;  %v4015_v19 = vpop.f32.mrf.mxu1  ;;  %v4128_v11 = vpop.f32.mrf.mxu0  ;;  %v15251_v15 = vmax.f32 %v10865_v4, %v15250_v43  ;;  %v15253_v14 = vld [vmem:[#allocation23_spill] sm:$0xff] }
 0x43f   : > { %15249 = vst [vmem:[#allocation57_spill] sm:$0xff] %v11243_v57  ;;  %v4016_v24 = vadd.f32 %v4015_v19, %v15114_v61  ;;  %v4129_v34 = vadd.f32 %v4128_v11, %v15115_v40  ;;  %v15255_v1 = vmax.f32 %v15253_v14, %v15254_v26  ;;  %v11264_v57 = vld [vmem:[#allocation2 + $0x70] sm:$0xff]   ;;  %v15258_v11 = vld [vmem:[#allocation42_spill] sm:$0xff]  ;;  %v15262_v26 = vmax.f32 %v10893_v55, %v10901_v3 }
 0x440   : > { %v4017_v48 = vpop.f32.mrf.mxu1  ;;  %v11249_v63 = vpop.f32.mrf.mxu0  ;;  %15257 = vst [vmem:[#allocation71_spill] sm:$0xff] %v11264_v57 }
 0x441   : > { %v11254_v2 = vmax.f32 %v15251_v15, %v4016_v24  ;;  %v11259_v21 = vmax.f32 %v15255_v1, %v4129_v34  ;;  %v11262_v44 = vadd.f32 %v4017_v48, %v15114_v61  ;;  %v15259_v24 = vld [vmem:[#allocation61_spill] sm:$0xff]  ;;  %v15260_v15 = vld [vmem:[#allocation34_spill] sm:$0xff] }
 0x442   : > { %v4021_v45 = vpop.f32.mrf.mxu1  ;;  %v4134_v19 = vpop.f32.mrf.mxu0  ;;  %4599 = vmatmul.mubr.bf16.gmra.mxu0 %v11264_v57  ;;  %4712 = vmatmul.mubr.bf16.gmra.mxu1 %v15258_v11  ;;  %v15263_v11 = vld [vmem:[#allocation50_spill] sm:$0xff] }
 0x443   : > { %15252 = vst [vmem:[#allocation63_spill] sm:$0xff] %v11254_v2  ;;  %15256 = vst [vmem:[#allocation39_spill] sm:$0xff] %v11262_v44  ;;  %v4022_v43 = vadd.f32 %v4021_v45, %v15259_v24  ;;  %v4135_v14 = vadd.f32 %v4134_v19, %v15260_v15  ;;  %4608 = vmatprep.mubr.bf16.mxu0 %v14571_v39  ;;  %4721 = vmatprep.mubr.bf16.mxu1 %v14571_v39  ;;  %v15264_v57 = vld [vmem:[#allocation58_spill] sm:$0xff] }
 0x444   : > { %v4023_v34 = vpop.f32.mrf.mxu1  ;;  %v11273_v48 = vpop.f32.mrf.mxu0  ;;  %v15265_v61 = vmax.f32 %v15263_v11, %v15264_v57 }
 0x445   : > { %15261 = vst [vmem:[#allocation67_spill] sm:$0xff] %v11273_v48  ;;  %v11279_v1 = vmax.f32 %v15262_v26, %v4022_v43  ;;  %v11287_v45 = vadd.f32 %v4023_v34, %v15259_v24  ;;  %v15267_v43 = vld [vmem:[#allocation64_spill] sm:$0xff] }
 0x446   : > { %v11284_v4 = vmax.f32 %v15265_v61, %v4135_v14  ;;  %v4025_v19 = vpop.f32.mrf.mxu1  ;;  %v4138_v44 = vpop.f32.mrf.mxu0  ;;  %v15268_v57 = vmax.f32 %v10915_v22, %v15267_v43  ;;  %v15270_v14 = vld [vmem:[#allocation49_spill] sm:$0xff]  ;;  %v15271_v34 = vld [vmem:[#allocation12_spill] sm:$0xff] }
 0x447   : > { %15266 = vst [vmem:[#allocation40_spill] sm:$0xff] %v11287_v45  ;;  %v4026_v48 = vadd.f32 %v4025_v19, %v14999_v28  ;;  %v4139_v15 = vadd.f32 %v4138_v44, %v15000_v16  ;;  %v15272_v26 = vmax.f32 %v15270_v14, %v15271_v34  ;;  %v11308_v45 = vld [vmem:[#allocation2 + $0x78] sm:$0xff]   ;;  %v15275_v44 = vld [vmem:[#allocation11_spill] sm:$0xff] }
 0x448   : > { %v4027_v55 = vpop.f32.mrf.mxu1  ;;  %v11293_v3 = vpop.f32.mrf.mxu0  ;;  %15274 = vst [vmem:[#allocation13_spill] sm:$0xff] %v11308_v45  ;;  %v15278_v34 = vld [vmem:[#allocation15_spill] sm:$0xff] }
 0x449   : > { %v11298_v61 = vmax.f32 %v15268_v57, %v4026_v48  ;;  %v11303_v11 = vmax.f32 %v15272_v26, %v4139_v15  ;;  %v11306_v24 = vadd.f32 %v4027_v55, %v14999_v28  ;;  %v15276_v57 = vmax.f32 %v10943_v17, %v10951_v62 }
 0x44a   : > { %v4031_v2 = vpop.f32.mrf.mxu1  ;;  %v4144_v19 = vpop.f32.mrf.mxu0  ;;  %4609 = vmatmul.mubr.bf16.gmra.mxu0 %v11308_v45  ;;  %4722 = vmatmul.mubr.bf16.gmra.mxu1 %v15275_v44  ;;  %v15279_v26 = vmax.f32 %v10948_v60, %v15278_v34  ;;  %v15281_v60 = vmax.f32 %v10965_v36, %v10973_v20 }
 0x44b   : > { %15269 = vst [vmem:[#allocation69_spill] sm:$0xff] %v11298_v61  ;;  %15273 = vst [vmem:[#allocation68_spill] sm:$0xff] %v11306_v24  ;;  %v4032_v48 = vadd.f32 %v4031_v2, %v15145_v37  ;;  %v4145_v43 = vadd.f32 %v4144_v19, %v15146_v54  ;;  %4731 = vmatprep.mubr.bf16.mxu1 %v14571_v39 }
 0x44c   : > { %v4033_v15 = vpop.f32.mrf.mxu1  ;;  %v11317_v55 = vpop.f32.mrf.mxu0 }
 0x44d   : > { %v11322_v14 = vmax.f32 %v15276_v57, %v4032_v48  ;;  %v11327_v44 = vmax.f32 %v15279_v26, %v4145_v43  ;;  %v11330_v22 = vadd.f32 %v4033_v15, %v15145_v37  ;;  %v15282_v43 = vld [vmem:[#allocation32_spill] sm:$0xff]  ;;  %v15283_v15 = vld [vmem:[#allocation9_spill] sm:$0xff] }
 0x44e   : > { %v4035_v2 = vpop.f32.mrf.mxu1  ;;  %v4148_v19 = vpop.f32.mrf.mxu0  ;;  %v15284_v57 = vmax.f32 %v15282_v43, %v15283_v15 }
 0x44f   : > { %15277 = vst [vmem:[#allocation52_spill] sm:$0xff] %v11322_v14  ;;  %15280 = vst [vmem:[#allocation19_spill] sm:$0xff] %v11330_v22  ;;  %v4036_v24 = vadd.f32 %v4035_v2, %v15019_v5  ;;  %v4149_v61 = vadd.f32 %v4148_v19, %v15020_v59  ;;  %v15286_v22 = vld [vmem:[#allocation46_spill] sm:$0xff] }
 0x450   : > { %v4037_v17 = vpop.f32.mrf.mxu1  ;;  %v11336_v62 = vpop.f32.mrf.mxu0 }
 0x451   : > { %v11341_v48 = vmax.f32 %v15281_v60, %v4036_v24  ;;  %v11346_v34 = vmax.f32 %v15284_v57, %v4149_v61  ;;  %v11349_v26 = vadd.f32 %v4037_v17, %v15019_v5  ;;  %v15287_v61 = vmax.f32 %v10993_v50, %v11001_v13  ;;  %v15288_v60 = vld [vmem:[#allocation59_spill] sm:$0xff] }
 0x452   : > { %v4154_v45 = vpop.f32.mrf.mxu0  ;;  %v4267_v2 = vpop.f32.mrf.mxu1  ;;  %4732 = vmatmul.mubr.bf16.gmra.mxu1 %v15286_v22  ;;  %v15289_v22 = vmax.f32 %v10998_v31, %v15288_v60  ;;  %v15290_v31 = vmax.f32 %v11015_v10, %v11023_v0 }
 0x453   : > { %15285 = vst [vmem:[#allocation53_spill] sm:$0xff] %v11349_v26  ;;  %v4155_v14 = vadd.f32 %v4154_v45, %v9803_v35  ;;  %v4268_v20 = vadd.f32 %v4267_v2, %v14882_v51  ;;  %4741 = vmatprep.mubr.bf16.mxu1 %v14571_v39 }
 0x454   : > { %v11357_v36 = vpop.f32.mrf.mxu0  ;;  %v4269_v24 = vpop.f32.mrf.mxu1 }
 0x455   : > { %v11362_v17 = vmax.f32 %v15287_v61, %v4155_v14  ;;  %v11367_v43 = vmax.f32 %v15289_v22, %v4268_v20  ;;  %v11370_v15 = vadd.f32 %v4269_v24, %v14882_v51  ;;  %v15291_v20 = vmax.f32 %v11020_v7, %v11026_v46 }
 0x456   : > { %v4158_v45 = vpop.f32.mrf.mxu0  ;;  %v4271_v57 = vpop.f32.mrf.mxu1  ;;  %v15293_v7 = vmax.f32 %v11043_v23, %v11051_v58 }
 0x457   : > { %v4159_v19 = vadd.f32 %v4158_v45, %v9829_v33  ;;  %v4272_v26 = vadd.f32 %v4271_v57, %v9569_v18  ;;  %v15292_v45 = vld [vmem:[#allocation79_spill] sm:$0xff] }
 0x458   : > { %v11376_v50 = vpop.f32.mrf.mxu0  ;;  %v4273_v13 = vpop.f32.mrf.mxu1 }
 0x459   : > { %v11381_v14 = vmax.f32 %v15290_v31, %v4159_v19  ;;  %v11386_v24 = vmax.f32 %v15291_v20, %v4272_v26  ;;  %v11389_v61 = vadd.f32 %v4273_v13, %v9569_v18  ;;  %v15294_v19 = vmax.f32 %v11048_v12, %v11054_v41 }
 0x45a   : > { %v4164_v60 = vpop.f32.mrf.mxu0  ;;  %v4277_v22 = vpop.f32.mrf.mxu1  ;;  %4742 = vmatmul.mubr.bf16.gmra.mxu1 %v15292_v45 }
 0x45b   : > { %v4165_v2 = vadd.f32 %v4164_v60, %v14898_v47  ;;  %v4278_v0 = vadd.f32 %v4277_v22, %v14899_v49  ;;  %4751 = vmatprep.mubr.bf16.mxu1 %v14571_v39 }
 0x45c   : > { %v11397_v10 = vpop.f32.mrf.mxu0  ;;  %v4279_v46 = vpop.f32.mrf.mxu1 }
 0x45d   : > { %v11402_v26 = vmax.f32 %v15293_v7, %v4165_v2  ;;  %v11407_v13 = vmax.f32 %v15294_v19, %v4278_v0  ;;  %v11410_v31 = vadd.f32 %v4279_v46, %v14899_v49  ;;  %v15298_v2 = vld [vmem:[#allocation28_spill] sm:$0xff]  ;;  %v15301_v0 = vld [vmem:[#allocation77_spill] sm:$0xff]  ;;  %v15302_v46 = vld [vmem:[#allocation14_spill] sm:$0xff] }
 0x45e   : > { %v4168_v20 = vpop.f32.mrf.mxu0  ;;  %v4281_v60 = vpop.f32.mrf.mxu1  ;;  %v15299_v12 = vmax.f32 %v11065_v53, %v15298_v2  ;;  %v15303_v7 = vmax.f32 %v15301_v0, %v15302_v46  ;;  %v15308_v53 = vld [vmem:[#allocation27_spill] sm:$0xff]  ;;  %v15311_v0 = vld [vmem:[#allocation90_spill] sm:$0xff] }
 0x45f   : > { %15295 = vst [vmem:[#allocation48_spill] sm:$0xff] %v11407_v13  ;;  %15296 = vst [vmem:[#allocation26_spill] sm:$0xff] %v11410_v31  ;;  %v4169_v45 = vadd.f32 %v4168_v20, %v9789_v8  ;;  %v4282_v57 = vadd.f32 %v4281_v60, %v9546_v38  ;;  %v15306_v31 = vld [vmem:[#allocation43_spill] sm:$0xff] }
 0x460   : > { %v11416_v23 = vpop.f32.mrf.mxu0  ;;  %v4283_v58 = vpop.f32.mrf.mxu1  ;;  %v15307_v13 = vld [vmem:[#allocation91_spill] sm:$0xff] }
 0x461   : > { %15297 = vst [vmem:[#allocation18_spill] sm:$0xff] %v11416_v23  ;;  %v11421_v41 = vmax.f32 %v15299_v12, %v4169_v45  ;;  %v11426_v19 = vmax.f32 %v15303_v7, %v4282_v57  ;;  %v11429_v49 = vadd.f32 %v4283_v58, %v9546_v38  ;;  %v15310_v12 = vld [vmem:[#allocation55_spill] sm:$0xff]  ;;  %v15315_v38 = vld [vmem:[#allocation44_spill] sm:$0xff] }
 0x462   : > { %v4174_v22 = vpop.f32.mrf.mxu0  ;;  %v4287_v20 = vpop.f32.mrf.mxu1  ;;  %4752 = vmatmul.mubr.bf16.gmra.mxu1 %v15306_v31  ;;  %v15312_v58 = vmax.f32 %v15310_v12, %v15311_v0  ;;  %v15314_v7 = vld [vmem:[#allocation51_spill] sm:$0xff] }
 0x463   : > { %15300 = vst [vmem:[#allocation17_spill] sm:$0xff] %v11421_v41  ;;  %15304 = vst [vmem:[#allocation23_spill] sm:$0xff] %v11426_v19  ;;  %v4175_v23 = vadd.f32 %v4174_v22, %v15307_v13  ;;  %v4288_v45 = vadd.f32 %v4287_v20, %v15308_v53  ;;  %4761 = vmatprep.mubr.bf16.mxu1 %v14571_v39  ;;  %v15316_v31 = vmax.f32 %v15314_v7, %v15315_v38  ;;  %v15319_v19 = vld [vmem:[#allocation94_spill] sm:$0xff]  ;;  %v15320_v13 = vld [vmem:[#allocation33_spill] sm:$0xff] }
 0x464   : > { %15305 = vst [vmem:[#allocation10_spill] sm:$0xff] %v11429_v49  ;;  %v11437_v2 = vpop.f32.mrf.mxu0  ;;  %v4289_v57 = vpop.f32.mrf.mxu1  ;;  %v15322_v0 = vld [vmem:[#allocation47_spill] sm:$0xff] }
 0x465   : > { %15309 = vst [vmem:[#allocation42_spill] sm:$0xff] %v11437_v2  ;;  %v11442_v46 = vmax.f32 %v15312_v58, %v4175_v23  ;;  %v11447_v41 = vmax.f32 %v15316_v31, %v4288_v45  ;;  %v11450_v60 = vadd.f32 %v4289_v57, %v15308_v53  ;;  %v15323_v58 = vld [vmem:[#allocation97_spill] sm:$0xff]  ;;  %v15325_v7 = vld [vmem:[#allocation75_spill] sm:$0xff] }
 0x466   : > { %v4178_v22 = vpop.f32.mrf.mxu0  ;;  %v4291_v20 = vpop.f32.mrf.mxu1  ;;  %v15324_v38 = vmax.f32 %v15322_v0, %v15323_v58  ;;  %v15326_v57 = vld [vmem:[#allocation87_spill] sm:$0xff]  ;;  %v15332_v0 = vld [vmem:[#allocation45_spill] sm:$0xff] }
 0x467   : > { %15313 = vst [vmem:[#allocation50_spill] sm:$0xff] %v11442_v46  ;;  %15317 = vst [vmem:[#allocation58_spill] sm:$0xff] %v11447_v41  ;;  %v4179_v2 = vadd.f32 %v4178_v22, %v15319_v19  ;;  %v4292_v8 = vadd.f32 %v4291_v20, %v15320_v13  ;;  %v15327_v31 = vmax.f32 %v15325_v7, %v15326_v57  ;;  %v15331_v41 = vld [vmem:[#allocation84_spill] sm:$0xff]  ;;  %v15336_v7 = vld [vmem:[#allocation78_spill] sm:$0xff] }
 0x468   : > { %15318 = vst [vmem:[#allocation64_spill] sm:$0xff] %v11450_v60  ;;  %v11456_v12 = vpop.f32.mrf.mxu0  ;;  %v4293_v23 = vpop.f32.mrf.mxu1  ;;  %v15330_v60 = vld [vmem:[#allocation92_spill] sm:$0xff]  ;;  %v15337_v57 = vld [vmem:[#allocation81_spill] sm:$0xff] }
 0x469   : > { %15321 = vst [vmem:[#allocation49_spill] sm:$0xff] %v11456_v12  ;;  %v11461_v45 = vmax.f32 %v15324_v38, %v4179_v2  ;;  %v11466_v53 = vmax.f32 %v15327_v31, %v4292_v8  ;;  %v11469_v46 = vadd.f32 %v4293_v23, %v15320_v13  ;;  %v15334_v23 = vmax.f32 %v11141_v6, %v11149_v9  ;;  %v15341_v13 = vld [vmem:[#allocation88_spill] sm:$0xff]  ;;  %v15342_v9 = vld [vmem:[#allocation38_spill] sm:$0xff] }
 0x46a   : > { %v4184_v49 = vpop.f32.mrf.mxu0  ;;  %v4297_v22 = vpop.f32.mrf.mxu1  ;;  %4762 = vmatmul.mubr.bf16.gmra.mxu1 %v15330_v60  ;;  %v15338_v60 = vmax.f32 %v15336_v7, %v15337_v57  ;;  %v15345_v57 = vld [vmem:[#allocation86_spill] sm:$0xff] }
 0x46b   : > { %15328 = vst [vmem:[#allocation12_spill] sm:$0xff] %v11466_v53  ;;  %15329 = vst [vmem:[#allocation11_spill] sm:$0xff] %v11469_v46  ;;  %v4185_v12 = vadd.f32 %v4184_v49, %v15331_v41  ;;  %v4298_v2 = vadd.f32 %v4297_v22, %v15332_v0  ;;  %4771 = vmatprep.mubr.bf16.mxu1 %v14571_v39  ;;  %v4117_v49 = vadd.f32 %v11185_v56, %v15223_v42  ;;  %v15352_v53 = vld [vmem:[#allocation85_spill] sm:$0xff] }
 0x46c   : > { %v11477_v58 = vpop.f32.mrf.mxu0  ;;  %v4299_v8 = vpop.f32.mrf.mxu1 }
 0x46d   : > { %15333 = vst [vmem:[#allocation15_spill] sm:$0xff] %v11477_v58  ;;  %v11482_v38 = vmax.f32 %v15334_v23, %v4185_v12  ;;  %v11487_v31 = vmax.f32 %v15338_v60, %v4298_v2  ;;  %v11490_v20 = vadd.f32 %v4299_v8, %v15332_v0  ;;  %v15344_v2 = vld [vmem:[#allocation56_spill] sm:$0xff]  ;;  %v15347_v0 = vld [vmem:[#allocation82_spill] sm:$0xff] }
 0x46e   : > { %v4188_v22 = vpop.f32.mrf.mxu0  ;;  %v4301_v46 = vpop.f32.mrf.mxu1  ;;  %v15346_v60 = vmax.f32 %v15344_v2, %v15345_v57  ;;  %v15354_v2 = vld [vmem:[#allocation80_spill] sm:$0xff] }
 0x46f   : > { %15335 = vst [vmem:[#allocation32_spill] sm:$0xff] %v11482_v38  ;;  %15339 = vst [vmem:[#allocation9_spill] sm:$0xff] %v11487_v31  ;;  %v4189_v6 = vadd.f32 %v4188_v22, %v15341_v13  ;;  %v4302_v12 = vadd.f32 %v4301_v46, %v15342_v9  ;;  %v15348_v38 = vld [vmem:[#allocation89_spill] sm:$0xff]  ;;  %v4988_v22 = vmax.f32 %v15352_v53, %v4117_v49  ;;  %v15353_v31 = vld [vmem:[#allocation70_spill] sm:$0xff] }
 0x470   : > { %15340 = vst [vmem:[#allocation46_spill] sm:$0xff] %v11490_v20  ;;  %v11498_v23 = vpop.f32.mrf.mxu0  ;;  %v4303_v7 = vpop.f32.mrf.mxu1  ;;  %v15349_v56 = vmax.f32 %v15347_v0, %v15348_v38  ;;  %v15356_v53 = vld [vmem:[#allocation66_spill] sm:$0xff] }
 0x471   : > { %15343 = vst [vmem:[#allocation59_spill] sm:$0xff] %v11498_v23  ;;  %v11503_v8 = vmax.f32 %v15346_v60, %v4189_v6  ;;  %v11511_v41 = vadd.f32 %v4303_v7, %v15342_v9  ;;  %v4121_v23 = vadd.f32 %v11205_v52, %v15231_v25  ;;  %v15357_v49 = vmax.f32 %v11191_v29, %v15356_v53  ;;  %v15360_v6 = vld [vmem:[#allocation60_spill] sm:$0xff]  ;;  %v15363_v29 = vld [vmem:[#allocation31_spill] sm:$0xff] }
 0x472   : > { %v11508_v58 = vmax.f32 %v15349_v56, %v4302_v12  ;;  %v4194_v20 = vpop.f32.mrf.mxu0  ;;  %v4307_v46 = vpop.f32.mrf.mxu1  ;;  %4772 = vmatmul.mubr.bf16.gmra.mxu1 %v15353_v31 }
 0x473   : > { %15351 = vst [vmem:[#allocation28_spill] sm:$0xff] %v11511_v41  ;;  %v4195_v57 = vadd.f32 %v4194_v20, %v15354_v2  ;;  %v4308_v0 = vadd.f32 %v4307_v46, %v15223_v42  ;;  %4781 = vmatprep.mubr.bf16.mxu1 %v14571_v39  ;;  %v5005_v56 = vmax.f32 %v11215_v27, %v4121_v23  ;;  %v15359_v20 = vld [vmem:[#allocation16_spill] sm:$0xff]  ;;  %v15361_v41 = vld [vmem:[#allocation83_spill] sm:$0xff] }
 0x474   : > { %15350 = vst [vmem:[#allocation79_spill] sm:$0xff] %v11508_v58  ;;  %v11522_v38 = vpop.f32.mrf.mxu0  ;;  %v11524_v12 = vpop.f32.mrf.mxu1  ;;  %v4127_v46 = vadd.f32 %v15360_v6, %v15359_v20  ;;  %v15367_v23 = vld [vmem:[#allocation96_spill] sm:$0xff] }
 0x475   : > { %15355 = vst [vmem:[#allocation77_spill] sm:$0xff] %v11524_v12  ;;  %v11529_v31 = vmax.f32 %v15357_v49, %v4195_v57  ;;  %v11531_v7 = vmax.f32 %v4988_v22, %v4308_v0  ;;  %v15364_v57 = vld [vmem:[#allocation93_spill] sm:$0xff] }
 0x476   : > { %v4198_v52 = vpop.f32.mrf.mxu0  ;;  %v4311_v60 = vpop.f32.mrf.mxu1  ;;  %v15365_v53 = vmax.f32 %v15363_v29, %v15364_v57  ;;  %v5022_v6 = vmax.f32 %v11240_v30, %v4127_v46 }
 0x477   : > { %15358 = vst [vmem:[#allocation14_spill] sm:$0xff] %v11531_v7  ;;  %v4199_v58 = vadd.f32 %v4198_v52, %v15361_v41  ;;  %v4312_v9 = vadd.f32 %v4311_v60, %v15231_v25  ;;  %v4131_v52 = vadd.f32 %v11249_v63, %v15115_v40  ;;  %v15368_v60 = vld [vmem:[#allocation74_spill] sm:$0xff] }
 0x478   : > { %v11538_v42 = vpop.f32.mrf.mxu0  ;;  %v11540_v12 = vpop.f32.mrf.mxu1 }
 0x479   : > { %15362 = vst [vmem:[#allocation43_spill] sm:$0xff] %v11540_v12  ;;  %v11545_v22 = vmax.f32 %v15365_v53, %v4199_v58  ;;  %v11547_v0 = vmax.f32 %v5005_v56, %v4312_v9  ;;  %v15371_v9 = vld [vmem:[#allocation57_spill] sm:$0xff]  ;;  %v5039_v63 = vmax.f32 %v11259_v21, %v4131_v52  ;;  %v15382_v52 = vld [vmem:[#allocation71_spill] sm:$0xff] }
 0x47a   : > { %v4204_v49 = vpop.f32.mrf.mxu0  ;;  %v4317_v27 = vpop.f32.mrf.mxu1  ;;  %4782 = vmatmul.mubr.bf16.gmra.mxu1 %v15367_v23  ;;  %v15372_v56 = vmax.f32 %v11235_v32, %v15371_v9  ;;  %v15375_v23 = vld [vmem:[#allocation67_spill] sm:$0xff] }
 0x47b   : > { %15366 = vst [vmem:[#allocation55_spill] sm:$0xff] %v11547_v0  ;;  %v4205_v7 = vadd.f32 %v4204_v49, %v15368_v60  ;;  %v4318_v12 = vadd.f32 %v4317_v27, %v15359_v20  ;;  %4791 = vmatprep.mubr.bf16.mxu1 %v14571_v39  ;;  %v15374_v49 = vld [vmem:[#allocation34_spill] sm:$0xff]  ;;  %v15376_v0 = vld [vmem:[#allocation76_spill] sm:$0xff]  ;;  %v15378_v32 = vld [vmem:[#allocation63_spill] sm:$0xff] }
 0x47c   : > { %v11556_v29 = vpop.f32.mrf.mxu0  ;;  %v11558_v58 = vpop.f32.mrf.mxu1  ;;  %v4137_v27 = vadd.f32 %v15375_v23, %v15374_v49 }
 0x47d   : > { %15369 = vst [vmem:[#allocation90_spill] sm:$0xff] %v11556_v29  ;;  %15370 = vst [vmem:[#allocation51_spill] sm:$0xff] %v11558_v58  ;;  %v11563_v57 = vmax.f32 %v15372_v56, %v4205_v7  ;;  %v11565_v53 = vmax.f32 %v5022_v6, %v4318_v12  ;;  %v15379_v7 = vld [vmem:[#allocation39_spill] sm:$0xff] }
 0x47e   : > { %v4208_v30 = vpop.f32.mrf.mxu0  ;;  %v4321_v46 = vpop.f32.mrf.mxu1  ;;  %v15380_v9 = vmax.f32 %v15378_v32, %v15379_v7  ;;  %v5056_v23 = vmax.f32 %v11284_v4, %v4137_v27 }
 0x47f   : > { %15373 = vst [vmem:[#allocation44_spill] sm:$0xff] %v11565_v53  ;;  %v4209_v20 = vadd.f32 %v4208_v30, %v15376_v0  ;;  %v4322_v25 = vadd.f32 %v4321_v46, %v15115_v40  ;;  %v4141_v30 = vadd.f32 %v11293_v3, %v15000_v16  ;;  %v15383_v46 = vld [vmem:[#allocation61_spill] sm:$0xff] }
 0x480   : > { %v11572_v29 = vpop.f32.mrf.mxu0  ;;  %v11574_v58 = vpop.f32.mrf.mxu1 }
 0x481   : > { %15377 = vst [vmem:[#allocation47_spill] sm:$0xff] %v11574_v58  ;;  %v11579_v12 = vmax.f32 %v15380_v9, %v4209_v20  ;;  %v11581_v6 = vmax.f32 %v5039_v63, %v4322_v25  ;;  %v15385_v25 = vld [vmem:[#allocation40_spill] sm:$0xff]  ;;  %v5073_v3 = vmax.f32 %v11303_v11, %v4141_v30  ;;  %v15393_v30 = vld [vmem:[#allocation13_spill] sm:$0xff] }
 0x482   : > { %v4214_v56 = vpop.f32.mrf.mxu0  ;;  %v4327_v21 = vpop.f32.mrf.mxu1  ;;  %4792 = vmatmul.mubr.bf16.gmra.mxu1 %v15382_v52  ;;  %v15386_v63 = vmax.f32 %v11279_v1, %v15385_v25  ;;  %v15389_v1 = vld [vmem:[#allocation69_spill] sm:$0xff] }
 0x483   : > { %15381 = vst [vmem:[#allocation97_spill] sm:$0xff] %v11581_v6  ;;  %v4215_v53 = vadd.f32 %v4214_v56, %v15383_v46  ;;  %v4328_v58 = vadd.f32 %v4327_v21, %v15374_v49  ;;  %4801 = vmatprep.mubr.bf16.mxu1 %v14571_v39  ;;  %v4147_v56 = vadd.f32 %v11317_v55, %v15146_v54  ;;  %v15415_v6 = vld [vmem:[#allocation42_spill] sm:$0xff] }
 0x484   : > { %v11590_v32 = vpop.f32.mrf.mxu0  ;;  %v11592_v20 = vpop.f32.mrf.mxu1 }
 0x485   : > { %15384 = vst [vmem:[#allocation75_spill] sm:$0xff] %v11592_v20  ;;  %v11597_v7 = vmax.f32 %v15386_v63, %v4215_v53  ;;  %v11599_v9 = vmax.f32 %v5056_v23, %v4328_v58  ;;  %v15390_v53 = vld [vmem:[#allocation68_spill] sm:$0xff]  ;;  %v5090_v55 = vmax.f32 %v11327_v44, %v4147_v56 }
 0x486   : > { %v4218_v4 = vpop.f32.mrf.mxu0  ;;  %v4331_v27 = vpop.f32.mrf.mxu1  ;;  %v15391_v25 = vmax.f32 %v15389_v1, %v15390_v53 }
 0x487   : > { %15387 = vst [vmem:[#allocation87_spill] sm:$0xff] %v11599_v9  ;;  %v4219_v39 = vadd.f32 %v4218_v4, %v14999_v28  ;;  %v4332_v21 = vadd.f32 %v4331_v27, %v15000_v16  ;;  %v4151_v4 = vadd.f32 %v11336_v62, %v15020_v59  ;;  %v4157_v62 = vadd.f32 %v11357_v36, %v9803_v35 }
 0x488   : > { %v11606_v52 = vpop.f32.mrf.mxu0  ;;  %v11608_v20 = vpop.f32.mrf.mxu1  ;;  %v4161_v36 = vadd.f32 %v11376_v50, %v9829_v33  ;;  %v4167_v50 = vadd.f32 %v11397_v10, %v14898_v47  ;;  %v15405_v10 = vld [vmem:[#allocation62_spill] sm:$0xff] }
 0x489   : > { %15388 = vst [vmem:[#allocation92_spill] sm:$0xff] %v11608_v20  ;;  %v11613_v58 = vmax.f32 %v15391_v25, %v4219_v39  ;;  %v11615_v23 = vmax.f32 %v5073_v3, %v4332_v21  ;;  %v15395_v39 = vld [vmem:[#allocation52_spill] sm:$0xff]  ;;  %v15396_v3 = vld [vmem:[#allocation19_spill] sm:$0xff]  ;;  %v5107_v56 = vmax.f32 %v11346_v34, %v4151_v4  ;;  %v5124_v4 = vmax.f32 %v11362_v17, %v4157_v62 }
 0x48a   : > { %v4224_v63 = vpop.f32.mrf.mxu0  ;;  %v4337_v11 = vpop.f32.mrf.mxu1  ;;  %4802 = vmatmul.mubr.bf16.gmra.mxu1 %v15393_v30  ;;  %v15397_v21 = vmax.f32 %v15395_v39, %v15396_v3  ;;  %v5141_v62 = vmax.f32 %v11381_v14, %v4161_v36  ;;  %v5158_v36 = vmax.f32 %v11402_v26, %v4167_v50  ;;  %v15413_v50 = vld [vmem:[#allocation17_spill] sm:$0xff] }
 0x48b   : > { %15392 = vst [vmem:[#allocation78_spill] sm:$0xff] %v11615_v23  ;;  %v4225_v27 = vadd.f32 %v4224_v63, %v15145_v37  ;;  %v4338_v9 = vadd.f32 %v4337_v11, %v15146_v54 }
 0x48c   : > { %v11623_v20 = vpop.f32.mrf.mxu0  ;;  %v11625_v1 = vpop.f32.mrf.mxu1 }
 0x48d   : > { %15394 = vst [vmem:[#allocation81_spill] sm:$0xff] %v11625_v1  ;;  %v11630_v53 = vmax.f32 %v15397_v21, %v4225_v27  ;;  %v11632_v25 = vmax.f32 %v5090_v55, %v4338_v9  ;;  %v15400_v27 = vld [vmem:[#allocation53_spill] sm:$0xff] }
 0x48e   : > { %v4228_v30 = vpop.f32.mrf.mxu0  ;;  %v4341_v44 = vpop.f32.mrf.mxu1  ;;  %v15401_v39 = vmax.f32 %v11341_v48, %v15400_v27  ;;  %v15416_v1 = vld [vmem:[#allocation29_spill] sm:$0xff] }
 0x48f   : > { %15398 = vst [vmem:[#allocation56_spill] sm:$0xff] %v11632_v25  ;;  %v4229_v63 = vadd.f32 %v4228_v30, %v15019_v5  ;;  %v4342_v11 = vadd.f32 %v4341_v44, %v15020_v59 }
 0x490   : > { %v11639_v23 = vpop.f32.mrf.mxu0  ;;  %v11641_v16 = vpop.f32.mrf.mxu1 }
 0x491   : > { %15399 = vst [vmem:[#allocation86_spill] sm:$0xff] %v11641_v16  ;;  %v11646_v9 = vmax.f32 %v15401_v39, %v4229_v63  ;;  %v11648_v55 = vmax.f32 %v5107_v56, %v4342_v11  ;;  %v15403_v56 = vmax.f32 %v11367_v43, %v11370_v15  ;;  %v15404_v43 = vmax.f32 %v11386_v24, %v11389_v61  ;;  %v15409_v24 = vld [vmem:[#allocation48_spill] sm:$0xff]  ;;  %v15410_v61 = vld [vmem:[#allocation26_spill] sm:$0xff] }
 0x492   : > { %v4347_v3 = vpop.f32.mrf.mxu1  ;;  %v4460_v34 = vpop.f32.mrf.mxu0 }
 0x493   : > { %15402 = vst [vmem:[#allocation82_spill] sm:$0xff] %v11648_v55  ;;  %v4348_v21 = vadd.f32 %v4347_v3, %v9803_v35  ;;  %v4461_v30 = vadd.f32 %v4460_v34, %v14882_v51 }
 0x494   : > { %v11655_v44 = vpop.f32.mrf.mxu1  ;;  %v11657_v16 = vpop.f32.mrf.mxu0 }
 0x495   : > { %v11659_v48 = vmax.f32 %v5124_v4, %v4348_v21  ;;  %v11664_v63 = vmax.f32 %v15403_v56, %v4461_v30  ;;  %v15406_v30 = vld [vmem:[#allocation18_spill] sm:$0xff] }
 0x496   : > { %v4351_v11 = vpop.f32.mrf.mxu1  ;;  %v4464_v17 = vpop.f32.mrf.mxu0  ;;  %v4171_v56 = vadd.f32 %v15406_v30, %v15405_v10  ;;  %v15414_v30 = vld [vmem:[#allocation91_spill] sm:$0xff] }
 0x497   : > { %v4352_v27 = vadd.f32 %v4351_v11, %v9829_v33  ;;  %v4465_v39 = vadd.f32 %v4464_v17, %v9569_v18  ;;  %v15407_v17 = vld [vmem:[#allocation30_spill] sm:$0xff] }
 0x498   : > { %v11671_v3 = vpop.f32.mrf.mxu1  ;;  %v11673_v34 = vpop.f32.mrf.mxu0  ;;  %v5175_v49 = vmax.f32 %v15413_v50, %v4171_v56  ;;  %v15422_v50 = vld [vmem:[#allocation50_spill] sm:$0xff] }
 0x499   : > { %v11675_v4 = vmax.f32 %v5141_v62, %v4352_v27  ;;  %v11680_v15 = vmax.f32 %v15404_v43, %v4465_v39  ;;  %v15411_v39 = vmax.f32 %v15409_v24, %v15410_v61  ;;  %v15418_v24 = vld [vmem:[#allocation23_spill] sm:$0xff] }
 0x49a   : > { %v4357_v21 = vpop.f32.mrf.mxu1  ;;  %v4470_v14 = vpop.f32.mrf.mxu0 }
 0x49b   : > { %v4358_v11 = vadd.f32 %v4357_v21, %v14898_v47  ;;  %v4471_v55 = vadd.f32 %v4470_v14, %v15407_v17  ;;  %v4177_v21 = vadd.f32 %v15415_v6, %v15414_v30  ;;  %v15423_v6 = vld [vmem:[#allocation49_spill] sm:$0xff] }
 0x49c   : > { %v11687_v59 = vpop.f32.mrf.mxu1  ;;  %v11689_v62 = vpop.f32.mrf.mxu0 }
 0x49d   : > { %v11691_v27 = vmax.f32 %v5158_v36, %v4358_v11  ;;  %v11696_v43 = vmax.f32 %v15411_v39, %v4471_v55  ;;  %v15419_v55 = vld [vmem:[#allocation10_spill] sm:$0xff] }
 0x49e   : > { %v4361_v25 = vpop.f32.mrf.mxu1  ;;  %v4474_v26 = vpop.f32.mrf.mxu0  ;;  %v15420_v61 = vmax.f32 %v15418_v24, %v15419_v55  ;;  %v15428_v24 = vld [vmem:[#allocation58_spill] sm:$0xff] }
 0x49f   : > { %15408 = vst [vmem:[#allocation89_spill] sm:$0xff] %v11691_v27  ;;  %15412 = vst [vmem:[#allocation85_spill] sm:$0xff] %v11696_v43  ;;  %v4362_v14 = vadd.f32 %v4361_v25, %v15405_v10  ;;  %v4475_v54 = vadd.f32 %v4474_v26, %v15416_v1  ;;  %v5192_v27 = vmax.f32 %v15422_v50, %v4177_v21  ;;  %v15424_v1 = vld [vmem:[#allocation27_spill] sm:$0xff] }
 0x4a0   : > { %v11703_v40 = vpop.f32.mrf.mxu1  ;;  %v11705_v36 = vpop.f32.mrf.mxu0  ;;  %v4181_v25 = vadd.f32 %v15423_v6, %v15319_v19  ;;  %v15431_v6 = vld [vmem:[#allocation84_spill] sm:$0xff] }
 0x4a1   : > { %15417 = vst [vmem:[#allocation70_spill] sm:$0xff] %v11703_v40  ;;  %v11707_v11 = vmax.f32 %v5175_v49, %v4362_v14  ;;  %v11712_v39 = vmax.f32 %v15420_v61, %v4475_v54  ;;  %v15429_v54 = vld [vmem:[#allocation64_spill] sm:$0xff] }
 0x4a2   : > { %v4367_v43 = vpop.f32.mrf.mxu1  ;;  %v4480_v56 = vpop.f32.mrf.mxu0  ;;  %v15430_v55 = vmax.f32 %v15428_v24, %v15429_v54  ;;  %v5209_v50 = vmax.f32 %v11461_v45, %v4181_v25 }
 0x4a3   : > { %15421 = vst [vmem:[#allocation66_spill] sm:$0xff] %v11712_v39  ;;  %v4368_v26 = vadd.f32 %v4367_v43, %v15414_v30  ;;  %v4481_v40 = vadd.f32 %v4480_v56, %v15424_v1  ;;  %v15432_v43 = vld [vmem:[#allocation15_spill] sm:$0xff] }
 0x4a4   : > { %v11719_v10 = vpop.f32.mrf.mxu1  ;;  %v11721_v49 = vpop.f32.mrf.mxu0  ;;  %v4187_v30 = vadd.f32 %v15432_v43, %v15431_v6 }
 0x4a5   : > { %15425 = vst [vmem:[#allocation60_spill] sm:$0xff] %v11719_v10  ;;  %15426 = vst [vmem:[#allocation31_spill] sm:$0xff] %v11721_v49  ;;  %v11723_v14 = vmax.f32 %v5192_v27, %v4368_v26  ;;  %v11728_v61 = vmax.f32 %v15430_v55, %v4481_v40  ;;  %v15436_v40 = vld [vmem:[#allocation32_spill] sm:$0xff]  ;;  %v15437_v55 = vld [vmem:[#allocation59_spill] sm:$0xff] }
 0x4a6   : > { %v4371_v39 = vpop.f32.mrf.mxu1  ;;  %v11730_v21 = vpop.f32.mrf.mxu0  ;;  %v5226_v54 = vmax.f32 %v15436_v40, %v4187_v30 }
 0x4a7   : > { %15427 = vst [vmem:[#allocation93_spill] sm:$0xff] %v11723_v14  ;;  %v4372_v56 = vadd.f32 %v4371_v39, %v15319_v19  ;;  %v4191_v14 = vadd.f32 %v15437_v55, %v15341_v13 }
 0x4a8   : > { %v11736_v10 = vpop.f32.mrf.mxu1  ;;  %v11738_v49 = vpop.f32.mrf.mxu0 }
 0x4a9   : > { %15433 = vst [vmem:[#allocation96_spill] sm:$0xff] %v11736_v10  ;;  %v11740_v27 = vmax.f32 %v5209_v50, %v4372_v56  ;;  %v5243_v50 = vmax.f32 %v11503_v8, %v4191_v14  ;;  %v4197_v56 = vadd.f32 %v11522_v38, %v15354_v2 }
 0x4aa   : > { %v4377_v26 = vpop.f32.mrf.mxu1  ;;  %v11742_v24 = vpop.f32.mrf.mxu0 }
 0x4ab   : > { %15434 = vst [vmem:[#allocation57_spill] sm:$0xff] %v11740_v27  ;;  %15435 = vst [vmem:[#allocation67_spill] sm:$0xff] %v11742_v24  ;;  %v4378_v45 = vadd.f32 %v4377_v26, %v15431_v6  ;;  %v15520_v24 = vld [vmem:[#allocation86_spill] sm:$0xff] }
 0x4ac   : > { %v11748_v25 = vpop.f32.mrf.mxu1  ;;  %v11750_v43 = vpop.f32.mrf.mxu0 }
 0x4ad   : > { %15438 = vst [vmem:[#allocation63_spill] sm:$0xff] %v11748_v25  ;;  %15439 = vst [vmem:[#allocation39_spill] sm:$0xff] %v11750_v43  ;;  %v11752_v39 = vmax.f32 %v5226_v54, %v4378_v45  ;;  %v5260_v54 = vmax.f32 %v11529_v31, %v4197_v56  ;;  %v4201_v45 = vadd.f32 %v11538_v42, %v15361_v41 }
 0x4ae   : > { %v4381_v10 = vpop.f32.mrf.mxu1  ;;  %v11754_v19 = vpop.f32.mrf.mxu0 }
 0x4af   : > { %15440 = vst [vmem:[#allocation71_spill] sm:$0xff] %v11752_v39  ;;  %v4382_v30 = vadd.f32 %v4381_v10, %v15341_v13 }
 0x4b0   : > { %v11760_v40 = vpop.f32.mrf.mxu1  ;;  %v11762_v55 = vpop.f32.mrf.mxu0 }
 0x4b1   : > { %15441 = vst [vmem:[#allocation40_spill] sm:$0xff] %v11760_v40  ;;  %v11764_v26 = vmax.f32 %v5243_v50, %v4382_v30  ;;  %v5277_v50 = vmax.f32 %v11545_v22, %v4201_v45  ;;  %v15446_v30 = vld [vmem:[#allocation90_spill] sm:$0xff] }
 0x4b2   : > { %v4387_v27 = vpop.f32.mrf.mxu1  ;;  %v11766_v25 = vpop.f32.mrf.mxu0 }
 0x4b3   : > { %15442 = vst [vmem:[#allocation69_spill] sm:$0xff] %v11764_v26  ;;  %v4388_v8 = vadd.f32 %v4387_v27, %v15354_v2  ;;  %v4207_v26 = vadd.f32 %v15446_v30, %v15368_v60 }
 0x4b4   : > { %v11772_v14 = vpop.f32.mrf.mxu1  ;;  %v11774_v38 = vpop.f32.mrf.mxu0 }
 0x4b5   : > { %15443 = vst [vmem:[#allocation68_spill] sm:$0xff] %v11772_v14  ;;  %15444 = vst [vmem:[#allocation13_spill] sm:$0xff] %v11774_v38  ;;  %v11776_v10 = vmax.f32 %v5260_v54, %v4388_v8  ;;  %v5294_v54 = vmax.f32 %v11563_v57, %v4207_v26  ;;  %v4211_v8 = vadd.f32 %v11572_v29, %v15376_v0 }
 0x4b6   : > { %v4391_v39 = vpop.f32.mrf.mxu1  ;;  %v11778_v40 = vpop.f32.mrf.mxu0 }
 0x4b7   : > { %15445 = vst [vmem:[#allocation52_spill] sm:$0xff] %v11776_v10  ;;  %v4392_v31 = vadd.f32 %v4391_v39, %v15361_v41 }
 0x4b8   : > { %v11784_v56 = vpop.f32.mrf.mxu1  ;;  %v11786_v42 = vpop.f32.mrf.mxu0 }
 0x4b9   : > { %15447 = vst [vmem:[#allocation19_spill] sm:$0xff] %v11784_v56  ;;  %v11788_v27 = vmax.f32 %v5277_v50, %v4392_v31  ;;  %v5311_v50 = vmax.f32 %v11579_v12, %v4211_v8  ;;  %v4217_v31 = vadd.f32 %v11590_v32, %v15383_v46 }
 0x4ba   : > { %v4397_v14 = vpop.f32.mrf.mxu1  ;;  %v11790_v2 = vpop.f32.mrf.mxu0 }
 0x4bb   : > { %15448 = vst [vmem:[#allocation53_spill] sm:$0xff] %v11788_v27  ;;  %v4398_v22 = vadd.f32 %v4397_v14, %v15368_v60  ;;  %v15467_v60 = vld [vmem:[#allocation70_spill] sm:$0xff] }
 0x4bc   : > { %v11796_v45 = vpop.f32.mrf.mxu1  ;;  %v11798_v30 = vpop.f32.mrf.mxu0 }
 0x4bd   : > { %15449 = vst [vmem:[#allocation18_spill] sm:$0xff] %v11796_v45  ;;  %v11800_v39 = vmax.f32 %v5294_v54, %v4398_v22  ;;  %v5328_v54 = vmax.f32 %v11597_v7, %v4217_v31  ;;  %v4221_v22 = vadd.f32 %v11606_v52, %v14999_v28 }
 0x4be   : > { %v4401_v10 = vpop.f32.mrf.mxu1  ;;  %v11802_v56 = vpop.f32.mrf.mxu0 }
 0x4bf   : > { %15450 = vst [vmem:[#allocation48_spill] sm:$0xff] %v11800_v39  ;;  %v4402_v57 = vadd.f32 %v4401_v10, %v15376_v0 }
 0x4c0   : > { %v11808_v26 = vpop.f32.mrf.mxu1  ;;  %v11810_v29 = vpop.f32.mrf.mxu0 }
 0x4c1   : > { %15451 = vst [vmem:[#allocation26_spill] sm:$0xff] %v11808_v26  ;;  %v11812_v14 = vmax.f32 %v5311_v50, %v4402_v57  ;;  %v5345_v50 = vmax.f32 %v11613_v58, %v4221_v22  ;;  %v4227_v57 = vadd.f32 %v11623_v20, %v15145_v37 }
 0x4c2   : > { %v4407_v27 = vpop.f32.mrf.mxu1  ;;  %v11814_v45 = vpop.f32.mrf.mxu0 }
 0x4c3   : > { %15452 = vst [vmem:[#allocation17_spill] sm:$0xff] %v11812_v14  ;;  %v4408_v12 = vadd.f32 %v4407_v27, %v15383_v46 }
 0x4c4   : > { %v11820_v8 = vpop.f32.mrf.mxu1  ;;  %v11822_v32 = vpop.f32.mrf.mxu0 }
 0x4c5   : > { %15453 = vst [vmem:[#allocation42_spill] sm:$0xff] %v11820_v8  ;;  %v11824_v10 = vmax.f32 %v5328_v54, %v4408_v12  ;;  %v5362_v54 = vmax.f32 %v11630_v53, %v4227_v57  ;;  %v4231_v12 = vadd.f32 %v11639_v23, %v15019_v5  ;;  %v4463_v53 = vadd.f32 %v11657_v16, %v14882_v51 }
 0x4c6   : > { %v4411_v39 = vpop.f32.mrf.mxu1  ;;  %v11826_v26 = vpop.f32.mrf.mxu0  ;;  %v4467_v16 = vadd.f32 %v11673_v34, %v9569_v18 }
 0x4c7   : > { %15454 = vst [vmem:[#allocation23_spill] sm:$0xff] %v11824_v10  ;;  %v4412_v7 = vadd.f32 %v4411_v39, %v14999_v28  ;;  %v5379_v10 = vmax.f32 %v11646_v9, %v4231_v12  ;;  %v4856_v9 = vmax.f32 %v11664_v63, %v4463_v53  ;;  %v4360_v63 = vadd.f32 %v11687_v59, %v14898_v47  ;;  %v15465_v59 = vld [vmem:[#allocation89_spill] sm:$0xff] }
 0x4c8   : > { %v11832_v31 = vpop.f32.mrf.mxu1  ;;  %v11834_v52 = vpop.f32.mrf.mxu0  ;;  %v4873_v34 = vmax.f32 %v11680_v15, %v4467_v16 }
 0x4c9   : > { %15455 = vst [vmem:[#allocation10_spill] sm:$0xff] %v11832_v31  ;;  %v11836_v27 = vmax.f32 %v5345_v50, %v4412_v7  ;;  %v4350_v50 = vadd.f32 %v11655_v44, %v9803_v35  ;;  %v4354_v44 = vadd.f32 %v11671_v3, %v9829_v33 }
 0x4ca   : > { %v4417_v14 = vpop.f32.mrf.mxu1  ;;  %v11838_v0 = vpop.f32.mrf.mxu0 }
 0x4cb   : > { %15456 = vst [vmem:[#allocation50_spill] sm:$0xff] %v11836_v27  ;;  %v4418_v58 = vadd.f32 %v4417_v14, %v15145_v37  ;;  %v5143_v3 = vmax.f32 %v11675_v4, %v4354_v44  ;;  %v5160_v44 = vmax.f32 %v15465_v59, %v4360_v63 }
 0x4cc   : > { %v11844_v22 = vpop.f32.mrf.mxu1  ;;  %v11846_v20 = vpop.f32.mrf.mxu0 }
 0x4cd   : > { %15457 = vst [vmem:[#allocation49_spill] sm:$0xff] %v11844_v22  ;;  %v11848_v39 = vmax.f32 %v5362_v54, %v4418_v58  ;;  %v5126_v54 = vmax.f32 %v11659_v48, %v4350_v50 }
 0x4ce   : > { %v4421_v7 = vpop.f32.mrf.mxu1  ;;  %v11852_v27 = vpop.f32.mrf.mxu0 }
 0x4cf   : > { %15458 = vst [vmem:[#allocation58_spill] sm:$0xff] %v11848_v39  ;;  %v4422_v23 = vadd.f32 %v4421_v7, %v15019_v5 }
 0x4d0   : > { %v11858_v14 = vpop.f32.mrf.mxu1  ;;  %v11860_v57 = vpop.f32.mrf.mxu0 }
 0x4d1   : > { %15459 = vst [vmem:[#allocation64_spill] sm:$0xff] %v11858_v14  ;;  %v11862_v31 = vmax.f32 %v5379_v10, %v4422_v23 }
 0x4d2   : > { %v4540_v58 = vpop.f32.mrf.mxu0  ;;  %v4653_v39 = vpop.f32.mrf.mxu1 }
 0x4d3   : > { %15460 = vst [vmem:[#allocation15_spill] sm:$0xff] %v11862_v31  ;;  %v4541_v12 = vadd.f32 %v4540_v58, %v9803_v35  ;;  %v4654_v7 = vadd.f32 %v4653_v39, %v14882_v51  ;;  %v4473_v39 = vadd.f32 %v11689_v62, %v15407_v17  ;;  %v15468_v62 = vld [vmem:[#allocation85_spill] sm:$0xff] }
 0x4d4   : > { %v11872_v28 = vpop.f32.mrf.mxu0  ;;  %v11874_v10 = vpop.f32.mrf.mxu1 }
 0x4d5   : > { %15461 = vst [vmem:[#allocation32_spill] sm:$0xff] %v11874_v10  ;;  %v11876_v23 = vmax.f32 %v5126_v54, %v4541_v12  ;;  %v11878_v48 = vmax.f32 %v4856_v9, %v4654_v7  ;;  %v15466_v7 = vld [vmem:[#allocation62_spill] sm:$0xff]  ;;  %v4890_v5 = vmax.f32 %v15468_v62, %v4473_v39  ;;  %v15496_v10 = vld [vmem:[#allocation77_spill] sm:$0xff] }
 0x4d6   : > { %v4544_v50 = vpop.f32.mrf.mxu0  ;;  %v4657_v53 = vpop.f32.mrf.mxu1  ;;  %v4364_v15 = vadd.f32 %v15467_v60, %v15466_v7  ;;  %v15473_v39 = vld [vmem:[#allocation66_spill] sm:$0xff] }
 0x4d7   : > { %15462 = vst [vmem:[#allocation59_spill] sm:$0xff] %v11878_v48  ;;  %v4545_v58 = vadd.f32 %v4544_v50, %v9829_v33  ;;  %v4658_v31 = vadd.f32 %v4657_v53, %v9569_v18  ;;  %v15469_v50 = vld [vmem:[#allocation29_spill] sm:$0xff] }
 0x4d8   : > { %v11888_v54 = vpop.f32.mrf.mxu0  ;;  %v11890_v9 = vpop.f32.mrf.mxu1  ;;  %v4477_v53 = vadd.f32 %v11705_v36, %v15469_v50  ;;  %v5177_v60 = vmax.f32 %v11707_v11, %v4364_v15  ;;  %v15474_v36 = vld [vmem:[#allocation31_spill] sm:$0xff] }
 0x4d9   : > { %15463 = vst [vmem:[#allocation90_spill] sm:$0xff] %v11890_v9  ;;  %v11892_v12 = vmax.f32 %v5143_v3, %v4545_v58  ;;  %v11894_v4 = vmax.f32 %v4873_v34, %v4658_v31  ;;  %v4483_v46 = vadd.f32 %v15474_v36, %v15424_v1 }
 0x4da   : > { %v4550_v16 = vpop.f32.mrf.mxu0  ;;  %v4663_v14 = vpop.f32.mrf.mxu1  ;;  %v4907_v62 = vmax.f32 %v15473_v39, %v4477_v53 }
 0x4db   : > { %15464 = vst [vmem:[#allocation98_spill] sm:$0xff] %v11894_v4  ;;  %v4551_v41 = vadd.f32 %v4550_v16, %v14898_v47  ;;  %v4664_v8 = vadd.f32 %v4663_v14, %v15407_v17  ;;  %v4924_v11 = vmax.f32 %v11728_v61, %v4483_v46  ;;  %v15501_v4 = vld [vmem:[#allocation41_spill] sm:$0xff] }
 0x4dc   : > { %v11904_v3 = vpop.f32.mrf.mxu0  ;;  %v11906_v31 = vpop.f32.mrf.mxu1 }
 0x4dd   : > { %15470 = vst [vmem:[#allocation89_spill] sm:$0xff] %v11906_v31  ;;  %v11908_v34 = vmax.f32 %v5160_v44, %v4551_v41  ;;  %v11910_v63 = vmax.f32 %v4890_v5, %v4664_v8  ;;  %v15500_v31 = vld [vmem:[#allocation43_spill] sm:$0xff] }
 0x4de   : > { %v4554_v58 = vpop.f32.mrf.mxu0  ;;  %v4667_v59 = vpop.f32.mrf.mxu1 }
 0x4df   : > { %15471 = vst [vmem:[#allocation70_spill] sm:$0xff] %v11908_v34  ;;  %15472 = vst [vmem:[#allocation85_spill] sm:$0xff] %v11910_v63  ;;  %v4555_v16 = vadd.f32 %v4554_v58, %v15466_v7  ;;  %v4668_v14 = vadd.f32 %v4667_v59, %v15469_v50  ;;  %v15495_v63 = vld [vmem:[#allocation21_spill] sm:$0xff]  ;;  %v15508_v50 = vld [vmem:[#allocation16_spill] sm:$0xff]  ;;  %v4515_v7 = vadd.f32 %v11802_v56, %v15501_v4 }
 0x4e0   : > { %v11918_v13 = vpop.f32.mrf.mxu1  ;;  %v11932_v58 = vpop.f32.mrf.mxu0  ;;  %v12038_v51 = vadd.f32 %v15496_v10, %v15495_v63  ;;  %v15516_v34 = vld [vmem:[#allocation22_spill] sm:$0xff] }
 0x4e1   : > { %15475 = vst [vmem:[#allocation66_spill] sm:$0xff] %v11918_v13  ;;  %v11920_v41 = vmax.f32 %v5177_v60, %v4555_v16  ;;  %v11922_v5 = vmax.f32 %v4907_v62, %v4668_v14  ;;  %15481 = vst [vmem:[#allocation103_spill] sm:$0xff] %v11932_v58 }
 0x4e2   : > { %v4673_v8 = vpop.f32.mrf.mxu1  ;;  %v11938_v60 = vpop.f32.mrf.mxu0  ;;  %15497 = vst [vmem:[#allocation21_spill] sm:$0xff] %v12038_v51  ;;  %v15518_v51 = vld [vmem:[#allocation56_spill] sm:$0xff] }
 0x4e3   : > { %15476 = vst [vmem:[#allocation31_spill] sm:$0xff] %v11920_v41  ;;  %15477 = vst [vmem:[#allocation99_spill] sm:$0xff] %v11922_v5  ;;  %v4674_v44 = vadd.f32 %v4673_v8, %v15424_v1  ;;  %v15503_v5 = vld [vmem:[#allocation37_spill] sm:$0xff] }
 0x4e4   : > { %v11926_v15 = vpop.f32.mrf.mxu1  ;;  %15484 = vst [vmem:[#allocation106_spill] sm:$0xff] %v11938_v60  ;;  %v11945_v61 = vpop.f32.mrf.mxu0 }
 0x4e5   : > { %15478 = vst [vmem:[#allocation100_spill] sm:$0xff] %v11926_v15  ;;  %v11928_v53 = vmax.f32 %v4924_v11, %v4674_v44  ;;  %15486 = vst [vmem:[#allocation108_spill] sm:$0xff] %v11945_v61  ;;  %v7578_v11 = vmov -inf  }
 0x4e6   : > { %v11930_v39 = vpop.f32.mrf.mxu1  ;;  %v11956_v8 = vpop.f32.mrf.mxu0  ;;  %519 = vst.msk [vmem:[%s11950_s23 + $0x70] sm:$0xff] %vm504_vm3, %v7578_v11  ;;  %505 = vst.msk [vmem:[%s11950_s23] sm:$0xff] %vm504_vm3, %v7578_v11 }
 0x4e7   : > { %15479 = vst [vmem:[#allocation101_spill] sm:$0xff] %v11928_v53  ;;  %15480 = vst [vmem:[#allocation102_spill] sm:$0xff] %v11930_v39  ;;  %v15499_v53 = vld [vmem:[#allocation20_spill] sm:$0xff] }
 0x4e8   : > { %v11934_v59 = vpop.f32.mrf.mxu1  ;;  %15489 = vst [vmem:[#allocation111_spill] sm:$0xff] %v11956_v8  ;;  %506 = vst.msk [vmem:[%s11950_s23 + $0x8] sm:$0xff] %vm504_vm3, %v7578_v11  ;;  %v12026_v61 = vpop.f32.mrf.mxu0  ;;  %v4314_v17 = vadd.f32 %v15500_v31, %v15499_v53  ;;  %v15509_v31 = vld [vmem:[#allocation51_spill] sm:$0xff] }
 0x4e9   : > { %15482 = vst [vmem:[#allocation104_spill] sm:$0xff] %v11934_v59  ;;  %507 = vst.msk [vmem:[%s11950_s23 + $0x10] sm:$0xff] %vm504_vm3, %v7578_v11  ;;  %v12058_v41 = vadd.f32 %v15509_v31, %v15508_v50  ;;  %v15513_v59 = vld [vmem:[#allocation34_spill] sm:$0xff]  ;;  %v15517_v31 = vld [vmem:[#allocation92_spill] sm:$0xff] }
 0x4ea   : > { %v11936_v36 = vpop.f32.mrf.mxu1  ;;  %508 = vst.msk [vmem:[%s11950_s23 + $0x18] sm:$0xff] %vm504_vm3, %v7578_v11  ;;  %509 = vst.msk [vmem:[%s11950_s23 + $0x20] sm:$0xff] %vm504_vm3, %v7578_v11  ;;  %v12032_v22 = vpop.f32.mrf.mxu0  ;;  %v4334_v38 = vadd.f32 %v15517_v31, %v15516_v34 }
 0x4eb   : > { %15483 = vst [vmem:[#allocation105_spill] sm:$0xff] %v11936_v36  ;;  %510 = vst.msk [vmem:[%s11950_s23 + $0x28] sm:$0xff] %vm504_vm3, %v7578_v11 }
 0x4ec   : > { %v11940_v62 = vpop.f32.mrf.mxu1  ;;  %511 = vst.msk [vmem:[%s11950_s23 + $0x30] sm:$0xff] %vm504_vm3, %v7578_v11  ;;  %512 = vst.msk [vmem:[%s11950_s23 + $0x38] sm:$0xff] %vm504_vm3, %v7578_v11 }
 0x4ed   : > { %15485 = vst [vmem:[#allocation107_spill] sm:$0xff] %v11940_v62  ;;  %513 = vst.msk [vmem:[%s11950_s23 + $0x40] sm:$0xff] %vm504_vm3, %v7578_v11  ;;  %v15504_v62 = vld [vmem:[#allocation81_spill] sm:$0xff] }
 0x4ee   : > { %v11943_v46 = vpop.f32.mrf.mxu1  ;;  %514 = vst.msk [vmem:[%s11950_s23 + $0x48] sm:$0xff] %vm504_vm3, %v7578_v11  ;;  %515 = vst.msk [vmem:[%s11950_s23 + $0x50] sm:$0xff] %vm504_vm3, %v7578_v11  ;;  %v4340_v9 = vadd.f32 %v15504_v62, %v15503_v5  ;;  %v15511_v62 = vld [vmem:[#allocation55_spill] sm:$0xff] }
 0x4ef   : > { %516 = vst.msk [vmem:[%s11950_s23 + $0x58] sm:$0xff] %vm504_vm3, %v7578_v11  ;;  %517 = vst.msk [vmem:[%s11950_s23 + $0x60] sm:$0xff] %vm504_vm3, %v7578_v11 }
 0x4f0   : > { %v11952_v16 = vpop.f32.mrf.mxu1  ;;  %518 = vst.msk [vmem:[%s11950_s23 + $0x68] sm:$0xff] %vm504_vm3, %v7578_v11  ;;  %520 = vst.msk [vmem:[%s11950_s23 + $0x78] sm:$0xff] %vm504_vm3, %v7578_v11 }
 0x4f1   : > { %15487 = vst [vmem:[#allocation109_spill] sm:$0xff] %v11952_v16  ;;  %521 = vst.msk [vmem:[%s11950_s23 + $0x80] sm:$0xff] %vm504_vm3, %v7578_v11 }
 0x4f2   : > { %v11954_v14 = vpop.f32.mrf.mxu1  ;;  %522 = vst.msk [vmem:[%s11950_s23 + $0x88] sm:$0xff] %vm504_vm3, %v7578_v11  ;;  %523 = vst.msk [vmem:[%s11950_s23 + $0x90] sm:$0xff] %vm504_vm3, %v7578_v11 }
 0x4f3   : > { %15488 = vst [vmem:[#allocation110_spill] sm:$0xff] %v11954_v14  ;;  %524 = vst.msk [vmem:[%s11950_s23 + $0x98] sm:$0xff] %vm504_vm3, %v7578_v11 }
 0x4f4   : > { %525 = vst.msk [vmem:[%s11950_s23 + $0xa0] sm:$0xff] %vm504_vm3, %v7578_v11  ;;  %526 = vst.msk [vmem:[%s11950_s23 + $0xa8] sm:$0xff] %vm504_vm3, %v7578_v11  ;;  %v12022_v44 = vpop.f32.mrf.mxu1 }
 0x4f5   : > { %527 = vst.msk [vmem:[%s11950_s23 + $0xb0] sm:$0xff] %vm504_vm3, %v7578_v11  ;;  %528 = vst.msk [vmem:[%s11950_s23 + $0xb8] sm:$0xff] %vm504_vm3, %v7578_v11 }
 0x4f6   : > { %529 = vst.msk [vmem:[%s11950_s23 + $0xc0] sm:$0xff] %vm504_vm3, %v7578_v11  ;;  %530 = vst.msk [vmem:[%s11950_s23 + $0xc8] sm:$0xff] %vm504_vm3, %v7578_v11  ;;  %v12024_v8 = vpop.f32.mrf.mxu1 }
 0x4f7   : > { %531 = vst.msk [vmem:[%s11950_s23 + $0xd0] sm:$0xff] %vm504_vm3, %v7578_v11  ;;  %532 = vst.msk [vmem:[%s11950_s23 + $0xd8] sm:$0xff] %vm504_vm3, %v7578_v11 }
 0x4f8   : > { %533 = vst.msk [vmem:[%s11950_s23 + $0xe0] sm:$0xff] %vm504_vm3, %v7578_v11  ;;  %534 = vst.msk [vmem:[%s11950_s23 + $0xe8] sm:$0xff] %vm504_vm3, %v7578_v11  ;;  %v12028_v60 = vpop.f32.mrf.mxu1 }
 0x4f9   : > { %535 = vst.msk [vmem:[%s11950_s23 + $0xf0] sm:$0xff] %vm504_vm3, %v7578_v11  ;;  %536 = vst.msk [vmem:[%s11950_s23 + $0xf8] sm:$0xff] %vm504_vm3, %v7578_v11  ;;  %v12040_v11 = vpop.f32.mrf.mxu0 }
 0x4fa   : > { %15490 = vst [vmem:[#allocation112_spill] sm:$0xff] %v12022_v44  ;;  %15491 = vst [vmem:[#allocation113_spill] sm:$0xff] %v12026_v61  ;;  %v12030_v6 = vpop.f32.mrf.mxu1  ;;  %v15502_v61 = vld [vmem:[#allocation47_spill] sm:$0xff]  ;;  %v15506_v44 = vld [vmem:[#allocation38_spill] sm:$0xff] }
 0x4fb   : > { %15492 = vst [vmem:[#allocation114_spill] sm:$0xff] %v12030_v6  ;;  %15493 = vst [vmem:[#allocation115_spill] sm:$0xff] %v12032_v22  ;;  %v4324_v15 = vadd.f32 %v15502_v61, %v15501_v4  ;;  %v15505_v22 = vld [vmem:[#allocation33_spill] sm:$0xff]  ;;  %v4495_v36 = vadd.f32 %v11754_v19, %v15506_v44  ;;  %v4531_v61 = vadd.f32 %v11838_v0, %v15503_v5  ;;  %v12062_v43 = vpop.f32.mrf.mxu0  ;;  %v15514_v19 = vld [vmem:[#allocation75_spill] sm:$0xff] }
 0x4fc   : > { %v12034_v37 = vpop.f32.mrf.mxu1  ;;  %15498 = vst [vmem:[#allocation77_spill] sm:$0xff] %v12040_v11  ;;  %v4485_v18 = vadd.f32 %v11730_v21, %v15505_v22  ;;  %15510 = vst [vmem:[#allocation20_spill] sm:$0xff] %v12062_v43  ;;  %v15512_v21 = vld [vmem:[#allocation97_spill] sm:$0xff]  ;;  %v4330_v58 = vadd.f32 %v15514_v19, %v15513_v59  ;;  %v5092_v11 = vmax.f32 %v15518_v51, %v4340_v9  ;;  %v15519_v0 = vld [vmem:[#allocation35_spill] sm:$0xff] }
 0x4fd   : > { %15494 = vst [vmem:[#allocation116_spill] sm:$0xff] %v12034_v37  ;;  %v5007_v37 = vmax.f32 %v15511_v62, %v4314_v17  ;;  %v5041_v14 = vmax.f32 %v15512_v21, %v4324_v15  ;;  %v4344_v43 = vadd.f32 %v15520_v24, %v15519_v0  ;;  %v4505_v17 = vadd.f32 %v11778_v40, %v15499_v53  ;;  %v15521_v15 = vld [vmem:[#allocation12_spill] sm:$0xff]  ;;  %v15522_v62 = vld [vmem:[#allocation11_spill] sm:$0xff]  ;;  %v15530_v9 = vld [vmem:[#allocation78_spill] sm:$0xff] }
 0x4fe   : > { %v4707_v48 = vpop.f32.mrf.mxu1  ;;  %v15523_v21 = vmax.f32 %v15521_v15, %v15522_v62  ;;  %v12086_v56 = vadd.f32 %v11738_v49, %v15505_v22  ;;  %v15525_v6 = vld [vmem:[#allocation28_spill] sm:$0xff]  ;;  %v12095_v51 = vadd.f32 %v11762_v55, %v15506_v44  ;;  %v5093_v15 = vmax.f32 %v5092_v11, %v4531_v61  ;;  %v12103_v62 = vpop.f32.mrf.mxu0  ;;  %v15531_v61 = vld [vmem:[#allocation82_spill] sm:$0xff] }
 0x4ff   : > { %v15527_v40 = vld [vmem:[#allocation44_spill] sm:$0xff]  ;;  %v4535_v49 = vadd.f32 %v11852_v27, %v15519_v0  ;;  %15528 = vst [vmem:[#allocation41_spill] sm:$0xff] %v12103_v62  ;;  %v4517_v55 = vadd.f32 %v11810_v29, %v15501_v4  ;;  %v5075_v11 = vmax.f32 %v15530_v9, %v4334_v38  ;;  %v5109_v39 = vmax.f32 %v15531_v61, %v4344_v43 }
 0x500   : > { %v4709_v1 = vpop.f32.mrf.mxu1  ;;  %v12082_v19 = vmax.f32 %v15523_v21, %v4485_v18  ;;  %v4533_v18 = vadd.f32 %v11846_v20, %v15503_v5  ;;  %v4525_v21 = vadd.f32 %v11826_v26, %v15516_v34  ;;  %v5008_v20 = vmax.f32 %v5007_v37, %v4505_v17  ;;  %v12125_v43 = vpop.f32.mrf.mxu0 }
 0x501   : > { %v4507_v27 = vadd.f32 %v11786_v42, %v15499_v53  ;;  %v12120_v29 = vadd.f32 %v11766_v25, %v15495_v63  ;;  %v4708_v26 = vadd.f32 %v4707_v48, %v15501_v4  ;;  %v4537_v37 = vadd.f32 %v11860_v57, %v15519_v0 }
 0x502   : > { %v12052_v10 = vpop.f32.mrf.mxu1  ;;  %v4941_v62 = vmax.f32 %v12082_v19, %v12086_v56  ;;  %v5094_v38 = vmax.f32 %v5093_v15, %v4533_v18  ;;  %v4527_v25 = vadd.f32 %v11834_v52, %v15516_v34  ;;  %v4511_v18 = vadd.f32 %v11790_v2, %v15508_v50  ;;  %v12140_v52 = vpop.f32.mrf.mxu0  ;;  %v15554_v19 = vld [vmem:[#allocation46_spill] sm:$0xff] }
 0x503   : > { %v5009_v48 = vmax.f32 %v5008_v20, %v4507_v27 }
 0x504   : > { %v12070_v13 = vpop.f32.mrf.mxu1 }
 0x505   : > { %15515 = vst [vmem:[#allocation43_spill] sm:$0xff] %v12070_v13  ;;  %v15524_v13 = vld [vmem:[#allocation79_spill] sm:$0xff] }
 0x506   : > { %v15526_v31 = vmax.f32 %v15524_v13, %v15525_v6  ;;  %v4717_v24 = vpop.f32.mrf.mxu1  ;;  %v15529_v13 = vld [vmem:[#allocation87_spill] sm:$0xff] }
 0x507   : > { %v5058_v6 = vmax.f32 %v15529_v13, %v4330_v58 }
 0x508   : > { %v12091_v16 = vmax.f32 %v15526_v31, %v4495_v36  ;;  %v5042_v36 = vmax.f32 %v5041_v14, %v4515_v7  ;;  %v4719_v31 = vpop.f32.mrf.mxu1  ;;  %v5110_v14 = vmax.f32 %v5109_v39, %v4535_v49  ;;  %v4543_v39 = vadd.f32 %v11872_v28, %v9803_v35 }
 0x509   : > { %v4698_v49 = vadd.f32 %v12024_v8, %v15499_v53  ;;  %v4547_v8 = vadd.f32 %v11888_v54, %v9829_v33  ;;  %v12156_v54 = vpop.f32.mrf.mxu0 }
 0x50a   : > { %v4975_v7 = vmax.f32 %v12091_v16, %v12095_v51  ;;  %v4723_v58 = vpop.f32.mrf.mxu1  ;;  %v5043_v17 = vmax.f32 %v5042_v36, %v4517_v55  ;;  %v4521_v16 = vadd.f32 %v11814_v45, %v15513_v59  ;;  %v5076_v51 = vmax.f32 %v5075_v11, %v4525_v21 }
 0x50b   : > { %v4724_v42 = vadd.f32 %v4723_v58, %v15503_v5  ;;  %v4710_v45 = vadd.f32 %v4709_v1, %v15501_v4  ;;  %v5111_v55 = vmax.f32 %v5110_v14, %v4537_v37  ;;  %v4718_v21 = vadd.f32 %v4717_v24, %v15516_v34 }
 0x50c   : > { %v4725_v9 = vpop.f32.mrf.mxu1  ;;  %v5044_v13 = vmax.f32 %v5043_v17, %v4708_v26  ;;  %v5059_v61 = vmax.f32 %v5058_v6, %v4521_v16  ;;  %v5077_v2 = vmax.f32 %v5076_v51, %v4527_v25  ;;  %v5128_v1 = vmax.f32 %v11876_v23, %v4543_v39  ;;  %v12178_v39 = vpop.f32.mrf.mxu0 }
 0x50d   : > { %v5095_v15 = vmax.f32 %v5094_v38, %v4724_v42  ;;  %v4726_v57 = vadd.f32 %v4725_v9, %v15503_v5  ;;  %v4523_v5 = vadd.f32 %v11822_v32, %v15513_v59  ;;  %v4688_v4 = vadd.f32 %v11943_v46, %v15506_v44 }
 0x50e   : > { %v4727_v36 = vpop.f32.mrf.mxu1  ;;  %v5010_v26 = vmax.f32 %v5009_v48, %v4698_v49  ;;  %v4700_v6 = vadd.f32 %v12028_v60, %v15499_v53  ;;  %v4714_v32 = vadd.f32 %v12052_v10, %v15513_v59  ;;  %v5045_v38 = vmax.f32 %v5044_v13, %v4710_v45  ;;  %v15539_v13 = vld [vmem:[#allocation45_spill] sm:$0xff]  ;;  %v15540_v45 = vld [vmem:[#allocation67_spill] sm:$0xff] }
 0x50f   : > { %v4728_v28 = vadd.f32 %v4727_v36, %v15519_v0  ;;  %v5096_v11 = vmax.f32 %v5095_v15, %v4726_v57  ;;  %v5078_v14 = vmax.f32 %v5077_v2, %v4718_v21  ;;  %v4720_v23 = vadd.f32 %v4719_v31, %v15516_v34  ;;  %v15534_v34 = vld [vmem:[#allocation102_spill] sm:$0xff] }
 0x510   : > { %v4729_v20 = vpop.f32.mrf.mxu1  ;;  %v4513_v53 = vadd.f32 %v11798_v30, %v15508_v50  ;;  %v5060_v60 = vmax.f32 %v5059_v61, %v4523_v5  ;;  %v5145_v10 = vmax.f32 %v11892_v12, %v4547_v8  ;;  %v4553_v16 = vadd.f32 %v11904_v3, %v14898_v47  ;;  %v15537_v30 = vld [vmem:[#allocation114_spill] sm:$0xff]  ;;  %v15538_v3 = vld [vmem:[#allocation43_spill] sm:$0xff] }
 0x511   : > { %v5112_v27 = vmax.f32 %v5111_v55, %v4728_v28  ;;  %v4730_v24 = vadd.f32 %v4729_v20, %v15519_v0  ;;  %5097 = vmax.xlane.f32.xlu1 %v5096_v11  ;;  %v15532_v0 = vmax.f32 %v15527_v40, %v12058_v41  ;;  %v4678_v31 = vadd.f32 %v15534_v34, %v15505_v22  ;;  %v15536_v40 = vld [vmem:[#allocation109_spill] sm:$0xff]  ;;  %v15541_v36 = vld [vmem:[#allocation14_spill] sm:$0xff]  ;;  %v15548_v20 = vld [vmem:[#allocation103_spill] sm:$0xff] }
 0x512   : > { %v4733_v58 = vpop.f32.mrf.mxu1  ;;  %v4976_v41 = vmax.f32 %v4975_v7, %v4688_v4  ;;  %v4690_v25 = vadd.f32 %v15536_v40, %v15506_v44  ;;  %v4704_v9 = vadd.f32 %v15537_v30, %v15508_v50  ;;  %v5011_v48 = vmax.f32 %v5010_v26, %v4700_v6  ;;  %v15542_v44 = vld [vmem:[#allocation21_spill] sm:$0xff]  ;;  %v15546_v2 = vld [vmem:[#allocation70_spill] sm:$0xff]  ;;  %v15559_v34 = vld [vmem:[#allocation31_spill] sm:$0xff] }
 0x513   : > { %v4734_v46 = vadd.f32 %v4733_v58, %v9803_v35  ;;  %v5113_v37 = vmax.f32 %v5112_v27, %v4730_v24  ;;  %v5025_v42 = vmax.f32 %v15532_v0, %v4511_v18  ;;  %v5061_v15 = vmax.f32 %v5060_v60, %v4714_v32  ;;  %v15544_v28 = vld [vmem:[#allocation13_spill] sm:$0xff]  ;;  %v15551_v26 = vld [vmem:[#allocation110_spill] sm:$0xff] }
 0x514   : > { %v12166_v17 = vpop.f32.mrf.mxu1  ;;  %v4716_v57 = vadd.f32 %v15538_v3, %v15513_v59  ;;  %v5079_v49 = vmax.f32 %v5078_v14, %v4720_v23  ;;  %v4491_v7 = vadd.f32 %v15540_v45, %v15539_v13  ;;  %v15543_v55 = vmax.f32 %v15541_v36, %v15542_v44  ;;  %v15547_v59 = vld [vmem:[#allocation62_spill] sm:$0xff]  ;;  %v15552_v23 = vld [vmem:[#allocation116_spill] sm:$0xff]  ;;  %v15566_v44 = vld [vmem:[#allocation25_spill] sm:$0xff] }
 0x515   : > { %15533 = vst [vmem:[#allocation47_spill] sm:$0xff] %v12166_v17  ;;  %v12172_v51 = vmax.f32 %v5128_v1, %v4734_v46  ;;  %5114 = vmax.xlane.f32.xlu0 %v5113_v37  ;;  %5046 = vmax.xlane.f32.xlu1 %v5045_v38  ;;  %v4503_v11 = vadd.f32 %v15544_v28, %v15495_v63  ;;  %v12205_v38 = vpop.f32.mrf.mxu0  ;;  %v15612_v17 = vld [vmem:[#allocation18_spill] sm:$0xff] }
 0x516   : > { %v4737_v12 = vpop.f32.mrf.mxu1  ;;  %v4991_v21 = vmax.f32 %v15543_v55, %v12120_v29  ;;  %v5026_v61 = vmax.f32 %v5025_v42, %v4513_v53  ;;  %v5162_v8 = vmax.f32 %v15546_v2, %v4553_v16  ;;  %v4557_v1 = vadd.f32 %v15548_v20, %v15547_v59  ;;  %v15550_v29 = vld [vmem:[#allocation104_spill] sm:$0xff]  ;;  %v15553_v42 = vld [vmem:[#allocation9_spill] sm:$0xff]  ;;  %v15567_v55 = vld [vmem:[#allocation90_spill] sm:$0xff] }
 0x517   : > { %15535 = vst [vmem:[#allocation37_spill] sm:$0xff] %v12172_v51  ;;  %v4738_v18 = vadd.f32 %v4737_v12, %v9829_v33  ;;  %v4942_v27 = vmax.f32 %v4941_v62, %v4678_v31  ;;  %v4680_v24 = vadd.f32 %v15550_v29, %v15505_v22  ;;  %v4694_v6 = vadd.f32 %v15551_v26, %v15495_v63  ;;  %v15557_v22 = vld [vmem:[#allocation39_spill] sm:$0xff]  ;;  %v15574_v26 = vld [vmem:[#allocation100_spill] sm:$0xff] }
 0x518   : > { %v12191_v5 = vpop.f32.mrf.mxu1  ;;  %v4977_v58 = vmax.f32 %v4976_v41, %v4690_v25  ;;  %v5027_v14 = vmax.f32 %v5026_v61, %v4704_v9  ;;  %v4706_v46 = vadd.f32 %v15552_v23, %v15508_v50  ;;  %v5062_v0 = vmax.f32 %v5061_v15, %v4716_v57  ;;  %v15560_v50 = vld [vmem:[#allocation29_spill] sm:$0xff]  ;;  %v15561_v41 = vld [vmem:[#allocation66_spill] sm:$0xff]  ;;  %v15563_v15 = vld [vmem:[#allocation112_spill] sm:$0xff]  ;;  %v12226_v57 = vpop.f32.mrf.mxu0 }
 0x519   : > { %15545 = vst [vmem:[#allocation81_spill] sm:$0xff] %v12191_v5  ;;  %v12196_v4 = vmax.f32 %v5145_v10, %v4738_v18  ;;  %5080 = vmax.xlane.f32.xlu0 %v5079_v49  ;;  %5012 = vmax.xlane.f32.xlu1 %v5011_v48  ;;  %v15555_v56 = vmax.f32 %v15553_v42, %v15554_v19  ;;  %v15562_v25 = vld [vmem:[#allocation105_spill] sm:$0xff]  ;;  %v15570_v20 = vld [vmem:[#allocation99_spill] sm:$0xff]  ;;  %v15609_v33 = vld [vmem:[#allocation36_spill] sm:$0xff] }
 0x51a   : > { %v4743_v32 = vpop.f32.mrf.mxu1  ;;  %v4493_v60 = vadd.f32 %v15557_v22, %v15539_v13  ;;  %v4992_v10 = vmax.f32 %v4991_v21, %v4503_v11  ;;  %v5179_v31 = vmax.f32 %v15559_v34, %v4557_v1  ;;  %v4670_v40 = vadd.f32 %v15561_v41, %v15560_v50  ;;  %v12239_v2 = vpop.f32.mrf.mxu0  ;;  %v15578_v42 = vld [vmem:[#allocation89_spill] sm:$0xff]  ;;  %v15582_v34 = vld [vmem:[#allocation24_spill] sm:$0xff] }
 0x51b   : > { %15549 = vst [vmem:[#allocation33_spill] sm:$0xff] %v12196_v4  ;;  %v4744_v37 = vadd.f32 %v4743_v32, %v14898_v47  ;;  %v4957_v62 = vmax.f32 %v15555_v56, %v4491_v7  ;;  %v4684_v30 = vadd.f32 %v15562_v25, %v15539_v13  ;;  %v4943_v12 = vmax.f32 %v4942_v27, %v4680_v24  ;;  %v15573_v24 = vld [vmem:[#allocation27_spill] sm:$0xff]  ;;  %v15616_v47 = vld [vmem:[#allocation10_spill] sm:$0xff] }
 0x51c   : > { %v12213_v53 = vpop.f32.mrf.mxu1  ;;  %v4993_v48 = vmax.f32 %v4992_v10, %v4694_v6  ;;  %v4696_v3 = vadd.f32 %v15563_v15, %v15495_v63  ;;  %v5028_v49 = vmax.f32 %v5027_v14, %v4706_v46  ;;  %v4660_v21 = vadd.f32 %v15567_v55, %v15566_v44  ;;  %v15569_v63 = vld [vmem:[#allocation107_spill] sm:$0xff]  ;;  %v12248_v32 = vpop.f32.mrf.mxu0  ;;  %v15575_v14 = vld [vmem:[#allocation98_spill] sm:$0xff] }
 0x51d   : > { %15556 = vst [vmem:[#allocation38_spill] sm:$0xff] %v12213_v53  ;;  %v12217_v16 = vmax.f32 %v5162_v8, %v4744_v37  ;;  %5063 = vmax.xlane.f32.xlu0 %v5062_v0  ;;  %4978 = vmax.xlane.f32.xlu1 %v4977_v58  ;;  %v4958_v7 = vmax.f32 %v4957_v62, %v4493_v60  ;;  %v14550_v37 = vmov 0.0   ;;  %v15577_v0 = vld [vmem:[#allocation30_spill] sm:$0xff]  ;;  %v15579_v62 = vld [vmem:[#allocation101_spill] sm:$0xff] }
 0x51e   : > { %v4747_v9 = vpop.f32.mrf.mxu1  ;;  %v4686_v61 = vadd.f32 %v15569_v63, %v15539_v13  ;;  %v4994_v8 = vmax.f32 %v4993_v48, %v4696_v3  ;;  %v4909_v1 = vmax.f32 %v15570_v20, %v4670_v40  ;;  %v4676_v6 = vadd.f32 %v15574_v26, %v15573_v24  ;;  %5680 = vmatprep.subr.mxu0 %v14550_v37  ;;  %v4600_v56 = vpop.f32.mrf.mxu0  ;;  %v15584_v40 = vld [vmem:[#allocation85_spill] sm:$0xff]  ;;  %v15586_v48 = vld [vmem:[#allocation59_spill] sm:$0xff]  ;;  %v15592_v24 = vld [vmem:[#allocation96_spill] sm:$0xff] }
 0x51f   : > { %15558 = vst [vmem:[#allocation16_spill] sm:$0xff] %v12217_v16  ;;  %v4748_v18 = vadd.f32 %v4747_v9, %v15547_v59  ;;  %v4959_v11 = vmax.f32 %v4958_v7, %v4684_v30  ;;  %v4875_v23 = vmax.f32 %v15575_v14, %v4660_v21  ;;  %6289 = vmatprep.subr.mxu1 %v14550_v37  ;;  %v15595_v14 = vld [vmem:[#allocation49_spill] sm:$0xff]  ;;  %v15606_v37 = vld [vmem:[#allocation19_spill] sm:$0xff]  ;;  %v15610_v16 = vld [vmem:[#allocation64_spill] sm:$0xff] }
 0x520   : > { %v12229_v45 = vpop.f32.mrf.mxu1  ;;  %v4666_v19 = vadd.f32 %v15578_v42, %v15577_v0  ;;  %v4926_v22 = vmax.f32 %v15579_v62, %v4676_v6  ;;  %v4602_v41 = vpop.f32.mrf.mxu0  ;;  %v15596_v0 = vld [vmem:[#allocation84_spill] sm:$0xff]  ;;  %v15597_v42 = vld [vmem:[#allocation63_spill] sm:$0xff] }
 0x521   : > { %15564 = vst [vmem:[#allocation51_spill] sm:$0xff] %v12229_v45  ;;  %v12231_v36 = vmax.f32 %v5179_v31, %v4748_v18  ;;  %5029 = vmax.xlane.f32.xlu0 %v5028_v49  ;;  %4944 = vmax.xlane.f32.xlu1 %v4943_v12  ;;  %v4960_v58 = vmax.f32 %v4959_v11, %v4686_v61  ;;  %v15583_v31 = vld [vmem:[#allocation32_spill] sm:$0xff]  ;;  %v15588_v61 = vld [vmem:[#allocation91_spill] sm:$0xff] }
 0x522   : > { %v12235_v28 = vpop.f32.mrf.mxu1  ;;  %v4656_v50 = vadd.f32 %v15583_v31, %v15582_v34  ;;  %v4892_v25 = vmax.f32 %v15584_v40, %v4666_v19  ;;  %v4604_v12 = vpop.f32.mrf.mxu0  ;;  %v12298_v19 = vadd.f32 %v15597_v42, %v15596_v0  ;;  %v15598_v62 = vld [vmem:[#allocation88_spill] sm:$0xff]  ;;  %v15601_v31 = vld [vmem:[#allocation61_spill] sm:$0xff] }
 0x523   : > { %15565 = vst [vmem:[#allocation55_spill] sm:$0xff] %v12231_v36  ;;  %15568 = vst [vmem:[#allocation97_spill] sm:$0xff] %v12235_v28  ;;  %v4601_v45 = vadd.f32 %v4600_v56, %v15601_v31 }
 0x524   : > { %v12242_v27 = vpop.f32.mrf.mxu1  ;;  %v4858_v15 = vmax.f32 %v15586_v48, %v4656_v50  ;;  %v4606_v49 = vpop.f32.mrf.mxu0  ;;  %v15602_v50 = vld [vmem:[#allocation42_spill] sm:$0xff]  ;;  %v15603_v48 = vld [vmem:[#allocation80_spill] sm:$0xff] }
 0x525   : > { %15571 = vst [vmem:[#allocation34_spill] sm:$0xff] %v12242_v27  ;;  %4995 = vmax.xlane.f32.xlu0 %v4994_v8  ;;  %4910 = vmax.xlane.f32.xlu1 %v4909_v1  ;;  %v15589_v8 = vld [vmem:[#allocation60_spill] sm:$0xff]  ;;  %v15591_v1 = vld [vmem:[#allocation94_spill] sm:$0xff]  ;;  %v4410_v40 = vadd.f32 %v15602_v50, %v15601_v31  ;;  %v4424_v50 = vadd.f32 %v15610_v16, %v15609_v33  ;;  %v15618_v27 = vld [vmem:[#allocation71_spill] sm:$0xff] }
 0x526   : > { %v12244_v29 = vpop.f32.mrf.mxu1  ;;  %v4610_v55 = vpop.f32.mrf.mxu0  ;;  %v12286_v20 = vadd.f32 %v15589_v8, %v15588_v61  ;;  %v12290_v26 = vadd.f32 %v15592_v24, %v15591_v1  ;;  %v15605_v24 = vld [vmem:[#allocation83_spill] sm:$0xff] }
 0x527   : > { %15572 = vst [vmem:[#allocation75_spill] sm:$0xff] %v12244_v29  ;;  %v12310_v4 = vadd.f32 %v15606_v37, %v15605_v24  ;;  %v15613_v37 = vld [vmem:[#allocation76_spill] sm:$0xff]  ;;  %v15617_v29 = vld [vmem:[#allocation58_spill] sm:$0xff] }
 0x528   : > { %v12251_v13 = vpop.f32.mrf.mxu1  ;;  %v4612_v63 = vpop.f32.mrf.mxu0  ;;  %15590 = vst [vmem:[#allocation12_spill] sm:$0xff] %v12286_v20  ;;  %15593 = vst [vmem:[#allocation11_spill] sm:$0xff] %v12290_v26  ;;  %v15625_v26 = vld [vmem:[#allocation17_spill] sm:$0xff] }
 0x529   : > { %15576 = vst [vmem:[#allocation22_spill] sm:$0xff] %v12251_v13  ;;  %4961 = vmax.xlane.f32.xlu0 %v4960_v58  ;;  %4876 = vmax.xlane.f32.xlu1 %v4875_v23  ;;  %v15594_v58 = vld [vmem:[#allocation72_spill] sm:$0xff]  ;;  %v15614_v13 = vld [vmem:[#allocation26_spill] sm:$0xff] }
 0x52a   : > { %v12253_v46 = vpop.f32.mrf.mxu1  ;;  %v4420_v23 = vadd.f32 %v15595_v14, %v15594_v58  ;;  %v4611_v14 = vadd.f32 %v4610_v55, %v15594_v58  ;;  %v4614_v51 = vpop.f32.mrf.mxu0  ;;  %v4404_v53 = vadd.f32 %v15614_v13, %v15613_v37  ;;  %v15615_v55 = vld [vmem:[#allocation73_spill] sm:$0xff] }
 0x52b   : > { %v15622_v13 = vld [vmem:[#allocation53_spill] sm:$0xff] }
 0x52c   : > { %v12260_v60 = vpop.f32.mrf.mxu1  ;;  %v5364_v36 = vmax.f32 %v15617_v29, %v4420_v23  ;;  %v5279_v28 = vmax.f32 %v15622_v13, %v12310_v4  ;;  %v4616_v29 = vpop.f32.mrf.mxu0  ;;  %v15623_v23 = vld [vmem:[#allocation15_spill] sm:$0xff]  ;;  %v4605_v4 = vadd.f32 %v4604_v12, %v15615_v55  ;;  %v4607_v13 = vadd.f32 %v4606_v49, %v15615_v55 }
 0x52d   : > { %15580 = vst [vmem:[#allocation92_spill] sm:$0xff] %v12260_v60  ;;  %4927 = vmax.xlane.f32.xlu0 %v4926_v22  ;;  %v15599_v22 = vld [vmem:[#allocation40_spill] sm:$0xff]  ;;  %v5381_v20 = vmax.f32 %v15623_v23, %v4424_v50  ;;  %v4583_v49 = vadd.f32 %v12140_v52, %v15603_v48 }
 0x52e   : > { %v12262_v10 = vpop.f32.mrf.mxu1  ;;  %v12302_v34 = vadd.f32 %v15599_v22, %v15598_v62  ;;  %v15620_v22 = vld [vmem:[#allocation23_spill] sm:$0xff]  ;;  %v5365_v1 = vmax.f32 %v5364_v36, %v4611_v14  ;;  %v4581_v36 = vadd.f32 %v12125_v43, %v15603_v48  ;;  %v4617_v14 = vadd.f32 %v4616_v29, %v15609_v33 }
 0x52f   : > { %15581 = vst [vmem:[#allocation56_spill] sm:$0xff] %v12262_v10  ;;  %v5330_v56 = vmax.f32 %v15620_v22, %v4410_v40  ;;  %v4603_v40 = vadd.f32 %v4602_v41, %v15601_v31  ;;  %v15627_v41 = vld [vmem:[#allocation106_spill] sm:$0xff]  ;;  %v4595_v43 = vadd.f32 %v12239_v2, %v15613_v37 }
 0x530   : > { %v12267_v30 = vpop.f32.mrf.mxu1  ;;  %15600 = vst [vmem:[#allocation79_spill] sm:$0xff] %v12302_v34  ;;  %v4561_v50 = vadd.f32 %v15627_v41, %v15588_v61 }
 0x531   : > { %15585 = vst [vmem:[#allocation35_spill] sm:$0xff] %v12267_v30  ;;  %4893 = vmax.xlane.f32.xlu0 %v4892_v25  ;;  %v4414_v30 = vadd.f32 %v15616_v47, %v15615_v55  ;;  %v4613_v47 = vadd.f32 %v4612_v63, %v15594_v58  ;;  %v5331_v16 = vmax.f32 %v5330_v56, %v4601_v45 }
 0x532   : > { %v12269_v9 = vpop.f32.mrf.mxu1 }
 0x534   : > { %v12272_v3 = vpop.f32.mrf.mxu1 }
 0x535   : > { %4859 = vmax.xlane.f32.xlu0 %v4858_v15  ;;  %v15604_v15 = vld [vmem:[#allocation68_spill] sm:$0xff] }
 0x536   : > { %v12274_v18 = vpop.f32.mrf.mxu1  ;;  %v4390_v8 = vadd.f32 %v15604_v15, %v15603_v48  ;;  %v15611_v15 = vld [vmem:[#allocation74_spill] sm:$0xff] }
 0x537   : > { %v4400_v35 = vadd.f32 %v15612_v17, %v15611_v15  ;;  %v15621_v17 = vld [vmem:[#allocation52_spill] sm:$0xff]  ;;  %v4591_v5 = vadd.f32 %v12205_v38, %v15611_v15  ;;  %v4593_v12 = vadd.f32 %v12226_v57, %v15611_v15 }
 0x538   : > { %v12276_v7 = vpop.f32.mrf.mxu1  ;;  %v5262_v60 = vmax.f32 %v15621_v17, %v4390_v8  ;;  %v5313_v8 = vmax.f32 %v15625_v26, %v4404_v53  ;;  %v15626_v17 = vld [vmem:[#allocation50_spill] sm:$0xff]  ;;  %v5366_v53 = vmax.f32 %v5365_v1, %v4613_v47 }
 0x539   : > { %15587 = vst [vmem:[#allocation86_spill] sm:$0xff] %v12276_v7  ;;  %v4615_v7 = vadd.f32 %v4614_v51, %v15609_v33  ;;  %v15624_v51 = vld [vmem:[#allocation48_spill] sm:$0xff]  ;;  %v5347_v42 = vmax.f32 %v15626_v17, %v4414_v30 }
 0x53a   : > { %v12278_v44 = vpop.f32.mrf.mxu1  ;;  %v5296_v34 = vmax.f32 %v15624_v51, %v4400_v35  ;;  %v15628_v35 = vld [vmem:[#allocation115_spill] sm:$0xff]  ;;  %v5263_v51 = vmax.f32 %v5262_v60, %v4581_v36 }
 0x53b   : > { %v5382_v63 = vmax.f32 %v5381_v20, %v4615_v7  ;;  %v4571_v56 = vadd.f32 %v15628_v35, %v15596_v0  ;;  %v5332_v7 = vmax.f32 %v5331_v16, %v4603_v40  ;;  %v4784_v1 = vadd.f32 %v12278_v44, %v15611_v15 }
 0x53c   : > { %v12280_v21 = vpop.f32.mrf.mxu1  ;;  %v5297_v26 = vmax.f32 %v5296_v34, %v4591_v5  ;;  %v4597_v44 = vadd.f32 %v12248_v32, %v15613_v37 }
 0x53d   : > { %v5383_v17 = vmax.f32 %v5382_v63, %v4617_v14  ;;  %v4786_v52 = vadd.f32 %v12280_v21, %v15611_v15 }
 0x53e   : > { %v12282_v11 = vpop.f32.mrf.mxu1  ;;  %v5298_v60 = vmax.f32 %v5297_v26, %v4593_v12  ;;  %v15633_v12 = vld [vmem:[#allocation12_spill] sm:$0xff] }
 0x540   : > { %v12292_v6 = vpop.f32.mrf.mxu1 }
 0x542   : > { %v4793_v25 = vpop.f32.mrf.mxu1 }
 0x543   : > { %v4794_v38 = vadd.f32 %v4793_v25, %v15601_v31  ;;  %v5348_v25 = vmax.f32 %v5347_v42, %v4605_v4  ;;  %v5314_v42 = vmax.f32 %v5313_v8, %v4595_v43 }
 0x544   : > { %v4795_v59 = vpop.f32.mrf.mxu1 }
 0x545   : > { %v5333_v5 = vmax.f32 %v5332_v7, %v4794_v38  ;;  %v4796_v57 = vadd.f32 %v4795_v59, %v15601_v31  ;;  %v5349_v4 = vmax.f32 %v5348_v25, %v4607_v13  ;;  %v5299_v31 = vmax.f32 %v5298_v60, %v4784_v1  ;;  %v15636_v25 = vld [vmem:[#allocation94_spill] sm:$0xff]  ;;  %v15637_v13 = vld [vmem:[#allocation111_spill] sm:$0xff]  ;;  %v15642_v1 = vld [vmem:[#allocation97_spill] sm:$0xff] }
 0x546   : > { %v4797_v10 = vpop.f32.mrf.mxu1  ;;  %v15629_v38 = vmax.f32 %v15618_v27, %v12298_v19  ;;  %v5315_v15 = vmax.f32 %v5314_v42, %v4597_v44  ;;  %v4776_v27 = vadd.f32 %v12272_v3, %v15603_v48  ;;  %v4778_v19 = vadd.f32 %v12274_v18, %v15605_v24  ;;  %v15646_v44 = vld [vmem:[#allocation57_spill] sm:$0xff] }
 0x547   : > { %v4798_v47 = vadd.f32 %v4797_v10, %v15615_v55  ;;  %v4774_v10 = vadd.f32 %v12269_v9, %v15603_v48  ;;  %v5334_v32 = vmax.f32 %v5333_v5, %v4796_v57  ;;  %v15631_v9 = vld [vmem:[#allocation20_spill] sm:$0xff]  ;;  %v5300_v26 = vmax.f32 %v5299_v31, %v4786_v52  ;;  %v15638_v48 = vld [vmem:[#allocation69_spill] sm:$0xff] }
 0x548   : > { %v4799_v22 = vpop.f32.mrf.mxu1  ;;  %v4575_v35 = vadd.f32 %v15631_v9, %v15598_v62  ;;  %v15653_v9 = vld [vmem:[#allocation65_spill] sm:$0xff] }
 0x549   : > { %v5350_v8 = vmax.f32 %v5349_v4, %v4798_v47  ;;  %v4800_v63 = vadd.f32 %v4799_v22, %v15615_v55  ;;  %v4764_v55 = vadd.f32 %v12253_v46, %v15596_v0  ;;  %v15644_v47 = vld [vmem:[#allocation56_spill] sm:$0xff]  ;;  %v15647_v4 = vld [vmem:[#allocation11_spill] sm:$0xff] }
 0x54a   : > { %v4803_v45 = vpop.f32.mrf.mxu1 }
 0x54b   : > { %v4804_v30 = vadd.f32 %v4803_v45, %v15594_v58  ;;  %v15630_v45 = vld [vmem:[#allocation77_spill] sm:$0xff] }
 0x54c   : > { %v4805_v20 = vpop.f32.mrf.mxu1  ;;  %v4573_v41 = vadd.f32 %v15630_v45, %v15596_v0 }
 0x54d   : > { %v5367_v29 = vmax.f32 %v5366_v53, %v4804_v30  ;;  %v4806_v23 = vadd.f32 %v4805_v20, %v15594_v58  ;;  %v4585_v58 = vadd.f32 %v12156_v54, %v15605_v24  ;;  %v4788_v54 = vadd.f32 %v12282_v11, %v15613_v37  ;;  %v15635_v20 = vld [vmem:[#allocation108_spill] sm:$0xff] }
 0x54e   : > { %v4807_v34 = vpop.f32.mrf.mxu1  ;;  %v5264_v53 = vmax.f32 %v5263_v51, %v4583_v49  ;;  %v4587_v11 = vadd.f32 %v12178_v39, %v15605_v24  ;;  %v5351_v30 = vmax.f32 %v5350_v8, %v4800_v63  ;;  %v15632_v39 = vld [vmem:[#allocation93_spill] sm:$0xff]  ;;  %v4563_v46 = vadd.f32 %v15635_v20, %v15588_v61  ;;  %v15645_v49 = vld [vmem:[#allocation86_spill] sm:$0xff]  ;;  %v15651_v63 = vld [vmem:[#allocation75_spill] sm:$0xff] }
 0x54f   : > { %v4808_v2 = vadd.f32 %v4807_v34, %v15609_v33  ;;  %v5368_v16 = vmax.f32 %v5367_v29, %v4806_v23  ;;  %v5280_v21 = vmax.f32 %v5279_v28, %v4585_v58  ;;  %v4790_v28 = vadd.f32 %v12292_v6, %v15613_v37  ;;  %v15639_v23 = vld [vmem:[#allocation79_spill] sm:$0xff]  ;;  %v15643_v34 = vld [vmem:[#allocation92_spill] sm:$0xff] }
 0x550   : > { %v4809_v40 = vpop.f32.mrf.mxu1  ;;  %v5265_v22 = vmax.f32 %v5264_v53, %v4774_v10  ;;  %v15634_v43 = vmax.f32 %v15632_v39, %v15633_v12  ;;  %v4565_v29 = vadd.f32 %v15637_v13, %v15636_v25  ;;  %v15640_v18 = vmax.f32 %v15638_v48, %v15639_v23  ;;  %v15649_v10 = vld [vmem:[#allocation113_spill] sm:$0xff]  ;;  %v15661_v12 = vld [vmem:[#allocation54_spill] sm:$0xff]  ;;  %v15663_v20 = vld [vmem:[#allocation55_spill] sm:$0xff] }
 0x551   : > { %v5384_v36 = vmax.f32 %v5383_v17, %v4808_v2  ;;  %v4810_v59 = vadd.f32 %v4809_v40, %v15609_v33  ;;  %5369 = vmax.xlane.f32.xlu0 %v5368_v16  ;;  %v5229_v33 = vmax.f32 %v15629_v38, %v4571_v56  ;;  %v5316_v56 = vmax.f32 %v5315_v15, %v4788_v54  ;;  %v15641_v17 = vld [vmem:[#allocation41_spill] sm:$0xff]  ;;  %v15650_v54 = vld [vmem:[#allocation34_spill] sm:$0xff]  ;;  %v4826_v23 = vld [vmem:[%s11950_s23 + $0x70] sm:$0xff] }
 0x552   : > { %v5195_v7 = vmax.f32 %v15634_v43, %v4561_v50  ;;  %v5246_v51 = vmax.f32 %v15640_v18, %v4575_v35  ;;  %v4577_v6 = vadd.f32 %v15641_v17, %v15598_v62  ;;  %v5281_v37 = vmax.f32 %v5280_v21, %v4587_v11  ;;  %v15654_v35 = vld [vmem:[#allocation38_spill] sm:$0xff]  ;;  %v15662_v43 = vld [vmem:[#allocation81_spill] sm:$0xff]  ;;  %v4827_v17 = vld [vmem:[%s11950_s23 + $0x78] sm:$0xff] }
 0x553   : > { %v5385_v14 = vmax.f32 %v5384_v36, %v4810_v59  ;;  %v5230_v3 = vmax.f32 %v5229_v33, %v4573_v41  ;;  %v4754_v50 = vadd.f32 %v15642_v1, %v15588_v61  ;;  %v4766_v57 = vadd.f32 %v15643_v34, %v15596_v0  ;;  %v15655_v11 = vld [vmem:[#allocation22_spill] sm:$0xff] }
 0x554   : > { %v4768_v2 = vadd.f32 %v15644_v47, %v15598_v62  ;;  %v5282_v16 = vmax.f32 %v5281_v37, %v4778_v19  ;;  %v4780_v58 = vadd.f32 %v15645_v49, %v15605_v24  ;;  %v5317_v60 = vmax.f32 %v5316_v56, %v4790_v28  ;;  %v15658_v19 = vld [vmem:[#allocation62_spill] sm:$0xff]  ;;  %v15659_v56 = vld [vmem:[#allocation51_spill] sm:$0xff] }
 0x555   : > { %5386 = vmax.xlane.f32.xlu1 %v5385_v14  ;;  %5335 = vmax.xlane.f32.xlu0 %v5334_v32  ;;  %v5231_v5 = vmax.f32 %v5230_v3, %v4764_v55  ;;  %v5266_v42 = vmax.f32 %v5265_v22, %v4776_v27  ;;  %v5196_v40 = vmax.f32 %v5195_v7, %v4563_v46  ;;  %v15652_v32 = vld [vmem:[#allocation35_spill] sm:$0xff]  ;;  %v5489_v48 = vld [vmem:[%s14191_s7 + $0x8] sm:$0xff] }
 0x556   : > { %v15648_v36 = vmax.f32 %v15646_v44, %v15647_v4  ;;  %v4567_v31 = vadd.f32 %v15649_v10, %v15636_v25  ;;  %v5247_v52 = vmax.f32 %v5246_v51, %v4577_v6  ;;  %v4756_v8 = vadd.f32 %v15650_v54, %v15588_v61  ;;  %v15656_v22 = vld [vmem:[#allocation95_spill] sm:$0xff]  ;;  %5744 = vmatprep.mubr.f32.mxu0 %v5489_v48  ;;  %v4823_v6 = vld [vmem:[%s11950_s23 + $0x58] sm:$0xff]  ;;  %v4825_v34 = vld [vmem:[%s11950_s23 + $0x68] sm:$0xff] }
 0x557   : > { %v5197_v0 = vmax.f32 %v5196_v40, %v4754_v50  ;;  %v4758_v24 = vadd.f32 %v15651_v63, %v15636_v25  ;;  %v4770_v38 = vadd.f32 %v15652_v32, %v15598_v62  ;;  %v5283_v33 = vmax.f32 %v5282_v16, %v4780_v58  ;;  %v15657_v27 = vld [vmem:[#allocation47_spill] sm:$0xff]  ;;  %v4824_v58 = vld [vmem:[%s11950_s23 + $0x60] sm:$0xff]  ;;  %v4817_v10 = vld [vmem:[%s11950_s23 + $0x28] sm:$0xff] }
 0x558   : > { %v5212_v59 = vmax.f32 %v15648_v36, %v4565_v29  ;;  %v5248_v14 = vmax.f32 %v5247_v52, %v4768_v2  ;;  %v5232_v45 = vmax.f32 %v5231_v5, %v4766_v57  ;;  %v4746_v53 = vadd.f32 %v15654_v35, %v15653_v9  ;;  %v15665_v29 = vld [vmem:[#allocation33_spill] sm:$0xff]  ;;  %v4821_v57 = vld [vmem:[%s11950_s23 + $0x48] sm:$0xff]  ;;  %v4815_v32 = vld [vmem:[%s11950_s23 + $0x18] sm:$0xff] }
 0x559   : > { %5352 = vmax.xlane.f32.xlu1 %v5351_v30  ;;  %5301 = vmax.xlane.f32.xlu0 %v5300_v26  ;;  %v4760_v15 = vadd.f32 %v15655_v11, %v15636_v25  ;;  %v5198_v55 = vmax.f32 %v5197_v0, %v4756_v8  ;;  %v4736_v62 = vadd.f32 %v15657_v27, %v15656_v22  ;;  %v15660_v26 = vld [vmem:[#allocation16_spill] sm:$0xff]  ;;  %v15664_v25 = vld [vmem:[#allocation37_spill] sm:$0xff]  ;;  %v15666_v0 = vmov 0.0   ;;  %v4818_v35 = vld [vmem:[%s11950_s23 + $0x30] sm:$0xff] }
 0x55a   : > { %v5213_v41 = vmax.f32 %v5212_v59, %v4567_v31  ;;  %v5249_v61 = vmax.f32 %v5248_v14, %v4770_v38  ;;  %v4750_v28 = vadd.f32 %v15659_v56, %v15658_v19  ;;  %v5164_v39 = vmax.f32 %v15660_v26, %v4746_v53  ;;  %v4822_v59 = vld [vmem:[%s11950_s23 + $0x50] sm:$0xff]  ;;  %v4820_v14 = vld [vmem:[%s11950_s23 + $0x40] sm:$0xff]  ;;  %v4813_v53 = vld [vmem:[%s11950_s23 + $0x8] sm:$0xff] }
 0x55b   : > { %v4740_v7 = vadd.f32 %v15662_v43, %v15661_v12  ;;  %v5130_v13 = vmax.f32 %v15664_v25, %v4736_v62  ;;  %v4816_v27 = vld [vmem:[%s11950_s23 + $0x20] sm:$0xff] }
 0x55c   : > { %v5214_v21 = vmax.f32 %v5213_v41, %v4758_v24  ;;  %v5181_v46 = vmax.f32 %v15663_v20, %v4750_v28 }
 0x55d   : > { %5318 = vmax.xlane.f32.xlu1 %v5317_v60  ;;  %5267 = vmax.xlane.f32.xlu0 %v5266_v42  ;;  %v5147_v3 = vmax.f32 %v15665_v29, %v4740_v7  ;;  %v4819_v60 = vld [vmem:[%s11950_s23 + $0x38] sm:$0xff]  ;;  %v4812_v7 = vld [vmem:[%s11950_s23] sm:$0xff] }
 0x55e   : > { %v5215_v30 = vmax.f32 %v5214_v21, %v4760_v15 }
 0x561   : > { %5284 = vmax.xlane.f32.xlu1 %v5283_v33  ;;  %5233 = vmax.xlane.f32.xlu0 %v5232_v45 }
 0x565   : > { %5250 = vmax.xlane.f32.xlu1 %v5249_v61  ;;  %5199 = vmax.xlane.f32.xlu0 %v5198_v55 }
 0x569   : > { %5216 = vmax.xlane.f32.xlu1 %v5215_v30  ;;  %5165 = vmax.xlane.f32.xlu0 %v5164_v39  ;;  %v4814_v30 = vld [vmem:[%s11950_s23 + $0x10] sm:$0xff] }
 0x56d   : > { %5182 = vmax.xlane.f32.xlu1 %v5181_v46  ;;  %5131 = vmax.xlane.f32.xlu0 %v5130_v13 }
 0x571   : > { %5148 = vmax.xlane.f32.xlu1 %v5147_v3 }
 0x59a   : > { %v5098_v18 = vpop.xlane.xlu1 %5097 }
 0x59b   : > { %v5402_v51 = vmax.f32 %v4826_v23, %v5098_v18  ;;  %v4842_v18 = vld [vmem:[%s11950_s23 + $0xf0] sm:$0xff] }
 0x59d   : > { %5435 = vst.msk [vmem:[%s11950_s23 + $0x70] sm:$0xff] %vm504_vm3, %v5402_v51 }
 0x59e   : > { %v5115_v37 = vpop.xlane.xlu0 %5114  ;;  %v5047_v1 = vpop.xlane.xlu1 %5046 }
 0x59f   : > { %v5403_v50 = vmax.f32 %v4827_v17, %v5115_v37  ;;  %v5399_v5 = vmax.f32 %v4823_v6, %v5047_v1  ;;  %v4843_v6 = vld [vmem:[%s11950_s23 + $0xf8] sm:$0xff]  ;;  %v4840_v37 = vld [vmem:[%s11950_s23 + $0xe0] sm:$0xff] }
 0x5a1   : > { %5436 = vst.msk [vmem:[%s11950_s23 + $0x78] sm:$0xff] %vm504_vm3, %v5403_v50  ;;  %5432 = vst.msk [vmem:[%s11950_s23 + $0x58] sm:$0xff] %vm504_vm3, %v5399_v5 }
 0x5a2   : > { %v5081_v47 = vpop.xlane.xlu0 %5080  ;;  %v5013_v2 = vpop.xlane.xlu1 %5012 }
 0x5a3   : > { %v5401_v16 = vmax.f32 %v4825_v34, %v5081_v47  ;;  %v5397_v49 = vmax.f32 %v4821_v57, %v5013_v2  ;;  %v4841_v57 = vld [vmem:[%s11950_s23 + $0xe8] sm:$0xff]  ;;  %v4838_v47 = vld [vmem:[%s11950_s23 + $0xd0] sm:$0xff] }
 0x5a4   : > { %v5470_v54 = vld [vmem:[%s11950_s23 + $0x70] sm:$0xff] }
 0x5a5   : > { %5434 = vst.msk [vmem:[%s11950_s23 + $0x68] sm:$0xff] %vm504_vm3, %v5401_v16  ;;  %5430 = vst.msk [vmem:[%s11950_s23 + $0x48] sm:$0xff] %vm504_vm3, %v5397_v49 }
 0x5a6   : > { %v5064_v42 = vpop.xlane.xlu0 %5063  ;;  %v4979_v40 = vpop.xlane.xlu1 %4978 }
 0x5a7   : > { %v5400_v44 = vmax.f32 %v4824_v58, %v5064_v42  ;;  %v5395_v4 = vmax.f32 %v4819_v60, %v4979_v40  ;;  %v4839_v60 = vld [vmem:[%s11950_s23 + $0xd8] sm:$0xff]  ;;  %v4836_v42 = vld [vmem:[%s11950_s23 + $0xc0] sm:$0xff] }
 0x5a8   : > { %v5471_v36 = vld [vmem:[%s11950_s23 + $0x78] sm:$0xff] }
 0x5a9   : > { %5433 = vst.msk [vmem:[%s11950_s23 + $0x60] sm:$0xff] %vm504_vm3, %v5400_v44  ;;  %5428 = vst.msk [vmem:[%s11950_s23 + $0x38] sm:$0xff] %vm504_vm3, %v5395_v4  ;;  %5681 = vmatpush1.msra.mxu0 %v5471_v36  ;;  %v5467_v15 = vld [vmem:[%s11950_s23 + $0x58] sm:$0xff] }
 0x5aa   : > { %v5030_v31 = vpop.xlane.xlu0 %5029  ;;  %v4945_v52 = vpop.xlane.xlu1 %4944  ;;  %5682 = vmatprep.subr.mxu0 %v15666_v0 }
 0x5ab   : > { %v5398_v8 = vmax.f32 %v4822_v59, %v5030_v31  ;;  %v5393_v63 = vmax.f32 %v4817_v10, %v4945_v52  ;;  %5683 = vmatpush1.msra.mxu0 %v5470_v54  ;;  %v4837_v10 = vld [vmem:[%s11950_s23 + $0xc8] sm:$0xff]  ;;  %v4834_v31 = vld [vmem:[%s11950_s23 + $0xb0] sm:$0xff] }
 0x5ac   : > { %5684 = vmatprep.subr.mxu0 %v15666_v0  ;;  %v5469_v24 = vld [vmem:[%s11950_s23 + $0x68] sm:$0xff] }
 0x5ad   : > { %5431 = vst.msk [vmem:[%s11950_s23 + $0x50] sm:$0xff] %vm504_vm3, %v5398_v8  ;;  %5426 = vst.msk [vmem:[%s11950_s23 + $0x28] sm:$0xff] %vm504_vm3, %v5393_v63  ;;  %5685 = vmatpush1.msra.mxu0 %v5469_v24  ;;  %v5465_v19 = vld [vmem:[%s11950_s23 + $0x48] sm:$0xff] }
 0x5ae   : > { %v4996_v38 = vpop.xlane.xlu0 %4995  ;;  %v4911_v33 = vpop.xlane.xlu1 %4910  ;;  %5686 = vmatprep.subr.mxu0 %v15666_v0 }
 0x5af   : > { %v5396_v45 = vmax.f32 %v4820_v14, %v4996_v38  ;;  %v5391_v41 = vmax.f32 %v4815_v32, %v4911_v33  ;;  %v4835_v32 = vld [vmem:[%s11950_s23 + $0xb8] sm:$0xff]  ;;  %v4832_v38 = vld [vmem:[%s11950_s23 + $0xa0] sm:$0xff] }
 0x5b0   : > { %v5468_v9 = vld [vmem:[%s11950_s23 + $0x60] sm:$0xff]  ;;  %v5463_v39 = vld [vmem:[%s11950_s23 + $0x38] sm:$0xff] }
 0x5b1   : > { %5429 = vst.msk [vmem:[%s11950_s23 + $0x40] sm:$0xff] %vm504_vm3, %v5396_v45  ;;  %5424 = vst.msk [vmem:[%s11950_s23 + $0x18] sm:$0xff] %vm504_vm3, %v5391_v41  ;;  %5687 = vmatpush1.msra.mxu0 %v5468_v9 }
 0x5b2   : > { %v4962_v21 = vpop.xlane.xlu0 %4961  ;;  %v4877_v11 = vpop.xlane.xlu1 %4876  ;;  %5688 = vmatprep.subr.mxu0 %v15666_v0 }
 0x5b3   : > { %v5394_v61 = vmax.f32 %v4818_v35, %v4962_v21  ;;  %v5389_v55 = vmax.f32 %v4813_v53, %v4877_v11  ;;  %5689 = vmatpush1.msra.mxu0 %v5467_v15  ;;  %v4833_v21 = vld [vmem:[%s11950_s23 + $0xa8] sm:$0xff]  ;;  %v4830_v11 = vld [vmem:[%s11950_s23 + $0x90] sm:$0xff] }
 0x5b4   : > { %5690 = vmatprep.subr.mxu0 %v15666_v0  ;;  %v5466_v22 = vld [vmem:[%s11950_s23 + $0x50] sm:$0xff]  ;;  %v5461_v46 = vld [vmem:[%s11950_s23 + $0x28] sm:$0xff] }
 0x5b5   : > { %5427 = vst.msk [vmem:[%s11950_s23 + $0x30] sm:$0xff] %vm504_vm3, %v5394_v61  ;;  %5422 = vst.msk [vmem:[%s11950_s23 + $0x8] sm:$0xff] %vm504_vm3, %v5389_v55  ;;  %5691 = vmatpush1.msra.mxu0 %v5466_v22 }
 0x5b6   : > { %v4928_v62 = vpop.xlane.xlu0 %4927  ;;  %5692 = vmatprep.subr.mxu0 %v15666_v0 }
 0x5b7   : > { %v5392_v56 = vmax.f32 %v4816_v27, %v4928_v62  ;;  %5693 = vmatpush1.msra.mxu0 %v5465_v19  ;;  %v4831_v19 = vld [vmem:[%s11950_s23 + $0x98] sm:$0xff] }
 0x5b8   : > { %5694 = vmatprep.subr.mxu0 %v15666_v0  ;;  %v5464_v28 = vld [vmem:[%s11950_s23 + $0x40] sm:$0xff]  ;;  %v5459_v29 = vld [vmem:[%s11950_s23 + $0x18] sm:$0xff] }
 0x5b9   : > { %5425 = vst.msk [vmem:[%s11950_s23 + $0x20] sm:$0xff] %vm504_vm3, %v5392_v56  ;;  %5695 = vmatpush1.msra.mxu0 %v5464_v28  ;;  %v4828_v56 = vld [vmem:[%s11950_s23 + $0x80] sm:$0xff] }
 0x5ba   : > { %v4894_v26 = vpop.xlane.xlu0 %4893  ;;  %5696 = vmatprep.subr.mxu0 %v15666_v0 }
 0x5bb   : > { %v5390_v12 = vmax.f32 %v4814_v30, %v4894_v26  ;;  %5697 = vmatpush1.msra.mxu0 %v5463_v39 }
 0x5bc   : > { %5698 = vmatprep.subr.mxu0 %v15666_v0  ;;  %v5462_v43 = vld [vmem:[%s11950_s23 + $0x30] sm:$0xff]  ;;  %v5457_v48 = vld [vmem:[%s11950_s23 + $0x8] sm:$0xff] }
 0x5bd   : > { %5423 = vst.msk [vmem:[%s11950_s23 + $0x10] sm:$0xff] %vm504_vm3, %v5390_v12  ;;  %5699 = vmatpush1.msra.mxu0 %v5462_v43 }
 0x5be   : > { %v4860_v20 = vpop.xlane.xlu0 %4859  ;;  %5700 = vmatprep.subr.mxu0 %v15666_v0 }
 0x5bf   : > { %v5388_v25 = vmax.f32 %v4812_v7, %v4860_v20  ;;  %5701 = vmatpush1.msra.mxu0 %v5461_v46  ;;  %v4829_v7 = vld [vmem:[%s11950_s23 + $0x88] sm:$0xff] }
 0x5c0   : > { %5702 = vmatprep.subr.mxu0 %v15666_v0  ;;  %v5460_v13 = vld [vmem:[%s11950_s23 + $0x20] sm:$0xff] }
 0x5c1   : > { %5421 = vst.msk [vmem:[%s11950_s23] sm:$0xff] %vm504_vm3, %v5388_v25  ;;  %5703 = vmatpush1.msra.mxu0 %v5460_v13 }
 0x5c2   : > { %5704 = vmatprep.subr.mxu0 %v15666_v0 }
 0x5c3   : > { %5705 = vmatpush1.msra.mxu0 %v5459_v29 }
 0x5c4   : > { %5706 = vmatprep.subr.mxu0 %v15666_v0  ;;  %v5458_v3 = vld [vmem:[%s11950_s23 + $0x10] sm:$0xff] }
 0x5c5   : > { %5707 = vmatpush1.msra.mxu0 %v5458_v3 }
 0x5c6   : > { %5708 = vmatprep.subr.mxu0 %v15666_v0 }
 0x5c7   : > { %5709 = vmatpush1.msra.mxu0 %v5457_v48 }
 0x5c8   : > { %5710 = vmatprep.subr.mxu0 %v15666_v0  ;;  %v5456_v23 = vld [vmem:[%s11950_s23] sm:$0xff] }
 0x5c9   : > { %5711 = vmatpush1.msra.mxu0 %v5456_v23 }
 0x5ca   : > { %5712 = vmatprep.subr.mxu0 %v15666_v0 }
 0x5da   : > { %v5370_v51 = vpop.xlane.xlu0 %5369 }
 0x5db   : > { %v5418_v17 = vmax.f32 %v4842_v18, %v5370_v51  ;;  %v5488_v18 = vld [vmem:[%s14191_s7] sm:$0xff] }
 0x5dd   : > { %5451 = vst.msk [vmem:[%s11950_s23 + $0xf0] sm:$0xff] %vm504_vm3, %v5418_v17  ;;  %v5491_v17 = vld [vmem:[%s14191_s7 + $0x18] sm:$0xff] }
 0x5de   : > { %v5387_v1 = vpop.xlane.xlu1 %5386  ;;  %v5336_v50 = vpop.xlane.xlu0 %5335 }
 0x5df   : > { %v5419_v5 = vmax.f32 %v4843_v6, %v5387_v1  ;;  %v5416_v34 = vmax.f32 %v4840_v37, %v5336_v50  ;;  %v5490_v6 = vld [vmem:[%s14191_s7 + $0x10] sm:$0xff]  ;;  %v5493_v37 = vld [vmem:[%s14191_s7 + $0x28] sm:$0xff]  ;;  %v5492_v1 = vld [vmem:[%s14191_s7 + $0x20] sm:$0xff] }
 0x5e0   : > { %v5495_v50 = vld [vmem:[%s14191_s7 + $0x38] sm:$0xff] }
 0x5e1   : > { %5452 = vst.msk [vmem:[%s11950_s23 + $0xf8] sm:$0xff] %vm504_vm3, %v5419_v5  ;;  %5449 = vst.msk [vmem:[%s11950_s23 + $0xe0] sm:$0xff] %vm504_vm3, %v5416_v34  ;;  %v5494_v5 = vld [vmem:[%s14191_s7 + $0x30] sm:$0xff]  ;;  %v5497_v34 = vld [vmem:[%s14191_s7 + $0x48] sm:$0xff] }
 0x5e2   : > { %v5353_v2 = vpop.xlane.xlu1 %5352  ;;  %v5302_v16 = vpop.xlane.xlu0 %5301 }
 0x5e3   : > { %v5417_v49 = vmax.f32 %v4841_v57, %v5353_v2  ;;  %v5414_v58 = vmax.f32 %v4838_v47, %v5302_v16  ;;  %v5496_v57 = vld [vmem:[%s14191_s7 + $0x40] sm:$0xff]  ;;  %v5499_v47 = vld [vmem:[%s14191_s7 + $0x58] sm:$0xff]  ;;  %v5498_v2 = vld [vmem:[%s14191_s7 + $0x50] sm:$0xff] }
 0x5e4   : > { %v5486_v8 = vld [vmem:[%s11950_s23 + $0xf0] sm:$0xff]  ;;  %v5501_v16 = vld [vmem:[%s14191_s7 + $0x68] sm:$0xff] }
 0x5e5   : > { %5450 = vst.msk [vmem:[%s11950_s23 + $0xe8] sm:$0xff] %vm504_vm3, %v5417_v49  ;;  %5447 = vst.msk [vmem:[%s11950_s23 + $0xd0] sm:$0xff] %vm504_vm3, %v5414_v58  ;;  %v5500_v49 = vld [vmem:[%s14191_s7 + $0x60] sm:$0xff]  ;;  %v5503_v58 = vld [vmem:[%s14191_s7 + $0x78] sm:$0xff] }
 0x5e6   : > { %v5319_v40 = vpop.xlane.xlu1 %5318  ;;  %v5268_v44 = vpop.xlane.xlu0 %5267 }
 0x5e7   : > { %v5415_v4 = vmax.f32 %v4839_v60, %v5319_v40  ;;  %v5412_v36 = vmax.f32 %v4836_v42, %v5268_v44  ;;  %v5502_v60 = vld [vmem:[%s14191_s7 + $0x70] sm:$0xff]  ;;  %v5505_v42 = vld [vmem:[%s14191_s7 + $0x88] sm:$0xff]  ;;  %v5504_v40 = vld [vmem:[%s14191_s7 + $0x80] sm:$0xff] }
 0x5e8   : > { %v5487_v59 = vld [vmem:[%s11950_s23 + $0xf8] sm:$0xff]  ;;  %v5484_v41 = vld [vmem:[%s11950_s23 + $0xe0] sm:$0xff] }
 0x5e9   : > { %5448 = vst.msk [vmem:[%s11950_s23 + $0xd8] sm:$0xff] %vm504_vm3, %v5415_v4  ;;  %5445 = vst.msk [vmem:[%s11950_s23 + $0xc0] sm:$0xff] %vm504_vm3, %v5412_v36  ;;  %5713 = vmatpush2.msra.mxu0 %v5487_v59  ;;  %v5507_v44 = vld [vmem:[%s14191_s7 + $0x98] sm:$0xff]  ;;  %v5506_v4 = vld [vmem:[%s14191_s7 + $0x90] sm:$0xff] }
 0x5ea   : > { %v5285_v52 = vpop.xlane.xlu1 %5284  ;;  %v5234_v54 = vpop.xlane.xlu0 %5233  ;;  %5714 = vmatprep.subr.mxu0 %v15666_v0  ;;  %v5509_v36 = vld [vmem:[%s14191_s7 + $0xa8] sm:$0xff]  ;;  %v5508_v59 = vld [vmem:[%s14191_s7 + $0xa0] sm:$0xff] }
 0x5eb   : > { %v5413_v63 = vmax.f32 %v4837_v10, %v5285_v52  ;;  %v5410_v24 = vmax.f32 %v4834_v31, %v5234_v54  ;;  %5715 = vmatpush2.msra.mxu0 %v5486_v8  ;;  %v5511_v10 = vld [vmem:[%s14191_s7 + $0xb8] sm:$0xff]  ;;  %v5510_v31 = vld [vmem:[%s14191_s7 + $0xb0] sm:$0xff]  ;;  %v5513_v52 = vld [vmem:[%s14191_s7 + $0xc8] sm:$0xff] }
 0x5ec   : > { %5716 = vmatprep.subr.mxu0 %v15666_v0  ;;  %v5485_v14 = vld [vmem:[%s11950_s23 + $0xe8] sm:$0xff]  ;;  %v5482_v55 = vld [vmem:[%s11950_s23 + $0xd0] sm:$0xff]  ;;  %v5512_v54 = vld [vmem:[%s14191_s7 + $0xc0] sm:$0xff] }
 0x5ed   : > { %5446 = vst.msk [vmem:[%s11950_s23 + $0xc8] sm:$0xff] %vm504_vm3, %v5413_v63  ;;  %5443 = vst.msk [vmem:[%s11950_s23 + $0xb0] sm:$0xff] %vm504_vm3, %v5410_v24  ;;  %5717 = vmatpush2.msra.mxu0 %v5485_v14  ;;  %v5515_v8 = vld [vmem:[%s14191_s7 + $0xd8] sm:$0xff]  ;;  %v5514_v63 = vld [vmem:[%s14191_s7 + $0xd0] sm:$0xff] }
 0x5ee   : > { %v5251_v33 = vpop.xlane.xlu1 %5250  ;;  %v5200_v45 = vpop.xlane.xlu0 %5199  ;;  %5718 = vmatprep.subr.mxu0 %v15666_v0  ;;  %v5517_v24 = vld [vmem:[%s14191_s7 + $0xe8] sm:$0xff]  ;;  %v5516_v14 = vld [vmem:[%s14191_s7 + $0xe0] sm:$0xff] }
 0x5ef   : > { %v5411_v9 = vmax.f32 %v4835_v32, %v5251_v33  ;;  %v5408_v35 = vmax.f32 %v4832_v38, %v5200_v45  ;;  %5719 = vmatpush2.msra.mxu0 %v5484_v41  ;;  %v5519_v32 = vld [vmem:[%s14191_s7 + $0xf8] sm:$0xff]  ;;  %v5518_v38 = vld [vmem:[%s14191_s7 + $0xf0] sm:$0xff]  ;;  %v5521_v33 = vld [vmem:[%s14191_s7 + $0x108] sm:$0xff] }
 0x5f0   : > { %5720 = vmatprep.subr.mxu0 %v15666_v0  ;;  %v5483_v53 = vld [vmem:[%s11950_s23 + $0xd8] sm:$0xff]  ;;  %v5480_v26 = vld [vmem:[%s11950_s23 + $0xc0] sm:$0xff] }
 0x5f1   : > { %5444 = vst.msk [vmem:[%s11950_s23 + $0xb8] sm:$0xff] %vm504_vm3, %v5411_v9  ;;  %5441 = vst.msk [vmem:[%s11950_s23 + $0xa0] sm:$0xff] %vm504_vm3, %v5408_v35  ;;  %5721 = vmatpush2.msra.mxu0 %v5483_v53  ;;  %v5520_v45 = vld [vmem:[%s14191_s7 + $0x100] sm:$0xff]  ;;  %v5523_v41 = vld [vmem:[%s14191_s7 + $0x118] sm:$0xff] }
 0x5f2   : > { %v5217_v15 = vpop.xlane.xlu1 %5216  ;;  %v5166_v61 = vpop.xlane.xlu0 %5165  ;;  %5722 = vmatprep.subr.mxu0 %v15666_v0  ;;  %v5522_v9 = vld [vmem:[%s14191_s7 + $0x110] sm:$0xff]  ;;  %v5525_v35 = vld [vmem:[%s14191_s7 + $0x128] sm:$0xff]  ;;  %v5524_v53 = vld [vmem:[%s14191_s7 + $0x120] sm:$0xff] }
 0x5f3   : > { %v5409_v22 = vmax.f32 %v4833_v21, %v5217_v15  ;;  %v5406_v27 = vmax.f32 %v4830_v11, %v5166_v61  ;;  %5723 = vmatpush2.msra.mxu0 %v5482_v55  ;;  %v5527_v21 = vld [vmem:[%s14191_s7 + $0x138] sm:$0xff]  ;;  %v5526_v11 = vld [vmem:[%s14191_s7 + $0x130] sm:$0xff]  ;;  %v5529_v15 = vld [vmem:[%s14191_s7 + $0x148] sm:$0xff] }
 0x5f4   : > { %5724 = vmatprep.subr.mxu0 %v15666_v0  ;;  %v5481_v62 = vld [vmem:[%s11950_s23 + $0xc8] sm:$0xff]  ;;  %v5478_v46 = vld [vmem:[%s11950_s23 + $0xb0] sm:$0xff]  ;;  %v5528_v61 = vld [vmem:[%s14191_s7 + $0x140] sm:$0xff] }
 0x5f5   : > { %5442 = vst.msk [vmem:[%s11950_s23 + $0xa8] sm:$0xff] %vm504_vm3, %v5409_v22  ;;  %5439 = vst.msk [vmem:[%s11950_s23 + $0x90] sm:$0xff] %vm504_vm3, %v5406_v27  ;;  %5725 = vmatpush2.msra.mxu0 %v5481_v62  ;;  %v5531_v55 = vld [vmem:[%s14191_s7 + $0x158] sm:$0xff]  ;;  %v5530_v22 = vld [vmem:[%s14191_s7 + $0x150] sm:$0xff] }
 0x5f6   : > { %v5183_v28 = vpop.xlane.xlu1 %5182  ;;  %v5132_v30 = vpop.xlane.xlu0 %5131  ;;  %5726 = vmatprep.subr.mxu0 %v15666_v0  ;;  %v5533_v27 = vld [vmem:[%s14191_s7 + $0x168] sm:$0xff]  ;;  %v5532_v62 = vld [vmem:[%s14191_s7 + $0x160] sm:$0xff] }
 0x5f7   : > { %v5407_v39 = vmax.f32 %v4831_v19, %v5183_v28  ;;  %v5404_v12 = vmax.f32 %v4828_v56, %v5132_v30  ;;  %5727 = vmatpush2.msra.mxu0 %v5480_v26  ;;  %v5535_v19 = vld [vmem:[%s14191_s7 + $0x178] sm:$0xff]  ;;  %v5534_v56 = vld [vmem:[%s14191_s7 + $0x170] sm:$0xff]  ;;  %v5537_v28 = vld [vmem:[%s14191_s7 + $0x188] sm:$0xff] }
 0x5f8   : > { %5728 = vmatprep.subr.mxu0 %v15666_v0  ;;  %v5479_v43 = vld [vmem:[%s11950_s23 + $0xb8] sm:$0xff]  ;;  %v5476_v29 = vld [vmem:[%s11950_s23 + $0xa0] sm:$0xff] }
 0x5f9   : > { %5440 = vst.msk [vmem:[%s11950_s23 + $0x98] sm:$0xff] %vm504_vm3, %v5407_v39  ;;  %5437 = vst.msk [vmem:[%s11950_s23 + $0x80] sm:$0xff] %vm504_vm3, %v5404_v12  ;;  %5729 = vmatpush2.msra.mxu0 %v5479_v43  ;;  %v5536_v30 = vld [vmem:[%s14191_s7 + $0x180] sm:$0xff]  ;;  %v5539_v26 = vld [vmem:[%s14191_s7 + $0x198] sm:$0xff] }
 0x5fa   : > { %v5149_v20 = vpop.xlane.xlu1 %5148  ;;  %5730 = vmatprep.subr.mxu0 %v15666_v0  ;;  %v5538_v39 = vld [vmem:[%s14191_s7 + $0x190] sm:$0xff]  ;;  %v5541_v12 = vld [vmem:[%s14191_s7 + $0x1a8] sm:$0xff]  ;;  %v5540_v43 = vld [vmem:[%s14191_s7 + $0x1a0] sm:$0xff] }
 0x5fb   : > { %v5405_v25 = vmax.f32 %v4829_v7, %v5149_v20  ;;  %5731 = vmatpush2.msra.mxu0 %v5478_v46  ;;  %v5543_v7 = vld [vmem:[%s14191_s7 + $0x1b8] sm:$0xff]  ;;  %v5542_v20 = vld [vmem:[%s14191_s7 + $0x1b0] sm:$0xff]  ;;  %v5545_v46 = vld [vmem:[%s14191_s7 + $0x1c8] sm:$0xff] }
 0x5fc   : > { %5732 = vmatprep.subr.mxu0 %v15666_v0  ;;  %v5477_v13 = vld [vmem:[%s11950_s23 + $0xa8] sm:$0xff]  ;;  %v5474_v48 = vld [vmem:[%s11950_s23 + $0x90] sm:$0xff] }
 0x5fd   : > { %5438 = vst.msk [vmem:[%s11950_s23 + $0x88] sm:$0xff] %vm504_vm3, %v5405_v25  ;;  %5733 = vmatpush2.msra.mxu0 %v5477_v13  ;;  %v5544_v25 = vld [vmem:[%s14191_s7 + $0x1c0] sm:$0xff]  ;;  %v5547_v13 = vld [vmem:[%s14191_s7 + $0x1d8] sm:$0xff] }
 0x5fe   : > { %5734 = vmatprep.subr.mxu0 %v15666_v0 }
 0x5ff   : > { %5735 = vmatpush2.msra.mxu0 %v5476_v29  ;;  %v5546_v29 = vld [vmem:[%s14191_s7 + $0x1d0] sm:$0xff] }
 0x600   : > { %5736 = vmatprep.subr.mxu0 %v15666_v0  ;;  %v5475_v3 = vld [vmem:[%s11950_s23 + $0x98] sm:$0xff]  ;;  %v5472_v51 = vld [vmem:[%s11950_s23 + $0x80] sm:$0xff] }
 0x601   : > { %5737 = vmatpush2.msra.mxu0 %v5475_v3  ;;  %v5549_v3 = vld [vmem:[%s14191_s7 + $0x1e8] sm:$0xff] }
 0x602   : > { %5738 = vmatprep.subr.mxu0 %v15666_v0 }
 0x603   : > { %5739 = vmatpush2.msra.mxu0 %v5474_v48  ;;  %v5548_v48 = vld [vmem:[%s14191_s7 + $0x1e0] sm:$0xff] }
 0x604   : > { %5740 = vmatprep.subr.mxu0 %v15666_v0  ;;  %v5473_v23 = vld [vmem:[%s11950_s23 + $0x88] sm:$0xff] }
 0x605   : > { %5741 = vmatpush2.msra.mxu0 %v5473_v23  ;;  %v5551_v23 = vld [vmem:[%s14191_s7 + $0x1f8] sm:$0xff] }
 0x606   : > { %5742 = vmatprep.subr.mxu0 %v15666_v0 }
 0x607   : > { %5743 = vmatpush2.msra.mxu0 %v5472_v51  ;;  %v5553_v51 = vld [vmem:[%s14191_s7 + $0x208] sm:$0xff] }
 0x608   : > { %5745 = vmatmul.mubr.f32.vlgmr.msra.gmra.mxu0 %v5488_v18  ;;  %6867 = vmatprep.subr.mxu0 %v15666_v0  ;;  %v5550_v18 = vld [vmem:[%s14191_s7 + $0x1f0] sm:$0xff] }
 0x609   : > { %5749 = vmatprep.mubr.f32.mxu0 %v5491_v17  ;;  %v5552_v17 = vld [vmem:[%s14191_s7 + $0x200] sm:$0xff] }
 0x60c   : > { %5750 = vmatmul.mubr.f32.gmra.mxu0 %v5490_v6  ;;  %v5555_v6 = vld [vmem:[%s14191_s7 + $0x218] sm:$0xff] }
 0x60d   : > { %5754 = vmatprep.mubr.f32.mxu0 %v5493_v37  ;;  %v5554_v37 = vld [vmem:[%s14191_s7 + $0x210] sm:$0xff] }
 0x610   : > { %5755 = vmatmul.mubr.f32.gmra.mxu0 %v5492_v1  ;;  %v5557_v1 = vld [vmem:[%s14191_s7 + $0x228] sm:$0xff] }
 0x611   : > { %5759 = vmatprep.mubr.f32.mxu0 %v5495_v50  ;;  %v5556_v50 = vld [vmem:[%s14191_s7 + $0x220] sm:$0xff] }
 0x614   : > { %5760 = vmatmul.mubr.f32.gmra.mxu0 %v5494_v5  ;;  %v5559_v5 = vld [vmem:[%s14191_s7 + $0x238] sm:$0xff] }
 0x615   : > { %5764 = vmatprep.mubr.f32.mxu0 %v5497_v34  ;;  %v5558_v34 = vld [vmem:[%s14191_s7 + $0x230] sm:$0xff] }
 0x618   : > { %5765 = vmatmul.mubr.f32.gmra.mxu0 %v5496_v57  ;;  %v5561_v57 = vld [vmem:[%s14191_s7 + $0x248] sm:$0xff] }
 0x619   : > { %5769 = vmatprep.mubr.f32.mxu0 %v5499_v47  ;;  %v5560_v47 = vld [vmem:[%s14191_s7 + $0x240] sm:$0xff] }
 0x61c   : > { %5770 = vmatmul.mubr.f32.gmra.mxu0 %v5498_v2  ;;  %v5563_v2 = vld [vmem:[%s14191_s7 + $0x258] sm:$0xff] }
 0x61d   : > { %5774 = vmatprep.mubr.f32.mxu0 %v5501_v16  ;;  %v5562_v16 = vld [vmem:[%s14191_s7 + $0x250] sm:$0xff] }
 0x620   : > { %5775 = vmatmul.mubr.f32.gmra.mxu0 %v5500_v49  ;;  %v5565_v49 = vld [vmem:[%s14191_s7 + $0x268] sm:$0xff] }
 0x621   : > { %5779 = vmatprep.mubr.f32.mxu0 %v5503_v58  ;;  %v5564_v58 = vld [vmem:[%s14191_s7 + $0x260] sm:$0xff] }
 0x624   : > { %5780 = vmatmul.mubr.f32.gmra.mxu0 %v5502_v60  ;;  %v5567_v60 = vld [vmem:[%s14191_s7 + $0x278] sm:$0xff] }
 0x625   : > { %5784 = vmatprep.mubr.f32.mxu0 %v5505_v42  ;;  %v5566_v42 = vld [vmem:[%s14191_s7 + $0x270] sm:$0xff] }
 0x628   : > { %5785 = vmatmul.mubr.f32.gmra.mxu0 %v5504_v40  ;;  %v5569_v40 = vld [vmem:[%s14191_s7 + $0x288] sm:$0xff] }
 0x629   : > { %5789 = vmatprep.mubr.f32.mxu0 %v5507_v44  ;;  %v5568_v44 = vld [vmem:[%s14191_s7 + $0x280] sm:$0xff] }
 0x62c   : > { %5790 = vmatmul.mubr.f32.gmra.mxu0 %v5506_v4  ;;  %v5571_v4 = vld [vmem:[%s14191_s7 + $0x298] sm:$0xff] }
 0x62d   : > { %5794 = vmatprep.mubr.f32.mxu0 %v5509_v36  ;;  %v5570_v36 = vld [vmem:[%s14191_s7 + $0x290] sm:$0xff] }
 0x630   : > { %5795 = vmatmul.mubr.f32.gmra.mxu0 %v5508_v59  ;;  %v5573_v59 = vld [vmem:[%s14191_s7 + $0x2a8] sm:$0xff] }
 0x631   : > { %5799 = vmatprep.mubr.f32.mxu0 %v5511_v10  ;;  %v5572_v10 = vld [vmem:[%s14191_s7 + $0x2a0] sm:$0xff] }
 0x634   : > { %5800 = vmatmul.mubr.f32.gmra.mxu0 %v5510_v31  ;;  %v5575_v31 = vld [vmem:[%s14191_s7 + $0x2b8] sm:$0xff] }
 0x635   : > { %5804 = vmatprep.mubr.f32.mxu0 %v5513_v52  ;;  %v5574_v52 = vld [vmem:[%s14191_s7 + $0x2b0] sm:$0xff] }
 0x638   : > { %5805 = vmatmul.mubr.f32.gmra.mxu0 %v5512_v54  ;;  %v5577_v54 = vld [vmem:[%s14191_s7 + $0x2c8] sm:$0xff] }
 0x639   : > { %5809 = vmatprep.mubr.f32.mxu0 %v5515_v8  ;;  %v5576_v8 = vld [vmem:[%s14191_s7 + $0x2c0] sm:$0xff] }
 0x63c   : > { %5810 = vmatmul.mubr.f32.gmra.mxu0 %v5514_v63  ;;  %v5579_v63 = vld [vmem:[%s14191_s7 + $0x2d8] sm:$0xff] }
 0x63d   : > { %5814 = vmatprep.mubr.f32.mxu0 %v5517_v24  ;;  %v5578_v24 = vld [vmem:[%s14191_s7 + $0x2d0] sm:$0xff] }
 0x640   : > { %5815 = vmatmul.mubr.f32.gmra.mxu0 %v5516_v14  ;;  %v5581_v14 = vld [vmem:[%s14191_s7 + $0x2e8] sm:$0xff] }
 0x641   : > { %5819 = vmatprep.mubr.f32.mxu0 %v5519_v32  ;;  %v5580_v32 = vld [vmem:[%s14191_s7 + $0x2e0] sm:$0xff] }
 0x644   : > { %5820 = vmatmul.mubr.f32.gmra.mxu0 %v5518_v38  ;;  %v5583_v38 = vld [vmem:[%s14191_s7 + $0x2f8] sm:$0xff] }
 0x645   : > { %5824 = vmatprep.mubr.f32.mxu0 %v5521_v33  ;;  %v5582_v33 = vld [vmem:[%s14191_s7 + $0x2f0] sm:$0xff] }
 0x648   : > { %5825 = vmatmul.mubr.f32.gmra.mxu0 %v5520_v45  ;;  %v5585_v45 = vld [vmem:[%s14191_s7 + $0x308] sm:$0xff] }
 0x649   : > { %5829 = vmatprep.mubr.f32.mxu0 %v5523_v41  ;;  %v5584_v41 = vld [vmem:[%s14191_s7 + $0x300] sm:$0xff] }
 0x64c   : > { %5830 = vmatmul.mubr.f32.gmra.mxu0 %v5522_v9  ;;  %v5587_v9 = vld [vmem:[%s14191_s7 + $0x318] sm:$0xff] }
 0x64d   : > { %5834 = vmatprep.mubr.f32.mxu0 %v5525_v35 }
 0x650   : > { %5835 = vmatmul.mubr.f32.gmra.mxu0 %v5524_v53  ;;  %v5586_v53 = vld [vmem:[%s14191_s7 + $0x310] sm:$0xff] }
 0x651   : > { %5839 = vmatprep.mubr.f32.mxu0 %v5527_v21 }
 0x654   : > { %5840 = vmatmul.mubr.f32.gmra.mxu0 %v5526_v11  ;;  %v5589_v11 = vld [vmem:[%s14191_s7 + $0x328] sm:$0xff] }
 0x655   : > { %5844 = vmatprep.mubr.f32.mxu0 %v5529_v15 }
 0x658   : > { %5845 = vmatmul.mubr.f32.gmra.mxu0 %v5528_v61  ;;  %v5588_v61 = vld [vmem:[%s14191_s7 + $0x320] sm:$0xff] }
 0x659   : > { %5849 = vmatprep.mubr.f32.mxu0 %v5531_v55 }
 0x65c   : > { %5850 = vmatmul.mubr.f32.gmra.mxu0 %v5530_v22  ;;  %v5591_v22 = vld [vmem:[%s14191_s7 + $0x338] sm:$0xff] }
 0x65d   : > { %5854 = vmatprep.mubr.f32.mxu0 %v5533_v27 }
 0x660   : > { %5855 = vmatmul.mubr.f32.gmra.mxu0 %v5532_v62  ;;  %v5590_v62 = vld [vmem:[%s14191_s7 + $0x330] sm:$0xff] }
 0x661   : > { %5859 = vmatprep.mubr.f32.mxu0 %v5535_v19 }
 0x664   : > { %5860 = vmatmul.mubr.f32.gmra.mxu0 %v5534_v56  ;;  %v5593_v56 = vld [vmem:[%s14191_s7 + $0x348] sm:$0xff] }
 0x665   : > { %5864 = vmatprep.mubr.f32.mxu0 %v5537_v28 }
 0x668   : > { %5865 = vmatmul.mubr.f32.gmra.mxu0 %v5536_v30  ;;  %v5592_v30 = vld [vmem:[%s14191_s7 + $0x340] sm:$0xff] }
 0x669   : > { %5869 = vmatprep.mubr.f32.mxu0 %v5539_v26 }
 0x66c   : > { %5870 = vmatmul.mubr.f32.gmra.mxu0 %v5538_v39  ;;  %v5595_v39 = vld [vmem:[%s14191_s7 + $0x358] sm:$0xff] }
 0x66d   : > { %5874 = vmatprep.mubr.f32.mxu0 %v5541_v12 }
 0x670   : > { %5875 = vmatmul.mubr.f32.gmra.mxu0 %v5540_v43  ;;  %v5594_v43 = vld [vmem:[%s14191_s7 + $0x350] sm:$0xff] }
 0x671   : > { %5879 = vmatprep.mubr.f32.mxu0 %v5543_v7 }
 0x674   : > { %5880 = vmatmul.mubr.f32.gmra.mxu0 %v5542_v20  ;;  %v5597_v20 = vld [vmem:[%s14191_s7 + $0x368] sm:$0xff] }
 0x675   : > { %5884 = vmatprep.mubr.f32.mxu0 %v5545_v46 }
 0x678   : > { %5885 = vmatmul.mubr.f32.gmra.mxu0 %v5544_v25  ;;  %v5596_v25 = vld [vmem:[%s14191_s7 + $0x360] sm:$0xff] }
 0x679   : > { %5889 = vmatprep.mubr.f32.mxu0 %v5547_v13 }
 0x67c   : > { %5890 = vmatmul.mubr.f32.gmra.mxu0 %v5546_v29  ;;  %v5599_v29 = vld [vmem:[%s14191_s7 + $0x378] sm:$0xff] }
 0x67d   : > { %5894 = vmatprep.mubr.f32.mxu0 %v5549_v3 }
 0x680   : > { %5895 = vmatmul.mubr.f32.gmra.mxu0 %v5548_v48  ;;  %v5598_v48 = vld [vmem:[%s14191_s7 + $0x370] sm:$0xff] }
 0x681   : > { %5899 = vmatprep.mubr.f32.mxu0 %v5551_v23 }
 0x684   : > { %5900 = vmatmul.mubr.f32.gmra.mxu0 %v5550_v18  ;;  %v5601_v18 = vld [vmem:[%s14191_s7 + $0x388] sm:$0xff] }
 0x685   : > { %5904 = vmatprep.mubr.f32.mxu0 %v5553_v51 }
 0x688   : > { %5905 = vmatmul.mubr.f32.gmra.mxu0 %v5552_v17  ;;  %v5600_v17 = vld [vmem:[%s14191_s7 + $0x380] sm:$0xff] }
 0x689   : > { %5909 = vmatprep.mubr.f32.mxu0 %v5555_v6 }
 0x68c   : > { %5910 = vmatmul.mubr.f32.gmra.mxu0 %v5554_v37  ;;  %v5603_v37 = vld [vmem:[%s14191_s7 + $0x398] sm:$0xff] }
 0x68d   : > { %5914 = vmatprep.mubr.f32.mxu0 %v5557_v1  ;;  %v6130_v1 = vld [vmem:[%s14193_s9 + $0x8] sm:$0xff] }
 0x68e   : > { %6353 = vmatprep.mubr.f32.mxu1 %v6130_v1 }
 0x690   : > { %5915 = vmatmul.mubr.f32.gmra.mxu0 %v5556_v50 }
 0x691   : > { %5919 = vmatprep.mubr.f32.mxu0 %v5559_v5  ;;  %v5602_v5 = vld [vmem:[%s14191_s7 + $0x390] sm:$0xff] }
 0x694   : > { %5920 = vmatmul.mubr.f32.gmra.mxu0 %v5558_v34 }
 0x695   : > { %5924 = vmatprep.mubr.f32.mxu0 %v5561_v57  ;;  %v5605_v57 = vld [vmem:[%s14191_s7 + $0x3a8] sm:$0xff] }
 0x698   : > { %5925 = vmatmul.mubr.f32.gmra.mxu0 %v5560_v47 }
 0x699   : > { %5929 = vmatprep.mubr.f32.mxu0 %v5563_v2  ;;  %v5604_v2 = vld [vmem:[%s14191_s7 + $0x3a0] sm:$0xff] }
 0x69c   : > { %5930 = vmatmul.mubr.f32.gmra.mxu0 %v5562_v16 }
 0x69d   : > { %5934 = vmatprep.mubr.f32.mxu0 %v5565_v49  ;;  %v5607_v49 = vld [vmem:[%s14191_s7 + $0x3b8] sm:$0xff] }
 0x6a0   : > { %5935 = vmatmul.mubr.f32.gmra.mxu0 %v5564_v58 }
 0x6a1   : > { %5939 = vmatprep.mubr.f32.mxu0 %v5567_v60  ;;  %v5606_v60 = vld [vmem:[%s14191_s7 + $0x3b0] sm:$0xff] }
 0x6a4   : > { %5940 = vmatmul.mubr.f32.gmra.mxu0 %v5566_v42 }
 0x6a5   : > { %5944 = vmatprep.mubr.f32.mxu0 %v5569_v40  ;;  %v5609_v40 = vld [vmem:[%s14191_s7 + $0x3c8] sm:$0xff] }
 0x6a8   : > { %5945 = vmatmul.mubr.f32.gmra.mxu0 %v5568_v44 }
 0x6a9   : > { %5949 = vmatprep.mubr.f32.mxu0 %v5571_v4  ;;  %v5608_v4 = vld [vmem:[%s14191_s7 + $0x3c0] sm:$0xff] }
 0x6ac   : > { %5950 = vmatmul.mubr.f32.gmra.mxu0 %v5570_v36 }
 0x6ad   : > { %5954 = vmatprep.mubr.f32.mxu0 %v5573_v59  ;;  %v5611_v59 = vld [vmem:[%s14191_s7 + $0x3d8] sm:$0xff] }
 0x6b0   : > { %5955 = vmatmul.mubr.f32.gmra.mxu0 %v5572_v10 }
 0x6b1   : > { %5959 = vmatprep.mubr.f32.mxu0 %v5575_v31  ;;  %v5610_v31 = vld [vmem:[%s14191_s7 + $0x3d0] sm:$0xff] }
 0x6b4   : > { %5960 = vmatmul.mubr.f32.gmra.mxu0 %v5574_v52 }
 0x6b5   : > { %5964 = vmatprep.mubr.f32.mxu0 %v5577_v54  ;;  %v5613_v54 = vld [vmem:[%s14191_s7 + $0x3e8] sm:$0xff] }
 0x6b8   : > { %5965 = vmatmul.mubr.f32.gmra.mxu0 %v5576_v8 }
 0x6b9   : > { %5969 = vmatprep.mubr.f32.mxu0 %v5579_v63  ;;  %v5612_v63 = vld [vmem:[%s14191_s7 + $0x3e0] sm:$0xff] }
 0x6bc   : > { %5970 = vmatmul.mubr.f32.gmra.mxu0 %v5578_v24 }
 0x6bd   : > { %5974 = vmatprep.mubr.f32.mxu0 %v5581_v14  ;;  %v5615_v14 = vld [vmem:[%s14191_s7 + $0x3f8] sm:$0xff] }
 0x6c0   : > { %5975 = vmatmul.mubr.f32.gmra.mxu0 %v5580_v32 }
 0x6c1   : > { %5979 = vmatprep.mubr.f32.mxu0 %v5583_v38  ;;  %v5614_v38 = vld [vmem:[%s14191_s7 + $0x3f0] sm:$0xff] }
 0x6c4   : > { %5980 = vmatmul.mubr.f32.gmra.mxu0 %v5582_v33  ;;  %v5630_v33 = vld [vmem:[%s14192_s8 + $0x70] sm:$0xff] }
 0x6c5   : > { %5984 = vmatprep.mubr.f32.mxu0 %v5585_v45 }
 0x6c8   : > { %v12898_v35 = vpop.f32.mrf.mxu0  ;;  %5985 = vmatmul.mubr.f32.gmra.mxu0 %v5584_v41  ;;  %v5631_v41 = vld [vmem:[%s14192_s8 + $0x78] sm:$0xff] }
 0x6c9   : > { %5989 = vmatprep.mubr.f32.mxu0 %v5587_v9  ;;  %v5629_v9 = vld [vmem:[%s14192_s8 + $0x68] sm:$0xff] }
 0x6ca   : > { %v5748_v21 = vpop.f32.mrf.mxu0 }
 0x6cc   : > { %v12906_v15 = vpop.f32.mrf.mxu0  ;;  %5990 = vmatmul.mubr.f32.gmra.mxu0 %v5586_v53 }
 0x6cd   : > { %5994 = vmatprep.mubr.f32.mxu0 %v5589_v11 }
 0x6ce   : > { %v5753_v55 = vpop.f32.mrf.mxu0 }
 0x6d0   : > { %v12914_v27 = vpop.f32.mrf.mxu0  ;;  %5995 = vmatmul.mubr.f32.gmra.mxu0 %v5588_v61  ;;  %v5628_v61 = vld [vmem:[%s14192_s8 + $0x60] sm:$0xff] }
 0x6d1   : > { %5999 = vmatprep.mubr.f32.mxu0 %v5591_v22 }
 0x6d2   : > { %v5758_v19 = vpop.f32.mrf.mxu0 }
 0x6d3   : > { %v5627_v19 = vld [vmem:[%s14192_s8 + $0x58] sm:$0xff] }
 0x6d4   : > { %v12922_v28 = vpop.f32.mrf.mxu0  ;;  %6000 = vmatmul.mubr.f32.gmra.mxu0 %v5590_v62 }
 0x6d5   : > { %6004 = vmatprep.mubr.f32.mxu0 %v5593_v56 }
 0x6d6   : > { %v5763_v26 = vpop.f32.mrf.mxu0 }
 0x6d8   : > { %v12930_v12 = vpop.f32.mrf.mxu0  ;;  %6005 = vmatmul.mubr.f32.gmra.mxu0 %v5592_v30 }
 0x6d9   : > { %6009 = vmatprep.mubr.f32.mxu0 %v5595_v39  ;;  %v5626_v39 = vld [vmem:[%s14192_s8 + $0x50] sm:$0xff] }
 0x6da   : > { %v5768_v7 = vpop.f32.mrf.mxu0 }
 0x6dc   : > { %v12938_v46 = vpop.f32.mrf.mxu0  ;;  %6010 = vmatmul.mubr.f32.gmra.mxu0 %v5594_v43 }
 0x6dd   : > { %6014 = vmatprep.mubr.f32.mxu0 %v5597_v20 }
 0x6de   : > { %v5773_v13 = vpop.f32.mrf.mxu0 }
 0x6e0   : > { %v12946_v3 = vpop.f32.mrf.mxu0  ;;  %6015 = vmatmul.mubr.f32.gmra.mxu0 %v5596_v25  ;;  %v5625_v25 = vld [vmem:[%s14192_s8 + $0x48] sm:$0xff] }
 0x6e1   : > { %6019 = vmatprep.mubr.f32.mxu0 %v5599_v29 }
 0x6e2   : > { %v5778_v23 = vpop.f32.mrf.mxu0 }
 0x6e3   : > { %v5624_v23 = vld [vmem:[%s14192_s8 + $0x40] sm:$0xff] }
 0x6e4   : > { %v12954_v51 = vpop.f32.mrf.mxu0  ;;  %6020 = vmatmul.mubr.f32.gmra.mxu0 %v5598_v48 }
 0x6e5   : > { %6024 = vmatprep.mubr.f32.mxu0 %v5601_v18 }
 0x6e6   : > { %v5783_v6 = vpop.f32.mrf.mxu0 }
 0x6e8   : > { %v12965_v50 = vpop.f32.mrf.mxu0  ;;  %6025 = vmatmul.mubr.f32.gmra.mxu0 %v5600_v17 }
 0x6e9   : > { %6029 = vmatprep.mubr.f32.mxu0 %v5603_v37  ;;  %v5623_v37 = vld [vmem:[%s14192_s8 + $0x38] sm:$0xff] }
 0x6ea   : > { %v5788_v34 = vpop.f32.mrf.mxu0 }
 0x6ec   : > { %v12973_v47 = vpop.f32.mrf.mxu0  ;;  %6030 = vmatmul.mubr.f32.gmra.mxu0 %v5602_v5  ;;  %v5787_v5 = vadd.f32 %v12965_v50, %v5624_v23 }
 0x6ed   : > { %6034 = vmatprep.mubr.f32.mxu0 %v5605_v57  ;;  %v5792_v17 = vadd.f32 %v12973_v47, %v5625_v25  ;;  %v5622_v57 = vld [vmem:[%s14192_s8 + $0x30] sm:$0xff]  ;;  %v5782_v47 = vadd.f32 %v12954_v51, %v5623_v37 }
 0x6ee   : > { %v5793_v16 = vpop.f32.mrf.mxu0  ;;  %v5777_v50 = vadd.f32 %v12946_v3, %v5622_v57  ;;  %v5643_v57 = vld [vmem:[%s14192_s8 + $0xd8] sm:$0xff] }
 0x6ef   : > { %v6074_v16 = vmax.f32 %v5792_v17, 0.0 }
 0x6f0   : > { %v5796_v58 = vpop.f32.mrf.mxu0  ;;  %6035 = vmatmul.mubr.f32.gmra.mxu0 %v5604_v2 }
 0x6f1   : > { %6039 = vmatprep.mubr.f32.mxu0 %v5607_v49  ;;  %v5797_v29 = vadd.f32 %v5796_v58, %v5626_v39  ;;  %v5621_v49 = vld [vmem:[%s14192_s8 + $0x28] sm:$0xff] }
 0x6f2   : > { %v5798_v42 = vpop.f32.mrf.mxu0  ;;  %v5772_v51 = vadd.f32 %v12938_v46, %v5621_v49  ;;  %v5642_v49 = vld [vmem:[%s14192_s8 + $0xd0] sm:$0xff] }
 0x6f3   : > { %v6075_v34 = vmax.f32 %v5797_v29, 0.0  ;;  %v5620_v42 = vld [vmem:[%s14192_s8 + $0x20] sm:$0xff]  ;;  %v5647_v29 = vld [vmem:[%s14192_s8 + $0xf8] sm:$0xff] }
 0x6f4   : > { %v5801_v44 = vpop.f32.mrf.mxu0  ;;  %6040 = vmatmul.mubr.f32.gmra.mxu0 %v5606_v60  ;;  %v6073_v60 = vmax.f32 %v5787_v5, 0.0  ;;  %v5767_v3 = vadd.f32 %v12930_v12, %v5620_v42 }
 0x6f5   : > { %6044 = vmatprep.mubr.f32.mxu0 %v5609_v40  ;;  %v5802_v7 = vadd.f32 %v5801_v44, %v5627_v19  ;;  %v6072_v44 = vmax.f32 %v5782_v47, 0.0 }
 0x6f6   : > { %v5803_v36 = vpop.f32.mrf.mxu0 }
 0x6f7   : > { %v6076_v6 = vmax.f32 %v5802_v7, 0.0 }
 0x6f8   : > { %v5806_v10 = vpop.f32.mrf.mxu0  ;;  %6045 = vmatmul.mubr.f32.gmra.mxu0 %v5608_v4  ;;  %v5619_v4 = vld [vmem:[%s14192_s8 + $0x18] sm:$0xff] }
 0x6f9   : > { %6049 = vmatprep.mubr.f32.mxu0 %v5611_v59  ;;  %v5807_v30 = vadd.f32 %v5806_v10, %v5628_v61  ;;  %v6071_v59 = vmax.f32 %v5777_v50, 0.0  ;;  %v5618_v10 = vld [vmem:[%s14192_s8 + $0x10] sm:$0xff]  ;;  %v5762_v46 = vadd.f32 %v12922_v28, %v5619_v4 }
 0x6fa   : > { %v5808_v52 = vpop.f32.mrf.mxu0  ;;  %v5757_v12 = vadd.f32 %v12914_v27, %v5618_v10 }
 0x6fb   : > { %v6077_v48 = vmax.f32 %v5807_v30, 0.0  ;;  %v6070_v52 = vmax.f32 %v5772_v51, 0.0 }
 0x6fc   : > { %v5811_v8 = vpop.f32.mrf.mxu0  ;;  %6050 = vmatmul.mubr.f32.gmra.mxu0 %v5610_v31  ;;  %v6067_v27 = vmax.f32 %v5757_v12, 0.0 }
 0x6fd   : > { %6054 = vmatprep.mubr.f32.mxu0 %v5613_v54  ;;  %v5812_v22 = vadd.f32 %v5811_v8, %v5629_v9  ;;  %v5617_v54 = vld [vmem:[%s14192_s8 + $0x8] sm:$0xff] }
 0x6fe   : > { %v5813_v24 = vpop.f32.mrf.mxu0  ;;  %v5752_v28 = vadd.f32 %v12906_v15, %v5617_v54 }
 0x6ff   : > { %v6078_v20 = vmax.f32 %v5812_v22, 0.0  ;;  %v5616_v24 = vld [vmem:[%s14192_s8] sm:$0xff] }
 0x700   : > { %v5816_v32 = vpop.f32.mrf.mxu0  ;;  %6055 = vmatmul.mubr.f32.gmra.mxu0 %v5612_v63  ;;  %v6069_v63 = vmax.f32 %v5767_v3, 0.0  ;;  %v5640_v3 = vld [vmem:[%s14192_s8 + $0xc0] sm:$0xff] }
 0x701   : > { %6059 = vmatprep.mubr.f32.mxu0 %v5615_v14  ;;  %v5817_v21 = vadd.f32 %v5816_v32, %v5630_v33  ;;  %v6068_v32 = vmax.f32 %v5762_v46, 0.0  ;;  %v5747_v33 = vadd.f32 %v12898_v35, %v5616_v24  ;;  %v5639_v46 = vld [vmem:[%s14192_s8 + $0xb8] sm:$0xff] }
 0x702   : > { %v5818_v45 = vpop.f32.mrf.mxu0 }
 0x703   : > { %v6079_v26 = vmax.f32 %v5817_v21, 0.0  ;;  %v6065_v15 = vmax.f32 %v5747_v33, 0.0 }
 0x704   : > { %v5821_v53 = vpop.f32.mrf.mxu0  ;;  %6060 = vmatmul.mubr.f32.gmra.mxu0 %v5614_v38 }
 0x705   : > { %v5822_v11 = vadd.f32 %v5821_v53, %v5631_v41  ;;  %v6066_v41 = vmax.f32 %v5752_v28, 0.0 }
 0x706   : > { %v5823_v55 = vpop.f32.mrf.mxu0 }
 0x707   : > { %v6080_v62 = vmax.f32 %v5822_v11, 0.0 }
 0x708   : > { %v13023_v56 = vpop.f32.mrf.mxu0 }
 0x709   : > { %6290 = vmatpush1.msra.mxu1 %v6080_v62 }
 0x70a   : > { %v5828_v43 = vpop.f32.mrf.mxu0  ;;  %6291 = vmatprep.subr.mxu1 %v15666_v0 }
 0x70b   : > { %6292 = vmatpush1.msra.mxu1 %v6079_v26 }
 0x70c   : > { %v13032_v13 = vpop.f32.mrf.mxu0  ;;  %6293 = vmatprep.subr.mxu1 %v15666_v0 }
 0x70d   : > { %6294 = vmatpush1.msra.mxu1 %v6078_v20  ;;  %v5646_v20 = vld [vmem:[%s14192_s8 + $0xf0] sm:$0xff] }
 0x70e   : > { %v5833_v18 = vpop.f32.mrf.mxu0  ;;  %6295 = vmatprep.subr.mxu1 %v15666_v0 }
 0x70f   : > { %6296 = vmatpush1.msra.mxu1 %v6077_v48  ;;  %v5645_v48 = vld [vmem:[%s14192_s8 + $0xe8] sm:$0xff] }
 0x710   : > { %v13043_v1 = vpop.f32.mrf.mxu0  ;;  %6297 = vmatprep.subr.mxu1 %v15666_v0 }
 0x711   : > { %6298 = vmatpush1.msra.mxu1 %v6076_v6  ;;  %v5644_v6 = vld [vmem:[%s14192_s8 + $0xe0] sm:$0xff] }
 0x712   : > { %v5838_v2 = vpop.f32.mrf.mxu0  ;;  %6299 = vmatprep.subr.mxu1 %v15666_v0 }
 0x713   : > { %6300 = vmatpush1.msra.mxu1 %v6075_v34 }
 0x714   : > { %v13055_v58 = vpop.f32.mrf.mxu0  ;;  %6301 = vmatprep.subr.mxu1 %v15666_v0 }
 0x715   : > { %6302 = vmatpush1.msra.mxu1 %v6074_v16 }
 0x716   : > { %v5843_v40 = vpop.f32.mrf.mxu0  ;;  %6303 = vmatprep.subr.mxu1 %v15666_v0 }
 0x717   : > { %6304 = vmatpush1.msra.mxu1 %v6073_v60  ;;  %v5641_v40 = vld [vmem:[%s14192_s8 + $0xc8] sm:$0xff] }
 0x718   : > { %v13067_v36 = vpop.f32.mrf.mxu0  ;;  %6305 = vmatprep.subr.mxu1 %v15666_v0 }
 0x719   : > { %6306 = vmatpush1.msra.mxu1 %v6072_v44 }
 0x71a   : > { %v5848_v31 = vpop.f32.mrf.mxu0  ;;  %6307 = vmatprep.subr.mxu1 %v15666_v0 }
 0x71b   : > { %6308 = vmatpush1.msra.mxu1 %v6071_v59 }
 0x71c   : > { %v13079_v8 = vpop.f32.mrf.mxu0  ;;  %6309 = vmatprep.subr.mxu1 %v15666_v0 }
 0x71d   : > { %6310 = vmatpush1.msra.mxu1 %v6070_v52 }
 0x71e   : > { %v5853_v14 = vpop.f32.mrf.mxu0  ;;  %6311 = vmatprep.subr.mxu1 %v15666_v0 }
 0x71f   : > { %6312 = vmatpush1.msra.mxu1 %v6069_v63  ;;  %v5638_v63 = vld [vmem:[%s14192_s8 + $0xb0] sm:$0xff] }
 0x720   : > { %v13088_v38 = vpop.f32.mrf.mxu0  ;;  %6313 = vmatprep.subr.mxu1 %v15666_v0 }
 0x721   : > { %6314 = vmatpush1.msra.mxu1 %v6068_v32  ;;  %v5637_v32 = vld [vmem:[%s14192_s8 + $0xa8] sm:$0xff] }
 0x722   : > { %v5858_v45 = vpop.f32.mrf.mxu0  ;;  %6315 = vmatprep.subr.mxu1 %v15666_v0 }
 0x723   : > { %6316 = vmatpush1.msra.mxu1 %v6067_v27  ;;  %v5857_v27 = vadd.f32 %v13088_v38, %v5638_v63 }
 0x724   : > { %v13093_v9 = vpop.f32.mrf.mxu0  ;;  %6317 = vmatprep.subr.mxu1 %v15666_v0 }
 0x725   : > { %6318 = vmatpush1.msra.mxu1 %v6066_v41  ;;  %v5862_v14 = vadd.f32 %v13093_v9, %v5639_v46  ;;  %v5636_v41 = vld [vmem:[%s14192_s8 + $0xa0] sm:$0xff]  ;;  %v5852_v9 = vadd.f32 %v13079_v8, %v5637_v32  ;;  %v6154_v46 = vld [vmem:[%s14193_s9 + $0xc8] sm:$0xff]  ;;  %v5662_v32 = vld [vmem:[%s14192_s8 + $0x170] sm:$0xff] }
 0x726   : > { %v5863_v53 = vpop.f32.mrf.mxu0  ;;  %6319 = vmatprep.subr.mxu1 %v15666_v0  ;;  %v5847_v38 = vadd.f32 %v13067_v36, %v5636_v41  ;;  %v6162_v41 = vld [vmem:[%s14193_s9 + $0x108] sm:$0xff] }
 0x727   : > { %6320 = vmatpush1.msra.mxu1 %v6065_v15  ;;  %v6088_v53 = vmax.f32 %v5862_v14, 0.0 }
 0x728   : > { %v5866_v21 = vpop.f32.mrf.mxu0  ;;  %6321 = vmatprep.subr.mxu1 %v15666_v0 }
 0x729   : > { %v5867_v54 = vadd.f32 %v5866_v21, %v5640_v3  ;;  %v5635_v21 = vld [vmem:[%s14192_s8 + $0x98] sm:$0xff]  ;;  %v6150_v3 = vld [vmem:[%s14193_s9 + $0xa8] sm:$0xff] }
 0x72a   : > { %v5868_v35 = vpop.f32.mrf.mxu0  ;;  %v5842_v8 = vadd.f32 %v13055_v58, %v5635_v21 }
 0x72b   : > { %v6089_v45 = vmax.f32 %v5867_v54, 0.0 }
 0x72c   : > { %v5871_v11 = vpop.f32.mrf.mxu0 }
 0x72d   : > { %v5872_v10 = vadd.f32 %v5871_v11, %v5641_v40  ;;  %v6087_v11 = vmax.f32 %v5857_v27, 0.0 }
 0x72e   : > { %v5873_v61 = vpop.f32.mrf.mxu0 }
 0x72f   : > { %v6090_v28 = vmax.f32 %v5872_v10, 0.0  ;;  %v5634_v61 = vld [vmem:[%s14192_s8 + $0x90] sm:$0xff]  ;;  %v6149_v10 = vld [vmem:[%s14193_s9 + $0xa0] sm:$0xff] }
 0x730   : > { %v5876_v55 = vpop.f32.mrf.mxu0  ;;  %v5837_v36 = vadd.f32 %v13043_v1, %v5634_v61 }
 0x731   : > { %v5877_v44 = vadd.f32 %v5876_v55, %v5642_v49 }
 0x732   : > { %v5878_v22 = vpop.f32.mrf.mxu0  ;;  %v6083_v1 = vmax.f32 %v5837_v36, 0.0 }
 0x733   : > { %v6091_v12 = vmax.f32 %v5877_v44, 0.0  ;;  %v6086_v22 = vmax.f32 %v5852_v9, 0.0  ;;  %v6145_v44 = vld [vmem:[%s14193_s9 + $0x80] sm:$0xff] }
 0x734   : > { %v5881_v62 = vpop.f32.mrf.mxu0 }
 0x735   : > { %v5882_v60 = vadd.f32 %v5881_v62, %v5643_v57  ;;  %v5633_v62 = vld [vmem:[%s14192_s8 + $0x88] sm:$0xff]  ;;  %v6137_v57 = vld [vmem:[%s14193_s9 + $0x40] sm:$0xff] }
 0x736   : > { %v5883_v19 = vpop.f32.mrf.mxu0  ;;  %v5832_v58 = vadd.f32 %v13032_v13, %v5633_v62  ;;  %v5659_v62 = vld [vmem:[%s14192_s8 + $0x158] sm:$0xff] }
 0x737   : > { %v6092_v31 = vmax.f32 %v5882_v60, 0.0 }
 0x738   : > { %v5886_v30 = vpop.f32.mrf.mxu0 }
 0x739   : > { %v5887_v47 = vadd.f32 %v5886_v30, %v5644_v6  ;;  %v6085_v30 = vmax.f32 %v5847_v38, 0.0  ;;  %v6133_v6 = vld [vmem:[%s14193_s9 + $0x20] sm:$0xff] }
 0x73a   : > { %v5888_v26 = vpop.f32.mrf.mxu0  ;;  %v6161_v38 = vld [vmem:[%s14193_s9 + $0x100] sm:$0xff] }
 0x73b   : > { %v6093_v4 = vmax.f32 %v5887_v47, 0.0  ;;  %v5632_v26 = vld [vmem:[%s14192_s8 + $0x80] sm:$0xff] }
 0x73c   : > { %v5891_v39 = vpop.f32.mrf.mxu0 }
 0x73d   : > { %v5892_v5 = vadd.f32 %v5891_v39, %v5645_v48 }
 0x73e   : > { %v5893_v43 = vpop.f32.mrf.mxu0 }
 0x73f   : > { %v6094_v42 = vmax.f32 %v5892_v5, 0.0  ;;  %v6084_v43 = vmax.f32 %v5842_v8, 0.0  ;;  %v6138_v5 = vld [vmem:[%s14193_s9 + $0x48] sm:$0xff] }
 0x740   : > { %v5896_v7 = vpop.f32.mrf.mxu0 }
 0x741   : > { %v5897_v18 = vadd.f32 %v5896_v7, %v5646_v20  ;;  %v5827_v20 = vadd.f32 %v13023_v56, %v5632_v26  ;;  %v6134_v56 = vld [vmem:[%s14193_s9 + $0x28] sm:$0xff] }
 0x742   : > { %v5898_v25 = vpop.f32.mrf.mxu0 }
 0x743   : > { %v6095_v16 = vmax.f32 %v5897_v18, 0.0  ;;  %v6081_v13 = vmax.f32 %v5827_v20, 0.0  ;;  %v6170_v20 = vld [vmem:[%s14193_s9 + $0x148] sm:$0xff] }
 0x744   : > { %v5901_v23 = vpop.f32.mrf.mxu0 }
 0x745   : > { %v5902_v17 = vadd.f32 %v5901_v23, %v5647_v29  ;;  %v6082_v29 = vmax.f32 %v5832_v58, 0.0  ;;  %v6129_v23 = vld [vmem:[%s14193_s9] sm:$0xff]  ;;  %v5658_v58 = vld [vmem:[%s14192_s8 + $0x150] sm:$0xff] }
 0x746   : > { %v5903_v37 = vpop.f32.mrf.mxu0 }
 0x747   : > { %v6096_v34 = vmax.f32 %v5902_v17, 0.0 }
 0x748   : > { %v13113_v2 = vpop.f32.mrf.mxu0 }
 0x749   : > { %6322 = vmatpush2.msra.mxu1 %v6096_v34 }
 0x74a   : > { %v5908_v50 = vpop.f32.mrf.mxu0  ;;  %6323 = vmatprep.subr.mxu1 %v15666_v0 }
 0x74b   : > { %6324 = vmatpush2.msra.mxu1 %v6095_v16  ;;  %v6142_v16 = vld [vmem:[%s14193_s9 + $0x68] sm:$0xff]  ;;  %v6141_v50 = vld [vmem:[%s14193_s9 + $0x60] sm:$0xff] }
 0x74c   : > { %v13122_v51 = vpop.f32.mrf.mxu0  ;;  %6325 = vmatprep.subr.mxu1 %v15666_v0 }
 0x74d   : > { %6326 = vmatpush2.msra.mxu1 %v6094_v42  ;;  %v6146_v42 = vld [vmem:[%s14193_s9 + $0x88] sm:$0xff] }
 0x74e   : > { %v5913_v59 = vpop.f32.mrf.mxu0  ;;  %6327 = vmatprep.subr.mxu1 %v15666_v0 }
 0x74f   : > { %6328 = vmatpush2.msra.mxu1 %v6093_v4 }
 0x750   : > { %v13132_v52 = vpop.f32.mrf.mxu0  ;;  %6329 = vmatprep.subr.mxu1 %v15666_v0 }
 0x751   : > { %6330 = vmatpush2.msra.mxu1 %v6092_v31 }
 0x752   : > { %v5918_v24 = vpop.f32.mrf.mxu0  ;;  %6331 = vmatprep.subr.mxu1 %v15666_v0 }
 0x753   : > { %6332 = vmatpush2.msra.mxu1 %v6091_v12  ;;  %v6153_v12 = vld [vmem:[%s14193_s9 + $0xc0] sm:$0xff]  ;;  %v6158_v24 = vld [vmem:[%s14193_s9 + $0xe8] sm:$0xff] }
 0x754   : > { %v13143_v33 = vpop.f32.mrf.mxu0  ;;  %6333 = vmatprep.subr.mxu1 %v15666_v0 }
 0x755   : > { %6334 = vmatpush2.msra.mxu1 %v6090_v28  ;;  %v6157_v28 = vld [vmem:[%s14193_s9 + $0xe0] sm:$0xff] }
 0x756   : > { %v5923_v15 = vpop.f32.mrf.mxu0  ;;  %6335 = vmatprep.subr.mxu1 %v15666_v0 }
 0x757   : > { %6336 = vmatpush2.msra.mxu1 %v6089_v45  ;;  %v5663_v45 = vld [vmem:[%s14192_s8 + $0x178] sm:$0xff]  ;;  %v5661_v15 = vld [vmem:[%s14192_s8 + $0x168] sm:$0xff] }
 0x758   : > { %v13155_v35 = vpop.f32.mrf.mxu0  ;;  %6337 = vmatprep.subr.mxu1 %v15666_v0 }
 0x759   : > { %6338 = vmatpush2.msra.mxu1 %v6088_v53 }
 0x75a   : > { %v5928_v55 = vpop.f32.mrf.mxu0  ;;  %6339 = vmatprep.subr.mxu1 %v15666_v0 }
 0x75b   : > { %6340 = vmatpush2.msra.mxu1 %v6087_v11  ;;  %v5660_v11 = vld [vmem:[%s14192_s8 + $0x160] sm:$0xff]  ;;  %v6166_v55 = vld [vmem:[%s14193_s9 + $0x128] sm:$0xff] }
 0x75c   : > { %v13167_v19 = vpop.f32.mrf.mxu0  ;;  %6341 = vmatprep.subr.mxu1 %v15666_v0 }
 0x75d   : > { %6342 = vmatpush2.msra.mxu1 %v6086_v22 }
 0x75e   : > { %v5933_v39 = vpop.f32.mrf.mxu0  ;;  %6343 = vmatprep.subr.mxu1 %v15666_v0 }
 0x75f   : > { %6344 = vmatpush2.msra.mxu1 %v6085_v30  ;;  %v6165_v39 = vld [vmem:[%s14193_s9 + $0x120] sm:$0xff] }
 0x760   : > { %v13176_v7 = vpop.f32.mrf.mxu0  ;;  %6345 = vmatprep.subr.mxu1 %v15666_v0 }
 0x761   : > { %6346 = vmatpush2.msra.mxu1 %v6084_v43 }
 0x762   : > { %v5938_v25 = vpop.f32.mrf.mxu0  ;;  %6347 = vmatprep.subr.mxu1 %v15666_v0 }
 0x763   : > { %6348 = vmatpush2.msra.mxu1 %v6083_v1 }
 0x764   : > { %v13181_v48 = vpop.f32.mrf.mxu0  ;;  %6349 = vmatprep.subr.mxu1 %v15666_v0 }
 0x765   : > { %6350 = vmatpush2.msra.mxu1 %v6082_v29  ;;  %v5657_v29 = vld [vmem:[%s14192_s8 + $0x148] sm:$0xff] }
 0x766   : > { %v5943_v18 = vpop.f32.mrf.mxu0  ;;  %6351 = vmatprep.subr.mxu1 %v15666_v0 }
 0x767   : > { %6352 = vmatpush2.msra.mxu1 %v6081_v13 }
 0x768   : > { %v13191_v17 = vpop.f32.mrf.mxu0  ;;  %6354 = vmatmul.mubr.f32.vlgmr.msra.gmra.mxu1 %v6129_v23  ;;  %6514 = vmatprep.subr.mxu1 %v15666_v0 }
 0x769   : > { %6358 = vmatprep.mubr.f32.mxu1 %v6134_v56  ;;  %v6169_v56 = vld [vmem:[%s14193_s9 + $0x140] sm:$0xff] }
 0x76a   : > { %v5948_v37 = vpop.f32.mrf.mxu0 }
 0x76c   : > { %v13200_v34 = vpop.f32.mrf.mxu0  ;;  %6359 = vmatmul.mubr.f32.gmra.mxu1 %v6133_v6  ;;  %v5656_v6 = vld [vmem:[%s14192_s8 + $0x140] sm:$0xff] }
 0x76d   : > { %6363 = vmatprep.mubr.f32.mxu1 %v6138_v5  ;;  %v6174_v5 = vld [vmem:[%s14193_s9 + $0x168] sm:$0xff] }
 0x76e   : > { %v5953_v47 = vpop.f32.mrf.mxu0 }
 0x770   : > { %v13208_v49 = vpop.f32.mrf.mxu0  ;;  %6364 = vmatmul.mubr.f32.gmra.mxu1 %v6137_v57  ;;  %v5952_v57 = vadd.f32 %v13200_v34, %v5657_v29  ;;  %v6173_v34 = vld [vmem:[%s14193_s9 + $0x160] sm:$0xff] }
 0x771   : > { %6368 = vmatprep.mubr.f32.mxu1 %v6142_v16  ;;  %v5957_v23 = vadd.f32 %v13208_v49, %v5658_v58  ;;  %v5655_v16 = vld [vmem:[%s14192_s8 + $0x138] sm:$0xff] }
 0x772   : > { %v5958_v60 = vpop.f32.mrf.mxu0 }
 0x773   : > { %v6107_v60 = vmax.f32 %v5957_v23, 0.0  ;;  %v6197_v23 = vld [vmem:[%s14193_s9 + $0x220] sm:$0xff] }
 0x774   : > { %v5961_v40 = vpop.f32.mrf.mxu0  ;;  %6369 = vmatmul.mubr.f32.gmra.mxu1 %v6141_v50  ;;  %v5947_v50 = vadd.f32 %v13191_v17, %v5656_v6  ;;  %v5942_v17 = vadd.f32 %v13181_v48, %v5655_v16  ;;  %v6177_v48 = vld [vmem:[%s14193_s9 + $0x180] sm:$0xff] }
 0x775   : > { %6373 = vmatprep.mubr.f32.mxu1 %v6146_v42  ;;  %v5962_v1 = vadd.f32 %v5961_v40, %v5659_v62  ;;  %v5654_v42 = vld [vmem:[%s14192_s8 + $0x130] sm:$0xff]  ;;  %v6205_v16 = vld [vmem:[%s14193_s9 + $0x260] sm:$0xff] }
 0x776   : > { %v5963_v4 = vpop.f32.mrf.mxu0 }
 0x777   : > { %v6108_v47 = vmax.f32 %v5962_v1, 0.0  ;;  %v6106_v4 = vmax.f32 %v5952_v57, 0.0  ;;  %v6206_v57 = vld [vmem:[%s14193_s9 + $0x268] sm:$0xff] }
 0x778   : > { %v5966_v59 = vpop.f32.mrf.mxu0  ;;  %6374 = vmatmul.mubr.f32.gmra.mxu1 %v6145_v44  ;;  %v6178_v44 = vld [vmem:[%s14193_s9 + $0x188] sm:$0xff] }
 0x779   : > { %6378 = vmatprep.mubr.f32.mxu1 %v6150_v3  ;;  %v5967_v30 = vadd.f32 %v5966_v59, %v5660_v11  ;;  %v5653_v3 = vld [vmem:[%s14192_s8 + $0x128] sm:$0xff]  ;;  %v5648_v11 = vld [vmem:[%s14192_s8 + $0x100] sm:$0xff] }
 0x77a   : > { %v5968_v31 = vpop.f32.mrf.mxu0  ;;  %v5907_v62 = vadd.f32 %v13113_v2, %v5648_v11  ;;  %v5675_v11 = vld [vmem:[%s14192_s8 + $0x1d8] sm:$0xff] }
 0x77b   : > { %v6109_v18 = vmax.f32 %v5967_v30, 0.0  ;;  %v6105_v31 = vmax.f32 %v5947_v50, 0.0 }
 0x77c   : > { %v5971_v54 = vpop.f32.mrf.mxu0  ;;  %6379 = vmatmul.mubr.f32.gmra.mxu1 %v6149_v10  ;;  %v5937_v10 = vadd.f32 %v13176_v7, %v5654_v42  ;;  %v5932_v7 = vadd.f32 %v13167_v19, %v5653_v3  ;;  %v6181_v19 = vld [vmem:[%s14193_s9 + $0x1a0] sm:$0xff]  ;;  %v6097_v2 = vmax.f32 %v5907_v62, 0.0  ;;  %v6234_v62 = vld [vmem:[%s14193_s9 + $0x348] sm:$0xff] }
 0x77d   : > { %6383 = vmatprep.mubr.f32.mxu1 %v6154_v46  ;;  %v5972_v8 = vadd.f32 %v5971_v54, %v5661_v15  ;;  %v5652_v46 = vld [vmem:[%s14192_s8 + $0x120] sm:$0xff] }
 0x77e   : > { %v5973_v63 = vpop.f32.mrf.mxu0  ;;  %v6102_v15 = vmax.f32 %v5932_v7, 0.0  ;;  %v6209_v42 = vld [vmem:[%s14193_s9 + $0x280] sm:$0xff] }
 0x77f   : > { %v6110_v25 = vmax.f32 %v5972_v8, 0.0  ;;  %v6104_v63 = vmax.f32 %v5942_v17, 0.0  ;;  %v6221_v7 = vld [vmem:[%s14193_s9 + $0x2e0] sm:$0xff] }
 0x780   : > { %v5976_v14 = vpop.f32.mrf.mxu0  ;;  %6384 = vmatmul.mubr.f32.gmra.mxu1 %v6153_v12  ;;  %v6182_v12 = vld [vmem:[%s14193_s9 + $0x1a8] sm:$0xff] }
 0x781   : > { %6388 = vmatprep.mubr.f32.mxu1 %v6158_v24  ;;  %v5977_v53 = vadd.f32 %v5976_v14, %v5662_v32  ;;  %v5651_v24 = vld [vmem:[%s14192_s8 + $0x118] sm:$0xff]  ;;  %v6103_v32 = vmax.f32 %v5937_v10, 0.0  ;;  %v6218_v10 = vld [vmem:[%s14193_s9 + $0x2c8] sm:$0xff] }
 0x782   : > { %v5978_v27 = vpop.f32.mrf.mxu0 }
 0x783   : > { %v6111_v26 = vmax.f32 %v5977_v53, 0.0  ;;  %v5650_v27 = vld [vmem:[%s14192_s8 + $0x110] sm:$0xff] }
 0x784   : > { %v5981_v9 = vpop.f32.mrf.mxu0  ;;  %6389 = vmatmul.mubr.f32.gmra.mxu1 %v6157_v28  ;;  %v5927_v28 = vadd.f32 %v13155_v35, %v5652_v46  ;;  %v5922_v35 = vadd.f32 %v13143_v33, %v5651_v24  ;;  %v6185_v33 = vld [vmem:[%s14193_s9 + $0x1c0] sm:$0xff] }
 0x785   : > { %v5982_v21 = vadd.f32 %v5981_v9, %v5663_v45  ;;  %6393 = vmatprep.mubr.f32.mxu1 %v6162_v41  ;;  %v6186_v41 = vld [vmem:[%s14193_s9 + $0x1c8] sm:$0xff] }
 0x786   : > { %v5983_v61 = vpop.f32.mrf.mxu0  ;;  %v5649_v9 = vld [vmem:[%s14192_s8 + $0x108] sm:$0xff]  ;;  %v6100_v8 = vmax.f32 %v5922_v35, 0.0  ;;  %v6225_v35 = vld [vmem:[%s14193_s9 + $0x300] sm:$0xff] }
 0x787   : > { %v6112_v22 = vmax.f32 %v5982_v21, 0.0  ;;  %v5917_v21 = vadd.f32 %v13132_v52, %v5650_v27  ;;  %v5912_v52 = vadd.f32 %v13122_v51, %v5649_v9  ;;  %v6194_v51 = vld [vmem:[%s14193_s9 + $0x208] sm:$0xff] }
 0x788   : > { %v13261_v36 = vpop.f32.mrf.mxu0  ;;  %6394 = vmatmul.mubr.f32.gmra.mxu1 %v6161_v38  ;;  %v6101_v38 = vmax.f32 %v5927_v28, 0.0  ;;  %v5679_v28 = vld [vmem:[%s14192_s8 + $0x1f8] sm:$0xff] }
 0x789   : > { %6515 = vmatpush1.msra.mxu1 %v6112_v22  ;;  %6398 = vmatprep.mubr.f32.mxu1 %v6166_v55  ;;  %v6190_v55 = vld [vmem:[%s14193_s9 + $0x1e8] sm:$0xff]  ;;  %v6099_v30 = vmax.f32 %v5917_v21, 0.0  ;;  %v6098_v58 = vmax.f32 %v5912_v52, 0.0  ;;  %v6229_v52 = vld [vmem:[%s14193_s9 + $0x320] sm:$0xff] }
 0x78a   : > { %v5988_v43 = vpop.f32.mrf.mxu0  ;;  %6516 = vmatprep.subr.mxu1 %v15666_v0  ;;  %v6230_v21 = vld [vmem:[%s14193_s9 + $0x328] sm:$0xff] }
 0x78b   : > { %6517 = vmatpush1.msra.mxu1 %v6111_v26  ;;  %v6189_v26 = vld [vmem:[%s14193_s9 + $0x1e0] sm:$0xff] }
 0x78c   : > { %v13276_v13 = vpop.f32.mrf.mxu0  ;;  %6399 = vmatmul.mubr.f32.gmra.mxu1 %v6165_v39  ;;  %6518 = vmatprep.subr.mxu1 %v15666_v0 }
 0x78d   : > { %6519 = vmatpush1.msra.mxu1 %v6110_v25  ;;  %6403 = vmatprep.mubr.f32.mxu1 %v6170_v20  ;;  %v6193_v20 = vld [vmem:[%s14193_s9 + $0x200] sm:$0xff]  ;;  %v6198_v25 = vld [vmem:[%s14193_s9 + $0x228] sm:$0xff] }
 0x78e   : > { %v5993_v37 = vpop.f32.mrf.mxu0  ;;  %6520 = vmatprep.subr.mxu1 %v15666_v0 }
 0x78f   : > { %6521 = vmatpush1.msra.mxu1 %v6109_v18  ;;  %v6201_v37 = vld [vmem:[%s14193_s9 + $0x240] sm:$0xff] }
 0x790   : > { %v13294_v49 = vpop.f32.mrf.mxu0  ;;  %6404 = vmatmul.mubr.f32.gmra.mxu1 %v6169_v56  ;;  %6522 = vmatprep.subr.mxu1 %v15666_v0  ;;  %v6202_v56 = vld [vmem:[%s14193_s9 + $0x248] sm:$0xff] }
 0x791   : > { %6523 = vmatpush1.msra.mxu1 %v6108_v47  ;;  %6408 = vmatprep.mubr.f32.mxu1 %v6174_v5 }
 0x792   : > { %v5998_v40 = vpop.f32.mrf.mxu0  ;;  %6524 = vmatprep.subr.mxu1 %v15666_v0 }
 0x793   : > { %6525 = vmatpush1.msra.mxu1 %v6107_v60  ;;  %v6210_v60 = vld [vmem:[%s14193_s9 + $0x288] sm:$0xff] }
 0x794   : > { %v13312_v59 = vpop.f32.mrf.mxu0  ;;  %6409 = vmatmul.mubr.f32.gmra.mxu1 %v6173_v34  ;;  %6526 = vmatprep.subr.mxu1 %v15666_v0 }
 0x795   : > { %6527 = vmatpush1.msra.mxu1 %v6106_v4  ;;  %6413 = vmatprep.mubr.f32.mxu1 %v6178_v44  ;;  %v6214_v44 = vld [vmem:[%s14193_s9 + $0x2a8] sm:$0xff]  ;;  %v6213_v4 = vld [vmem:[%s14193_s9 + $0x2a0] sm:$0xff] }
 0x796   : > { %v6003_v54 = vpop.f32.mrf.mxu0  ;;  %6528 = vmatprep.subr.mxu1 %v15666_v0 }
 0x797   : > { %6529 = vmatpush1.msra.mxu1 %v6105_v31  ;;  %v6222_v54 = vld [vmem:[%s14193_s9 + $0x2e8] sm:$0xff] }
 0x798   : > { %v13330_v14 = vpop.f32.mrf.mxu0  ;;  %6414 = vmatmul.mubr.f32.gmra.mxu1 %v6177_v48  ;;  %6530 = vmatprep.subr.mxu1 %v15666_v0  ;;  %v6217_v48 = vld [vmem:[%s14193_s9 + $0x2c0] sm:$0xff] }
 0x799   : > { %6531 = vmatpush1.msra.mxu1 %v6104_v63  ;;  %6418 = vmatprep.mubr.f32.mxu1 %v6182_v12  ;;  %v5678_v63 = vld [vmem:[%s14192_s8 + $0x1f0] sm:$0xff] }
 0x79a   : > { %v6008_v45 = vpop.f32.mrf.mxu0  ;;  %6532 = vmatprep.subr.mxu1 %v15666_v0 }
 0x79b   : > { %6533 = vmatpush1.msra.mxu1 %v6103_v32  ;;  %v6226_v32 = vld [vmem:[%s14193_s9 + $0x308] sm:$0xff] }
 0x79c   : > { %v13348_v53 = vpop.f32.mrf.mxu0  ;;  %6419 = vmatmul.mubr.f32.gmra.mxu1 %v6181_v19  ;;  %6534 = vmatprep.subr.mxu1 %v15666_v0  ;;  %v5677_v19 = vld [vmem:[%s14192_s8 + $0x1e8] sm:$0xff] }
 0x79d   : > { %6535 = vmatpush1.msra.mxu1 %v6102_v15  ;;  %6423 = vmatprep.mubr.f32.mxu1 %v6186_v41  ;;  %v5676_v15 = vld [vmem:[%s14192_s8 + $0x1e0] sm:$0xff] }
 0x79e   : > { %v6013_v61 = vpop.f32.mrf.mxu0  ;;  %6536 = vmatprep.subr.mxu1 %v15666_v0 }
 0x79f   : > { %6537 = vmatpush1.msra.mxu1 %v6101_v38 }
 0x7a0   : > { %v13363_v22 = vpop.f32.mrf.mxu0  ;;  %6424 = vmatmul.mubr.f32.gmra.mxu1 %v6185_v33  ;;  %6538 = vmatprep.subr.mxu1 %v15666_v0 }
 0x7a1   : > { %6539 = vmatpush1.msra.mxu1 %v6100_v8  ;;  %6428 = vmatprep.mubr.f32.mxu1 %v6190_v55  ;;  %v5674_v8 = vld [vmem:[%s14192_s8 + $0x1d0] sm:$0xff] }
 0x7a2   : > { %v6018_v39 = vpop.f32.mrf.mxu0  ;;  %6540 = vmatprep.subr.mxu1 %v15666_v0 }
 0x7a3   : > { %6541 = vmatpush1.msra.mxu1 %v6099_v30  ;;  %v5673_v39 = vld [vmem:[%s14192_s8 + $0x1c8] sm:$0xff] }
 0x7a4   : > { %v13374_v43 = vpop.f32.mrf.mxu0  ;;  %6429 = vmatmul.mubr.f32.gmra.mxu1 %v6189_v26  ;;  %6542 = vmatprep.subr.mxu1 %v15666_v0 }
 0x7a5   : > { %6543 = vmatpush1.msra.mxu1 %v6098_v58  ;;  %6433 = vmatprep.mubr.f32.mxu1 %v6194_v51 }
 0x7a6   : > { %v6023_v1 = vpop.f32.mrf.mxu0  ;;  %6544 = vmatprep.subr.mxu1 %v15666_v0 }
 0x7a7   : > { %6545 = vmatpush1.msra.mxu1 %v6097_v2  ;;  %v6233_v2 = vld [vmem:[%s14193_s9 + $0x340] sm:$0xff]  ;;  %v6238_v1 = vld [vmem:[%s14193_s9 + $0x368] sm:$0xff] }
 0x7a8   : > { %v13384_v29 = vpop.f32.mrf.mxu0  ;;  %6434 = vmatmul.mubr.f32.gmra.mxu1 %v6193_v20  ;;  %6546 = vmatprep.subr.mxu1 %v15666_v0  ;;  %v5672_v20 = vld [vmem:[%s14192_s8 + $0x1c0] sm:$0xff] }
 0x7a9   : > { %6438 = vmatprep.mubr.f32.mxu1 %v6198_v25 }
 0x7aa   : > { %v6028_v18 = vpop.f32.mrf.mxu0 }
 0x7ab   : > { %v5671_v18 = vld [vmem:[%s14192_s8 + $0x1b8] sm:$0xff] }
 0x7ac   : > { %v13393_v6 = vpop.f32.mrf.mxu0  ;;  %6439 = vmatmul.mubr.f32.gmra.mxu1 %v6197_v23 }
 0x7ad   : > { %6443 = vmatprep.mubr.f32.mxu1 %v6202_v56  ;;  %v6032_v25 = vadd.f32 %v13393_v6, %v5673_v39  ;;  %v6027_v56 = vadd.f32 %v13384_v29, %v5672_v20  ;;  %v5670_v6 = vld [vmem:[%s14192_s8 + $0x1b0] sm:$0xff]  ;;  %v6168_v39 = vld [vmem:[%s14193_s9 + $0x138] sm:$0xff] }
 0x7ae   : > { %v6033_v5 = vpop.f32.mrf.mxu0  ;;  %v6176_v20 = vld [vmem:[%s14193_s9 + $0x178] sm:$0xff] }
 0x7af   : > { %v6237_v5 = vld [vmem:[%s14193_s9 + $0x360] sm:$0xff]  ;;  %v6122_v29 = vmax.f32 %v6032_v25, 0.0  ;;  %v6180_v25 = vld [vmem:[%s14193_s9 + $0x198] sm:$0xff] }
 0x7b0   : > { %v6036_v47 = vpop.f32.mrf.mxu0  ;;  %6444 = vmatmul.mubr.f32.gmra.mxu1 %v6201_v37 }
 0x7b1   : > { %6448 = vmatprep.mubr.f32.mxu1 %v6206_v57  ;;  %v6037_v51 = vadd.f32 %v6036_v47, %v5674_v8  ;;  %v6242_v57 = vld [vmem:[%s14193_s9 + $0x388] sm:$0xff]  ;;  %v6022_v47 = vadd.f32 %v13374_v43, %v5671_v18  ;;  %v5668_v43 = vld [vmem:[%s14192_s8 + $0x1a0] sm:$0xff]  ;;  %v6160_v8 = vld [vmem:[%s14193_s9 + $0xf8] sm:$0xff] }
 0x7b2   : > { %v6038_v50 = vpop.f32.mrf.mxu0  ;;  %v6184_v18 = vld [vmem:[%s14193_s9 + $0x1b8] sm:$0xff] }
 0x7b3   : > { %v6123_v37 = vmax.f32 %v6037_v51, 0.0  ;;  %v6017_v50 = vadd.f32 %v13363_v22, %v5670_v6  ;;  %v6120_v22 = vmax.f32 %v6022_v47, 0.0  ;;  %v6167_v51 = vld [vmem:[%s14193_s9 + $0x130] sm:$0xff]  ;;  %v6192_v6 = vld [vmem:[%s14193_s9 + $0x1f8] sm:$0xff] }
 0x7b4   : > { %v6041_v34 = vpop.f32.mrf.mxu0  ;;  %6449 = vmatmul.mubr.f32.gmra.mxu1 %v6205_v16  ;;  %v5669_v16 = vld [vmem:[%s14192_s8 + $0x1a8] sm:$0xff]  ;;  %v6196_v47 = vld [vmem:[%s14193_s9 + $0x218] sm:$0xff] }
 0x7b5   : > { %6453 = vmatprep.mubr.f32.mxu1 %v6210_v60  ;;  %v6042_v30 = vadd.f32 %v6041_v34, %v5675_v11  ;;  %v6121_v60 = vmax.f32 %v6027_v56, 0.0  ;;  %v6241_v34 = vld [vmem:[%s14193_s9 + $0x380] sm:$0xff]  ;;  %v6152_v11 = vld [vmem:[%s14193_s9 + $0xb8] sm:$0xff]  ;;  %v6183_v56 = vld [vmem:[%s14193_s9 + $0x1b0] sm:$0xff] }
 0x7b6   : > { %v6043_v40 = vpop.f32.mrf.mxu0 }
 0x7b7   : > { %v6124_v23 = vmax.f32 %v6042_v30, 0.0  ;;  %v6012_v40 = vadd.f32 %v13348_v53, %v5669_v16  ;;  %v5666_v53 = vld [vmem:[%s14192_s8 + $0x190] sm:$0xff]  ;;  %v6164_v30 = vld [vmem:[%s14193_s9 + $0x118] sm:$0xff] }
 0x7b8   : > { %v6046_v17 = vpop.f32.mrf.mxu0  ;;  %6454 = vmatmul.mubr.f32.gmra.mxu1 %v6209_v42  ;;  %v6246_v42 = vld [vmem:[%s14193_s9 + $0x3a8] sm:$0xff]  ;;  %v6200_v16 = vld [vmem:[%s14193_s9 + $0x238] sm:$0xff] }
 0x7b9   : > { %6458 = vmatprep.mubr.f32.mxu1 %v6214_v44  ;;  %v6047_v61 = vadd.f32 %v6046_v17, %v5676_v15  ;;  %v5667_v44 = vld [vmem:[%s14192_s8 + $0x198] sm:$0xff]  ;;  %v6007_v17 = vadd.f32 %v13330_v14, %v5668_v43  ;;  %v6118_v14 = vmax.f32 %v6012_v40, 0.0  ;;  %v6139_v15 = vld [vmem:[%s14193_s9 + $0x50] sm:$0xff] }
 0x7ba   : > { %v6048_v3 = vpop.f32.mrf.mxu0  ;;  %v6204_v43 = vld [vmem:[%s14193_s9 + $0x258] sm:$0xff]  ;;  %v6203_v40 = vld [vmem:[%s14193_s9 + $0x250] sm:$0xff] }
 0x7bb   : > { %v6125_v58 = vmax.f32 %v6047_v61, 0.0  ;;  %v6245_v3 = vld [vmem:[%s14193_s9 + $0x3a0] sm:$0xff]  ;;  %v6151_v61 = vld [vmem:[%s14193_s9 + $0xb0] sm:$0xff] }
 0x7bc   : > { %v6051_v31 = vpop.f32.mrf.mxu0  ;;  %6459 = vmatmul.mubr.f32.gmra.mxu1 %v6213_v4  ;;  %v6119_v4 = vmax.f32 %v6017_v50, 0.0 }
 0x7bd   : > { %6463 = vmatprep.mubr.f32.mxu1 %v6218_v10  ;;  %v6052_v38 = vadd.f32 %v6051_v31, %v5677_v19  ;;  %v6250_v10 = vld [vmem:[%s14193_s9 + $0x3c8] sm:$0xff]  ;;  %v6002_v31 = vadd.f32 %v13312_v59, %v5667_v44  ;;  %v5664_v59 = vld [vmem:[%s14192_s8 + $0x180] sm:$0xff]  ;;  %v6208_v44 = vld [vmem:[%s14193_s9 + $0x278] sm:$0xff] }
 0x7be   : > { %v6053_v46 = vpop.f32.mrf.mxu0 }
 0x7bf   : > { %v6126_v26 = vmax.f32 %v6052_v38, 0.0  ;;  %v5997_v46 = vadd.f32 %v13294_v49, %v5666_v53  ;;  %v6116_v49 = vmax.f32 %v6002_v31, 0.0  ;;  %v6148_v38 = vld [vmem:[%s14193_s9 + $0x98] sm:$0xff]  ;;  %v6211_v31 = vld [vmem:[%s14193_s9 + $0x290] sm:$0xff] }
 0x7c0   : > { %v6056_v12 = vpop.f32.mrf.mxu0  ;;  %6464 = vmatmul.mubr.f32.gmra.mxu1 %v6217_v48  ;;  %v5665_v48 = vld [vmem:[%s14192_s8 + $0x188] sm:$0xff]  ;;  %v6212_v53 = vld [vmem:[%s14193_s9 + $0x298] sm:$0xff] }
 0x7c1   : > { %6468 = vmatprep.mubr.f32.mxu1 %v6222_v54  ;;  %v6057_v45 = vadd.f32 %v6056_v12, %v5678_v63  ;;  %v6117_v54 = vmax.f32 %v6007_v17, 0.0  ;;  %v6249_v12 = vld [vmem:[%s14193_s9 + $0x3c0] sm:$0xff]  ;;  %v5992_v63 = vadd.f32 %v13276_v13, %v5665_v48  ;;  %v6132_v13 = vld [vmem:[%s14193_s9 + $0x18] sm:$0xff] }
 0x7c2   : > { %v6058_v24 = vpop.f32.mrf.mxu0  ;;  %v6216_v48 = vld [vmem:[%s14193_s9 + $0x2b8] sm:$0xff] }
 0x7c3   : > { %v6127_v55 = vmax.f32 %v6057_v45, 0.0  ;;  %v5987_v24 = vadd.f32 %v13261_v36, %v5664_v59  ;;  %v6114_v19 = vmax.f32 %v5992_v63, 0.0  ;;  %v6131_v36 = vld [vmem:[%s14193_s9 + $0x10] sm:$0xff]  ;;  %v6136_v45 = vld [vmem:[%s14193_s9 + $0x38] sm:$0xff] }
 0x7c4   : > { %v6061_v27 = vpop.f32.mrf.mxu0  ;;  %6469 = vmatmul.mubr.f32.gmra.mxu1 %v6221_v7  ;;  %v6254_v7 = vld [vmem:[%s14193_s9 + $0x3e8] sm:$0xff]  ;;  %v6220_v59 = vld [vmem:[%s14193_s9 + $0x2d8] sm:$0xff]  ;;  %v6219_v63 = vld [vmem:[%s14193_s9 + $0x2d0] sm:$0xff] }
 0x7c5   : > { %v6062_v41 = vadd.f32 %v6061_v27, %v5679_v28  ;;  %6473 = vmatprep.mubr.f32.mxu1 %v6226_v32  ;;  %v6115_v28 = vmax.f32 %v5997_v46, 0.0  ;;  %v6253_v32 = vld [vmem:[%s14193_s9 + $0x3e0] sm:$0xff]  ;;  %v6113_v27 = vmax.f32 %v5987_v24, 0.0  ;;  %v6224_v24 = vld [vmem:[%s14193_s9 + $0x2f8] sm:$0xff] }
 0x7c6   : > { %v6063_v9 = vpop.f32.mrf.mxu0 }
 0x7c7   : > { %v6128_v33 = vmax.f32 %v6062_v41, 0.0  ;;  %v6135_v41 = vld [vmem:[%s14193_s9 + $0x30] sm:$0xff]  ;;  %v6144_v9 = vld [vmem:[%s14193_s9 + $0x78] sm:$0xff] }
 0x7c8   : > { %6474 = vmatmul.mubr.f32.gmra.mxu1 %v6225_v35  ;;  %v6140_v35 = vld [vmem:[%s14193_s9 + $0x58] sm:$0xff] }
 0x7c9   : > { %6547 = vmatpush2.msra.mxu1 %v6128_v33  ;;  %6478 = vmatprep.mubr.f32.mxu1 %v6230_v21  ;;  %v6143_v21 = vld [vmem:[%s14193_s9 + $0x70] sm:$0xff] }
 0x7ca   : > { %6548 = vmatprep.subr.mxu1 %v15666_v0  ;;  %v6147_v33 = vld [vmem:[%s14193_s9 + $0x90] sm:$0xff] }
 0x7cb   : > { %6549 = vmatpush2.msra.mxu1 %v6127_v55  ;;  %v6156_v55 = vld [vmem:[%s14193_s9 + $0xd8] sm:$0xff] }
 0x7cc   : > { %6479 = vmatmul.mubr.f32.gmra.mxu1 %v6229_v52  ;;  %6550 = vmatprep.subr.mxu1 %v15666_v0  ;;  %v6155_v52 = vld [vmem:[%s14193_s9 + $0xd0] sm:$0xff] }
 0x7cd   : > { %6551 = vmatpush2.msra.mxu1 %v6126_v26  ;;  %6483 = vmatprep.mubr.f32.mxu1 %v6234_v62  ;;  %v6159_v62 = vld [vmem:[%s14193_s9 + $0xf0] sm:$0xff] }
 0x7ce   : > { %6552 = vmatprep.subr.mxu1 %v15666_v0  ;;  %v6163_v26 = vld [vmem:[%s14193_s9 + $0x110] sm:$0xff] }
 0x7cf   : > { %6553 = vmatpush2.msra.mxu1 %v6125_v58  ;;  %v6172_v58 = vld [vmem:[%s14193_s9 + $0x158] sm:$0xff] }
 0x7d0   : > { %6484 = vmatmul.mubr.f32.gmra.mxu1 %v6233_v2  ;;  %6554 = vmatprep.subr.mxu1 %v15666_v0  ;;  %v6171_v2 = vld [vmem:[%s14193_s9 + $0x150] sm:$0xff] }
 0x7d1   : > { %6555 = vmatpush2.msra.mxu1 %v6124_v23  ;;  %6488 = vmatprep.mubr.f32.mxu1 %v6238_v1  ;;  %v6175_v1 = vld [vmem:[%s14193_s9 + $0x170] sm:$0xff] }
 0x7d2   : > { %6556 = vmatprep.subr.mxu1 %v15666_v0  ;;  %v6179_v23 = vld [vmem:[%s14193_s9 + $0x190] sm:$0xff] }
 0x7d3   : > { %6557 = vmatpush2.msra.mxu1 %v6123_v37  ;;  %v6188_v37 = vld [vmem:[%s14193_s9 + $0x1d8] sm:$0xff] }
 0x7d4   : > { %6489 = vmatmul.mubr.f32.gmra.mxu1 %v6237_v5  ;;  %6558 = vmatprep.subr.mxu1 %v15666_v0  ;;  %v6187_v5 = vld [vmem:[%s14193_s9 + $0x1d0] sm:$0xff] }
 0x7d5   : > { %6559 = vmatpush2.msra.mxu1 %v6122_v29  ;;  %6493 = vmatprep.mubr.f32.mxu1 %v6242_v57  ;;  %v6191_v57 = vld [vmem:[%s14193_s9 + $0x1f0] sm:$0xff] }
 0x7d6   : > { %6560 = vmatprep.subr.mxu1 %v15666_v0  ;;  %v6195_v29 = vld [vmem:[%s14193_s9 + $0x210] sm:$0xff] }
 0x7d7   : > { %6561 = vmatpush2.msra.mxu1 %v6121_v60  ;;  %v6199_v60 = vld [vmem:[%s14193_s9 + $0x230] sm:$0xff] }
 0x7d8   : > { %6494 = vmatmul.mubr.f32.gmra.mxu1 %v6241_v34  ;;  %6562 = vmatprep.subr.mxu1 %v15666_v0 }
 0x7d9   : > { %6563 = vmatpush2.msra.mxu1 %v6120_v22  ;;  %6498 = vmatprep.mubr.f32.mxu1 %v6246_v42 }
 0x7da   : > { %6564 = vmatprep.subr.mxu1 %v15666_v0 }
 0x7db   : > { %6565 = vmatpush2.msra.mxu1 %v6119_v4  ;;  %v6207_v4 = vld [vmem:[%s14193_s9 + $0x270] sm:$0xff] }
 0x7dc   : > { %6499 = vmatmul.mubr.f32.gmra.mxu1 %v6245_v3  ;;  %6566 = vmatprep.subr.mxu1 %v15666_v0 }
 0x7dd   : > { %6567 = vmatpush2.msra.mxu1 %v6118_v14  ;;  %6503 = vmatprep.mubr.f32.mxu1 %v6250_v10 }
 0x7de   : > { %6568 = vmatprep.subr.mxu1 %v15666_v0 }
 0x7df   : > { %6569 = vmatpush2.msra.mxu1 %v6117_v54  ;;  %v6215_v54 = vld [vmem:[%s14193_s9 + $0x2b0] sm:$0xff] }
 0x7e0   : > { %6504 = vmatmul.mubr.f32.gmra.mxu1 %v6249_v12  ;;  %6570 = vmatprep.subr.mxu1 %v15666_v0 }
 0x7e1   : > { %6571 = vmatpush2.msra.mxu1 %v6116_v49  ;;  %6508 = vmatprep.mubr.f32.mxu1 %v6254_v7 }
 0x7e2   : > { %6572 = vmatprep.subr.mxu1 %v15666_v0 }
 0x7e3   : > { %6573 = vmatpush2.msra.mxu1 %v6115_v28 }
 0x7e4   : > { %6509 = vmatmul.mubr.f32.gmra.mxu1 %v6253_v32  ;;  %6574 = vmatprep.subr.mxu1 %v15666_v0  ;;  %v6223_v32 = vld [vmem:[%s14193_s9 + $0x2f0] sm:$0xff] }
 0x7e5   : > { %6575 = vmatpush2.msra.mxu1 %v6114_v19  ;;  %6578 = vmatprep.mubr.f32.mxu1 %v6132_v13  ;;  %v6228_v19 = vld [vmem:[%s14193_s9 + $0x318] sm:$0xff] }
 0x7e6   : > { %6576 = vmatprep.subr.mxu1 %v15666_v0 }
 0x7e7   : > { %6577 = vmatpush2.msra.mxu1 %v6113_v27 }
 0x7e8   : > { %6579 = vmatmul.mubr.f32.vlgmr.msra.gmra.mxu1 %v6131_v36  ;;  %v6227_v36 = vld [vmem:[%s14193_s9 + $0x310] sm:$0xff] }
 0x7e9   : > { %6583 = vmatprep.mubr.f32.mxu1 %v6136_v45 }
 0x7ec   : > { %6584 = vmatmul.mubr.f32.gmra.mxu1 %v6135_v41  ;;  %v6232_v41 = vld [vmem:[%s14193_s9 + $0x338] sm:$0xff] }
 0x7ed   : > { %6588 = vmatprep.mubr.f32.mxu1 %v6140_v35 }
 0x7f0   : > { %6589 = vmatmul.mubr.f32.gmra.mxu1 %v6139_v15  ;;  %v6231_v15 = vld [vmem:[%s14193_s9 + $0x330] sm:$0xff] }
 0x7f1   : > { %6593 = vmatprep.mubr.f32.mxu1 %v6144_v9 }
 0x7f4   : > { %6594 = vmatmul.mubr.f32.gmra.mxu1 %v6143_v21  ;;  %v6236_v21 = vld [vmem:[%s14193_s9 + $0x358] sm:$0xff] }
 0x7f5   : > { %6598 = vmatprep.mubr.f32.mxu1 %v6148_v38 }
 0x7f8   : > { %6599 = vmatmul.mubr.f32.gmra.mxu1 %v6147_v33  ;;  %v6235_v33 = vld [vmem:[%s14193_s9 + $0x350] sm:$0xff] }
 0x7f9   : > { %6603 = vmatprep.mubr.f32.mxu1 %v6152_v11 }
 0x7fc   : > { %6604 = vmatmul.mubr.f32.gmra.mxu1 %v6151_v61  ;;  %v6240_v61 = vld [vmem:[%s14193_s9 + $0x378] sm:$0xff] }
 0x7fd   : > { %6608 = vmatprep.mubr.f32.mxu1 %v6156_v55 }
 0x800   : > { %6609 = vmatmul.mubr.f32.gmra.mxu1 %v6155_v52  ;;  %v6239_v52 = vld [vmem:[%s14193_s9 + $0x370] sm:$0xff] }
 0x801   : > { %6613 = vmatprep.mubr.f32.mxu1 %v6160_v8 }
 0x804   : > { %6614 = vmatmul.mubr.f32.gmra.mxu1 %v6159_v62  ;;  %v6244_v62 = vld [vmem:[%s14193_s9 + $0x398] sm:$0xff] }
 0x805   : > { %6618 = vmatprep.mubr.f32.mxu1 %v6164_v30 }
 0x808   : > { %6619 = vmatmul.mubr.f32.gmra.mxu1 %v6163_v26  ;;  %v6243_v26 = vld [vmem:[%s14193_s9 + $0x390] sm:$0xff] }
 0x809   : > { %6623 = vmatprep.mubr.f32.mxu1 %v6168_v39 }
 0x80c   : > { %6624 = vmatmul.mubr.f32.gmra.mxu1 %v6167_v51  ;;  %v6248_v51 = vld [vmem:[%s14193_s9 + $0x3b8] sm:$0xff] }
 0x80d   : > { %6628 = vmatprep.mubr.f32.mxu1 %v6172_v58 }
 0x810   : > { %6629 = vmatmul.mubr.f32.gmra.mxu1 %v6171_v2  ;;  %v6247_v2 = vld [vmem:[%s14193_s9 + $0x3b0] sm:$0xff] }
 0x811   : > { %6633 = vmatprep.mubr.f32.mxu1 %v6176_v20 }
 0x814   : > { %6634 = vmatmul.mubr.f32.gmra.mxu1 %v6175_v1  ;;  %v6252_v1 = vld [vmem:[%s14193_s9 + $0x3d8] sm:$0xff] }
 0x815   : > { %6638 = vmatprep.mubr.f32.mxu1 %v6180_v25 }
 0x818   : > { %6639 = vmatmul.mubr.f32.gmra.mxu1 %v6179_v23  ;;  %v6251_v23 = vld [vmem:[%s14193_s9 + $0x3d0] sm:$0xff] }
 0x819   : > { %6643 = vmatprep.mubr.f32.mxu1 %v6184_v18 }
 0x81c   : > { %6644 = vmatmul.mubr.f32.gmra.mxu1 %v6183_v56  ;;  %v6256_v56 = vld [vmem:[%s14193_s9 + $0x3f8] sm:$0xff] }
 0x81d   : > { %6648 = vmatprep.mubr.f32.mxu1 %v6188_v37 }
 0x820   : > { %6649 = vmatmul.mubr.f32.gmra.mxu1 %v6187_v5  ;;  %v6255_v5 = vld [vmem:[%s14193_s9 + $0x3f0] sm:$0xff] }
 0x821   : > { %6653 = vmatprep.mubr.f32.mxu1 %v6192_v6 }
 0x824   : > { %6654 = vmatmul.mubr.f32.gmra.mxu1 %v6191_v57 }
 0x825   : > { %6658 = vmatprep.mubr.f32.mxu1 %v6196_v47 }
 0x828   : > { %v13654_v50 = vpop.f32.mrf.mxu1  ;;  %6659 = vmatmul.mubr.f32.gmra.mxu1 %v6195_v29 }
 0x829   : > { %6663 = vmatprep.mubr.f32.mxu1 %v6200_v16 }
 0x82a   : > { %v6357_v34 = vpop.f32.mrf.mxu1 }
 0x82c   : > { %v13662_v42 = vpop.f32.mrf.mxu1  ;;  %6664 = vmatmul.mubr.f32.gmra.mxu1 %v6199_v60 }
 0x82d   : > { %6668 = vmatprep.mubr.f32.mxu1 %v6204_v43 }
 0x82e   : > { %v6362_v22 = vpop.f32.mrf.mxu1 }
 0x830   : > { %v13670_v17 = vpop.f32.mrf.mxu1  ;;  %6669 = vmatmul.mubr.f32.gmra.mxu1 %v6203_v40 }
 0x831   : > { %6673 = vmatprep.mubr.f32.mxu1 %v6208_v44 }
 0x832   : > { %v6367_v3 = vpop.f32.mrf.mxu1 }
 0x834   : > { %v13678_v10 = vpop.f32.mrf.mxu1  ;;  %6674 = vmatmul.mubr.f32.gmra.mxu1 %v6207_v4 }
 0x835   : > { %6678 = vmatprep.mubr.f32.mxu1 %v6212_v53 }
 0x836   : > { %v6372_v14 = vpop.f32.mrf.mxu1 }
 0x838   : > { %v13686_v46 = vpop.f32.mrf.mxu1  ;;  %6679 = vmatmul.mubr.f32.gmra.mxu1 %v6211_v31 }
 0x839   : > { %6683 = vmatprep.mubr.f32.mxu1 %v6216_v48 }
 0x83a   : > { %v6377_v12 = vpop.f32.mrf.mxu1 }
 0x83c   : > { %v13694_v7 = vpop.f32.mrf.mxu1  ;;  %6684 = vmatmul.mubr.f32.gmra.mxu1 %v6215_v54 }
 0x83d   : > { %6688 = vmatprep.mubr.f32.mxu1 %v6220_v59 }
 0x83e   : > { %v6382_v49 = vpop.f32.mrf.mxu1 }
 0x840   : > { %v13702_v28 = vpop.f32.mrf.mxu1  ;;  %6689 = vmatmul.mubr.f32.gmra.mxu1 %v6219_v63 }
 0x841   : > { %6693 = vmatprep.mubr.f32.mxu1 %v6224_v24 }
 0x842   : > { %v6387_v13 = vpop.f32.mrf.mxu1 }
 0x844   : > { %v13710_v27 = vpop.f32.mrf.mxu1  ;;  %6694 = vmatmul.mubr.f32.gmra.mxu1 %v6223_v32 }
 0x845   : > { %6698 = vmatprep.mubr.f32.mxu1 %v6228_v19 }
 0x846   : > { %v6392_v45 = vpop.f32.mrf.mxu1 }
 0x848   : > { %v13718_v35 = vpop.f32.mrf.mxu1  ;;  %6699 = vmatmul.mubr.f32.gmra.mxu1 %v6227_v36 }
 0x849   : > { %6703 = vmatprep.mubr.f32.mxu1 %v6232_v41 }
 0x84a   : > { %v6397_v9 = vpop.f32.mrf.mxu1 }
 0x84c   : > { %v13726_v38 = vpop.f32.mrf.mxu1  ;;  %6704 = vmatmul.mubr.f32.gmra.mxu1 %v6231_v15 }
 0x84d   : > { %6708 = vmatprep.mubr.f32.mxu1 %v6236_v21 }
 0x84e   : > { %v6402_v11 = vpop.f32.mrf.mxu1 }
 0x84f   : > { %v6257_v11 = vld [vmem:[%s14194_s10] sm:$0xff] }
 0x850   : > { %v13734_v55 = vpop.f32.mrf.mxu1  ;;  %6709 = vmatmul.mubr.f32.gmra.mxu1 %v6235_v33 }
 0x851   : > { %6713 = vmatprep.mubr.f32.mxu1 %v6240_v61 }
 0x852   : > { %v6407_v8 = vpop.f32.mrf.mxu1 }
 0x853   : > { %v6356_v8 = vadd.f32 %v13654_v50, %v6257_v11 }
 0x854   : > { %v13742_v30 = vpop.f32.mrf.mxu1  ;;  %6714 = vmatmul.mubr.f32.gmra.mxu1 %v6239_v52 }
 0x855   : > { %6718 = vmatprep.mubr.f32.mxu1 %v6244_v62  ;;  %v6258_v62 = vld [vmem:[%s14194_s10 + $0x8] sm:$0xff] }
 0x856   : > { %v6412_v39 = vpop.f32.mrf.mxu1 }
 0x858   : > { %v13750_v58 = vpop.f32.mrf.mxu1  ;;  %6719 = vmatmul.mubr.f32.gmra.mxu1 %v6243_v26 }
 0x859   : > { %6723 = vmatprep.mubr.f32.mxu1 %v6248_v51 }
 0x85a   : > { %v6417_v20 = vpop.f32.mrf.mxu1 }
 0x85b   : > { %v6259_v20 = vld [vmem:[%s14194_s10 + $0x10] sm:$0xff] }
 0x85c   : > { %v13758_v25 = vpop.f32.mrf.mxu1  ;;  %6724 = vmatmul.mubr.f32.gmra.mxu1 %v6247_v2  ;;  %v6361_v2 = vadd.f32 %v13662_v42, %v6258_v62  ;;  %v6366_v50 = vadd.f32 %v13670_v17, %v6259_v20 }
 0x85d   : > { %6728 = vmatprep.mubr.f32.mxu1 %v6252_v1 }
 0x85e   : > { %v6422_v18 = vpop.f32.mrf.mxu1 }
 0x860   : > { %v13766_v37 = vpop.f32.mrf.mxu1  ;;  %6729 = vmatmul.mubr.f32.gmra.mxu1 %v6251_v23 }
 0x861   : > { %6733 = vmatprep.mubr.f32.mxu1 %v6256_v56  ;;  %v6260_v56 = vld [vmem:[%s14194_s10 + $0x18] sm:$0xff] }
 0x862   : > { %v6427_v6 = vpop.f32.mrf.mxu1  ;;  %v6371_v42 = vadd.f32 %v13678_v10, %v6260_v56 }
 0x864   : > { %v13771_v57 = vpop.f32.mrf.mxu1  ;;  %6734 = vmatmul.mubr.f32.gmra.mxu1 %v6255_v5 }
 0x866   : > { %v6432_v47 = vpop.f32.mrf.mxu1 }
 0x868   : > { %v13773_v29 = vpop.f32.mrf.mxu1 }
 0x86a   : > { %v6437_v16 = vpop.f32.mrf.mxu1 }
 0x86b   : > { %v6261_v16 = vld [vmem:[%s14194_s10 + $0x20] sm:$0xff] }
 0x86c   : > { %v13775_v60 = vpop.f32.mrf.mxu1  ;;  %v6376_v17 = vadd.f32 %v13686_v46, %v6261_v16 }
 0x86e   : > { %v6442_v34 = vpop.f32.mrf.mxu1 }
 0x870   : > { %v13777_v43 = vpop.f32.mrf.mxu1 }
 0x872   : > { %v6447_v40 = vpop.f32.mrf.mxu1 }
 0x874   : > { %v13779_v22 = vpop.f32.mrf.mxu1 }
 0x876   : > { %v6452_v44 = vpop.f32.mrf.mxu1 }
 0x878   : > { %v13781_v4 = vpop.f32.mrf.mxu1 }
 0x87a   : > { %v6457_v3 = vpop.f32.mrf.mxu1 }
 0x87c   : > { %v13783_v53 = vpop.f32.mrf.mxu1 }
 0x87e   : > { %v6462_v31 = vpop.f32.mrf.mxu1 }
 0x880   : > { %v13785_v14 = vpop.f32.mrf.mxu1 }
 0x882   : > { %v6467_v48 = vpop.f32.mrf.mxu1 }
 0x884   : > { %v13787_v54 = vpop.f32.mrf.mxu1 }
 0x886   : > { %v6472_v12 = vpop.f32.mrf.mxu1 }
 0x888   : > { %v13789_v59 = vpop.f32.mrf.mxu1 }
 0x88a   : > { %v6477_v63 = vpop.f32.mrf.mxu1 }
 0x88c   : > { %v13791_v49 = vpop.f32.mrf.mxu1 }
 0x88e   : > { %v6482_v24 = vpop.f32.mrf.mxu1 }
 0x890   : > { %v13793_v32 = vpop.f32.mrf.mxu1 }
 0x892   : > { %v6487_v13 = vpop.f32.mrf.mxu1 }
 0x894   : > { %v13795_v19 = vpop.f32.mrf.mxu1 }
 0x896   : > { %v6492_v36 = vpop.f32.mrf.mxu1 }
 0x898   : > { %v13797_v45 = vpop.f32.mrf.mxu1 }
 0x89a   : > { %v6497_v41 = vpop.f32.mrf.mxu1 }
 0x89b   : > { %v6772_v41 = vld [vmem:[#allocation4 + $0x8] sm:$0xff] }
 0x89c   : > { %v13799_v15 = vpop.f32.mrf.mxu1  ;;  %6931 = vmatprep.mubr.f32.mxu0 %v6772_v41 }
 0x89e   : > { %v6502_v9 = vpop.f32.mrf.mxu1 }
 0x8a0   : > { %v13801_v21 = vpop.f32.mrf.mxu1 }
 0x8a2   : > { %v6507_v33 = vpop.f32.mrf.mxu1 }
 0x8a4   : > { %v13806_v61 = vpop.f32.mrf.mxu1 }
 0x8a6   : > { %v6512_v52 = vpop.f32.mrf.mxu1 }
 0x8a8   : > { %v6580_v26 = vpop.f32.mrf.mxu1 }
 0x8a9   : > { %v13812_v39 = vadd.f32 %v6580_v26, %v6356_v8 }
 0x8aa   : > { %v6582_v51 = vpop.f32.mrf.mxu1 }
 0x8ac   : > { %v6585_v1 = vpop.f32.mrf.mxu1 }
 0x8ad   : > { %v13818_v23 = vadd.f32 %v6585_v1, %v6361_v2 }
 0x8ae   : > { %v6587_v18 = vpop.f32.mrf.mxu1 }
 0x8af   : > { %v6271_v18 = vld [vmem:[%s14194_s10 + $0x70] sm:$0xff] }
 0x8b0   : > { %v6590_v5 = vpop.f32.mrf.mxu1 }
 0x8b1   : > { %v13824_v6 = vadd.f32 %v6590_v5, %v6366_v50  ;;  %v6272_v50 = vld [vmem:[%s14194_s10 + $0x78] sm:$0xff]  ;;  %v6270_v5 = vld [vmem:[%s14194_s10 + $0x68] sm:$0xff] }
 0x8b2   : > { %v6592_v47 = vpop.f32.mrf.mxu1  ;;  %v6431_v16 = vadd.f32 %v13771_v57, %v6272_v50 }
 0x8b4   : > { %v6595_v34 = vpop.f32.mrf.mxu1 }
 0x8b5   : > { %v13830_v40 = vadd.f32 %v6595_v34, %v6371_v42  ;;  %v6426_v42 = vadd.f32 %v13766_v37, %v6271_v18  ;;  %v6269_v34 = vld [vmem:[%s14194_s10 + $0x60] sm:$0xff] }
 0x8b6   : > { %v6597_v44 = vpop.f32.mrf.mxu1  ;;  %v6416_v57 = vadd.f32 %v13750_v58, %v6269_v34  ;;  %v6266_v58 = vld [vmem:[%s14194_s10 + $0x48] sm:$0xff] }
 0x8b7   : > { %v6273_v44 = vld [vmem:[%s14194_s10 + $0x80] sm:$0xff] }
 0x8b8   : > { %v6600_v3 = vpop.f32.mrf.mxu1 }
 0x8b9   : > { %v13833_v31 = vadd.f32 %v6600_v3, %v6376_v17  ;;  %v6421_v3 = vadd.f32 %v13758_v25, %v6270_v5  ;;  %v6274_v25 = vld [vmem:[%s14194_s10 + $0x88] sm:$0xff] }
 0x8ba   : > { %v6602_v48 = vpop.f32.mrf.mxu1  ;;  %v6441_v50 = vadd.f32 %v13775_v60, %v6274_v25  ;;  %v6264_v60 = vld [vmem:[%s14194_s10 + $0x38] sm:$0xff] }
 0x8bc   : > { %v13835_v12 = vpop.f32.mrf.mxu1 }
 0x8be   : > { %v6607_v63 = vpop.f32.mrf.mxu1 }
 0x8c0   : > { %v13837_v24 = vpop.f32.mrf.mxu1 }
 0x8c2   : > { %v6612_v10 = vpop.f32.mrf.mxu1 }
 0x8c3   : > { %v6268_v10 = vld [vmem:[%s14194_s10 + $0x58] sm:$0xff] }
 0x8c4   : > { %v13839_v13 = vpop.f32.mrf.mxu1 }
 0x8c6   : > { %v6617_v36 = vpop.f32.mrf.mxu1 }
 0x8c7   : > { %v6436_v36 = vadd.f32 %v13773_v29, %v6273_v44 }
 0x8c8   : > { %v13841_v9 = vpop.f32.mrf.mxu1 }
 0x8ca   : > { %v6622_v33 = vpop.f32.mrf.mxu1 }
 0x8cc   : > { %v6625_v11 = vpop.f32.mrf.mxu1 }
 0x8ce   : > { %v6627_v46 = vpop.f32.mrf.mxu1 }
 0x8cf   : > { %v6267_v46 = vld [vmem:[%s14194_s10 + $0x50] sm:$0xff] }
 0x8d0   : > { %v6630_v52 = vpop.f32.mrf.mxu1 }
 0x8d2   : > { %v6632_v8 = vpop.f32.mrf.mxu1 }
 0x8d4   : > { %v6635_v62 = vpop.f32.mrf.mxu1 }
 0x8d6   : > { %v6637_v26 = vpop.f32.mrf.mxu1 }
 0x8d7   : > { %v6411_v26 = vadd.f32 %v13742_v30, %v6268_v10  ;;  %v6265_v30 = vld [vmem:[%s14194_s10 + $0x40] sm:$0xff]  ;;  %v6391_v10 = vadd.f32 %v13710_v27, %v6264_v60 }
 0x8d8   : > { %v6640_v51 = vpop.f32.mrf.mxu1  ;;  %v6396_v44 = vadd.f32 %v13718_v35, %v6265_v30  ;;  %v6741_v30 = vmax.f32 %v13824_v6, 0.0 }
 0x8da   : > { %v6642_v2 = vpop.f32.mrf.mxu1  ;;  %v6621_v35 = vadd.f32 %v13841_v9, %v6396_v44  ;;  %v6277_v9 = vld [vmem:[%s14194_s10 + $0xa0] sm:$0xff] }
 0x8db   : > { %v6641_v2 = vadd.f32 %v6640_v51, %v6416_v57  ;;  %v6275_v51 = vld [vmem:[%s14194_s10 + $0x90] sm:$0xff] }
 0x8dc   : > { %v6645_v20 = vpop.f32.mrf.mxu1 }
 0x8dd   : > { %v6646_v41 = vadd.f32 %v6645_v20, %v6421_v3  ;;  %v6406_v20 = vadd.f32 %v13734_v55, %v6267_v46  ;;  %v6751_v55 = vmax.f32 %v6641_v2, 0.0 }
 0x8de   : > { %v6647_v1 = vpop.f32.mrf.mxu1 }
 0x8df   : > { %v6752_v5 = vmax.f32 %v6646_v41, 0.0 }
 0x8e0   : > { %v6650_v56 = vpop.f32.mrf.mxu1 }
 0x8e1   : > { %v6651_v48 = vadd.f32 %v6650_v56, %v6426_v42  ;;  %v6636_v56 = vadd.f32 %v6635_v62, %v6411_v26  ;;  %v6401_v42 = vadd.f32 %v13726_v38, %v6266_v58  ;;  %v6263_v38 = vld [vmem:[%s14194_s10 + $0x30] sm:$0xff]  ;;  %v6747_v26 = vmax.f32 %v6621_v35, 0.0  ;;  %v6286_v35 = vld [vmem:[%s14194_s10 + $0xe8] sm:$0xff] }
 0x8e2   : > { %v6652_v47 = vpop.f32.mrf.mxu1 }
 0x8e3   : > { %v6753_v1 = vmax.f32 %v6651_v48, 0.0  ;;  %v6626_v3 = vadd.f32 %v6625_v11, %v6401_v42  ;;  %v6750_v48 = vmax.f32 %v6636_v56, 0.0  ;;  %v6262_v11 = vld [vmem:[%s14194_s10 + $0x28] sm:$0xff]  ;;  %v6742_v56 = vmax.f32 %v13830_v40, 0.0 }
 0x8e4   : > { %v6655_v17 = vpop.f32.mrf.mxu1  ;;  %v6381_v25 = vadd.f32 %v13694_v7, %v6262_v11  ;;  %v6739_v40 = vmax.f32 %v13812_v39, 0.0  ;;  %v6287_v39 = vld [vmem:[%s14194_s10 + $0xf0] sm:$0xff] }
 0x8e5   : > { %v6656_v63 = vadd.f32 %v6655_v17, %v6431_v16  ;;  %v6631_v16 = vadd.f32 %v6630_v52, %v6406_v20  ;;  %v6446_v17 = vadd.f32 %v13777_v43, %v6275_v51  ;;  %v6276_v52 = vld [vmem:[%s14194_s10 + $0x98] sm:$0xff]  ;;  %v6748_v27 = vmax.f32 %v6626_v3, 0.0 }
 0x8e6   : > { %v6657_v37 = vpop.f32.mrf.mxu1  ;;  %v6451_v41 = vadd.f32 %v13779_v22, %v6276_v52  ;;  %v6456_v22 = vadd.f32 %v13781_v4, %v6277_v9  ;;  %v6743_v4 = vmax.f32 %v13833_v31, 0.0  ;;  %v6506_v11 = vadd.f32 %v13801_v21, %v6287_v39  ;;  %v6784_v39 = vld [vmem:[#allocation4 + $0x68] sm:$0xff] }
 0x8e7   : > { %v6754_v33 = vmax.f32 %v6656_v63, 0.0  ;;  %v6749_v37 = vmax.f32 %v6631_v16, 0.0 }
 0x8e8   : > { %v6660_v8 = vpop.f32.mrf.mxu1 }
 0x8e9   : > { %v13873_v18 = vadd.f32 %v6660_v8, %v6436_v36  ;;  %6868 = vmatpush1.msra.mxu0 %v6754_v33  ;;  %v6386_v36 = vadd.f32 %v13702_v28, %v6263_v38  ;;  %v6616_v33 = vadd.f32 %v13839_v13, %v6391_v10  ;;  %v6606_v13 = vadd.f32 %v13835_v12, %v6381_v25 }
 0x8ea   : > { %v6662_v29 = vpop.f32.mrf.mxu1  ;;  %6869 = vmatprep.subr.mxu0 %v15666_v0 }
 0x8eb   : > { %6870 = vmatpush1.msra.mxu0 %v6753_v1  ;;  %v6611_v8 = vadd.f32 %v13837_v24, %v6386_v36  ;;  %v6746_v1 = vmax.f32 %v6616_v33, 0.0  ;;  %v6744_v20 = vmax.f32 %v6606_v13, 0.0  ;;  %v6285_v36 = vld [vmem:[%s14194_s10 + $0xe0] sm:$0xff]  ;;  %v6501_v33 = vadd.f32 %v13799_v15, %v6286_v35  ;;  %v6282_v15 = vld [vmem:[%s14194_s10 + $0xc8] sm:$0xff]  ;;  %v6785_v35 = vld [vmem:[#allocation4 + $0x70] sm:$0xff] }
 0x8ec   : > { %v6665_v47 = vpop.f32.mrf.mxu1  ;;  %6871 = vmatprep.subr.mxu0 %v15666_v0 }
 0x8ed   : > { %v13889_v34 = vadd.f32 %v6665_v47, %v6441_v50  ;;  %6872 = vmatpush1.msra.mxu0 %v6752_v5  ;;  %v6745_v29 = vmax.f32 %v6611_v8, 0.0  ;;  %v6740_v47 = vmax.f32 %v13818_v23, 0.0  ;;  %v6496_v8 = vadd.f32 %v13797_v45, %v6285_v36  ;;  %v6789_v36 = vld [vmem:[#allocation4 + $0x90] sm:$0xff] }
 0x8ee   : > { %v6667_v62 = vpop.f32.mrf.mxu1  ;;  %6873 = vmatprep.subr.mxu0 %v15666_v0 }
 0x8ef   : > { %6874 = vmatpush1.msra.mxu0 %v6751_v55 }
 0x8f0   : > { %v6670_v63 = vpop.f32.mrf.mxu1  ;;  %6875 = vmatprep.subr.mxu0 %v15666_v0 }
 0x8f1   : > { %v13906_v43 = vadd.f32 %v6670_v63, %v6446_v17  ;;  %6876 = vmatpush1.msra.mxu0 %v6750_v48  ;;  %v6288_v63 = vld [vmem:[%s14194_s10 + $0xf8] sm:$0xff] }
 0x8f2   : > { %v6672_v57 = vpop.f32.mrf.mxu1  ;;  %6877 = vmatprep.subr.mxu0 %v15666_v0 }
 0x8f3   : > { %6878 = vmatpush1.msra.mxu0 %v6749_v37  ;;  %v6511_v57 = vadd.f32 %v13806_v61, %v6288_v63  ;;  %v6283_v61 = vld [vmem:[%s14194_s10 + $0xd0] sm:$0xff]  ;;  %v6783_v63 = vld [vmem:[#allocation4 + $0x60] sm:$0xff] }
 0x8f4   : > { %v6675_v46 = vpop.f32.mrf.mxu1  ;;  %6879 = vmatprep.subr.mxu0 %v15666_v0 }
 0x8f5   : > { %v13921_v2 = vadd.f32 %v6675_v46, %v6451_v41  ;;  %6880 = vmatpush1.msra.mxu0 %v6748_v27  ;;  %v6284_v46 = vld [vmem:[%s14194_s10 + $0xd8] sm:$0xff] }
 0x8f6   : > { %v6677_v28 = vpop.f32.mrf.mxu1  ;;  %6881 = vmatprep.subr.mxu0 %v15666_v0 }
 0x8f7   : > { %6882 = vmatpush1.msra.mxu0 %v6747_v26  ;;  %v6491_v28 = vadd.f32 %v13795_v19, %v6284_v46  ;;  %v6481_v19 = vadd.f32 %v13791_v49, %v6282_v15  ;;  %v6796_v46 = vld [vmem:[#allocation4 + $0xc8] sm:$0xff]  ;;  %v6803_v15 = vld [vmem:[#allocation4 + $0x100] sm:$0xff] }
 0x8f8   : > { %v6680_v58 = vpop.f32.mrf.mxu1  ;;  %6883 = vmatprep.subr.mxu0 %v15666_v0 }
 0x8f9   : > { %v13927_v7 = vadd.f32 %v6680_v58, %v6456_v22  ;;  %6884 = vmatpush1.msra.mxu0 %v6746_v1  ;;  %v6486_v1 = vadd.f32 %v13793_v32, %v6283_v61  ;;  %v6799_v61 = vld [vmem:[#allocation4 + $0xe0] sm:$0xff] }
 0x8fa   : > { %v6682_v24 = vpop.f32.mrf.mxu1  ;;  %6885 = vmatprep.subr.mxu0 %v15666_v0 }
 0x8fb   : > { %6886 = vmatpush1.msra.mxu0 %v6745_v29  ;;  %v6281_v29 = vld [vmem:[%s14194_s10 + $0xc0] sm:$0xff] }
 0x8fc   : > { %v13930_v50 = vpop.f32.mrf.mxu1  ;;  %6887 = vmatprep.subr.mxu0 %v15666_v0  ;;  %v6476_v32 = vadd.f32 %v13789_v59, %v6281_v29  ;;  %v6807_v29 = vld [vmem:[#allocation4 + $0x120] sm:$0xff] }
 0x8fd   : > { %6888 = vmatpush1.msra.mxu0 %v6744_v20 }
 0x8fe   : > { %v6687_v12 = vpop.f32.mrf.mxu1  ;;  %6889 = vmatprep.subr.mxu0 %v15666_v0 }
 0x8ff   : > { %6890 = vmatpush1.msra.mxu0 %v6743_v4  ;;  %v6280_v4 = vld [vmem:[%s14194_s10 + $0xb8] sm:$0xff] }
 0x900   : > { %v13936_v5 = vpop.f32.mrf.mxu1  ;;  %6891 = vmatprep.subr.mxu0 %v15666_v0  ;;  %v6471_v49 = vadd.f32 %v13787_v54, %v6280_v4  ;;  %v6811_v4 = vld [vmem:[#allocation4 + $0x140] sm:$0xff] }
 0x901   : > { %6892 = vmatpush1.msra.mxu0 %v6742_v56 }
 0x902   : > { %v6692_v51 = vpop.f32.mrf.mxu1  ;;  %6893 = vmatprep.subr.mxu0 %v15666_v0 }
 0x903   : > { %6894 = vmatpush1.msra.mxu0 %v6741_v30  ;;  %v6279_v30 = vld [vmem:[%s14194_s10 + $0xb0] sm:$0xff] }
 0x904   : > { %v13942_v31 = vpop.f32.mrf.mxu1  ;;  %6895 = vmatprep.subr.mxu0 %v15666_v0  ;;  %v6466_v59 = vadd.f32 %v13785_v14, %v6279_v30  ;;  %v6815_v30 = vld [vmem:[#allocation4 + $0x160] sm:$0xff] }
 0x905   : > { %6896 = vmatpush1.msra.mxu0 %v6740_v47 }
 0x906   : > { %v6697_v42 = vpop.f32.mrf.mxu1  ;;  %6897 = vmatprep.subr.mxu0 %v15666_v0  ;;  %v6691_v54 = vadd.f32 %v13936_v5, %v6466_v59  ;;  %v6758_v5 = vmax.f32 %v13921_v2, 0.0  ;;  %v6774_v2 = vld [vmem:[#allocation4 + $0x18] sm:$0xff] }
 0x907   : > { %6898 = vmatpush1.msra.mxu0 %v6739_v40  ;;  %v6278_v40 = vld [vmem:[%s14194_s10 + $0xa8] sm:$0xff]  ;;  %v6696_v42 = vadd.f32 %v13942_v31, %v6471_v49  ;;  %v6818_v49 = vld [vmem:[#allocation4 + $0x178] sm:$0xff] }
 0x908   : > { %v6700_v16 = vpop.f32.mrf.mxu1  ;;  %6899 = vmatprep.subr.mxu0 %v15666_v0  ;;  %v6761_v14 = vmax.f32 %v6691_v54, 0.0  ;;  %v6822_v59 = vld [vmem:[#allocation4 + $0x198] sm:$0xff] }
 0x909   : > { %v6701_v51 = vadd.f32 %v6700_v16, %v6476_v32  ;;  %v6814_v32 = vld [vmem:[#allocation4 + $0x158] sm:$0xff] }
 0x90a   : > { %v6702_v6 = vpop.f32.mrf.mxu1  ;;  %v6826_v54 = vld [vmem:[#allocation4 + $0x1b8] sm:$0xff] }
 0x90b   : > { %v6763_v16 = vmax.f32 %v6701_v51, 0.0  ;;  %v6817_v51 = vld [vmem:[#allocation4 + $0x170] sm:$0xff] }
 0x90c   : > { %v6705_v55 = vpop.f32.mrf.mxu1 }
 0x90d   : > { %v6706_v12 = vadd.f32 %v6705_v55, %v6481_v19  ;;  %v6461_v55 = vadd.f32 %v13783_v53, %v6278_v40  ;;  %v6759_v53 = vmax.f32 %v13927_v7, 0.0  ;;  %v6755_v7 = vmax.f32 %v13873_v18, 0.0  ;;  %v6779_v18 = vld [vmem:[#allocation4 + $0x40] sm:$0xff]  ;;  %v6810_v19 = vld [vmem:[#allocation4 + $0x138] sm:$0xff] }
 0x90e   : > { %v6707_v60 = vpop.f32.mrf.mxu1  ;;  %v6819_v40 = vld [vmem:[#allocation4 + $0x180] sm:$0xff] }
 0x90f   : > { %v6764_v6 = vmax.f32 %v6706_v12, 0.0  ;;  %v6686_v60 = vadd.f32 %v13930_v50, %v6461_v55  ;;  %v6757_v50 = vmax.f32 %v13906_v43, 0.0  ;;  %v6776_v43 = vld [vmem:[#allocation4 + $0x28] sm:$0xff]  ;;  %v6813_v12 = vld [vmem:[#allocation4 + $0x150] sm:$0xff]  ;;  %v6823_v55 = vld [vmem:[#allocation4 + $0x1a0] sm:$0xff] }
 0x910   : > { %v6710_v62 = vpop.f32.mrf.mxu1 }
 0x911   : > { %v6711_v24 = vadd.f32 %v6710_v62, %v6486_v1  ;;  %v6762_v62 = vmax.f32 %v6696_v42, 0.0  ;;  %v6760_v31 = vmax.f32 %v6686_v60, 0.0  ;;  %v6806_v1 = vld [vmem:[#allocation4 + $0x118] sm:$0xff]  ;;  %v6821_v42 = vld [vmem:[#allocation4 + $0x190] sm:$0xff]  ;;  %v6828_v60 = vld [vmem:[#allocation4 + $0x1c8] sm:$0xff] }
 0x912   : > { %v6712_v23 = vpop.f32.mrf.mxu1 }
 0x913   : > { %v6765_v47 = vmax.f32 %v6711_v24, 0.0  ;;  %v6756_v23 = vmax.f32 %v13889_v34, 0.0  ;;  %v6777_v34 = vld [vmem:[#allocation4 + $0x30] sm:$0xff] }
 0x914   : > { %v6715_v44 = vpop.f32.mrf.mxu1  ;;  %v6809_v24 = vld [vmem:[#allocation4 + $0x130] sm:$0xff] }
 0x915   : > { %v6716_v45 = vadd.f32 %v6715_v44, %v6491_v28  ;;  %v6771_v44 = vld [vmem:[#allocation4] sm:$0xff]  ;;  %v6802_v28 = vld [vmem:[#allocation4 + $0xf8] sm:$0xff] }
 0x916   : > { %v6717_v17 = vpop.f32.mrf.mxu1 }
 0x917   : > { %v6766_v56 = vmax.f32 %v6716_v45, 0.0  ;;  %v6773_v17 = vld [vmem:[#allocation4 + $0x10] sm:$0xff] }
 0x918   : > { %v6720_v3 = vpop.f32.mrf.mxu1  ;;  %v6805_v45 = vld [vmem:[#allocation4 + $0x110] sm:$0xff] }
 0x919   : > { %v6721_v22 = vadd.f32 %v6720_v3, %v6496_v8  ;;  %v6775_v3 = vld [vmem:[#allocation4 + $0x20] sm:$0xff]  ;;  %v6798_v8 = vld [vmem:[#allocation4 + $0xd8] sm:$0xff] }
 0x91a   : > { %v6722_v48 = vpop.f32.mrf.mxu1 }
 0x91b   : > { %v6767_v20 = vmax.f32 %v6721_v22, 0.0  ;;  %v6778_v48 = vld [vmem:[#allocation4 + $0x38] sm:$0xff]  ;;  %v6801_v22 = vld [vmem:[#allocation4 + $0xf0] sm:$0xff] }
 0x91c   : > { %v6725_v38 = vpop.f32.mrf.mxu1 }
 0x91d   : > { %v6726_v26 = vadd.f32 %v6725_v38, %v6501_v33  ;;  %v6780_v38 = vld [vmem:[#allocation4 + $0x48] sm:$0xff]  ;;  %v6791_v33 = vld [vmem:[#allocation4 + $0xa0] sm:$0xff] }
 0x91e   : > { %v6727_v52 = vpop.f32.mrf.mxu1 }
 0x91f   : > { %v6768_v58 = vmax.f32 %v6726_v26, 0.0  ;;  %v6782_v52 = vld [vmem:[#allocation4 + $0x58] sm:$0xff]  ;;  %v6797_v26 = vld [vmem:[#allocation4 + $0xd0] sm:$0xff] }
 0x920   : > { %v6730_v10 = vpop.f32.mrf.mxu1 }
 0x921   : > { %v6731_v27 = vadd.f32 %v6730_v10, %v6506_v11  ;;  %v6786_v10 = vld [vmem:[#allocation4 + $0x78] sm:$0xff]  ;;  %v6787_v11 = vld [vmem:[#allocation4 + $0x80] sm:$0xff] }
 0x922   : > { %v6732_v37 = vpop.f32.mrf.mxu1 }
 0x923   : > { %v6769_v13 = vmax.f32 %v6731_v27, 0.0  ;;  %v6788_v37 = vld [vmem:[#allocation4 + $0x88] sm:$0xff]  ;;  %v6794_v27 = vld [vmem:[#allocation4 + $0xb8] sm:$0xff] }
 0x924   : > { %v6735_v41 = vpop.f32.mrf.mxu1 }
 0x925   : > { %v6736_v9 = vadd.f32 %v6735_v41, %v6511_v57  ;;  %v6790_v57 = vld [vmem:[#allocation4 + $0x98] sm:$0xff]  ;;  %v6792_v41 = vld [vmem:[#allocation4 + $0xa8] sm:$0xff] }
 0x926   : > { %v6737_v25 = vpop.f32.mrf.mxu1 }
 0x927   : > { %v6770_v21 = vmax.f32 %v6736_v9, 0.0  ;;  %v6793_v9 = vld [vmem:[#allocation4 + $0xb0] sm:$0xff]  ;;  %v6795_v25 = vld [vmem:[#allocation4 + $0xc0] sm:$0xff] }
 0x929   : > { %6900 = vmatpush2.msra.mxu0 %v6770_v21  ;;  %v6800_v21 = vld [vmem:[#allocation4 + $0xe8] sm:$0xff] }
 0x92a   : > { %6901 = vmatprep.subr.mxu0 %v15666_v0 }
 0x92b   : > { %6902 = vmatpush2.msra.mxu0 %v6769_v13  ;;  %v6804_v13 = vld [vmem:[#allocation4 + $0x108] sm:$0xff] }
 0x92c   : > { %6903 = vmatprep.subr.mxu0 %v15666_v0 }
 0x92d   : > { %6904 = vmatpush2.msra.mxu0 %v6768_v58  ;;  %v6808_v58 = vld [vmem:[#allocation4 + $0x128] sm:$0xff] }
 0x92e   : > { %6905 = vmatprep.subr.mxu0 %v15666_v0 }
 0x92f   : > { %6906 = vmatpush2.msra.mxu0 %v6767_v20  ;;  %v6812_v20 = vld [vmem:[#allocation4 + $0x148] sm:$0xff] }
 0x930   : > { %6907 = vmatprep.subr.mxu0 %v15666_v0 }
 0x931   : > { %6908 = vmatpush2.msra.mxu0 %v6766_v56  ;;  %v6816_v56 = vld [vmem:[#allocation4 + $0x168] sm:$0xff] }
 0x932   : > { %6909 = vmatprep.subr.mxu0 %v15666_v0 }
 0x933   : > { %6910 = vmatpush2.msra.mxu0 %v6765_v47  ;;  %v6820_v47 = vld [vmem:[#allocation4 + $0x188] sm:$0xff] }
 0x934   : > { %6911 = vmatprep.subr.mxu0 %v15666_v0 }
 0x935   : > { %6912 = vmatpush2.msra.mxu0 %v6764_v6  ;;  %v6824_v6 = vld [vmem:[#allocation4 + $0x1a8] sm:$0xff] }
 0x936   : > { %6913 = vmatprep.subr.mxu0 %v15666_v0 }
 0x937   : > { %6914 = vmatpush2.msra.mxu0 %v6763_v16  ;;  %v6825_v16 = vld [vmem:[#allocation4 + $0x1b0] sm:$0xff] }
 0x938   : > { %6915 = vmatprep.subr.mxu0 %v15666_v0 }
 0x939   : > { %6916 = vmatpush2.msra.mxu0 %v6762_v62  ;;  %v6827_v62 = vld [vmem:[#allocation4 + $0x1c0] sm:$0xff] }
 0x93a   : > { %6917 = vmatprep.subr.mxu0 %v15666_v0 }
 0x93b   : > { %6918 = vmatpush2.msra.mxu0 %v6761_v14  ;;  %v6830_v14 = vld [vmem:[#allocation4 + $0x1d8] sm:$0xff] }
 0x93c   : > { %6919 = vmatprep.subr.mxu0 %v15666_v0 }
 0x93d   : > { %6920 = vmatpush2.msra.mxu0 %v6760_v31  ;;  %v6829_v31 = vld [vmem:[#allocation4 + $0x1d0] sm:$0xff] }
 0x93e   : > { %6921 = vmatprep.subr.mxu0 %v15666_v0 }
 0x93f   : > { %6922 = vmatpush2.msra.mxu0 %v6759_v53  ;;  %v6832_v53 = vld [vmem:[#allocation4 + $0x1e8] sm:$0xff] }
 0x940   : > { %6923 = vmatprep.subr.mxu0 %v15666_v0 }
 0x941   : > { %6924 = vmatpush2.msra.mxu0 %v6758_v5  ;;  %v6831_v5 = vld [vmem:[#allocation4 + $0x1e0] sm:$0xff] }
 0x942   : > { %6925 = vmatprep.subr.mxu0 %v15666_v0 }
 0x943   : > { %6926 = vmatpush2.msra.mxu0 %v6757_v50  ;;  %v6834_v50 = vld [vmem:[#allocation4 + $0x1f8] sm:$0xff] }
 0x944   : > { %6927 = vmatprep.subr.mxu0 %v15666_v0 }
 0x945   : > { %6928 = vmatpush2.msra.mxu0 %v6756_v23  ;;  %v6833_v23 = vld [vmem:[#allocation4 + $0x1f0] sm:$0xff] }
 0x946   : > { %6929 = vmatprep.subr.mxu0 %v15666_v0  ;;  %v6781_v0 = vld [vmem:[#allocation4 + $0x50] sm:$0xff] }
 0x947   : > { %6930 = vmatpush2.msra.mxu0 %v6755_v7  ;;  %v6835_v7 = vld [vmem:[%s14196_s12] sm:$0xff] }
 0x948   : > { %6932 = vmatmul.mubr.f32.vlgmr.msra.gmra.mxu0 %v6771_v44 }
 0x949   : > { %6936 = vmatprep.mubr.f32.mxu0 %v6774_v2 }
 0x94c   : > { %6937 = vmatmul.mubr.f32.gmra.mxu0 %v6773_v17 }
 0x94d   : > { %6941 = vmatprep.mubr.f32.mxu0 %v6776_v43  ;;  %v6836_v43 = vld [vmem:[%s14196_s12 + $0x8] sm:$0xff] }
 0x950   : > { %6942 = vmatmul.mubr.f32.gmra.mxu0 %v6775_v3 }
 0x951   : > { %6946 = vmatprep.mubr.f32.mxu0 %v6778_v48 }
 0x954   : > { %6947 = vmatmul.mubr.f32.gmra.mxu0 %v6777_v34 }
 0x955   : > { %6951 = vmatprep.mubr.f32.mxu0 %v6780_v38  ;;  %v6837_v38 = vld [vmem:[%s14196_s12 + $0x10] sm:$0xff] }
 0x958   : > { %6952 = vmatmul.mubr.f32.gmra.mxu0 %v6779_v18 }
 0x959   : > { %6956 = vmatprep.mubr.f32.mxu0 %v6782_v52 }
 0x95c   : > { %6957 = vmatmul.mubr.f32.gmra.mxu0 %v6781_v0 }
 0x95d   : > { %6961 = vmatprep.mubr.f32.mxu0 %v6784_v39  ;;  %v6838_v39 = vld [vmem:[%s14196_s12 + $0x18] sm:$0xff] }
 0x960   : > { %6962 = vmatmul.mubr.f32.gmra.mxu0 %v6783_v63 }
 0x961   : > { %6966 = vmatprep.mubr.f32.mxu0 %v6786_v10 }
 0x964   : > { %6967 = vmatmul.mubr.f32.gmra.mxu0 %v6785_v35 }
 0x965   : > { %6971 = vmatprep.mubr.f32.mxu0 %v6788_v37  ;;  %v6839_v37 = vld [vmem:[%s14196_s12 + $0x20] sm:$0xff] }
 0x968   : > { %6972 = vmatmul.mubr.f32.gmra.mxu0 %v6787_v11 }
 0x969   : > { %6976 = vmatprep.mubr.f32.mxu0 %v6790_v57 }
 0x96c   : > { %6977 = vmatmul.mubr.f32.gmra.mxu0 %v6789_v36 }
 0x96d   : > { %6981 = vmatprep.mubr.f32.mxu0 %v6792_v41  ;;  %v6840_v41 = vld [vmem:[%s14196_s12 + $0x28] sm:$0xff] }
 0x970   : > { %6982 = vmatmul.mubr.f32.gmra.mxu0 %v6791_v33 }
 0x971   : > { %6986 = vmatprep.mubr.f32.mxu0 %v6794_v27 }
 0x974   : > { %6987 = vmatmul.mubr.f32.gmra.mxu0 %v6793_v9 }
 0x975   : > { %6991 = vmatprep.mubr.f32.mxu0 %v6796_v46  ;;  %v6841_v46 = vld [vmem:[%s14196_s12 + $0x30] sm:$0xff] }
 0x978   : > { %6992 = vmatmul.mubr.f32.gmra.mxu0 %v6795_v25 }
 0x979   : > { %6996 = vmatprep.mubr.f32.mxu0 %v6798_v8 }
 0x97c   : > { %6997 = vmatmul.mubr.f32.gmra.mxu0 %v6797_v26 }
 0x97d   : > { %7001 = vmatprep.mubr.f32.mxu0 %v6800_v21  ;;  %v6842_v21 = vld [vmem:[%s14196_s12 + $0x38] sm:$0xff] }
 0x980   : > { %7002 = vmatmul.mubr.f32.gmra.mxu0 %v6799_v61 }
 0x981   : > { %7006 = vmatprep.mubr.f32.mxu0 %v6802_v28 }
 0x984   : > { %7007 = vmatmul.mubr.f32.gmra.mxu0 %v6801_v22 }
 0x985   : > { %7011 = vmatprep.mubr.f32.mxu0 %v6804_v13  ;;  %v6843_v13 = vld [vmem:[%s14196_s12 + $0x40] sm:$0xff] }
 0x988   : > { %7012 = vmatmul.mubr.f32.gmra.mxu0 %v6803_v15 }
 0x989   : > { %7016 = vmatprep.mubr.f32.mxu0 %v6806_v1 }
 0x98c   : > { %7017 = vmatmul.mubr.f32.gmra.mxu0 %v6805_v45 }
 0x98d   : > { %7021 = vmatprep.mubr.f32.mxu0 %v6808_v58  ;;  %v6844_v58 = vld [vmem:[%s14196_s12 + $0x48] sm:$0xff] }
 0x990   : > { %7022 = vmatmul.mubr.f32.gmra.mxu0 %v6807_v29 }
 0x991   : > { %7026 = vmatprep.mubr.f32.mxu0 %v6810_v19 }
 0x994   : > { %7027 = vmatmul.mubr.f32.gmra.mxu0 %v6809_v24 }
 0x995   : > { %7031 = vmatprep.mubr.f32.mxu0 %v6812_v20  ;;  %v6845_v20 = vld [vmem:[%s14196_s12 + $0x50] sm:$0xff] }
 0x998   : > { %7032 = vmatmul.mubr.f32.gmra.mxu0 %v6811_v4 }
 0x999   : > { %7036 = vmatprep.mubr.f32.mxu0 %v6814_v32 }
 0x99c   : > { %7037 = vmatmul.mubr.f32.gmra.mxu0 %v6813_v12 }
 0x99d   : > { %7041 = vmatprep.mubr.f32.mxu0 %v6816_v56  ;;  %v6846_v56 = vld [vmem:[%s14196_s12 + $0x58] sm:$0xff] }
 0x9a0   : > { %7042 = vmatmul.mubr.f32.gmra.mxu0 %v6815_v30 }
 0x9a1   : > { %7046 = vmatprep.mubr.f32.mxu0 %v6818_v49 }
 0x9a4   : > { %7047 = vmatmul.mubr.f32.gmra.mxu0 %v6817_v51 }
 0x9a5   : > { %7051 = vmatprep.mubr.f32.mxu0 %v6820_v47  ;;  %v6847_v47 = vld [vmem:[%s14196_s12 + $0x60] sm:$0xff] }
 0x9a8   : > { %7052 = vmatmul.mubr.f32.gmra.mxu0 %v6819_v40 }
 0x9a9   : > { %7056 = vmatprep.mubr.f32.mxu0 %v6822_v59 }
 0x9ac   : > { %7057 = vmatmul.mubr.f32.gmra.mxu0 %v6821_v42 }
 0x9ad   : > { %7061 = vmatprep.mubr.f32.mxu0 %v6824_v6  ;;  %v6848_v6 = vld [vmem:[%s14196_s12 + $0x68] sm:$0xff] }
 0x9b0   : > { %7062 = vmatmul.mubr.f32.gmra.mxu0 %v6823_v55 }
 0x9b1   : > { %7066 = vmatprep.mubr.f32.mxu0 %v6826_v54 }
 0x9b4   : > { %7067 = vmatmul.mubr.f32.gmra.mxu0 %v6825_v16 }
 0x9b5   : > { %7071 = vmatprep.mubr.f32.mxu0 %v6828_v60  ;;  %v6849_v60 = vld [vmem:[%s14196_s12 + $0x70] sm:$0xff] }
 0x9b8   : > { %7072 = vmatmul.mubr.f32.gmra.mxu0 %v6827_v62 }
 0x9b9   : > { %7076 = vmatprep.mubr.f32.mxu0 %v6830_v14 }
 0x9bc   : > { %7077 = vmatmul.mubr.f32.gmra.mxu0 %v6829_v31 }
 0x9bd   : > { %7081 = vmatprep.mubr.f32.mxu0 %v6832_v53  ;;  %v6850_v53 = vld [vmem:[%s14196_s12 + $0x78] sm:$0xff] }
 0x9c0   : > { %7082 = vmatmul.mubr.f32.gmra.mxu0 %v6831_v5 }
 0x9c1   : > { %7086 = vmatprep.mubr.f32.mxu0 %v6834_v50 }
 0x9c4   : > { %7087 = vmatmul.mubr.f32.gmra.mxu0 %v6833_v23 }
 0xa08   : > { %v6933_v44 = vpop.f32.mrf.mxu0 }
 0xa09   : > { %v6934_v2 = vadd.f32 %v6933_v44, %v6835_v7  ;;  %v6851_v7 = vld [vmem:[%s14196_s12 + $0x80] sm:$0xff] }
 0xa0a   : > { %v6935_v17 = vpop.f32.mrf.mxu0 }
 0xa0b   : > { %7092 = vst.msk [vmem:[%s11950_s23] sm:$0xff] %vm504_vm3, %v6934_v2 }
 0xa0c   : > { %v6938_v3 = vpop.f32.mrf.mxu0 }
 0xa0d   : > { %v6939_v48 = vadd.f32 %v6938_v3, %v6836_v43  ;;  %v6852_v43 = vld [vmem:[%s14196_s12 + $0x88] sm:$0xff] }
 0xa0e   : > { %v6940_v34 = vpop.f32.mrf.mxu0 }
 0xa0f   : > { %7093 = vst.msk [vmem:[%s11950_s23 + $0x8] sm:$0xff] %vm504_vm3, %v6939_v48 }
 0xa10   : > { %v6943_v18 = vpop.f32.mrf.mxu0 }
 0xa11   : > { %v6944_v52 = vadd.f32 %v6943_v18, %v6837_v38  ;;  %v6853_v38 = vld [vmem:[%s14196_s12 + $0x90] sm:$0xff] }
 0xa12   : > { %v6945_v0 = vpop.f32.mrf.mxu0 }
 0xa13   : > { %7094 = vst.msk [vmem:[%s11950_s23 + $0x10] sm:$0xff] %vm504_vm3, %v6944_v52 }
 0xa14   : > { %v6948_v63 = vpop.f32.mrf.mxu0 }
 0xa15   : > { %v6949_v10 = vadd.f32 %v6948_v63, %v6838_v39  ;;  %v6854_v39 = vld [vmem:[%s14196_s12 + $0x98] sm:$0xff] }
 0xa16   : > { %v6950_v35 = vpop.f32.mrf.mxu0 }
 0xa17   : > { %7095 = vst.msk [vmem:[%s11950_s23 + $0x18] sm:$0xff] %vm504_vm3, %v6949_v10 }
 0xa18   : > { %v6953_v11 = vpop.f32.mrf.mxu0 }
 0xa19   : > { %v6954_v57 = vadd.f32 %v6953_v11, %v6839_v37  ;;  %v6855_v37 = vld [vmem:[%s14196_s12 + $0xa0] sm:$0xff] }
 0xa1a   : > { %v6955_v36 = vpop.f32.mrf.mxu0 }
 0xa1b   : > { %7096 = vst.msk [vmem:[%s11950_s23 + $0x20] sm:$0xff] %vm504_vm3, %v6954_v57 }
 0xa1c   : > { %v6958_v33 = vpop.f32.mrf.mxu0 }
 0xa1d   : > { %v6959_v27 = vadd.f32 %v6958_v33, %v6840_v41  ;;  %v6856_v41 = vld [vmem:[%s14196_s12 + $0xa8] sm:$0xff] }
 0xa1e   : > { %v6960_v9 = vpop.f32.mrf.mxu0 }
 0xa1f   : > { %7097 = vst.msk [vmem:[%s11950_s23 + $0x28] sm:$0xff] %vm504_vm3, %v6959_v27 }
 0xa20   : > { %v6963_v25 = vpop.f32.mrf.mxu0 }
 0xa21   : > { %v6964_v8 = vadd.f32 %v6963_v25, %v6841_v46  ;;  %v6857_v46 = vld [vmem:[%s14196_s12 + $0xb0] sm:$0xff] }
 0xa22   : > { %v6965_v26 = vpop.f32.mrf.mxu0 }
 0xa23   : > { %7098 = vst.msk [vmem:[%s11950_s23 + $0x30] sm:$0xff] %vm504_vm3, %v6964_v8 }
 0xa24   : > { %v6968_v61 = vpop.f32.mrf.mxu0 }
 0xa25   : > { %v6969_v28 = vadd.f32 %v6968_v61, %v6842_v21  ;;  %v6858_v21 = vld [vmem:[%s14196_s12 + $0xb8] sm:$0xff] }
 0xa26   : > { %v6970_v22 = vpop.f32.mrf.mxu0 }
 0xa27   : > { %7099 = vst.msk [vmem:[%s11950_s23 + $0x38] sm:$0xff] %vm504_vm3, %v6969_v28 }
 0xa28   : > { %v6973_v15 = vpop.f32.mrf.mxu0 }
 0xa29   : > { %v6974_v1 = vadd.f32 %v6973_v15, %v6843_v13  ;;  %v6859_v13 = vld [vmem:[%s14196_s12 + $0xc0] sm:$0xff] }
 0xa2a   : > { %v6975_v45 = vpop.f32.mrf.mxu0 }
 0xa2b   : > { %7100 = vst.msk [vmem:[%s11950_s23 + $0x40] sm:$0xff] %vm504_vm3, %v6974_v1 }
 0xa2c   : > { %v6978_v29 = vpop.f32.mrf.mxu0 }
 0xa2d   : > { %v6979_v19 = vadd.f32 %v6978_v29, %v6844_v58  ;;  %v6860_v58 = vld [vmem:[%s14196_s12 + $0xc8] sm:$0xff] }
 0xa2e   : > { %v6980_v24 = vpop.f32.mrf.mxu0 }
 0xa2f   : > { %7101 = vst.msk [vmem:[%s11950_s23 + $0x48] sm:$0xff] %vm504_vm3, %v6979_v19 }
 0xa30   : > { %v6983_v4 = vpop.f32.mrf.mxu0 }
 0xa31   : > { %v6984_v32 = vadd.f32 %v6983_v4, %v6845_v20  ;;  %v6861_v20 = vld [vmem:[%s14196_s12 + $0xd0] sm:$0xff] }
 0xa32   : > { %v6985_v12 = vpop.f32.mrf.mxu0 }
 0xa33   : > { %7102 = vst.msk [vmem:[%s11950_s23 + $0x50] sm:$0xff] %vm504_vm3, %v6984_v32 }
 0xa34   : > { %v6988_v30 = vpop.f32.mrf.mxu0 }
 0xa35   : > { %v6989_v49 = vadd.f32 %v6988_v30, %v6846_v56  ;;  %v6862_v56 = vld [vmem:[%s14196_s12 + $0xd8] sm:$0xff] }
 0xa36   : > { %v6990_v51 = vpop.f32.mrf.mxu0 }
 0xa37   : > { %7103 = vst.msk [vmem:[%s11950_s23 + $0x58] sm:$0xff] %vm504_vm3, %v6989_v49 }
 0xa38   : > { %v6993_v40 = vpop.f32.mrf.mxu0 }
 0xa39   : > { %v6994_v59 = vadd.f32 %v6993_v40, %v6847_v47  ;;  %v6863_v47 = vld [vmem:[%s14196_s12 + $0xe0] sm:$0xff] }
 0xa3a   : > { %v6995_v42 = vpop.f32.mrf.mxu0 }
 0xa3b   : > { %7104 = vst.msk [vmem:[%s11950_s23 + $0x60] sm:$0xff] %vm504_vm3, %v6994_v59 }
 0xa3c   : > { %v6998_v55 = vpop.f32.mrf.mxu0 }
 0xa3d   : > { %v6999_v54 = vadd.f32 %v6998_v55, %v6848_v6  ;;  %v6864_v6 = vld [vmem:[%s14196_s12 + $0xe8] sm:$0xff] }
 0xa3e   : > { %v7000_v16 = vpop.f32.mrf.mxu0 }
 0xa3f   : > { %7105 = vst.msk [vmem:[%s11950_s23 + $0x68] sm:$0xff] %vm504_vm3, %v6999_v54 }
 0xa40   : > { %v7003_v62 = vpop.f32.mrf.mxu0 }
 0xa41   : > { %v7004_v14 = vadd.f32 %v7003_v62, %v6849_v60  ;;  %v6865_v60 = vld [vmem:[%s14196_s12 + $0xf0] sm:$0xff] }
 0xa42   : > { %v7005_v31 = vpop.f32.mrf.mxu0 }
 0xa43   : > { %7106 = vst.msk [vmem:[%s11950_s23 + $0x70] sm:$0xff] %vm504_vm3, %v7004_v14 }
 0xa44   : > { %v7008_v5 = vpop.f32.mrf.mxu0 }
 0xa45   : > { %v7009_v50 = vadd.f32 %v7008_v5, %v6850_v53  ;;  %v6866_v53 = vld [vmem:[%s14196_s12 + $0xf8] sm:$0xff] }
 0xa46   : > { %v7010_v23 = vpop.f32.mrf.mxu0 }
 0xa47   : > { %7107 = vst.msk [vmem:[%s11950_s23 + $0x78] sm:$0xff] %vm504_vm3, %v7009_v50 }
 0xa48   : > { %v7013_v44 = vpop.f32.mrf.mxu0 }
 0xa49   : > { %v7014_v2 = vadd.f32 %v7013_v44, %v6851_v7 }
 0xa4a   : > { %v7015_v17 = vpop.f32.mrf.mxu0 }
 0xa4b   : > { %7108 = vst.msk [vmem:[%s11950_s23 + $0x80] sm:$0xff] %vm504_vm3, %v7014_v2 }
 0xa4c   : > { %v7018_v3 = vpop.f32.mrf.mxu0 }
 0xa4d   : > { %v7019_v48 = vadd.f32 %v7018_v3, %v6852_v43 }
 0xa4e   : > { %v7020_v34 = vpop.f32.mrf.mxu0 }
 0xa4f   : > { %7109 = vst.msk [vmem:[%s11950_s23 + $0x88] sm:$0xff] %vm504_vm3, %v7019_v48 }
 0xa50   : > { %v7023_v18 = vpop.f32.mrf.mxu0 }
 0xa51   : > { %v7024_v52 = vadd.f32 %v7023_v18, %v6853_v38 }
 0xa52   : > { %v7025_v0 = vpop.f32.mrf.mxu0 }
 0xa53   : > { %7110 = vst.msk [vmem:[%s11950_s23 + $0x90] sm:$0xff] %vm504_vm3, %v7024_v52 }
 0xa54   : > { %v7028_v63 = vpop.f32.mrf.mxu0 }
 0xa55   : > { %v7029_v10 = vadd.f32 %v7028_v63, %v6854_v39 }
 0xa56   : > { %v7030_v35 = vpop.f32.mrf.mxu0 }
 0xa57   : > { %7111 = vst.msk [vmem:[%s11950_s23 + $0x98] sm:$0xff] %vm504_vm3, %v7029_v10 }
 0xa58   : > { %v7033_v11 = vpop.f32.mrf.mxu0 }
 0xa59   : > { %v7034_v57 = vadd.f32 %v7033_v11, %v6855_v37 }
 0xa5a   : > { %v7035_v36 = vpop.f32.mrf.mxu0 }
 0xa5b   : > { %7112 = vst.msk [vmem:[%s11950_s23 + $0xa0] sm:$0xff] %vm504_vm3, %v7034_v57 }
 0xa5c   : > { %v7038_v33 = vpop.f32.mrf.mxu0 }
 0xa5d   : > { %v7039_v27 = vadd.f32 %v7038_v33, %v6856_v41 }
 0xa5e   : > { %v7040_v9 = vpop.f32.mrf.mxu0 }
 0xa5f   : > { %7113 = vst.msk [vmem:[%s11950_s23 + $0xa8] sm:$0xff] %vm504_vm3, %v7039_v27 }
 0xa60   : > { %v7043_v25 = vpop.f32.mrf.mxu0 }
 0xa61   : > { %v7044_v8 = vadd.f32 %v7043_v25, %v6857_v46 }
 0xa62   : > { %v7045_v26 = vpop.f32.mrf.mxu0 }
 0xa63   : > { %7114 = vst.msk [vmem:[%s11950_s23 + $0xb0] sm:$0xff] %vm504_vm3, %v7044_v8 }
 0xa64   : > { %v7048_v61 = vpop.f32.mrf.mxu0 }
 0xa65   : > { %v7049_v28 = vadd.f32 %v7048_v61, %v6858_v21 }
 0xa66   : > { %v7050_v22 = vpop.f32.mrf.mxu0 }
 0xa67   : > { %7115 = vst.msk [vmem:[%s11950_s23 + $0xb8] sm:$0xff] %vm504_vm3, %v7049_v28 }
 0xa68   : > { %v7053_v15 = vpop.f32.mrf.mxu0 }
 0xa69   : > { %v7054_v1 = vadd.f32 %v7053_v15, %v6859_v13 }
 0xa6a   : > { %v7055_v45 = vpop.f32.mrf.mxu0 }
 0xa6b   : > { %7116 = vst.msk [vmem:[%s11950_s23 + $0xc0] sm:$0xff] %vm504_vm3, %v7054_v1 }
 0xa6c   : > { %v7058_v29 = vpop.f32.mrf.mxu0 }
 0xa6d   : > { %v7059_v19 = vadd.f32 %v7058_v29, %v6860_v58 }
 0xa6e   : > { %v7060_v24 = vpop.f32.mrf.mxu0 }
 0xa6f   : > { %7117 = vst.msk [vmem:[%s11950_s23 + $0xc8] sm:$0xff] %vm504_vm3, %v7059_v19 }
 0xa70   : > { %v7063_v4 = vpop.f32.mrf.mxu0 }
 0xa71   : > { %v7064_v32 = vadd.f32 %v7063_v4, %v6861_v20 }
 0xa72   : > { %v7065_v12 = vpop.f32.mrf.mxu0 }
 0xa73   : > { %7118 = vst.msk [vmem:[%s11950_s23 + $0xd0] sm:$0xff] %vm504_vm3, %v7064_v32 }
 0xa74   : > { %v7068_v30 = vpop.f32.mrf.mxu0 }
 0xa75   : > { %v7069_v49 = vadd.f32 %v7068_v30, %v6862_v56 }
 0xa76   : > { %v7070_v51 = vpop.f32.mrf.mxu0 }
 0xa77   : > { %7119 = vst.msk [vmem:[%s11950_s23 + $0xd8] sm:$0xff] %vm504_vm3, %v7069_v49 }
 0xa78   : > { %v7073_v40 = vpop.f32.mrf.mxu0 }
 0xa79   : > { %v7074_v59 = vadd.f32 %v7073_v40, %v6863_v47 }
 0xa7a   : > { %v7075_v42 = vpop.f32.mrf.mxu0 }
 0xa7b   : > { %7120 = vst.msk [vmem:[%s11950_s23 + $0xe0] sm:$0xff] %vm504_vm3, %v7074_v59 }
 0xa7c   : > { %v7078_v55 = vpop.f32.mrf.mxu0 }
 0xa7d   : > { %v7079_v54 = vadd.f32 %v7078_v55, %v6864_v6 }
 0xa7e   : > { %v7080_v16 = vpop.f32.mrf.mxu0 }
 0xa7f   : > { %7121 = vst.msk [vmem:[%s11950_s23 + $0xe8] sm:$0xff] %vm504_vm3, %v7079_v54 }
 0xa80   : > { %v7083_v62 = vpop.f32.mrf.mxu0 }
 0xa81   : > { %v7084_v14 = vadd.f32 %v7083_v62, %v6865_v60 }
 0xa82   : > { %v7085_v31 = vpop.f32.mrf.mxu0 }
 0xa83   : > { %7122 = vst.msk [vmem:[%s11950_s23 + $0xf0] sm:$0xff] %vm504_vm3, %v7084_v14 }
 0xa84   : > { %v7088_v5 = vpop.f32.mrf.mxu0 }
 0xa85   : > { %v7089_v50 = vadd.f32 %v7088_v5, %v6866_v53 }
 0xa86   : > { %v7090_v23 = vpop.f32.mrf.mxu0 }
 0xa87   : > { %7123 = vst.msk [vmem:[%s11950_s23 + $0xf8] sm:$0xff] %vm504_vm3, %v7089_v50 }
 0xa88 PF: > { %s25_s27 = sadd.s32 1, %s7569_s27   ;;  %s15667_s21 = sld [smem:[#allocation8_spill]] }
 0xa89   : > { %p22_p3 = scmp.ge.s32.totalorder %s25_s27, 4   ;;  %s15668_s25 = smov %s7565_s26 }
 0xa8b   :  { %24 = sbr.rel (!%p22_p3) target bundleno = 3 (0x3), region = 119 }
 0xa8e   : > { %s15669_s26 = smov %s15667_s21 }
 0xa90   :  { %7145 = vsyncpa [#allocation3], 1 }
 0xa91   :  { %7147 = vsyncpa [#allocation3 + $0x1], 1 }
 0xa92   :  { %7148 = vsyncpa [#allocation5], 1 }

</bundles_post_ra>
